<compile_context>
chip_gen: v7x
topology: tpu7x:2x2x1
jax: 0.10.0
libtpu: 0.0.40
codegen_flags: <defaults>
</compile_context>

<pallas_src>
import jax
import jax.numpy as jnp
from jax import lax
from jax.experimental import pallas as pl
from jax.experimental.pallas import tpu as pltpu

BN_EPS = 1e-5
C_PAD = 128    # channel lanes (every conv channel axis lives in 128 lanes)
F_PAD = 256    # fc output lanes (200 -> 256), sliced back in the wrapper
K_FC = 1024    # fc input features = 32 channels * 32 width
W_IMG = 32     # spatial width required by the module (fc expects 32 * 1 * 32 == 1024)
CH3 = 32       # conv3 output channels


# --------------------------------------------------------------------------- in-kernel helpers

def _shift_w(y, s, wcoord):
    """xs[r] = y[row at width w+s of the same (n, h) block], 0 outside [0, W).

    One global sublane rotate + one row-validity mask per width shift s (np.roll
    semantics: out[r] = in[(r - shift) mod rows], so shift = -s gives out[r] = in[r + s]).
    Rows that would cross an (n, h) block are exactly the masked ones.
    """
    if s == 0:
        return y
    rows = y.shape[0]
    valid = jnp.logical_and(wcoord + s >= 0, wcoord + s < W_IMG)
    return jnp.where(valid, pltpu.roll(y, (-s) % rows, 0), 0.0)


def _conv_taps(y, n, hin, kh, kw, pw):
    """Yield (tap, patch) for every kernel tap; patch is (n*hout*W_IMG, C_PAD).

    The width shift/mask is applied once per kernel column j; the H shift is a cheap,
    32-row-aligned slice of the reshaped activation.
    """
    hout = hin - kh + 1
    m = n * hout * W_IMG
    rows = n * hin * W_IMG
    wcoord = lax.broadcasted_iota(jnp.int32, (rows, C_PAD), 0) & (W_IMG - 1)
    for j in range(kw):
        xs4 = _shift_w(y, j - pw, wcoord).reshape(n, hin, W_IMG, C_PAD)
        for i in range(kh):
            yield i * kw + j, xs4[:, i:i + hout].reshape(m, C_PAD)


def _conv1_vpu(xb, n, hin, w1):
    """Conv2d(1, 16, (2, 9), W-pad 4): cin == 1, so one VPU broadcast-MAC per tap (no MXU)."""
    kh, kw, pw = 2, 9, 4
    acc = jnp.zeros((n * (hin - kh + 1) * W_IMG, C_PAD), jnp.float32)
    for tap, patch in _conv_taps(xb, n, hin, kh, kw, pw):
        acc = acc + patch * w1[tap:tap + 1, :]
    return acc


def _conv_im2col(y, n, hin, kh, kw, pw, cin, w_ref):
    """Conv as ONE MXU dot: taps*cin packed densely into the K/lane axis ("lane im2col").

    y lanes [cin, 128) are exactly zero, so a plain lane rotate places each tap's cin
    channels at lanes [tap*cin, tap*cin + cin) of its 128-lane K block with no masking.
    """
    hout = hin - kh + 1
    m = n * hout * W_IMG
    nblk = pl.cdiv(kh * kw * cin, C_PAD)
    blocks = [jnp.zeros((m, C_PAD), jnp.float32) for _ in range(nblk)]
    for tap, patch in _conv_taps(y, n, hin, kh, kw, pw):
        blk, off = divmod(tap * cin, C_PAD)
        blocks[blk] = blocks[blk] + (pltpu.roll(patch, off, 1) if off else patch)
    lhs = blocks[0] if nblk == 1 else jnp.concatenate(blocks, axis=1)
    w = w_ref[...]
    return jnp.dot(lhs.astype(w.dtype), w, preferred_element_type=jnp.float32)


def _bn_relu(acc, p):
    """Train-mode BatchNorm2d (biased batch stats over N*H*W per channel) + ReLU.

    p rows: [conv bias, bn gamma, bn beta]; padded lanes are zero so padded channels stay 0.
    Sum and sum-of-squares are produced by a single reduction pass.
    """
    m = acc.shape[0]
    acc = acc + p[0:1, :]
    stats = jnp.sum(jnp.concatenate([acc, acc * acc], axis=0).reshape(2, m, C_PAD), axis=1)
    stats = stats * (1.0 / m)
    mean = stats[0:1, :]
    var = jnp.maximum(stats[1:2, :] - mean * mean, 0.0)
    scale = p[1:2, :] * lax.rsqrt(var + BN_EPS)
    shift = p[2:3, :] - mean * scale
    return jnp.maximum(acc * scale + shift, 0.0)


def _fc_relu(y3, n, wfc_ref, bfc_ref):
    """view(-1, 1024) + Linear(1024, 200) + ReLU as a single (n, 1024) @ (1024, 256) dot.

    The flatten is realized by a log2(32)-stage shift-reduce tree of uniform lane rotates:
    row (n, w)'s 32 channels land at lanes [w*32, w*32+32) and the 32 rows of each sample
    are summed into one dense 1024-lane feature row (order w*32 + c, matched by the host-side
    fc weight packing). Disjoint lane supports make the tree exact.
    """
    m3 = y3.shape[0]
    a = jnp.concatenate([y3, jnp.zeros((m3, K_FC - C_PAD), jnp.float32)], axis=1)
    a = a.reshape(n, W_IMG, K_FC)
    h = W_IMG // 2
    while h >= 1:
        a = a[:, :h, :] + pltpu.roll(a[:, h:2 * h, :], CH3 * h, 2)
        h //= 2
    ytr = a.reshape(n, K_FC)
    w = wfc_ref[...]
    z = jnp.dot(ytr.astype(w.dtype), w, preferred_element_type=jnp.float32)
    return jnp.maximum(z + bfc_ref[...], 0.0)


def _conv_body_kernel(x_ref, w1_ref, p1_ref, w2_ref, p2_ref, w3_ref, p3_ref,
                      wfc_ref, bfc_ref, out_ref):
    n = out_ref.shape[0]
    rows0 = x_ref.shape[0]
    hp = rows0 // (n * W_IMG)                                  # H + 2 (conv1 H padding) = 4

    # conv1 input: one scalar per (n, h, w) row, broadcast across the 128 output-channel lanes.
    xb = jnp.broadcast_to(x_ref[...], (rows0, C_PAD))
    w1 = w1_ref[...].astype(jnp.float32)

    y = _bn_relu(_conv1_vpu(xb, n, hp, w1), p1_ref[...])                           # (n*3*32, 128)
    y = _bn_relu(_conv_im2col(y, n, hp - 1, 2, 7, 3, 16, w2_ref), p2_ref[...])     # (n*2*32, 128)
    y = _bn_relu(_conv_im2col(y, n, hp - 2, 2, 7, 3, 32, w3_ref), p3_ref[...])     # (n*1*32, 128)
    out_ref[...] = _fc_relu(y, n, wfc_ref, bfc_ref)                                # (n, 256)


# --------------------------------------------------------------------------------- host side

def init_params(key):
    """Parameters in the same layout as the PyTorch module."""
    ks = jax.random.split(key, 8)
    rnd = lambda k, shape, s: s * jax.random.normal(k, shape, jnp.float32)
    return {
        "conv1_w": rnd(ks[0], (16, 1, 2, 9), 0.1), "conv1_b": rnd(ks[1], (16,), 0.1),
        "conv2_w": rnd(ks[2], (32, 16, 2, 7), 0.1), "conv2_b": rnd(ks[3], (32,), 0.1),
        "conv3_w": rnd(ks[4], (32, 32, 2, 7), 0.1), "conv3_b": rnd(ks[5], (32,), 0.1),
        "fc_w": rnd(ks[6], (200, 1024), 0.05), "fc_b": rnd(ks[7], (200,), 0.05),
        # BatchNorm2d default affine init: weight=1, bias=0.
        "bn1_g": jnp.ones((16,), jnp.float32), "bn1_b": jnp.zeros((16,), jnp.float32),
        "bn2_g": jnp.ones((32,), jnp.float32), "bn2_b": jnp.zeros((32,), jnp.float32),
        "bn3_g": jnp.ones((32,), jnp.float32), "bn3_b": jnp.zeros((32,), jnp.float32),
    }


def _pad_lanes(v, width):
    return jnp.pad(v, (0, width - v.shape[0]))


def _pack_bn(b, g, beta):
    return jnp.stack([_pad_lanes(b, C_PAD), _pad_lanes(g, C_PAD), _pad_lanes(beta, C_PAD)])


def _pack_conv_k(w, dtype):
    """(cout, cin, kh, kw) -> (K_pad, C_PAD); row = (i*kw + j)*cin + ci, col = co."""
    cout, cin, kh, kw = w.shape
    assert C_PAD % cin == 0
    k = kh * kw * cin
    wt = jnp.transpose(w, (2, 3, 1, 0)).reshape(k, cout)
    kpad = pl.cdiv(k, C_PAD) * C_PAD
    return jnp.pad(wt, ((0, kpad - k), (0, C_PAD - cout))).astype(dtype)


def pack_params(p, *, use_bf16_weights=False):
    """One-time repack into dense, kernel-ready tensors (~1.4 MiB f32 / ~0.7 MiB bf16)."""
    wdt = jnp.bfloat16 if use_bf16_weights else jnp.float32
    # conv1 (cin=1) runs on the VPU: per-tap (1, 128) weight rows, tap = i*9 + j.
    w1 = jnp.transpose(p["conv1_w"], (2, 3, 1, 0)).reshape(18, 16)
    w1 = jnp.pad(w1, ((0, 0), (0, C_PAD - 16))).astype(wdt)
    # fc: wfc[w*32 + c, o] = fc_w[o, c*32 + w]  (matches the kernel's shift-reduce order).
    wfc = jnp.transpose(p["fc_w"].reshape(200, CH3, W_IMG), (2, 1, 0)).reshape(K_FC, 200)
    wfc = jnp.pad(wfc, ((0, 0), (0, F_PAD - 200))).astype(wdt)
    return {
        "w1": w1, "p1": _pack_bn(p["conv1_b"], p["bn1_g"], p["bn1_b"]),
        "w2": _pack_conv_k(p["conv2_w"], wdt), "p2": _pack_bn(p["conv2_b"], p["bn2_g"], p["bn2_b"]),
        "w3": _pack_conv_k(p["conv3_w"], wdt), "p3": _pack_bn(p["conv3_b"], p["bn3_g"], p["bn3_b"]),
        "wfc": wfc, "bfc": _pad_lanes(p["fc_b"], F_PAD).reshape(1, F_PAD),
    }


@jax.jit
def conv_body_forward(x_nchw, packed):
    n, c, h, w = x_nchw.shape
    assert c == 1 and h == 2 and w == W_IMG, "ConvBody's fc(1024, 200) pins inputs to (N, 1, 2, 32)"
    hp = h + 2                                               # conv1 pads H by 1 on each side
    x = jnp.transpose(x_nchw, (0, 2, 3, 1))                  # NCHW -> NHWC (C == 1)
    x = jnp.pad(x, ((0, 0), (1, 1), (0, 0), (0, 0)))         # bake conv1's H padding into the rows
    x = x.reshape(n * hp * W_IMG, 1)                         # one f32 per (n, h, w) row (~0.5 KiB/sample)
    out = pl.pallas_call(
        _conv_body_kernel,
        out_shape=jax.ShapeDtypeStruct((n, F_PAD), jnp.float32),
        # Single invocation, no grid: BN statistics reduce over the full batch and the whole
        # problem (~1.5 MiB weights + <1 MiB activations) sits far below every default VMEM limit.
    )(x, packed["w1"], packed["p1"], packed["w2"], packed["p2"],
      packed["w3"], packed["p3"], packed["wfc"], packed["bfc"])
    return out[:, :200]


# ------------------------------------------------------------------------------- reference

def conv_body_reference(x, p):
    """Pure-JAX reference of the PyTorch module (train-mode BatchNorm, f32)."""
    def conv(x, w, b, pad):
        y = lax.conv_general_dilated(x, w, (1, 1), pad,
                                     dimension_numbers=("NCHW", "OIHW", "NCHW"),
                                     precision=lax.Precision.HIGHEST)
        return y + b[None, :, None, None]

    def bn_relu(y, g, be):
        mean = jnp.mean(y, axis=(0, 2, 3), keepdims=True)
        var = jnp.mean(jnp.square(y - mean), axis=(0, 2, 3), keepdims=True)
        y = (y - mean) * lax.rsqrt(var + BN_EPS)
        return jnp.maximum(y * g[None, :, None, None] + be[None, :, None, None], 0.0)

    y = bn_relu(conv(x, p["conv1_w"], p["conv1_b"], ((1, 1), (4, 4))), p["bn1_g"], p["bn1_b"])
    y = bn_relu(conv(y, p["conv2_w"], p["conv2_b"], ((0, 0), (3, 3))), p["bn2_g"], p["bn2_b"])
    y = bn_relu(conv(y, p["conv3_w"], p["conv3_b"], ((0, 0), (3, 3))), p["bn3_g"], p["bn3_b"])
    y = y.reshape(y.shape[0], -1)                            # NCHW flatten: feature = c*32 + w
    y = jnp.dot(y, p["fc_w"].T, precision=lax.Precision.HIGHEST) + p["fc_b"]
    return jnp.maximum(y, 0.0)


if __name__ == "__main__":
    key = jax.random.PRNGKey(0)
    pkey, xkey = jax.random.split(key)
    params = init_params(pkey)
    packed = pack_params(params)              # one-time weight repack, outside the hot path

    # (N=2, C=1, H=2, W=32): conv stack -> (2, 32, 1, 32) -> 1024 features -> 200.
    x = jax.random.normal(xkey, (2, 1, 2, 32), jnp.float32)
    out = conv_body_forward(x, packed)
    jax.block_until_ready(out)
    assert out.shape == (2, 200) and out.dtype == jnp.float32

    ref = conv_body_reference(x, params)
    err = float(jnp.max(jnp.abs(out - ref)))
    assert err < 2e-2, f"kernel/reference mismatch: max abs err = {err}"
    print("KERNEL_OK")
</pallas_src>

<mosaic_0001>
module attributes {stable_mosaic.version = 11 : i64} {
  func.func @_conv_body_kernel(%arg0: memref<256x1xf32, #tpu.memory_space<vmem>>, %arg1: memref<18x128xf32, #tpu.memory_space<vmem>>, %arg2: memref<3x128xf32, #tpu.memory_space<vmem>>, %arg3: memref<256x128xf32, #tpu.memory_space<vmem>>, %arg4: memref<3x128xf32, #tpu.memory_space<vmem>>, %arg5: memref<512x128xf32, #tpu.memory_space<vmem>>, %arg6: memref<3x128xf32, #tpu.memory_space<vmem>>, %arg7: memref<1024x256xf32, #tpu.memory_space<vmem>>, %arg8: memref<1x256xf32, #tpu.memory_space<vmem>>, %arg9: memref<2x256xf32, #tpu.memory_space<vmem>>) attributes {dimension_semantics = [], scalar_prefetch = 0 : i64, scratch_operands = 0 : i64, tpu.core_type = #tpu.core_type<tc>} {
    %c0 = arith.constant 0 : index
    %c0_0 = arith.constant 0 : index
    %0 = vector.load %arg0[%c0, %c0_0] : memref<256x1xf32, #tpu.memory_space<vmem>>, vector<256x1xf32>
    %1 = vector.shape_cast %0 : vector<256x1xf32> to vector<256x1xf32>
    %2 = vector.broadcast %1 : vector<256x1xf32> to vector<256x128xf32>
    %c0_1 = arith.constant 0 : index
    %c0_2 = arith.constant 0 : index
    %3 = vector.load %arg1[%c0_1, %c0_2] : memref<18x128xf32, #tpu.memory_space<vmem>>, vector<18x128xf32>
    %cst = arith.constant 0.000000e+00 : f32
    %4 = vector.broadcast %cst : f32 to vector<192x128xf32>
    %5 = tpu.iota {dimensions = array<i32: 0>} : vector<256x128xi32>
    %c31_i32 = arith.constant 31 : i32
    %6 = vector.broadcast %c31_i32 : i32 to vector<256x128xi32>
    %7 = arith.andi %5, %6 : vector<256x128xi32>
    %c-4_i32 = arith.constant -4 : i32
    %8 = vector.broadcast %c-4_i32 : i32 to vector<256x128xi32>
    %9 = arith.addi %7, %8 : vector<256x128xi32>
    %c0_i32 = arith.constant 0 : i32
    %10 = vector.broadcast %c0_i32 : i32 to vector<256x128xi32>
    %11 = arith.cmpi sge, %9, %10 : vector<256x128xi32>
    %c-4_i32_3 = arith.constant -4 : i32
    %12 = vector.broadcast %c-4_i32_3 : i32 to vector<256x128xi32>
    %13 = arith.addi %7, %12 : vector<256x128xi32>
    %c32_i32 = arith.constant 32 : i32
    %14 = vector.broadcast %c32_i32 : i32 to vector<256x128xi32>
    %15 = arith.cmpi slt, %13, %14 : vector<256x128xi32>
    %16 = arith.andi %11, %15 : vector<256x128xi1>
    %c4_i32 = arith.constant 4 : i32
    %17 = tpu.dynamic_rotate %2 by %c4_i32 dim 0 : vector<256x128xf32>, i32 -> vector<256x128xf32>
    %cst_4 = arith.constant 0.000000e+00 : f32
    %18 = vector.broadcast %cst_4 : f32 to vector<256x128xf32>
    %19 = arith.select %16, %17, %18 : vector<256x128xi1>, vector<256x128xf32>
    %20 = vector.shape_cast %19 : vector<256x128xf32> to vector<2x4x32x128xf32>
    %21 = vector.extract_strided_slice %20 {offsets = [0, 0, 0, 0], sizes = [2, 3, 32, 128], strides = [1, 1, 1, 1]} : vector<2x4x32x128xf32> to vector<2x3x32x128xf32>
    %22 = vector.shape_cast %21 : vector<2x3x32x128xf32> to vector<192x128xf32>
    %23 = vector.extract_strided_slice %3 {offsets = [0, 0], sizes = [1, 128], strides = [1, 1]} : vector<18x128xf32> to vector<1x128xf32>
    %24 = vector.broadcast %23 : vector<1x128xf32> to vector<192x128xf32>
    %25 = arith.mulf %22, %24 : vector<192x128xf32>
    %26 = arith.addf %4, %25 : vector<192x128xf32>
    %27 = vector.extract_strided_slice %20 {offsets = [0, 1, 0, 0], sizes = [2, 3, 32, 128], strides = [1, 1, 1, 1]} : vector<2x4x32x128xf32> to vector<2x3x32x128xf32>
    %28 = vector.shape_cast %27 : vector<2x3x32x128xf32> to vector<192x128xf32>
    %29 = vector.extract_strided_slice %3 {offsets = [9, 0], sizes = [1, 128], strides = [1, 1]} : vector<18x128xf32> to vector<1x128xf32>
    %30 = vector.broadcast %29 : vector<1x128xf32> to vector<192x128xf32>
    %31 = arith.mulf %28, %30 : vector<192x128xf32>
    %32 = arith.addf %26, %31 : vector<192x128xf32>
    %c-3_i32 = arith.constant -3 : i32
    %33 = vector.broadcast %c-3_i32 : i32 to vector<256x128xi32>
    %34 = arith.addi %7, %33 : vector<256x128xi32>
    %c0_i32_5 = arith.constant 0 : i32
    %35 = vector.broadcast %c0_i32_5 : i32 to vector<256x128xi32>
    %36 = arith.cmpi sge, %34, %35 : vector<256x128xi32>
    %c-3_i32_6 = arith.constant -3 : i32
    %37 = vector.broadcast %c-3_i32_6 : i32 to vector<256x128xi32>
    %38 = arith.addi %7, %37 : vector<256x128xi32>
    %c32_i32_7 = arith.constant 32 : i32
    %39 = vector.broadcast %c32_i32_7 : i32 to vector<256x128xi32>
    %40 = arith.cmpi slt, %38, %39 : vector<256x128xi32>
    %41 = arith.andi %36, %40 : vector<256x128xi1>
    %c3_i32 = arith.constant 3 : i32
    %42 = tpu.dynamic_rotate %2 by %c3_i32 dim 0 : vector<256x128xf32>, i32 -> vector<256x128xf32>
    %cst_8 = arith.constant 0.000000e+00 : f32
    %43 = vector.broadcast %cst_8 : f32 to vector<256x128xf32>
    %44 = arith.select %41, %42, %43 : vector<256x128xi1>, vector<256x128xf32>
    %45 = vector.shape_cast %44 : vector<256x128xf32> to vector<2x4x32x128xf32>
    %46 = vector.extract_strided_slice %45 {offsets = [0, 0, 0, 0], sizes = [2, 3, 32, 128], strides = [1, 1, 1, 1]} : vector<2x4x32x128xf32> to vector<2x3x32x128xf32>
    %47 = vector.shape_cast %46 : vector<2x3x32x128xf32> to vector<192x128xf32>
    %48 = vector.extract_strided_slice %3 {offsets = [1, 0], sizes = [1, 128], strides = [1, 1]} : vector<18x128xf32> to vector<1x128xf32>
    %49 = vector.broadcast %48 : vector<1x128xf32> to vector<192x128xf32>
    %50 = arith.mulf %47, %49 : vector<192x128xf32>
    %51 = arith.addf %32, %50 : vector<192x128xf32>
    %52 = vector.extract_strided_slice %45 {offsets = [0, 1, 0, 0], sizes = [2, 3, 32, 128], strides = [1, 1, 1, 1]} : vector<2x4x32x128xf32> to vector<2x3x32x128xf32>
    %53 = vector.shape_cast %52 : vector<2x3x32x128xf32> to vector<192x128xf32>
    %54 = vector.extract_strided_slice %3 {offsets = [10, 0], sizes = [1, 128], strides = [1, 1]} : vector<18x128xf32> to vector<1x128xf32>
    %55 = vector.broadcast %54 : vector<1x128xf32> to vector<192x128xf32>
    %56 = arith.mulf %53, %55 : vector<192x128xf32>
    %57 = arith.addf %51, %56 : vector<192x128xf32>
    %c-2_i32 = arith.constant -2 : i32
    %58 = vector.broadcast %c-2_i32 : i32 to vector<256x128xi32>
    %59 = arith.addi %7, %58 : vector<256x128xi32>
    %c0_i32_9 = arith.constant 0 : i32
    %60 = vector.broadcast %c0_i32_9 : i32 to vector<256x128xi32>
    %61 = arith.cmpi sge, %59, %60 : vector<256x128xi32>
    %c-2_i32_10 = arith.constant -2 : i32
    %62 = vector.broadcast %c-2_i32_10 : i32 to vector<256x128xi32>
    %63 = arith.addi %7, %62 : vector<256x128xi32>
    %c32_i32_11 = arith.constant 32 : i32
    %64 = vector.broadcast %c32_i32_11 : i32 to vector<256x128xi32>
    %65 = arith.cmpi slt, %63, %64 : vector<256x128xi32>
    %66 = arith.andi %61, %65 : vector<256x128xi1>
    %c2_i32 = arith.constant 2 : i32
    %67 = tpu.dynamic_rotate %2 by %c2_i32 dim 0 : vector<256x128xf32>, i32 -> vector<256x128xf32>
    %cst_12 = arith.constant 0.000000e+00 : f32
    %68 = vector.broadcast %cst_12 : f32 to vector<256x128xf32>
    %69 = arith.select %66, %67, %68 : vector<256x128xi1>, vector<256x128xf32>
    %70 = vector.shape_cast %69 : vector<256x128xf32> to vector<2x4x32x128xf32>
    %71 = vector.extract_strided_slice %70 {offsets = [0, 0, 0, 0], sizes = [2, 3, 32, 128], strides = [1, 1, 1, 1]} : vector<2x4x32x128xf32> to vector<2x3x32x128xf32>
    %72 = vector.shape_cast %71 : vector<2x3x32x128xf32> to vector<192x128xf32>
    %73 = vector.extract_strided_slice %3 {offsets = [2, 0], sizes = [1, 128], strides = [1, 1]} : vector<18x128xf32> to vector<1x128xf32>
    %74 = vector.broadcast %73 : vector<1x128xf32> to vector<192x128xf32>
    %75 = arith.mulf %72, %74 : vector<192x128xf32>
    %76 = arith.addf %57, %75 : vector<192x128xf32>
    %77 = vector.extract_strided_slice %70 {offsets = [0, 1, 0, 0], sizes = [2, 3, 32, 128], strides = [1, 1, 1, 1]} : vector<2x4x32x128xf32> to vector<2x3x32x128xf32>
    %78 = vector.shape_cast %77 : vector<2x3x32x128xf32> to vector<192x128xf32>
    %79 = vector.extract_strided_slice %3 {offsets = [11, 0], sizes = [1, 128], strides = [1, 1]} : vector<18x128xf32> to vector<1x128xf32>
    %80 = vector.broadcast %79 : vector<1x128xf32> to vector<192x128xf32>
    %81 = arith.mulf %78, %80 : vector<192x128xf32>
    %82 = arith.addf %76, %81 : vector<192x128xf32>
    %c-1_i32 = arith.constant -1 : i32
    %83 = vector.broadcast %c-1_i32 : i32 to vector<256x128xi32>
    %84 = arith.addi %7, %83 : vector<256x128xi32>
    %c0_i32_13 = arith.constant 0 : i32
    %85 = vector.broadcast %c0_i32_13 : i32 to vector<256x128xi32>
    %86 = arith.cmpi sge, %84, %85 : vector<256x128xi32>
    %c-1_i32_14 = arith.constant -1 : i32
    %87 = vector.broadcast %c-1_i32_14 : i32 to vector<256x128xi32>
    %88 = arith.addi %7, %87 : vector<256x128xi32>
    %c32_i32_15 = arith.constant 32 : i32
    %89 = vector.broadcast %c32_i32_15 : i32 to vector<256x128xi32>
    %90 = arith.cmpi slt, %88, %89 : vector<256x128xi32>
    %91 = arith.andi %86, %90 : vector<256x128xi1>
    %c1_i32 = arith.constant 1 : i32
    %92 = tpu.dynamic_rotate %2 by %c1_i32 dim 0 : vector<256x128xf32>, i32 -> vector<256x128xf32>
    %cst_16 = arith.constant 0.000000e+00 : f32
    %93 = vector.broadcast %cst_16 : f32 to vector<256x128xf32>
    %94 = arith.select %91, %92, %93 : vector<256x128xi1>, vector<256x128xf32>
    %95 = vector.shape_cast %94 : vector<256x128xf32> to vector<2x4x32x128xf32>
    %96 = vector.extract_strided_slice %95 {offsets = [0, 0, 0, 0], sizes = [2, 3, 32, 128], strides = [1, 1, 1, 1]} : vector<2x4x32x128xf32> to vector<2x3x32x128xf32>
    %97 = vector.shape_cast %96 : vector<2x3x32x128xf32> to vector<192x128xf32>
    %98 = vector.extract_strided_slice %3 {offsets = [3, 0], sizes = [1, 128], strides = [1, 1]} : vector<18x128xf32> to vector<1x128xf32>
    %99 = vector.broadcast %98 : vector<1x128xf32> to vector<192x128xf32>
    %100 = arith.mulf %97, %99 : vector<192x128xf32>
    %101 = arith.addf %82, %100 : vector<192x128xf32>
    %102 = vector.extract_strided_slice %95 {offsets = [0, 1, 0, 0], sizes = [2, 3, 32, 128], strides = [1, 1, 1, 1]} : vector<2x4x32x128xf32> to vector<2x3x32x128xf32>
    %103 = vector.shape_cast %102 : vector<2x3x32x128xf32> to vector<192x128xf32>
    %104 = vector.extract_strided_slice %3 {offsets = [12, 0], sizes = [1, 128], strides = [1, 1]} : vector<18x128xf32> to vector<1x128xf32>
    %105 = vector.broadcast %104 : vector<1x128xf32> to vector<192x128xf32>
    %106 = arith.mulf %103, %105 : vector<192x128xf32>
    %107 = arith.addf %101, %106 : vector<192x128xf32>
    %108 = vector.shape_cast %2 : vector<256x128xf32> to vector<2x4x32x128xf32>
    %109 = vector.extract_strided_slice %108 {offsets = [0, 0, 0, 0], sizes = [2, 3, 32, 128], strides = [1, 1, 1, 1]} : vector<2x4x32x128xf32> to vector<2x3x32x128xf32>
    %110 = vector.shape_cast %109 : vector<2x3x32x128xf32> to vector<192x128xf32>
    %111 = vector.extract_strided_slice %3 {offsets = [4, 0], sizes = [1, 128], strides = [1, 1]} : vector<18x128xf32> to vector<1x128xf32>
    %112 = vector.broadcast %111 : vector<1x128xf32> to vector<192x128xf32>
    %113 = arith.mulf %110, %112 : vector<192x128xf32>
    %114 = arith.addf %107, %113 : vector<192x128xf32>
    %115 = vector.extract_strided_slice %108 {offsets = [0, 1, 0, 0], sizes = [2, 3, 32, 128], strides = [1, 1, 1, 1]} : vector<2x4x32x128xf32> to vector<2x3x32x128xf32>
    %116 = vector.shape_cast %115 : vector<2x3x32x128xf32> to vector<192x128xf32>
    %117 = vector.extract_strided_slice %3 {offsets = [13, 0], sizes = [1, 128], strides = [1, 1]} : vector<18x128xf32> to vector<1x128xf32>
    %118 = vector.broadcast %117 : vector<1x128xf32> to vector<192x128xf32>
    %119 = arith.mulf %116, %118 : vector<192x128xf32>
    %120 = arith.addf %114, %119 : vector<192x128xf32>
    %c1_i32_17 = arith.constant 1 : i32
    %121 = vector.broadcast %c1_i32_17 : i32 to vector<256x128xi32>
    %122 = arith.addi %7, %121 : vector<256x128xi32>
    %c0_i32_18 = arith.constant 0 : i32
    %123 = vector.broadcast %c0_i32_18 : i32 to vector<256x128xi32>
    %124 = arith.cmpi sge, %122, %123 : vector<256x128xi32>
    %c1_i32_19 = arith.constant 1 : i32
    %125 = vector.broadcast %c1_i32_19 : i32 to vector<256x128xi32>
    %126 = arith.addi %7, %125 : vector<256x128xi32>
    %c32_i32_20 = arith.constant 32 : i32
    %127 = vector.broadcast %c32_i32_20 : i32 to vector<256x128xi32>
    %128 = arith.cmpi slt, %126, %127 : vector<256x128xi32>
    %129 = arith.andi %124, %128 : vector<256x128xi1>
    %c255_i32 = arith.constant 255 : i32
    %130 = tpu.dynamic_rotate %2 by %c255_i32 dim 0 : vector<256x128xf32>, i32 -> vector<256x128xf32>
    %cst_21 = arith.constant 0.000000e+00 : f32
    %131 = vector.broadcast %cst_21 : f32 to vector<256x128xf32>
    %132 = arith.select %129, %130, %131 : vector<256x128xi1>, vector<256x128xf32>
    %133 = vector.shape_cast %132 : vector<256x128xf32> to vector<2x4x32x128xf32>
    %134 = vector.extract_strided_slice %133 {offsets = [0, 0, 0, 0], sizes = [2, 3, 32, 128], strides = [1, 1, 1, 1]} : vector<2x4x32x128xf32> to vector<2x3x32x128xf32>
    %135 = vector.shape_cast %134 : vector<2x3x32x128xf32> to vector<192x128xf32>
    %136 = vector.extract_strided_slice %3 {offsets = [5, 0], sizes = [1, 128], strides = [1, 1]} : vector<18x128xf32> to vector<1x128xf32>
    %137 = vector.broadcast %136 : vector<1x128xf32> to vector<192x128xf32>
    %138 = arith.mulf %135, %137 : vector<192x128xf32>
    %139 = arith.addf %120, %138 : vector<192x128xf32>
    %140 = vector.extract_strided_slice %133 {offsets = [0, 1, 0, 0], sizes = [2, 3, 32, 128], strides = [1, 1, 1, 1]} : vector<2x4x32x128xf32> to vector<2x3x32x128xf32>
    %141 = vector.shape_cast %140 : vector<2x3x32x128xf32> to vector<192x128xf32>
    %142 = vector.extract_strided_slice %3 {offsets = [14, 0], sizes = [1, 128], strides = [1, 1]} : vector<18x128xf32> to vector<1x128xf32>
    %143 = vector.broadcast %142 : vector<1x128xf32> to vector<192x128xf32>
    %144 = arith.mulf %141, %143 : vector<192x128xf32>
    %145 = arith.addf %139, %144 : vector<192x128xf32>
    %c2_i32_22 = arith.constant 2 : i32
    %146 = vector.broadcast %c2_i32_22 : i32 to vector<256x128xi32>
    %147 = arith.addi %7, %146 : vector<256x128xi32>
    %c0_i32_23 = arith.constant 0 : i32
    %148 = vector.broadcast %c0_i32_23 : i32 to vector<256x128xi32>
    %149 = arith.cmpi sge, %147, %148 : vector<256x128xi32>
    %c2_i32_24 = arith.constant 2 : i32
    %150 = vector.broadcast %c2_i32_24 : i32 to vector<256x128xi32>
    %151 = arith.addi %7, %150 : vector<256x128xi32>
    %c32_i32_25 = arith.constant 32 : i32
    %152 = vector.broadcast %c32_i32_25 : i32 to vector<256x128xi32>
    %153 = arith.cmpi slt, %151, %152 : vector<256x128xi32>
    %154 = arith.andi %149, %153 : vector<256x128xi1>
    %c254_i32 = arith.constant 254 : i32
    %155 = tpu.dynamic_rotate %2 by %c254_i32 dim 0 : vector<256x128xf32>, i32 -> vector<256x128xf32>
    %cst_26 = arith.constant 0.000000e+00 : f32
    %156 = vector.broadcast %cst_26 : f32 to vector<256x128xf32>
    %157 = arith.select %154, %155, %156 : vector<256x128xi1>, vector<256x128xf32>
    %158 = vector.shape_cast %157 : vector<256x128xf32> to vector<2x4x32x128xf32>
    %159 = vector.extract_strided_slice %158 {offsets = [0, 0, 0, 0], sizes = [2, 3, 32, 128], strides = [1, 1, 1, 1]} : vector<2x4x32x128xf32> to vector<2x3x32x128xf32>
    %160 = vector.shape_cast %159 : vector<2x3x32x128xf32> to vector<192x128xf32>
    %161 = vector.extract_strided_slice %3 {offsets = [6, 0], sizes = [1, 128], strides = [1, 1]} : vector<18x128xf32> to vector<1x128xf32>
    %162 = vector.broadcast %161 : vector<1x128xf32> to vector<192x128xf32>
    %163 = arith.mulf %160, %162 : vector<192x128xf32>
    %164 = arith.addf %145, %163 : vector<192x128xf32>
    %165 = vector.extract_strided_slice %158 {offsets = [0, 1, 0, 0], sizes = [2, 3, 32, 128], strides = [1, 1, 1, 1]} : vector<2x4x32x128xf32> to vector<2x3x32x128xf32>
    %166 = vector.shape_cast %165 : vector<2x3x32x128xf32> to vector<192x128xf32>
    %167 = vector.extract_strided_slice %3 {offsets = [15, 0], sizes = [1, 128], strides = [1, 1]} : vector<18x128xf32> to vector<1x128xf32>
    %168 = vector.broadcast %167 : vector<1x128xf32> to vector<192x128xf32>
    %169 = arith.mulf %166, %168 : vector<192x128xf32>
    %170 = arith.addf %164, %169 : vector<192x128xf32>
    %c3_i32_27 = arith.constant 3 : i32
    %171 = vector.broadcast %c3_i32_27 : i32 to vector<256x128xi32>
    %172 = arith.addi %7, %171 : vector<256x128xi32>
    %c0_i32_28 = arith.constant 0 : i32
    %173 = vector.broadcast %c0_i32_28 : i32 to vector<256x128xi32>
    %174 = arith.cmpi sge, %172, %173 : vector<256x128xi32>
    %c3_i32_29 = arith.constant 3 : i32
    %175 = vector.broadcast %c3_i32_29 : i32 to vector<256x128xi32>
    %176 = arith.addi %7, %175 : vector<256x128xi32>
    %c32_i32_30 = arith.constant 32 : i32
    %177 = vector.broadcast %c32_i32_30 : i32 to vector<256x128xi32>
    %178 = arith.cmpi slt, %176, %177 : vector<256x128xi32>
    %179 = arith.andi %174, %178 : vector<256x128xi1>
    %c253_i32 = arith.constant 253 : i32
    %180 = tpu.dynamic_rotate %2 by %c253_i32 dim 0 : vector<256x128xf32>, i32 -> vector<256x128xf32>
    %cst_31 = arith.constant 0.000000e+00 : f32
    %181 = vector.broadcast %cst_31 : f32 to vector<256x128xf32>
    %182 = arith.select %179, %180, %181 : vector<256x128xi1>, vector<256x128xf32>
    %183 = vector.shape_cast %182 : vector<256x128xf32> to vector<2x4x32x128xf32>
    %184 = vector.extract_strided_slice %183 {offsets = [0, 0, 0, 0], sizes = [2, 3, 32, 128], strides = [1, 1, 1, 1]} : vector<2x4x32x128xf32> to vector<2x3x32x128xf32>
    %185 = vector.shape_cast %184 : vector<2x3x32x128xf32> to vector<192x128xf32>
    %186 = vector.extract_strided_slice %3 {offsets = [7, 0], sizes = [1, 128], strides = [1, 1]} : vector<18x128xf32> to vector<1x128xf32>
    %187 = vector.broadcast %186 : vector<1x128xf32> to vector<192x128xf32>
    %188 = arith.mulf %185, %187 : vector<192x128xf32>
    %189 = arith.addf %170, %188 : vector<192x128xf32>
    %190 = vector.extract_strided_slice %183 {offsets = [0, 1, 0, 0], sizes = [2, 3, 32, 128], strides = [1, 1, 1, 1]} : vector<2x4x32x128xf32> to vector<2x3x32x128xf32>
    %191 = vector.shape_cast %190 : vector<2x3x32x128xf32> to vector<192x128xf32>
    %192 = vector.extract_strided_slice %3 {offsets = [16, 0], sizes = [1, 128], strides = [1, 1]} : vector<18x128xf32> to vector<1x128xf32>
    %193 = vector.broadcast %192 : vector<1x128xf32> to vector<192x128xf32>
    %194 = arith.mulf %191, %193 : vector<192x128xf32>
    %195 = arith.addf %189, %194 : vector<192x128xf32>
    %c4_i32_32 = arith.constant 4 : i32
    %196 = vector.broadcast %c4_i32_32 : i32 to vector<256x128xi32>
    %197 = arith.addi %7, %196 : vector<256x128xi32>
    %c0_i32_33 = arith.constant 0 : i32
    %198 = vector.broadcast %c0_i32_33 : i32 to vector<256x128xi32>
    %199 = arith.cmpi sge, %197, %198 : vector<256x128xi32>
    %c4_i32_34 = arith.constant 4 : i32
    %200 = vector.broadcast %c4_i32_34 : i32 to vector<256x128xi32>
    %201 = arith.addi %7, %200 : vector<256x128xi32>
    %c32_i32_35 = arith.constant 32 : i32
    %202 = vector.broadcast %c32_i32_35 : i32 to vector<256x128xi32>
    %203 = arith.cmpi slt, %201, %202 : vector<256x128xi32>
    %204 = arith.andi %199, %203 : vector<256x128xi1>
    %c252_i32 = arith.constant 252 : i32
    %205 = tpu.dynamic_rotate %2 by %c252_i32 dim 0 : vector<256x128xf32>, i32 -> vector<256x128xf32>
    %cst_36 = arith.constant 0.000000e+00 : f32
    %206 = vector.broadcast %cst_36 : f32 to vector<256x128xf32>
    %207 = arith.select %204, %205, %206 : vector<256x128xi1>, vector<256x128xf32>
    %208 = vector.shape_cast %207 : vector<256x128xf32> to vector<2x4x32x128xf32>
    %209 = vector.extract_strided_slice %208 {offsets = [0, 0, 0, 0], sizes = [2, 3, 32, 128], strides = [1, 1, 1, 1]} : vector<2x4x32x128xf32> to vector<2x3x32x128xf32>
    %210 = vector.shape_cast %209 : vector<2x3x32x128xf32> to vector<192x128xf32>
    %211 = vector.extract_strided_slice %3 {offsets = [8, 0], sizes = [1, 128], strides = [1, 1]} : vector<18x128xf32> to vector<1x128xf32>
    %212 = vector.broadcast %211 : vector<1x128xf32> to vector<192x128xf32>
    %213 = arith.mulf %210, %212 : vector<192x128xf32>
    %214 = arith.addf %195, %213 : vector<192x128xf32>
    %215 = vector.extract_strided_slice %208 {offsets = [0, 1, 0, 0], sizes = [2, 3, 32, 128], strides = [1, 1, 1, 1]} : vector<2x4x32x128xf32> to vector<2x3x32x128xf32>
    %216 = vector.shape_cast %215 : vector<2x3x32x128xf32> to vector<192x128xf32>
    %217 = vector.extract_strided_slice %3 {offsets = [17, 0], sizes = [1, 128], strides = [1, 1]} : vector<18x128xf32> to vector<1x128xf32>
    %218 = vector.broadcast %217 : vector<1x128xf32> to vector<192x128xf32>
    %219 = arith.mulf %216, %218 : vector<192x128xf32>
    %220 = arith.addf %214, %219 : vector<192x128xf32>
    %c0_37 = arith.constant 0 : index
    %c0_38 = arith.constant 0 : index
    %221 = vector.load %arg2[%c0_37, %c0_38] : memref<3x128xf32, #tpu.memory_space<vmem>>, vector<3x128xf32>
    %222 = vector.extract_strided_slice %221 {offsets = [0, 0], sizes = [1, 128], strides = [1, 1]} : vector<3x128xf32> to vector<1x128xf32>
    %223 = vector.broadcast %222 : vector<1x128xf32> to vector<192x128xf32>
    %224 = arith.addf %220, %223 : vector<192x128xf32>
    %225 = arith.mulf %224, %224 : vector<192x128xf32>
    %226 = tpu.concatenate %224, %225 in 0 : vector<192x128xf32>, vector<192x128xf32> -> vector<384x128xf32>
    %227 = vector.shape_cast %226 : vector<384x128xf32> to vector<2x192x128xf32>
    %cst_39 = arith.constant dense<0.000000e+00> : vector<2x128xf32>
    %228 = vector.multi_reduction <add>, %227, %cst_39 [1] : vector<2x192x128xf32> to vector<2x128xf32>
    %cst_40 = arith.constant 0.00520833349 : f32
    %229 = vector.broadcast %cst_40 : f32 to vector<2x128xf32>
    %230 = arith.mulf %228, %229 : vector<2x128xf32>
    %231 = vector.extract_strided_slice %230 {offsets = [0, 0], sizes = [1, 128], strides = [1, 1]} : vector<2x128xf32> to vector<1x128xf32>
    %232 = vector.extract_strided_slice %230 {offsets = [1, 0], sizes = [1, 128], strides = [1, 1]} : vector<2x128xf32> to vector<1x128xf32>
    %233 = arith.mulf %231, %231 : vector<1x128xf32>
    %234 = arith.subf %232, %233 : vector<1x128xf32>
    %cst_41 = arith.constant 0.000000e+00 : f32
    %235 = vector.broadcast %cst_41 : f32 to vector<1x128xf32>
    %236 = arith.maximumf %234, %235 : vector<1x128xf32>
    %237 = vector.extract_strided_slice %221 {offsets = [1, 0], sizes = [1, 128], strides = [1, 1]} : vector<3x128xf32> to vector<1x128xf32>
    %cst_42 = arith.constant 9.99999974E-6 : f32
    %238 = vector.broadcast %cst_42 : f32 to vector<1x128xf32>
    %239 = arith.addf %236, %238 : vector<1x128xf32>
    %240 = math.rsqrt %239 : vector<1x128xf32>
    %241 = arith.mulf %237, %240 : vector<1x128xf32>
    %242 = vector.extract_strided_slice %221 {offsets = [2, 0], sizes = [1, 128], strides = [1, 1]} : vector<3x128xf32> to vector<1x128xf32>
    %243 = arith.mulf %231, %241 : vector<1x128xf32>
    %244 = arith.subf %242, %243 : vector<1x128xf32>
    %245 = vector.broadcast %241 : vector<1x128xf32> to vector<192x128xf32>
    %246 = arith.mulf %224, %245 : vector<192x128xf32>
    %247 = vector.broadcast %244 : vector<1x128xf32> to vector<192x128xf32>
    %248 = arith.addf %246, %247 : vector<192x128xf32>
    %cst_43 = arith.constant 0.000000e+00 : f32
    %249 = vector.broadcast %cst_43 : f32 to vector<192x128xf32>
    %250 = arith.maximumf %248, %249 : vector<192x128xf32>
    %cst_44 = arith.constant 0.000000e+00 : f32
    %251 = vector.broadcast %cst_44 : f32 to vector<128x128xf32>
    %cst_45 = arith.constant 0.000000e+00 : f32
    %252 = vector.broadcast %cst_45 : f32 to vector<128x128xf32>
    %253 = tpu.iota {dimensions = array<i32: 0>} : vector<192x128xi32>
    %c31_i32_46 = arith.constant 31 : i32
    %254 = vector.broadcast %c31_i32_46 : i32 to vector<192x128xi32>
    %255 = arith.andi %253, %254 : vector<192x128xi32>
    %c-3_i32_47 = arith.constant -3 : i32
    %256 = vector.broadcast %c-3_i32_47 : i32 to vector<192x128xi32>
    %257 = arith.addi %255, %256 : vector<192x128xi32>
    %c0_i32_48 = arith.constant 0 : i32
    %258 = vector.broadcast %c0_i32_48 : i32 to vector<192x128xi32>
    %259 = arith.cmpi sge, %257, %258 : vector<192x128xi32>
    %c-3_i32_49 = arith.constant -3 : i32
    %260 = vector.broadcast %c-3_i32_49 : i32 to vector<192x128xi32>
    %261 = arith.addi %255, %260 : vector<192x128xi32>
    %c32_i32_50 = arith.constant 32 : i32
    %262 = vector.broadcast %c32_i32_50 : i32 to vector<192x128xi32>
    %263 = arith.cmpi slt, %261, %262 : vector<192x128xi32>
    %264 = arith.andi %259, %263 : vector<192x128xi1>
    %c3_i32_51 = arith.constant 3 : i32
    %265 = tpu.dynamic_rotate %250 by %c3_i32_51 dim 0 : vector<192x128xf32>, i32 -> vector<192x128xf32>
    %cst_52 = arith.constant 0.000000e+00 : f32
    %266 = vector.broadcast %cst_52 : f32 to vector<192x128xf32>
    %267 = arith.select %264, %265, %266 : vector<192x128xi1>, vector<192x128xf32>
    %268 = vector.shape_cast %267 : vector<192x128xf32> to vector<2x3x32x128xf32>
    %269 = vector.extract_strided_slice %268 {offsets = [0, 0, 0, 0], sizes = [2, 2, 32, 128], strides = [1, 1, 1, 1]} : vector<2x3x32x128xf32> to vector<2x2x32x128xf32>
    %270 = vector.shape_cast %269 : vector<2x2x32x128xf32> to vector<128x128xf32>
    %271 = arith.addf %251, %270 : vector<128x128xf32>
    %272 = vector.extract_strided_slice %268 {offsets = [0, 1, 0, 0], sizes = [2, 2, 32, 128], strides = [1, 1, 1, 1]} : vector<2x3x32x128xf32> to vector<2x2x32x128xf32>
    %273 = vector.shape_cast %272 : vector<2x2x32x128xf32> to vector<128x128xf32>
    %c112_i32 = arith.constant 112 : i32
    %274 = tpu.dynamic_rotate %273 by %c112_i32 dim 1 : vector<128x128xf32>, i32 -> vector<128x128xf32>
    %275 = arith.addf %271, %274 : vector<128x128xf32>
    %c-2_i32_53 = arith.constant -2 : i32
    %276 = vector.broadcast %c-2_i32_53 : i32 to vector<192x128xi32>
    %277 = arith.addi %255, %276 : vector<192x128xi32>
    %c0_i32_54 = arith.constant 0 : i32
    %278 = vector.broadcast %c0_i32_54 : i32 to vector<192x128xi32>
    %279 = arith.cmpi sge, %277, %278 : vector<192x128xi32>
    %c-2_i32_55 = arith.constant -2 : i32
    %280 = vector.broadcast %c-2_i32_55 : i32 to vector<192x128xi32>
    %281 = arith.addi %255, %280 : vector<192x128xi32>
    %c32_i32_56 = arith.constant 32 : i32
    %282 = vector.broadcast %c32_i32_56 : i32 to vector<192x128xi32>
    %283 = arith.cmpi slt, %281, %282 : vector<192x128xi32>
    %284 = arith.andi %279, %283 : vector<192x128xi1>
    %c2_i32_57 = arith.constant 2 : i32
    %285 = tpu.dynamic_rotate %250 by %c2_i32_57 dim 0 : vector<192x128xf32>, i32 -> vector<192x128xf32>
    %cst_58 = arith.constant 0.000000e+00 : f32
    %286 = vector.broadcast %cst_58 : f32 to vector<192x128xf32>
    %287 = arith.select %284, %285, %286 : vector<192x128xi1>, vector<192x128xf32>
    %288 = vector.shape_cast %287 : vector<192x128xf32> to vector<2x3x32x128xf32>
    %289 = vector.extract_strided_slice %288 {offsets = [0, 0, 0, 0], sizes = [2, 2, 32, 128], strides = [1, 1, 1, 1]} : vector<2x3x32x128xf32> to vector<2x2x32x128xf32>
    %290 = vector.shape_cast %289 : vector<2x2x32x128xf32> to vector<128x128xf32>
    %c16_i32 = arith.constant 16 : i32
    %291 = tpu.dynamic_rotate %290 by %c16_i32 dim 1 : vector<128x128xf32>, i32 -> vector<128x128xf32>
    %292 = arith.addf %275, %291 : vector<128x128xf32>
    %293 = vector.extract_strided_slice %288 {offsets = [0, 1, 0, 0], sizes = [2, 2, 32, 128], strides = [1, 1, 1, 1]} : vector<2x3x32x128xf32> to vector<2x2x32x128xf32>
    %294 = vector.shape_cast %293 : vector<2x2x32x128xf32> to vector<128x128xf32>
    %295 = arith.addf %252, %294 : vector<128x128xf32>
    %c-1_i32_59 = arith.constant -1 : i32
    %296 = vector.broadcast %c-1_i32_59 : i32 to vector<192x128xi32>
    %297 = arith.addi %255, %296 : vector<192x128xi32>
    %c0_i32_60 = arith.constant 0 : i32
    %298 = vector.broadcast %c0_i32_60 : i32 to vector<192x128xi32>
    %299 = arith.cmpi sge, %297, %298 : vector<192x128xi32>
    %c-1_i32_61 = arith.constant -1 : i32
    %300 = vector.broadcast %c-1_i32_61 : i32 to vector<192x128xi32>
    %301 = arith.addi %255, %300 : vector<192x128xi32>
    %c32_i32_62 = arith.constant 32 : i32
    %302 = vector.broadcast %c32_i32_62 : i32 to vector<192x128xi32>
    %303 = arith.cmpi slt, %301, %302 : vector<192x128xi32>
    %304 = arith.andi %299, %303 : vector<192x128xi1>
    %c1_i32_63 = arith.constant 1 : i32
    %305 = tpu.dynamic_rotate %250 by %c1_i32_63 dim 0 : vector<192x128xf32>, i32 -> vector<192x128xf32>
    %cst_64 = arith.constant 0.000000e+00 : f32
    %306 = vector.broadcast %cst_64 : f32 to vector<192x128xf32>
    %307 = arith.select %304, %305, %306 : vector<192x128xi1>, vector<192x128xf32>
    %308 = vector.shape_cast %307 : vector<192x128xf32> to vector<2x3x32x128xf32>
    %309 = vector.extract_strided_slice %308 {offsets = [0, 0, 0, 0], sizes = [2, 2, 32, 128], strides = [1, 1, 1, 1]} : vector<2x3x32x128xf32> to vector<2x2x32x128xf32>
    %310 = vector.shape_cast %309 : vector<2x2x32x128xf32> to vector<128x128xf32>
    %c32_i32_65 = arith.constant 32 : i32
    %311 = tpu.dynamic_rotate %310 by %c32_i32_65 dim 1 : vector<128x128xf32>, i32 -> vector<128x128xf32>
    %312 = arith.addf %292, %311 : vector<128x128xf32>
    %313 = vector.extract_strided_slice %308 {offsets = [0, 1, 0, 0], sizes = [2, 2, 32, 128], strides = [1, 1, 1, 1]} : vector<2x3x32x128xf32> to vector<2x2x32x128xf32>
    %314 = vector.shape_cast %313 : vector<2x2x32x128xf32> to vector<128x128xf32>
    %c16_i32_66 = arith.constant 16 : i32
    %315 = tpu.dynamic_rotate %314 by %c16_i32_66 dim 1 : vector<128x128xf32>, i32 -> vector<128x128xf32>
    %316 = arith.addf %295, %315 : vector<128x128xf32>
    %317 = vector.shape_cast %250 : vector<192x128xf32> to vector<2x3x32x128xf32>
    %318 = vector.extract_strided_slice %317 {offsets = [0, 0, 0, 0], sizes = [2, 2, 32, 128], strides = [1, 1, 1, 1]} : vector<2x3x32x128xf32> to vector<2x2x32x128xf32>
    %319 = vector.shape_cast %318 : vector<2x2x32x128xf32> to vector<128x128xf32>
    %c48_i32 = arith.constant 48 : i32
    %320 = tpu.dynamic_rotate %319 by %c48_i32 dim 1 : vector<128x128xf32>, i32 -> vector<128x128xf32>
    %321 = arith.addf %312, %320 : vector<128x128xf32>
    %322 = vector.extract_strided_slice %317 {offsets = [0, 1, 0, 0], sizes = [2, 2, 32, 128], strides = [1, 1, 1, 1]} : vector<2x3x32x128xf32> to vector<2x2x32x128xf32>
    %323 = vector.shape_cast %322 : vector<2x2x32x128xf32> to vector<128x128xf32>
    %c32_i32_67 = arith.constant 32 : i32
    %324 = tpu.dynamic_rotate %323 by %c32_i32_67 dim 1 : vector<128x128xf32>, i32 -> vector<128x128xf32>
    %325 = arith.addf %316, %324 : vector<128x128xf32>
    %c1_i32_68 = arith.constant 1 : i32
    %326 = vector.broadcast %c1_i32_68 : i32 to vector<192x128xi32>
    %327 = arith.addi %255, %326 : vector<192x128xi32>
    %c0_i32_69 = arith.constant 0 : i32
    %328 = vector.broadcast %c0_i32_69 : i32 to vector<192x128xi32>
    %329 = arith.cmpi sge, %327, %328 : vector<192x128xi32>
    %c1_i32_70 = arith.constant 1 : i32
    %330 = vector.broadcast %c1_i32_70 : i32 to vector<192x128xi32>
    %331 = arith.addi %255, %330 : vector<192x128xi32>
    %c32_i32_71 = arith.constant 32 : i32
    %332 = vector.broadcast %c32_i32_71 : i32 to vector<192x128xi32>
    %333 = arith.cmpi slt, %331, %332 : vector<192x128xi32>
    %334 = arith.andi %329, %333 : vector<192x128xi1>
    %c191_i32 = arith.constant 191 : i32
    %335 = tpu.dynamic_rotate %250 by %c191_i32 dim 0 : vector<192x128xf32>, i32 -> vector<192x128xf32>
    %cst_72 = arith.constant 0.000000e+00 : f32
    %336 = vector.broadcast %cst_72 : f32 to vector<192x128xf32>
    %337 = arith.select %334, %335, %336 : vector<192x128xi1>, vector<192x128xf32>
    %338 = vector.shape_cast %337 : vector<192x128xf32> to vector<2x3x32x128xf32>
    %339 = vector.extract_strided_slice %338 {offsets = [0, 0, 0, 0], sizes = [2, 2, 32, 128], strides = [1, 1, 1, 1]} : vector<2x3x32x128xf32> to vector<2x2x32x128xf32>
    %340 = vector.shape_cast %339 : vector<2x2x32x128xf32> to vector<128x128xf32>
    %c64_i32 = arith.constant 64 : i32
    %341 = tpu.dynamic_rotate %340 by %c64_i32 dim 1 : vector<128x128xf32>, i32 -> vector<128x128xf32>
    %342 = arith.addf %321, %341 : vector<128x128xf32>
    %343 = vector.extract_strided_slice %338 {offsets = [0, 1, 0, 0], sizes = [2, 2, 32, 128], strides = [1, 1, 1, 1]} : vector<2x3x32x128xf32> to vector<2x2x32x128xf32>
    %344 = vector.shape_cast %343 : vector<2x2x32x128xf32> to vector<128x128xf32>
    %c48_i32_73 = arith.constant 48 : i32
    %345 = tpu.dynamic_rotate %344 by %c48_i32_73 dim 1 : vector<128x128xf32>, i32 -> vector<128x128xf32>
    %346 = arith.addf %325, %345 : vector<128x128xf32>
    %c2_i32_74 = arith.constant 2 : i32
    %347 = vector.broadcast %c2_i32_74 : i32 to vector<192x128xi32>
    %348 = arith.addi %255, %347 : vector<192x128xi32>
    %c0_i32_75 = arith.constant 0 : i32
    %349 = vector.broadcast %c0_i32_75 : i32 to vector<192x128xi32>
    %350 = arith.cmpi sge, %348, %349 : vector<192x128xi32>
    %c2_i32_76 = arith.constant 2 : i32
    %351 = vector.broadcast %c2_i32_76 : i32 to vector<192x128xi32>
    %352 = arith.addi %255, %351 : vector<192x128xi32>
    %c32_i32_77 = arith.constant 32 : i32
    %353 = vector.broadcast %c32_i32_77 : i32 to vector<192x128xi32>
    %354 = arith.cmpi slt, %352, %353 : vector<192x128xi32>
    %355 = arith.andi %350, %354 : vector<192x128xi1>
    %c190_i32 = arith.constant 190 : i32
    %356 = tpu.dynamic_rotate %250 by %c190_i32 dim 0 : vector<192x128xf32>, i32 -> vector<192x128xf32>
    %cst_78 = arith.constant 0.000000e+00 : f32
    %357 = vector.broadcast %cst_78 : f32 to vector<192x128xf32>
    %358 = arith.select %355, %356, %357 : vector<192x128xi1>, vector<192x128xf32>
    %359 = vector.shape_cast %358 : vector<192x128xf32> to vector<2x3x32x128xf32>
    %360 = vector.extract_strided_slice %359 {offsets = [0, 0, 0, 0], sizes = [2, 2, 32, 128], strides = [1, 1, 1, 1]} : vector<2x3x32x128xf32> to vector<2x2x32x128xf32>
    %361 = vector.shape_cast %360 : vector<2x2x32x128xf32> to vector<128x128xf32>
    %c80_i32 = arith.constant 80 : i32
    %362 = tpu.dynamic_rotate %361 by %c80_i32 dim 1 : vector<128x128xf32>, i32 -> vector<128x128xf32>
    %363 = arith.addf %342, %362 : vector<128x128xf32>
    %364 = vector.extract_strided_slice %359 {offsets = [0, 1, 0, 0], sizes = [2, 2, 32, 128], strides = [1, 1, 1, 1]} : vector<2x3x32x128xf32> to vector<2x2x32x128xf32>
    %365 = vector.shape_cast %364 : vector<2x2x32x128xf32> to vector<128x128xf32>
    %c64_i32_79 = arith.constant 64 : i32
    %366 = tpu.dynamic_rotate %365 by %c64_i32_79 dim 1 : vector<128x128xf32>, i32 -> vector<128x128xf32>
    %367 = arith.addf %346, %366 : vector<128x128xf32>
    %c3_i32_80 = arith.constant 3 : i32
    %368 = vector.broadcast %c3_i32_80 : i32 to vector<192x128xi32>
    %369 = arith.addi %255, %368 : vector<192x128xi32>
    %c0_i32_81 = arith.constant 0 : i32
    %370 = vector.broadcast %c0_i32_81 : i32 to vector<192x128xi32>
    %371 = arith.cmpi sge, %369, %370 : vector<192x128xi32>
    %c3_i32_82 = arith.constant 3 : i32
    %372 = vector.broadcast %c3_i32_82 : i32 to vector<192x128xi32>
    %373 = arith.addi %255, %372 : vector<192x128xi32>
    %c32_i32_83 = arith.constant 32 : i32
    %374 = vector.broadcast %c32_i32_83 : i32 to vector<192x128xi32>
    %375 = arith.cmpi slt, %373, %374 : vector<192x128xi32>
    %376 = arith.andi %371, %375 : vector<192x128xi1>
    %c189_i32 = arith.constant 189 : i32
    %377 = tpu.dynamic_rotate %250 by %c189_i32 dim 0 : vector<192x128xf32>, i32 -> vector<192x128xf32>
    %cst_84 = arith.constant 0.000000e+00 : f32
    %378 = vector.broadcast %cst_84 : f32 to vector<192x128xf32>
    %379 = arith.select %376, %377, %378 : vector<192x128xi1>, vector<192x128xf32>
    %380 = vector.shape_cast %379 : vector<192x128xf32> to vector<2x3x32x128xf32>
    %381 = vector.extract_strided_slice %380 {offsets = [0, 0, 0, 0], sizes = [2, 2, 32, 128], strides = [1, 1, 1, 1]} : vector<2x3x32x128xf32> to vector<2x2x32x128xf32>
    %382 = vector.shape_cast %381 : vector<2x2x32x128xf32> to vector<128x128xf32>
    %c96_i32 = arith.constant 96 : i32
    %383 = tpu.dynamic_rotate %382 by %c96_i32 dim 1 : vector<128x128xf32>, i32 -> vector<128x128xf32>
    %384 = arith.addf %363, %383 : vector<128x128xf32>
    %385 = vector.extract_strided_slice %380 {offsets = [0, 1, 0, 0], sizes = [2, 2, 32, 128], strides = [1, 1, 1, 1]} : vector<2x3x32x128xf32> to vector<2x2x32x128xf32>
    %386 = vector.shape_cast %385 : vector<2x2x32x128xf32> to vector<128x128xf32>
    %c80_i32_85 = arith.constant 80 : i32
    %387 = tpu.dynamic_rotate %386 by %c80_i32_85 dim 1 : vector<128x128xf32>, i32 -> vector<128x128xf32>
    %388 = arith.addf %367, %387 : vector<128x128xf32>
    %389 = tpu.concatenate %384, %388 in 1 : vector<128x128xf32>, vector<128x128xf32> -> vector<128x256xf32>
    %c0_86 = arith.constant 0 : index
    %c0_87 = arith.constant 0 : index
    %390 = vector.load %arg3[%c0_86, %c0_87] : memref<256x128xf32, #tpu.memory_space<vmem>>, vector<256x128xf32>
    %cst_88 = arith.constant dense<0.000000e+00> : vector<128x128xf32>
    %391 = tpu.matmul %389, %390, %cst_88 {dimension_numbers = #tpu.dot_dimension_numbers<[1], [0], [0], [1], [0, 0, 1, 1], [], []>} : vector<128x256xf32>, vector<256x128xf32>, vector<128x128xf32> -> vector<128x128xf32>
    %c0_89 = arith.constant 0 : index
    %c0_90 = arith.constant 0 : index
    %392 = vector.load %arg4[%c0_89, %c0_90] : memref<3x128xf32, #tpu.memory_space<vmem>>, vector<3x128xf32>
    %393 = vector.extract_strided_slice %392 {offsets = [0, 0], sizes = [1, 128], strides = [1, 1]} : vector<3x128xf32> to vector<1x128xf32>
    %394 = vector.broadcast %393 : vector<1x128xf32> to vector<128x128xf32>
    %395 = arith.addf %391, %394 : vector<128x128xf32>
    %396 = arith.mulf %395, %395 : vector<128x128xf32>
    %397 = tpu.concatenate %395, %396 in 0 : vector<128x128xf32>, vector<128x128xf32> -> vector<256x128xf32>
    %398 = vector.shape_cast %397 : vector<256x128xf32> to vector<2x128x128xf32>
    %cst_91 = arith.constant dense<0.000000e+00> : vector<2x128xf32>
    %399 = vector.multi_reduction <add>, %398, %cst_91 [1] : vector<2x128x128xf32> to vector<2x128xf32>
    %cst_92 = arith.constant 7.812500e-03 : f32
    %400 = vector.broadcast %cst_92 : f32 to vector<2x128xf32>
    %401 = arith.mulf %399, %400 : vector<2x128xf32>
    %402 = vector.extract_strided_slice %401 {offsets = [0, 0], sizes = [1, 128], strides = [1, 1]} : vector<2x128xf32> to vector<1x128xf32>
    %403 = vector.extract_strided_slice %401 {offsets = [1, 0], sizes = [1, 128], strides = [1, 1]} : vector<2x128xf32> to vector<1x128xf32>
    %404 = arith.mulf %402, %402 : vector<1x128xf32>
    %405 = arith.subf %403, %404 : vector<1x128xf32>
    %cst_93 = arith.constant 0.000000e+00 : f32
    %406 = vector.broadcast %cst_93 : f32 to vector<1x128xf32>
    %407 = arith.maximumf %405, %406 : vector<1x128xf32>
    %408 = vector.extract_strided_slice %392 {offsets = [1, 0], sizes = [1, 128], strides = [1, 1]} : vector<3x128xf32> to vector<1x128xf32>
    %cst_94 = arith.constant 9.99999974E-6 : f32
    %409 = vector.broadcast %cst_94 : f32 to vector<1x128xf32>
    %410 = arith.addf %407, %409 : vector<1x128xf32>
    %411 = math.rsqrt %410 : vector<1x128xf32>
    %412 = arith.mulf %408, %411 : vector<1x128xf32>
    %413 = vector.extract_strided_slice %392 {offsets = [2, 0], sizes = [1, 128], strides = [1, 1]} : vector<3x128xf32> to vector<1x128xf32>
    %414 = arith.mulf %402, %412 : vector<1x128xf32>
    %415 = arith.subf %413, %414 : vector<1x128xf32>
    %416 = vector.broadcast %412 : vector<1x128xf32> to vector<128x128xf32>
    %417 = arith.mulf %395, %416 : vector<128x128xf32>
    %418 = vector.broadcast %415 : vector<1x128xf32> to vector<128x128xf32>
    %419 = arith.addf %417, %418 : vector<128x128xf32>
    %cst_95 = arith.constant 0.000000e+00 : f32
    %420 = vector.broadcast %cst_95 : f32 to vector<128x128xf32>
    %421 = arith.maximumf %419, %420 : vector<128x128xf32>
    %cst_96 = arith.constant 0.000000e+00 : f32
    %422 = vector.broadcast %cst_96 : f32 to vector<64x128xf32>
    %cst_97 = arith.constant 0.000000e+00 : f32
    %423 = vector.broadcast %cst_97 : f32 to vector<64x128xf32>
    %cst_98 = arith.constant 0.000000e+00 : f32
    %424 = vector.broadcast %cst_98 : f32 to vector<64x128xf32>
    %cst_99 = arith.constant 0.000000e+00 : f32
    %425 = vector.broadcast %cst_99 : f32 to vector<64x128xf32>
    %426 = tpu.iota {dimensions = array<i32: 0>} : vector<128x128xi32>
    %c31_i32_100 = arith.constant 31 : i32
    %427 = vector.broadcast %c31_i32_100 : i32 to vector<128x128xi32>
    %428 = arith.andi %426, %427 : vector<128x128xi32>
    %c-3_i32_101 = arith.constant -3 : i32
    %429 = vector.broadcast %c-3_i32_101 : i32 to vector<128x128xi32>
    %430 = arith.addi %428, %429 : vector<128x128xi32>
    %c0_i32_102 = arith.constant 0 : i32
    %431 = vector.broadcast %c0_i32_102 : i32 to vector<128x128xi32>
    %432 = arith.cmpi sge, %430, %431 : vector<128x128xi32>
    %c-3_i32_103 = arith.constant -3 : i32
    %433 = vector.broadcast %c-3_i32_103 : i32 to vector<128x128xi32>
    %434 = arith.addi %428, %433 : vector<128x128xi32>
    %c32_i32_104 = arith.constant 32 : i32
    %435 = vector.broadcast %c32_i32_104 : i32 to vector<128x128xi32>
    %436 = arith.cmpi slt, %434, %435 : vector<128x128xi32>
    %437 = arith.andi %432, %436 : vector<128x128xi1>
    %c3_i32_105 = arith.constant 3 : i32
    %438 = tpu.dynamic_rotate %421 by %c3_i32_105 dim 0 : vector<128x128xf32>, i32 -> vector<128x128xf32>
    %cst_106 = arith.constant 0.000000e+00 : f32
    %439 = vector.broadcast %cst_106 : f32 to vector<128x128xf32>
    %440 = arith.select %437, %438, %439 : vector<128x128xi1>, vector<128x128xf32>
    %441 = vector.shape_cast %440 : vector<128x128xf32> to vector<2x2x32x128xf32>
    %442 = vector.extract_strided_slice %441 {offsets = [0, 0, 0, 0], sizes = [2, 1, 32, 128], strides = [1, 1, 1, 1]} : vector<2x2x32x128xf32> to vector<2x1x32x128xf32>
    %443 = vector.shape_cast %442 : vector<2x1x32x128xf32> to vector<64x128xf32>
    %444 = arith.addf %422, %443 : vector<64x128xf32>
    %445 = vector.extract_strided_slice %441 {offsets = [0, 1, 0, 0], sizes = [2, 1, 32, 128], strides = [1, 1, 1, 1]} : vector<2x2x32x128xf32> to vector<2x1x32x128xf32>
    %446 = vector.shape_cast %445 : vector<2x1x32x128xf32> to vector<64x128xf32>
    %c96_i32_107 = arith.constant 96 : i32
    %447 = tpu.dynamic_rotate %446 by %c96_i32_107 dim 1 : vector<64x128xf32>, i32 -> vector<64x128xf32>
    %448 = arith.addf %423, %447 : vector<64x128xf32>
    %c-2_i32_108 = arith.constant -2 : i32
    %449 = vector.broadcast %c-2_i32_108 : i32 to vector<128x128xi32>
    %450 = arith.addi %428, %449 : vector<128x128xi32>
    %c0_i32_109 = arith.constant 0 : i32
    %451 = vector.broadcast %c0_i32_109 : i32 to vector<128x128xi32>
    %452 = arith.cmpi sge, %450, %451 : vector<128x128xi32>
    %c-2_i32_110 = arith.constant -2 : i32
    %453 = vector.broadcast %c-2_i32_110 : i32 to vector<128x128xi32>
    %454 = arith.addi %428, %453 : vector<128x128xi32>
    %c32_i32_111 = arith.constant 32 : i32
    %455 = vector.broadcast %c32_i32_111 : i32 to vector<128x128xi32>
    %456 = arith.cmpi slt, %454, %455 : vector<128x128xi32>
    %457 = arith.andi %452, %456 : vector<128x128xi1>
    %c2_i32_112 = arith.constant 2 : i32
    %458 = tpu.dynamic_rotate %421 by %c2_i32_112 dim 0 : vector<128x128xf32>, i32 -> vector<128x128xf32>
    %cst_113 = arith.constant 0.000000e+00 : f32
    %459 = vector.broadcast %cst_113 : f32 to vector<128x128xf32>
    %460 = arith.select %457, %458, %459 : vector<128x128xi1>, vector<128x128xf32>
    %461 = vector.shape_cast %460 : vector<128x128xf32> to vector<2x2x32x128xf32>
    %462 = vector.extract_strided_slice %461 {offsets = [0, 0, 0, 0], sizes = [2, 1, 32, 128], strides = [1, 1, 1, 1]} : vector<2x2x32x128xf32> to vector<2x1x32x128xf32>
    %463 = vector.shape_cast %462 : vector<2x1x32x128xf32> to vector<64x128xf32>
    %c32_i32_114 = arith.constant 32 : i32
    %464 = tpu.dynamic_rotate %463 by %c32_i32_114 dim 1 : vector<64x128xf32>, i32 -> vector<64x128xf32>
    %465 = arith.addf %444, %464 : vector<64x128xf32>
    %466 = vector.extract_strided_slice %461 {offsets = [0, 1, 0, 0], sizes = [2, 1, 32, 128], strides = [1, 1, 1, 1]} : vector<2x2x32x128xf32> to vector<2x1x32x128xf32>
    %467 = vector.shape_cast %466 : vector<2x1x32x128xf32> to vector<64x128xf32>
    %468 = arith.addf %424, %467 : vector<64x128xf32>
    %c-1_i32_115 = arith.constant -1 : i32
    %469 = vector.broadcast %c-1_i32_115 : i32 to vector<128x128xi32>
    %470 = arith.addi %428, %469 : vector<128x128xi32>
    %c0_i32_116 = arith.constant 0 : i32
    %471 = vector.broadcast %c0_i32_116 : i32 to vector<128x128xi32>
    %472 = arith.cmpi sge, %470, %471 : vector<128x128xi32>
    %c-1_i32_117 = arith.constant -1 : i32
    %473 = vector.broadcast %c-1_i32_117 : i32 to vector<128x128xi32>
    %474 = arith.addi %428, %473 : vector<128x128xi32>
    %c32_i32_118 = arith.constant 32 : i32
    %475 = vector.broadcast %c32_i32_118 : i32 to vector<128x128xi32>
    %476 = arith.cmpi slt, %474, %475 : vector<128x128xi32>
    %477 = arith.andi %472, %476 : vector<128x128xi1>
    %c1_i32_119 = arith.constant 1 : i32
    %478 = tpu.dynamic_rotate %421 by %c1_i32_119 dim 0 : vector<128x128xf32>, i32 -> vector<128x128xf32>
    %cst_120 = arith.constant 0.000000e+00 : f32
    %479 = vector.broadcast %cst_120 : f32 to vector<128x128xf32>
    %480 = arith.select %477, %478, %479 : vector<128x128xi1>, vector<128x128xf32>
    %481 = vector.shape_cast %480 : vector<128x128xf32> to vector<2x2x32x128xf32>
    %482 = vector.extract_strided_slice %481 {offsets = [0, 0, 0, 0], sizes = [2, 1, 32, 128], strides = [1, 1, 1, 1]} : vector<2x2x32x128xf32> to vector<2x1x32x128xf32>
    %483 = vector.shape_cast %482 : vector<2x1x32x128xf32> to vector<64x128xf32>
    %c64_i32_121 = arith.constant 64 : i32
    %484 = tpu.dynamic_rotate %483 by %c64_i32_121 dim 1 : vector<64x128xf32>, i32 -> vector<64x128xf32>
    %485 = arith.addf %465, %484 : vector<64x128xf32>
    %486 = vector.extract_strided_slice %481 {offsets = [0, 1, 0, 0], sizes = [2, 1, 32, 128], strides = [1, 1, 1, 1]} : vector<2x2x32x128xf32> to vector<2x1x32x128xf32>
    %487 = vector.shape_cast %486 : vector<2x1x32x128xf32> to vector<64x128xf32>
    %c32_i32_122 = arith.constant 32 : i32
    %488 = tpu.dynamic_rotate %487 by %c32_i32_122 dim 1 : vector<64x128xf32>, i32 -> vector<64x128xf32>
    %489 = arith.addf %468, %488 : vector<64x128xf32>
    %490 = vector.shape_cast %421 : vector<128x128xf32> to vector<2x2x32x128xf32>
    %491 = vector.extract_strided_slice %490 {offsets = [0, 0, 0, 0], sizes = [2, 1, 32, 128], strides = [1, 1, 1, 1]} : vector<2x2x32x128xf32> to vector<2x1x32x128xf32>
    %492 = vector.shape_cast %491 : vector<2x1x32x128xf32> to vector<64x128xf32>
    %c96_i32_123 = arith.constant 96 : i32
    %493 = tpu.dynamic_rotate %492 by %c96_i32_123 dim 1 : vector<64x128xf32>, i32 -> vector<64x128xf32>
    %494 = arith.addf %485, %493 : vector<64x128xf32>
    %495 = vector.extract_strided_slice %490 {offsets = [0, 1, 0, 0], sizes = [2, 1, 32, 128], strides = [1, 1, 1, 1]} : vector<2x2x32x128xf32> to vector<2x1x32x128xf32>
    %496 = vector.shape_cast %495 : vector<2x1x32x128xf32> to vector<64x128xf32>
    %c64_i32_124 = arith.constant 64 : i32
    %497 = tpu.dynamic_rotate %496 by %c64_i32_124 dim 1 : vector<64x128xf32>, i32 -> vector<64x128xf32>
    %498 = arith.addf %489, %497 : vector<64x128xf32>
    %c1_i32_125 = arith.constant 1 : i32
    %499 = vector.broadcast %c1_i32_125 : i32 to vector<128x128xi32>
    %500 = arith.addi %428, %499 : vector<128x128xi32>
    %c0_i32_126 = arith.constant 0 : i32
    %501 = vector.broadcast %c0_i32_126 : i32 to vector<128x128xi32>
    %502 = arith.cmpi sge, %500, %501 : vector<128x128xi32>
    %c1_i32_127 = arith.constant 1 : i32
    %503 = vector.broadcast %c1_i32_127 : i32 to vector<128x128xi32>
    %504 = arith.addi %428, %503 : vector<128x128xi32>
    %c32_i32_128 = arith.constant 32 : i32
    %505 = vector.broadcast %c32_i32_128 : i32 to vector<128x128xi32>
    %506 = arith.cmpi slt, %504, %505 : vector<128x128xi32>
    %507 = arith.andi %502, %506 : vector<128x128xi1>
    %c127_i32 = arith.constant 127 : i32
    %508 = tpu.dynamic_rotate %421 by %c127_i32 dim 0 : vector<128x128xf32>, i32 -> vector<128x128xf32>
    %cst_129 = arith.constant 0.000000e+00 : f32
    %509 = vector.broadcast %cst_129 : f32 to vector<128x128xf32>
    %510 = arith.select %507, %508, %509 : vector<128x128xi1>, vector<128x128xf32>
    %511 = vector.shape_cast %510 : vector<128x128xf32> to vector<2x2x32x128xf32>
    %512 = vector.extract_strided_slice %511 {offsets = [0, 0, 0, 0], sizes = [2, 1, 32, 128], strides = [1, 1, 1, 1]} : vector<2x2x32x128xf32> to vector<2x1x32x128xf32>
    %513 = vector.shape_cast %512 : vector<2x1x32x128xf32> to vector<64x128xf32>
    %514 = arith.addf %448, %513 : vector<64x128xf32>
    %515 = vector.extract_strided_slice %511 {offsets = [0, 1, 0, 0], sizes = [2, 1, 32, 128], strides = [1, 1, 1, 1]} : vector<2x2x32x128xf32> to vector<2x1x32x128xf32>
    %516 = vector.shape_cast %515 : vector<2x1x32x128xf32> to vector<64x128xf32>
    %c96_i32_130 = arith.constant 96 : i32
    %517 = tpu.dynamic_rotate %516 by %c96_i32_130 dim 1 : vector<64x128xf32>, i32 -> vector<64x128xf32>
    %518 = arith.addf %498, %517 : vector<64x128xf32>
    %c2_i32_131 = arith.constant 2 : i32
    %519 = vector.broadcast %c2_i32_131 : i32 to vector<128x128xi32>
    %520 = arith.addi %428, %519 : vector<128x128xi32>
    %c0_i32_132 = arith.constant 0 : i32
    %521 = vector.broadcast %c0_i32_132 : i32 to vector<128x128xi32>
    %522 = arith.cmpi sge, %520, %521 : vector<128x128xi32>
    %c2_i32_133 = arith.constant 2 : i32
    %523 = vector.broadcast %c2_i32_133 : i32 to vector<128x128xi32>
    %524 = arith.addi %428, %523 : vector<128x128xi32>
    %c32_i32_134 = arith.constant 32 : i32
    %525 = vector.broadcast %c32_i32_134 : i32 to vector<128x128xi32>
    %526 = arith.cmpi slt, %524, %525 : vector<128x128xi32>
    %527 = arith.andi %522, %526 : vector<128x128xi1>
    %c126_i32 = arith.constant 126 : i32
    %528 = tpu.dynamic_rotate %421 by %c126_i32 dim 0 : vector<128x128xf32>, i32 -> vector<128x128xf32>
    %cst_135 = arith.constant 0.000000e+00 : f32
    %529 = vector.broadcast %cst_135 : f32 to vector<128x128xf32>
    %530 = arith.select %527, %528, %529 : vector<128x128xi1>, vector<128x128xf32>
    %531 = vector.shape_cast %530 : vector<128x128xf32> to vector<2x2x32x128xf32>
    %532 = vector.extract_strided_slice %531 {offsets = [0, 0, 0, 0], sizes = [2, 1, 32, 128], strides = [1, 1, 1, 1]} : vector<2x2x32x128xf32> to vector<2x1x32x128xf32>
    %533 = vector.shape_cast %532 : vector<2x1x32x128xf32> to vector<64x128xf32>
    %c32_i32_136 = arith.constant 32 : i32
    %534 = tpu.dynamic_rotate %533 by %c32_i32_136 dim 1 : vector<64x128xf32>, i32 -> vector<64x128xf32>
    %535 = arith.addf %514, %534 : vector<64x128xf32>
    %536 = vector.extract_strided_slice %531 {offsets = [0, 1, 0, 0], sizes = [2, 1, 32, 128], strides = [1, 1, 1, 1]} : vector<2x2x32x128xf32> to vector<2x1x32x128xf32>
    %537 = vector.shape_cast %536 : vector<2x1x32x128xf32> to vector<64x128xf32>
    %538 = arith.addf %425, %537 : vector<64x128xf32>
    %c3_i32_137 = arith.constant 3 : i32
    %539 = vector.broadcast %c3_i32_137 : i32 to vector<128x128xi32>
    %540 = arith.addi %428, %539 : vector<128x128xi32>
    %c0_i32_138 = arith.constant 0 : i32
    %541 = vector.broadcast %c0_i32_138 : i32 to vector<128x128xi32>
    %542 = arith.cmpi sge, %540, %541 : vector<128x128xi32>
    %c3_i32_139 = arith.constant 3 : i32
    %543 = vector.broadcast %c3_i32_139 : i32 to vector<128x128xi32>
    %544 = arith.addi %428, %543 : vector<128x128xi32>
    %c32_i32_140 = arith.constant 32 : i32
    %545 = vector.broadcast %c32_i32_140 : i32 to vector<128x128xi32>
    %546 = arith.cmpi slt, %544, %545 : vector<128x128xi32>
    %547 = arith.andi %542, %546 : vector<128x128xi1>
    %c125_i32 = arith.constant 125 : i32
    %548 = tpu.dynamic_rotate %421 by %c125_i32 dim 0 : vector<128x128xf32>, i32 -> vector<128x128xf32>
    %cst_141 = arith.constant 0.000000e+00 : f32
    %549 = vector.broadcast %cst_141 : f32 to vector<128x128xf32>
    %550 = arith.select %547, %548, %549 : vector<128x128xi1>, vector<128x128xf32>
    %551 = vector.shape_cast %550 : vector<128x128xf32> to vector<2x2x32x128xf32>
    %552 = vector.extract_strided_slice %551 {offsets = [0, 0, 0, 0], sizes = [2, 1, 32, 128], strides = [1, 1, 1, 1]} : vector<2x2x32x128xf32> to vector<2x1x32x128xf32>
    %553 = vector.shape_cast %552 : vector<2x1x32x128xf32> to vector<64x128xf32>
    %c64_i32_142 = arith.constant 64 : i32
    %554 = tpu.dynamic_rotate %553 by %c64_i32_142 dim 1 : vector<64x128xf32>, i32 -> vector<64x128xf32>
    %555 = arith.addf %535, %554 : vector<64x128xf32>
    %556 = vector.extract_strided_slice %551 {offsets = [0, 1, 0, 0], sizes = [2, 1, 32, 128], strides = [1, 1, 1, 1]} : vector<2x2x32x128xf32> to vector<2x1x32x128xf32>
    %557 = vector.shape_cast %556 : vector<2x1x32x128xf32> to vector<64x128xf32>
    %c32_i32_143 = arith.constant 32 : i32
    %558 = tpu.dynamic_rotate %557 by %c32_i32_143 dim 1 : vector<64x128xf32>, i32 -> vector<64x128xf32>
    %559 = arith.addf %538, %558 : vector<64x128xf32>
    %560 = tpu.concatenate %494, %555, %518, %559 in 1 : vector<64x128xf32>, vector<64x128xf32>, vector<64x128xf32>, vector<64x128xf32> -> vector<64x512xf32>
    %c0_144 = arith.constant 0 : index
    %c0_145 = arith.constant 0 : index
    %561 = vector.load %arg5[%c0_144, %c0_145] : memref<512x128xf32, #tpu.memory_space<vmem>>, vector<512x128xf32>
    %cst_146 = arith.constant dense<0.000000e+00> : vector<64x128xf32>
    %562 = tpu.matmul %560, %561, %cst_146 {dimension_numbers = #tpu.dot_dimension_numbers<[1], [0], [0], [1], [0, 0, 1, 1], [], []>} : vector<64x512xf32>, vector<512x128xf32>, vector<64x128xf32> -> vector<64x128xf32>
    %c0_147 = arith.constant 0 : index
    %c0_148 = arith.constant 0 : index
    %563 = vector.load %arg6[%c0_147, %c0_148] : memref<3x128xf32, #tpu.memory_space<vmem>>, vector<3x128xf32>
    %564 = vector.extract_strided_slice %563 {offsets = [0, 0], sizes = [1, 128], strides = [1, 1]} : vector<3x128xf32> to vector<1x128xf32>
    %565 = vector.broadcast %564 : vector<1x128xf32> to vector<64x128xf32>
    %566 = arith.addf %562, %565 : vector<64x128xf32>
    %567 = arith.mulf %566, %566 : vector<64x128xf32>
    %568 = tpu.concatenate %566, %567 in 0 : vector<64x128xf32>, vector<64x128xf32> -> vector<128x128xf32>
    %569 = vector.shape_cast %568 : vector<128x128xf32> to vector<2x64x128xf32>
    %cst_149 = arith.constant dense<0.000000e+00> : vector<2x128xf32>
    %570 = vector.multi_reduction <add>, %569, %cst_149 [1] : vector<2x64x128xf32> to vector<2x128xf32>
    %cst_150 = arith.constant 1.562500e-02 : f32
    %571 = vector.broadcast %cst_150 : f32 to vector<2x128xf32>
    %572 = arith.mulf %570, %571 : vector<2x128xf32>
    %573 = vector.extract_strided_slice %572 {offsets = [0, 0], sizes = [1, 128], strides = [1, 1]} : vector<2x128xf32> to vector<1x128xf32>
    %574 = vector.extract_strided_slice %572 {offsets = [1, 0], sizes = [1, 128], strides = [1, 1]} : vector<2x128xf32> to vector<1x128xf32>
    %575 = arith.mulf %573, %573 : vector<1x128xf32>
    %576 = arith.subf %574, %575 : vector<1x128xf32>
    %cst_151 = arith.constant 0.000000e+00 : f32
    %577 = vector.broadcast %cst_151 : f32 to vector<1x128xf32>
    %578 = arith.maximumf %576, %577 : vector<1x128xf32>
    %579 = vector.extract_strided_slice %563 {offsets = [1, 0], sizes = [1, 128], strides = [1, 1]} : vector<3x128xf32> to vector<1x128xf32>
    %cst_152 = arith.constant 9.99999974E-6 : f32
    %580 = vector.broadcast %cst_152 : f32 to vector<1x128xf32>
    %581 = arith.addf %578, %580 : vector<1x128xf32>
    %582 = math.rsqrt %581 : vector<1x128xf32>
    %583 = arith.mulf %579, %582 : vector<1x128xf32>
    %584 = vector.extract_strided_slice %563 {offsets = [2, 0], sizes = [1, 128], strides = [1, 1]} : vector<3x128xf32> to vector<1x128xf32>
    %585 = arith.mulf %573, %583 : vector<1x128xf32>
    %586 = arith.subf %584, %585 : vector<1x128xf32>
    %587 = vector.broadcast %583 : vector<1x128xf32> to vector<64x128xf32>
    %588 = arith.mulf %566, %587 : vector<64x128xf32>
    %589 = vector.broadcast %586 : vector<1x128xf32> to vector<64x128xf32>
    %590 = arith.addf %588, %589 : vector<64x128xf32>
    %cst_153 = arith.constant 0.000000e+00 : f32
    %591 = vector.broadcast %cst_153 : f32 to vector<64x128xf32>
    %592 = arith.maximumf %590, %591 : vector<64x128xf32>
    %cst_154 = arith.constant 0.000000e+00 : f32
    %593 = vector.broadcast %cst_154 : f32 to vector<64x896xf32>
    %594 = tpu.concatenate %592, %593 in 1 : vector<64x128xf32>, vector<64x896xf32> -> vector<64x1024xf32>
    %595 = vector.shape_cast %594 : vector<64x1024xf32> to vector<2x32x1024xf32>
    %596 = vector.extract_strided_slice %595 {offsets = [0, 0, 0], sizes = [2, 16, 1024], strides = [1, 1, 1]} : vector<2x32x1024xf32> to vector<2x16x1024xf32>
    %597 = vector.extract_strided_slice %595 {offsets = [0, 16, 0], sizes = [2, 16, 1024], strides = [1, 1, 1]} : vector<2x32x1024xf32> to vector<2x16x1024xf32>
    %c512_i32 = arith.constant 512 : i32
    %598 = tpu.dynamic_rotate %597 by %c512_i32 dim 2 : vector<2x16x1024xf32>, i32 -> vector<2x16x1024xf32>
    %599 = arith.addf %596, %598 : vector<2x16x1024xf32>
    %600 = vector.extract_strided_slice %599 {offsets = [0, 0, 0], sizes = [2, 8, 1024], strides = [1, 1, 1]} : vector<2x16x1024xf32> to vector<2x8x1024xf32>
    %601 = vector.extract_strided_slice %599 {offsets = [0, 8, 0], sizes = [2, 8, 1024], strides = [1, 1, 1]} : vector<2x16x1024xf32> to vector<2x8x1024xf32>
    %c256_i32 = arith.constant 256 : i32
    %602 = tpu.dynamic_rotate %601 by %c256_i32 dim 2 : vector<2x8x1024xf32>, i32 -> vector<2x8x1024xf32>
    %603 = arith.addf %600, %602 : vector<2x8x1024xf32>
    %604 = vector.extract_strided_slice %603 {offsets = [0, 0, 0], sizes = [2, 4, 1024], strides = [1, 1, 1]} : vector<2x8x1024xf32> to vector<2x4x1024xf32>
    %605 = vector.extract_strided_slice %603 {offsets = [0, 4, 0], sizes = [2, 4, 1024], strides = [1, 1, 1]} : vector<2x8x1024xf32> to vector<2x4x1024xf32>
    %c128_i32 = arith.constant 128 : i32
    %606 = tpu.dynamic_rotate %605 by %c128_i32 dim 2 : vector<2x4x1024xf32>, i32 -> vector<2x4x1024xf32>
    %607 = arith.addf %604, %606 : vector<2x4x1024xf32>
    %608 = vector.extract_strided_slice %607 {offsets = [0, 0, 0], sizes = [2, 2, 1024], strides = [1, 1, 1]} : vector<2x4x1024xf32> to vector<2x2x1024xf32>
    %609 = vector.extract_strided_slice %607 {offsets = [0, 2, 0], sizes = [2, 2, 1024], strides = [1, 1, 1]} : vector<2x4x1024xf32> to vector<2x2x1024xf32>
    %c64_i32_155 = arith.constant 64 : i32
    %610 = tpu.dynamic_rotate %609 by %c64_i32_155 dim 2 : vector<2x2x1024xf32>, i32 -> vector<2x2x1024xf32>
    %611 = arith.addf %608, %610 : vector<2x2x1024xf32>
    %612 = vector.extract_strided_slice %611 {offsets = [0, 0, 0], sizes = [2, 1, 1024], strides = [1, 1, 1]} : vector<2x2x1024xf32> to vector<2x1x1024xf32>
    %613 = vector.extract_strided_slice %611 {offsets = [0, 1, 0], sizes = [2, 1, 1024], strides = [1, 1, 1]} : vector<2x2x1024xf32> to vector<2x1x1024xf32>
    %c32_i32_156 = arith.constant 32 : i32
    %614 = tpu.dynamic_rotate %613 by %c32_i32_156 dim 2 : vector<2x1x1024xf32>, i32 -> vector<2x1x1024xf32>
    %615 = arith.addf %612, %614 : vector<2x1x1024xf32>
    %616 = vector.shape_cast %615 : vector<2x1x1024xf32> to vector<2x1024xf32>
    %c0_157 = arith.constant 0 : index
    %c0_158 = arith.constant 0 : index
    %617 = vector.load %arg7[%c0_157, %c0_158] : memref<1024x256xf32, #tpu.memory_space<vmem>>, vector<1024x256xf32>
    %cst_159 = arith.constant dense<0.000000e+00> : vector<2x256xf32>
    %618 = tpu.matmul %616, %617, %cst_159 {dimension_numbers = #tpu.dot_dimension_numbers<[1], [0], [0], [1], [0, 0, 1, 1], [], []>} : vector<2x1024xf32>, vector<1024x256xf32>, vector<2x256xf32> -> vector<2x256xf32>
    %c0_160 = arith.constant 0 : index
    %c0_161 = arith.constant 0 : index
    %619 = vector.load %arg8[%c0_160, %c0_161] : memref<1x256xf32, #tpu.memory_space<vmem>>, vector<1x256xf32>
    %620 = vector.broadcast %619 : vector<1x256xf32> to vector<2x256xf32>
    %621 = arith.addf %618, %620 : vector<2x256xf32>
    %cst_162 = arith.constant 0.000000e+00 : f32
    %622 = vector.broadcast %cst_162 : f32 to vector<2x256xf32>
    %623 = arith.maximumf %621, %622 : vector<2x256xf32>
    %c0_163 = arith.constant 0 : index
    %c0_164 = arith.constant 0 : index
    %624 = vector.load %arg9[%c0_163, %c0_164] : memref<2x256xf32, #tpu.memory_space<vmem>>, vector<2x256xf32>
    tpu.vector_store %arg9[%c0_163, %c0_164], %623 {strides = array<i32>} : memref<2x256xf32, #tpu.memory_space<vmem>>, vector<2x256xf32>,
    return
  }
}

</mosaic_0001>

<bundles_post_ra>
// kernel: conv_body_forward.1
= control target key start
LH: loop header
LB: loop body
LE: loop exit
PB: predicated region body
PF: predicated region fallthrough
CT: control target
= control target key end

     0   :  { %14 = vsyncpa [#allocation3], 0  ;;  %s13655_s0 = inlined_call_operand.vmem [shape: f32[256,1], index: 0, kind: input, shape index: {}]   ;;  %s13656_s1 = inlined_call_operand.vmem [shape: f32[18,128], index: 1, kind: input, shape index: {}]   ;;  %s13657_s2 = inlined_call_operand.vmem [shape: f32[3,128], index: 2, kind: input, shape index: {}]   ;;  %s13658_s3 = inlined_call_operand.vmem [shape: f32[256,128], index: 3, kind: input, shape index: {}]   ;;  %s13659_s4 = inlined_call_operand.vmem [shape: f32[3,128], index: 4, kind: input, shape index: {}]   ;;  %s13660_s5 = inlined_call_operand.hbm [shape: f32[512,128], index: 5, kind: input, shape index: {}]   ;;  %s13661_s6 = inlined_call_operand.vmem [shape: f32[3,128], index: 6, kind: input, shape index: {}]   ;;  %s13662_s7 = inlined_call_operand.hbm [shape: f32[1024,256], index: 7, kind: input, shape index: {}]   ;;  %s13663_s8 = inlined_call_operand.vmem [shape: f32[1,256], index: 8, kind: input, shape index: {}]   ;;  %s13664_s9 = inlined_call_operand.hbm [shape: f32[2,256], index: 9, kind: output, shape index: {}]  }
   0x1   :  { %15 = vsyncpa [#allocation6], 0 }
   0x2   :  { %16 = vsyncpa [#allocation4], 0  ;;  %s7022_s30 = smov [#allocation2]   ;;  %s6950_s13 = scalar_lea.hbm %s13660_s5, 8192 }
   0x3   :  { %s32_s10 = sshll.u32 %s7022_s30, 4  ;;  %p6951_p0 = scmp.ne.s32.totalorder %s13660_s5, %s6950_s13  ;;  %s33_s10 = int_to_ptr.vmem [resolvable:$true] %s32_s10 }
   0x4   :  { %p6954_p1 = scmp.lt.u32.totalorder %s6950_s13, %s13660_s5 }
   0x6   :  { %p6956_p2 = pnand %p6954_p1, %p6951_p0 }
   0x8   :  { %6959 = shalt.err (!%p6956_p2)
}
   0x9   :  { %s6960_s18 = scalar_lea.vmem %s33_s10, 8192  ;;  %p6965_p4 = scmp.lt.s32.totalorder %s33_s10, %s33_s10 }
   0xa   :  { %p6961_p3 = scmp.ne.s32.totalorder %s33_s10, %s6960_s18  ;;  %p6966_p5 = scmp.lt.s32.totalorder %s6960_s18, %s6960_s18 }
   0xc   :  { %p6967_p6 = por %p6966_p5, %p6965_p4 }
   0xe   :  { %p6968_p7 = pnand %p6967_p6, %p6961_p3 }
  0x10   :  { %6971 = shalt.err (!%p6968_p7)
}
  0x11   :  { %s7023_s19 = smov 128   ;;  %s7024_s20 = smov 8  }
  0x12   :  { %38 = dma.hbm_to_vmem [thread:$0]  %s13660_s5, 8192, %s33_s10, [#allocation3], %s7023_s19, %s7023_s19, %s7024_s20  }
  0x13   :  { %s7025_s23 = smov [#allocation5]   ;;  %s6972_s27 = scalar_lea.hbm %s13662_s7, 32768 }
  0x14   :  { %s46_s24 = sshll.u32 %s7025_s23, 4  ;;  %p6973_p8 = scmp.ne.s32.totalorder %s13662_s7, %s6972_s27  ;;  %s47_s24 = int_to_ptr.vmem [resolvable:$true] %s46_s24 }
  0x15   :  { %p6976_p9 = scmp.lt.u32.totalorder %s6972_s27, %s13662_s7 }
  0x17   :  { %p6978_p10 = pnand %p6976_p9, %p6973_p8 }
  0x19   :  { %6981 = shalt.err (!%p6978_p10)
}
  0x1a   :  { %s6982_s12 = scalar_lea.vmem %s47_s24, 32768  ;;  %p6987_p12 = scmp.lt.s32.totalorder %s47_s24, %s47_s24 }
  0x1b   :  { %p6983_p11 = scmp.ne.s32.totalorder %s47_s24, %s6982_s12  ;;  %p6988_p13 = scmp.lt.s32.totalorder %s6982_s12, %s6982_s12 }
  0x1d   :  { %p6989_p0 = por %p6988_p13, %p6987_p12 }
  0x1f   :  { %p6990_p1 = pnand %p6989_p0, %p6983_p11 }
  0x21   :  { %6993 = shalt.err (!%p6990_p1)
}
  0x22   :  { %s7026_s5 = smov 256   ;;  %s7027_s10 = smov 16  }
  0x23   :  { %52 = dma.hbm_to_vmem [thread:$0]  %s13662_s7, 32768, %s47_s24, [#allocation6], %s7026_s5, %s7026_s5, %s7027_s10  }
  0x24   :  { %7016 = dma.done.wait [#allocation3], 8192  }
  0x25   :  { %7017 = vsyncadd [#allocation3], 4294959104 }
  0x26   :  { %7018 = dma.done.wait [#allocation6], 32768  }
  0x27   :  { %7019 = vsyncadd [#allocation6], 4294934528  ;;  %v7028_v0 = vmov 0   ;;  %v65_v1 = vld [vmem:[%s13655_s0 + $0x20] sm:$0xff]  ;;  %v92_v3 = vld [vmem:[%s13655_s0 + $0xf8] sm:$0xff]  ;;  %v13665_v33 = vlaneseq  ;;  %s7030_s7 = smov 48  }
  0x28   :  { %6942 = vset.pattern.permute.xlu1 %v7028_v0  ;;  %6941 = vset.pattern.permute.xlu0 %v7028_v0  ;;  %v61_v2 = vld [vmem:[%s13655_s0] sm:$0xff]  ;;  %v64_v4 = vld [vmem:[%s13655_s0 + $0x18] sm:$0xff]  ;;  %v66_v5 = vld [vmem:[%s13655_s0 + $0x28] sm:$0xff]  ;;  %s7031_s21 = smov 112   ;;  %s7032_s22 = smov 64  }
  0x29   :  { %115 = vperm.xlu1 %6942, %v65_v1   ;;  %95 = vperm.xlu0 %6941, %v61_v2   ;;  %v62_v6 = vld [vmem:[%s13655_s0 + $0x8] sm:$0xff]  ;;  %v67_v7 = vld [vmem:[%s13655_s0 + $0x30] sm:$0xff]  ;;  %v69_v9 = vld [vmem:[%s13655_s0 + $0x40] sm:$0xff]  ;;  %v7209_v34 = vshrl.u32 %v13665_v33, 7  ;;  %s7033_s23 = smov 80   ;;  %s7034_s24 = smov 96  }
  0x2a   :  { %v63_v8 = vld [vmem:[%s13655_s0 + $0x10] sm:$0xff]  ;;  %v68_v10 = vld [vmem:[%s13655_s0 + $0x38] sm:$0xff]  ;;  %v70_v12 = vld [vmem:[%s13655_s0 + $0x48] sm:$0xff] }
  0x2b   :  { %v71_v11 = vld [vmem:[%s13655_s0 + $0x50] sm:$0xff]  ;;  %v73_v13 = vld [vmem:[%s13655_s0 + $0x60] sm:$0xff]  ;;  %v72_v14 = vld [vmem:[%s13655_s0 + $0x58] sm:$0xff]  ;;  %14010 = vst [vmem:[#allocation11_spill] sm:$0xff] %v7209_v34  ;;  %v288_v35 = vadd.s32 248, %v7209_v34  ;;  %v289_v36 = vand.u32 31, %v7209_v34 }
  0x2c   :  { %v75_v15 = vld [vmem:[%s13655_s0 + $0x70] sm:$0xff]  ;;  %v74_v16 = vld [vmem:[%s13655_s0 + $0x68] sm:$0xff]  ;;  %v77_v17 = vld [vmem:[%s13655_s0 + $0x80] sm:$0xff]  ;;  %v1587_v37 = vsub.s32 4, %v7209_v34  ;;  %v7215_v38 = vsub.s32 0, %v7209_v34  ;;  %v7218_v39 = vsub.s32 1, %v7209_v34 }
  0x2d   :  { %250 = vperm.xlu1 %6942, %v92_v3   ;;  %110 = vperm.xlu0 %6941, %v64_v4   ;;  %v76_v18 = vld [vmem:[%s13655_s0 + $0x78] sm:$0xff]  ;;  %v81_v19 = vld [vmem:[%s13655_s0 + $0xa0] sm:$0xff]  ;;  %v82_v21 = vld [vmem:[%s13655_s0 + $0xa8] sm:$0xff]  ;;  %v1691_v41 = vsub.s32 5, %v7209_v34  ;;  %v7225_v42 = vsub.s32 2, %v7209_v34  ;;  %v1258_v43 = vsub.s32 3, %v7209_v34 }
  0x2e   :  { %v80_v20 = vld [vmem:[%s13655_s0 + $0x98] sm:$0xff]  ;;  %v78_v22 = vld [vmem:[%s13655_s0 + $0x88] sm:$0xff]  ;;  %v83_v23 = vld [vmem:[%s13655_s0 + $0xb0] sm:$0xff]  ;;  %14011 = vst [vmem:[#allocation12_spill] sm:$0xff] %v7215_v38  ;;  %v320_v45 = vand.u32 31, %v288_v35  ;;  %v7231_v46 = vadd.s32 4294967292, %v289_v36 }
  0x2f   :  { %v79_v24 = vld [vmem:[%s13655_s0 + $0x90] sm:$0xff]  ;;  %v85_v25 = vld [vmem:[%s13655_s0 + $0xc0] sm:$0xff]  ;;  %v84_v26 = vld [vmem:[%s13655_s0 + $0xb8] sm:$0xff]  ;;  %14012 = vst [vmem:[#allocation13_spill] sm:$0xff] %v7218_v39  ;;  %v7233_v47 = vadd.s32 4294967293, %v289_v36  ;;  %v7235_v48 = vadd.s32 4294967294, %v289_v36 }
  0x30   :  { %v87_v27 = vld [vmem:[%s13655_s0 + $0xd0] sm:$0xff]  ;;  %v86_v28 = vld [vmem:[%s13655_s0 + $0xc8] sm:$0xff]  ;;  %v89_v29 = vld [vmem:[%s13655_s0 + $0xe0] sm:$0xff]  ;;  %14013 = vst [vmem:[#allocation14_spill] sm:$0xff] %v7225_v42  ;;  %v7237_v49 = vadd.s32 4294967295, %v289_v36  ;;  %v2020_v50 = vsub.s32 6, %v7209_v34 }
  0x31   :  { %120 = vperm.xlu1 %6942, %v66_v5   ;;  %100 = vperm.xlu0 %6941, %v62_v6   ;;  %v88_v30 = vld [vmem:[%s13655_s0 + $0xd8] sm:$0xff]  ;;  %v91_v31 = vld [vmem:[%s13655_s0 + $0xf0] sm:$0xff]  ;;  %v90_v32 = vld [vmem:[%s13655_s0 + $0xe8] sm:$0xff]  ;;  %14014 = vst [vmem:[#allocation15_spill] sm:$0xff] %v7233_v47  ;;  %v261_v51 = vadd.s32 32, %v7209_v34  ;;  %v2349_v55 = vsub.s32 7, %v7209_v34 }
  0x32   :  { %v253_v40 = vld [vmem:[%s13656_s1] sm:$0xff]  ;;  %v254_v44 = vld [vmem:[%s13656_s1 + $0x8] sm:$0xff]  ;;  %14015 = vst [vmem:[#allocation16_spill] sm:$0xff] %v7235_v48  ;;  %14016 = vst [vmem:[#allocation17_spill] sm:$0xff] %v7237_v49  ;;  %v260_v60 = vadd.s32 24, %v7209_v34  ;;  %v7261_v61 = vadd.s32 1, %v320_v45 }
  0x33   :  { %v7241_v52 = vrot.slane %v253_v40, %v1587_v37  ;;  %v7244_v53 = vrot.slane %v253_v40, %v7215_v38  ;;  %v7247_v54 = vrot.slane %v253_v40, %v7218_v39  ;;  %v7250_v56 = vrot.slane %v254_v44, %v1691_v41  ;;  %v255_v57 = vld [vmem:[%s13656_s1 + $0x10] sm:$0x3] }
  0x34   :  { %v7256_v58 = vrot.slane %v253_v40, %v7225_v42  ;;  %v7258_v59 = vrot.slane %v253_v40, %v1258_v43  ;;  %v7263_v62 = vrot.slane %v253_v40, %v1691_v41  ;;  %v7265_v63 = vadd.s32 4, %v320_v45 }
  0x35   :  { %125 = vperm.xlu1 %6942, %v67_v7   ;;  %105 = vperm.xlu0 %6941, %v63_v8   ;;  %14017 = vst [vmem:[#allocation18_spill] sm:$0xff] %v7244_v53  ;;  %14018 = vst [vmem:[#allocation19_spill] sm:$0xff] %v7247_v54  ;;  %v265_v0 = vadd.s32 64, %v7209_v34  ;;  %vm481_vm0 = vcmp.lt.s32.totalorder %v7209_v34, 4  ;;  %v7269_v1 = vrot.slane %v254_v44, %v2020_v50  ;;  %v7271_v2 = vadd.s32 2, %v320_v45 }
  0x36   :  { %14019 = vst [vmem:[#allocation20_spill] sm:$0xff] %v7256_v58  ;;  %14020 = vst [vmem:[#allocation21_spill] sm:$0xff] %v7258_v59  ;;  %v7273_v3 = vadd.s32 3, %v320_v45  ;;  %v293_v4 = vand.u32 31, %v261_v51  ;;  %v7275_v5 = vrot.slane %v254_v44, %v2349_v55  ;;  %v7278_v6 = vrot.slane %v255_v57, %v7215_v38 }
  0x37   :  { %14021 = vst [vmem:[#allocation22_spill] sm:$0xff] %v7263_v62  ;;  %v7281_v7 = vrot.slane %v255_v57, %v7218_v39  ;;  %v264_v8 = vadd.s32 56, %v7209_v34  ;;  %vm810_vm1 = vcmp.lt.s32.totalorder %v7209_v34, 3  ;;  %vm2823_vm2 = vcmp.lt.s32.totalorder %v7265_v63, 32 }
  0x38   :  { %14022 = vst [vmem:[#allocation23_spill] sm:$0xff] %v7278_v6  ;;  %vm353_vm3 = vcmp.ge.s32.totalorder %v7231_v46, 0  ;;  %vm13685_vm4 = vcmp.ge.s32.totalorder %v7233_v47, 0  ;;  %vm1139_vm5 = vcmp.lt.s32.totalorder %v7209_v34, 2  ;;  %vm1468_vm7 = vcmp.lt.s32.totalorder %v7209_v34, 1 }
  0x39   :  { %135 = vperm.xlu1 %6942, %v69_v9   ;;  %130 = vperm.xlu0 %6941, %v68_v10   ;;  %14023 = vst [vmem:[#allocation24_spill] sm:$0xff] %v7281_v7  ;;  %v292_v9 = vand.u32 31, %v260_v60  ;;  %v7285_v10 = vrot.slane %v254_v44, %v7218_v39  ;;  %vm13686_vm8 = vcmp.ge.s32.totalorder %v7235_v48, 0  ;;  %vm1901_vm9 = vcmp.lt.s32.totalorder %v7209_v34, 7 }
  0x3a   :  { %vm2230_vm11 = vcmp.lt.s32.totalorder %v7209_v34, 6  ;;  %vm13697_vm12 = vcmp.ge.s32.totalorder %v7237_v49, 0  ;;  %vm2559_vm13 = vcmp.lt.s32.totalorder %v7209_v34, 5  ;;  %vm2494_vm15 = vcmp.lt.s32.totalorder %v7273_v3, 32 }
  0x3b   :  { %14024 = vst [vmem:[#allocation25_spill] sm:$0xff] %v7285_v10  ;;  %v7331_v35 = vadd.s32 4, %v292_v9 }
  0x3d   :  { %145 = vperm.xlu1 %6942, %v71_v11   ;;  %140 = vperm.xlu0 %6941, %v70_v12   ;;  %v7288_v11 = vrot.slane %v254_v44, %v7225_v42  ;;  %v269_v12 = vadd.s32 96, %v7209_v34 }
  0x41   :  { %155 = vperm.xlu1 %6942, %v73_v13   ;;  %150 = vperm.xlu0 %6941, %v72_v14   ;;  %v7295_v14 = vrot.slane %v254_v44, %v1258_v43 }
  0x43   :  { %14025 = vst [vmem:[#allocation26_spill] sm:$0xff] %v7295_v14 }
  0x45   :  { %165 = vperm.xlu1 %6942, %v75_v15   ;;  %160 = vperm.xlu0 %6941, %v74_v16   ;;  %v7297_v15 = vrot.slane %v254_v44, %v1587_v37  ;;  %v297_v16 = vand.u32 31, %v265_v0 }
  0x47   :  { %v7336_v37 = vadd.s32 4294967292, %v297_v16  ;;  %v7340_v41 = vadd.s32 4294967293, %v297_v16  ;;  %v7342_v43 = vadd.s32 4294967294, %v297_v16 }
  0x49   :  { %175 = vperm.xlu1 %6942, %v77_v17   ;;  %170 = vperm.xlu0 %6941, %v76_v18   ;;  %v7300_v17 = vadd.s32 4294967292, %v293_v4  ;;  %v7302_v18 = vrot.slane %v253_v40, %v2020_v50  ;;  %14036 = vst [vmem:[#allocation37_spill] sm:$0xff] %v7340_v41  ;;  %14037 = vst [vmem:[#allocation38_spill] sm:$0xff] %v7342_v43  ;;  %v7348_v50 = vadd.s32 4294967295, %v297_v16 }
  0x4b   :  { %14026 = vst [vmem:[#allocation27_spill] sm:$0xff] %v7302_v18  ;;  %vm357_vm6 = vcmp.ge.s32.totalorder %v7300_v17, 0  ;;  %14039 = vst [vmem:[#allocation40_spill] sm:$0xff] %v7348_v50 }
  0x4d   :  { %195 = vperm.xlu1 %6942, %v81_v19   ;;  %190 = vperm.xlu0 %6941, %v80_v20   ;;  %v7304_v19 = vrot.slane %v253_v40, %v2349_v55  ;;  %v2992_v20 = vld [vmem:[%s13657_s2] sm:$0x7] }
  0x4e   :  { %v7334_v36 = vrot.slane %v2992_v20, %v7215_v38 }
  0x4f   :  { %14027 = vst [vmem:[#allocation28_spill] sm:$0xff] %v7304_v19 }
  0x51   :  { %200 = vperm.xlu1 %6942, %v82_v21   ;;  %180 = vperm.xlu0 %6941, %v78_v22   ;;  %v268_v21 = vadd.s32 88, %v7209_v34  ;;  %v7310_v22 = vadd.s32 4294967293, %v293_v4 }
  0x53   :  { %14028 = vst [vmem:[#allocation29_spill] sm:$0xff] %v7310_v22  ;;  %vm13694_vm10 = vcmp.ge.s32.totalorder %v7310_v22, 0 }
  0x55   :  { %205 = vperm.xlu1 %6942, %v83_v23   ;;  %185 = vperm.xlu0 %6941, %v79_v24   ;;  %v7312_v23 = vadd.s32 4294967294, %v293_v4  ;;  %v7315_v24 = vrot.slane %v254_v44, %v7215_v38  ;;  %v7344_v44 = vand.u32 31, %v268_v21 }
  0x57   :  { %14029 = vst [vmem:[#allocation30_spill] sm:$0xff] %v7312_v23  ;;  %14030 = vst [vmem:[#allocation31_spill] sm:$0xff] %v7315_v24  ;;  %v7381_v21 = vadd.s32 2, %v7344_v44  ;;  %v7387_v33 = vadd.s32 4, %v7344_v44  ;;  %vm13800_vm14 = vcmp.ge.s32.totalorder %v7312_v23, 0 }
  0x58   :  { %14038 = vst [vmem:[#allocation39_spill] sm:$0xff] %v7344_v44 }
  0x59   :  { %215 = vperm.xlu1 %6942, %v85_v25   ;;  %210 = vperm.xlu0 %6941, %v84_v26   ;;  %v296_v25 = vand.u32 31, %v264_v8  ;;  %14047 = vst [vmem:[#allocation48_spill] sm:$0xff] %v7381_v21  ;;  %14049 = vst [vmem:[#allocation50_spill] sm:$0xff] %v7387_v33 }
  0x5b   :  { %v7350_v51 = vadd.s32 1, %v296_v25  ;;  %v7352_v55 = vadd.s32 2, %v296_v25  ;;  %v7358_v60 = vadd.s32 3, %v296_v25  ;;  %v7360_v0 = vadd.s32 4, %v296_v25 }
  0x5c   :  { %v7384_v25 = vadd.s32 3, %v7344_v44 }
  0x5d   :  { %225 = vperm.xlu1 %6942, %v87_v27   ;;  %220 = vperm.xlu0 %6941, %v86_v28   ;;  %v7321_v27 = vadd.s32 4294967295, %v293_v4  ;;  %v7323_v28 = vadd.s32 1, %v292_v9  ;;  %14040 = vst [vmem:[#allocation41_spill] sm:$0xff] %v7350_v51  ;;  %14041 = vst [vmem:[#allocation42_spill] sm:$0xff] %v7352_v55 }
  0x5e   :  { %14042 = vst [vmem:[#allocation43_spill] sm:$0xff] %v7358_v60  ;;  %14048 = vst [vmem:[#allocation49_spill] sm:$0xff] %v7384_v25 }
  0x5f   :  { %14031 = vst [vmem:[#allocation32_spill] sm:$0xff] %v7321_v27  ;;  %14032 = vst [vmem:[#allocation33_spill] sm:$0xff] %v7323_v28 }
  0x61   :  { %235 = vperm.xlu1 %6942, %v89_v29   ;;  %230 = vperm.xlu0 %6941, %v88_v30   ;;  %v7325_v29 = vadd.s32 2, %v292_v9  ;;  %v301_v30 = vand.u32 31, %v269_v12 }
  0x63   :  { %14033 = vst [vmem:[#allocation34_spill] sm:$0xff] %v7325_v29  ;;  %v7362_v4 = vadd.s32 4294967292, %v301_v30  ;;  %v7373_v12 = vadd.s32 4294967294, %v301_v30  ;;  %v7375_v16 = vadd.s32 4294967295, %v301_v30 }
  0x65   :  { %245 = vperm.xlu1 %6942, %v91_v31   ;;  %240 = vperm.xlu0 %6941, %v90_v32   ;;  %v7329_v32 = vadd.s32 3, %v292_v9  ;;  %14043 = vst [vmem:[#allocation44_spill] sm:$0xff] %v7362_v4  ;;  %v7371_v9 = vadd.s32 4294967293, %v301_v30  ;;  %14045 = vst [vmem:[#allocation46_spill] sm:$0xff] %v7373_v12 }
  0x66   :  { %14046 = vst [vmem:[#allocation47_spill] sm:$0xff] %v7375_v16 }
  0x67   :  { %14035 = vst [vmem:[#allocation36_spill] sm:$0xff] %v7329_v32  ;;  %14044 = vst [vmem:[#allocation45_spill] sm:$0xff] %v7371_v9 }
  0xa8   :  { %v7291_v13 = vpop.permute.xlu1 %115  ;;  %v7317_v26 = vpop.permute.xlu0 %95 }
  0xa9   :  { %v13667_v45 = vrot.slane %v7317_v26, 4  ;;  %v7399_v42 = vmul.f32 %v7241_v52, %v7291_v13  ;;  %v7415_v38 = vmul.f32 %v7250_v56, %v7291_v13  ;;  %v13679_v44 = vrot.slane %v7317_v26, 6 }
  0xaa   :  { %v14055_v21 = vrot.slane %v7291_v13, 5  ;;  %v13689_v46 = vrot.slane %v7317_v26, 1  ;;  %v14057_v9 = vrot.slane %v7317_v26, 7  ;;  %v14061_v48 = vrot.slane %v7291_v13, 6 }
  0xab   :  { %14050 = vst [vmem:[#allocation51_spill] sm:$0xff] %v7399_v42  ;;  %v1641_v4 = vmul.f32 %v7241_v52, %v7317_v26 }
  0xac   :  { %v7327_v31 = vpop.permute.xlu1 %250  ;;  %v7394_v20 = vpop.permute.xlu0 %110 }
  0xad   :  { %14034 = vst [vmem:[#allocation35_spill] sm:$0xff] %v7327_v31  ;;  %v13666_v40 = vrot.slane %v7327_v31, 4  ;;  %v14052_v30 = vrot.slane %v7327_v31, 5  ;;  %v14053_v39 = vrot.slane %v7327_v31, 6  ;;  %v14059_v12 = vrot.slane %v7327_v31, 1 }
  0xae   :  { %v13699_v22 = vrot.slane %v7394_v20, 1 }
  0xaf   :  { %v513_v8 = vsel %vm481_vm0, %v13666_v40, %v13667_v45  ;;  %v14051_v40 = vrot.slane %v7317_v26, 5  ;;  %v1171_v16 = vsel %vm1139_vm5, %v14053_v39, %v13679_v44  ;;  %v14056_v39 = vrot.slane %v7394_v20, 5 }
  0xb0   :  { %v7410_v57 = vsel %vm2823_vm2, %v513_v8, 0.0  ;;  %v514_v25 = vsel %vm353_vm3, %v513_v8, 0.0  ;;  %vm1344_vm2 = vcmp.ge.s32.totalorder %v7321_v27, 0  ;;  %vm13795_vm3 = vcmp.lt.s32.totalorder %v7323_v28, 32  ;;  %v7511_v42 = vpop.permute.xlu1 %120 }
  0xb1   :  { %v842_v45 = vsel %vm810_vm1, %v14052_v30, %v14051_v40  ;;  %v13682_v30 = vrot.slane %v7394_v20, 4  ;;  %v550_v63 = vmul.f32 %v7244_v53, %v514_v25  ;;  %v14054_v40 = vrot.slane %v7291_v13, 4 }
  0xb2   :  { %v843_v33 = vsel %vm13685_vm4, %v842_v45, 0.0  ;;  %v838_v44 = vsel %vm810_vm1, %v14056_v39, %v14055_v21  ;;  %v14058_v21 = vrot.slane %v7327_v31, 7  ;;  %v1172_v17 = vsel %vm13686_vm8, %v1171_v16, 0.0 }
  0xb3   :  { %v7444_v45 = vsel %vm481_vm0, %v13682_v30, %v14054_v40  ;;  %v13693_v30 = vrot.slane %v7317_v26, 2  ;;  %v879_v47 = vmul.f32 %v7247_v54, %v843_v33  ;;  %v1933_v8 = vsel %vm1901_vm9, %v14059_v12, %v13689_v46 }
  0xb4   :  { %v518_v40 = vsel %vm357_vm6, %v7444_v45, 0.0  ;;  %v1500_v39 = vsel %vm1468_vm7, %v14058_v21, %v14057_v9  ;;  %vm13732_vm6 = vcmp.lt.s32.totalorder %v7325_v29, 32  ;;  %v847_v9 = vsel %vm13694_vm10, %v838_v44, 0.0 }
  0xb5   :  { %v602_v25 = vmul.f32 %v7285_v10, %v518_v40  ;;  %v14060_v21 = vrot.slane %v7327_v31, 2  ;;  %vm13728_vm4 = vcmp.lt.s32.totalorder %v7329_v32, 32  ;;  %vm2795_vm8 = vcmp.lt.s32.totalorder %v7331_v35, 32 }
  0xb6   :  { %v14062_v12 = vrot.slane %v7394_v20, 6  ;;  %vm14065_vm10 = vcmp.lt.s32.totalorder %v7261_v61, 32  ;;  %v931_v44 = vmul.f32 %v7288_v11, %v847_v9  ;;  %v1208_v49 = vmul.f32 %v7256_v58, %v1172_v17 }
  0xb7   :  { %v2262_v33 = vsel %vm2230_vm11, %v14060_v21, %v13693_v30  ;;  %v626_v16 = vadd.f32 %v602_v25, %v550_v63  ;;  %v1501_v21 = vsel %vm13697_vm12, %v1500_v39, 0.0  ;;  %v14063_v30 = vrot.slane %v7317_v26, 3 }
  0xb8   :  { %v1167_v46 = vsel %vm1139_vm5, %v14062_v12, %v14061_v48  ;;  %v14064_v63 = vrot.slane %v7327_v31, 3  ;;  %v1965_v48 = vsel %vm14065_vm10, %v1933_v8, 0.0  ;;  %vm14066_vm12 = vcmp.lt.s32.totalorder %v7271_v2, 32 }
  0xb9   :  { %v903_v12 = vadd.f32 %v879_v47, %v626_v16  ;;  %v2294_v39 = vsel %vm14066_vm12, %v2262_v33, 0.0  ;;  %v1176_v60 = vsel %vm13800_vm14, %v1167_v46, 0.0  ;;  %v14067_v8 = vrot.slane %v7291_v13, 7 }
  0xba   :  { %v2591_v25 = vsel %vm2559_vm13, %v14064_v63, %v14063_v30  ;;  %v13702_v30 = vrot.slane %v7394_v20, 2  ;;  %v14068_v16 = vrot.slane %v7394_v20, 7  ;;  %v13703_v17 = vrot.slane %v7394_v20, 3 }
  0xbb   :  { %v2623_v61 = vsel %vm2494_vm15, %v2591_v25, 0.0  ;;  %v955_v47 = vadd.f32 %v931_v44, %v903_v12  ;;  %v1537_v2 = vmul.f32 %v7258_v59, %v1501_v21  ;;  %v7531_v46 = vmul.f32 %v7250_v56, %v7327_v31 }
  0xbc   :  { %v1496_v63 = vsel %vm1468_vm7, %v14068_v16, %v14067_v8  ;;  %v7534_v33 = vmul.f32 %v7269_v1, %v1965_v48  ;;  %v7538_v44 = vmul.f32 %v7275_v5, %v2294_v39  ;;  %v1260_v12 = vmul.f32 %v7295_v14, %v1176_v60 }
  0xbd   :  { %14069 = vst [vmem:[#allocation52_spill] sm:$0xff] %v7531_v46  ;;  %v1232_v25 = vadd.f32 %v1208_v49, %v955_v47  ;;  %v14072_v8 = vrot.slane %v7291_v13, 1  ;;  %v7548_v16 = vmul.f32 %v7278_v6, %v2623_v61  ;;  %v7552_v48 = vmul.f32 %v7281_v7, %v7410_v57 }
  0xbe   :  { %14070 = vst [vmem:[#allocation53_spill] sm:$0xff] %v7534_v33  ;;  %14071 = vst [vmem:[#allocation54_spill] sm:$0xff] %v7538_v44  ;;  %v1505_v39 = vsel %vm1344_vm2, %v1496_v63, 0.0  ;;  %v14075_v49 = vrot.slane %v7291_v13, 2  ;;  %v7563_v3 = vmul.f32 %v7244_v53, %v518_v40  ;;  %v7567_v61 = vmul.f32 %v7241_v52, %v7394_v20  ;;  %v7689_v44 = vpop.permute.xlu1 %125 }
  0xbf   :  { %v1929_v21 = vsel %vm1901_vm9, %v13699_v22, %v14072_v8  ;;  %14073 = vst [vmem:[#allocation55_spill] sm:$0xff] %v7548_v16  ;;  %14074 = vst [vmem:[#allocation56_spill] sm:$0xff] %v7552_v48  ;;  %v1284_v8 = vadd.f32 %v1260_v12, %v1232_v25  ;;  %v14076_v57 = vrot.slane %v7291_v13, 3  ;;  %v7575_v22 = vpop.permute.xlu0 %100  ;;  %v7578_v23 = vmul.f32 %v7247_v54, %v847_v9 }
  0xc0   :  { %v2258_v47 = vsel %vm2230_vm11, %v13702_v30, %v14075_v49  ;;  %v7581_v40 = vmul.f32 %v7256_v58, %v1176_v60  ;;  %v1937_v25 = vsel %vm13795_vm3, %v1929_v21, 0.0  ;;  %v14077_v12 = vrot.slane %v7511_v42, 4 }
  0xc1   :  { %v2587_v63 = vsel %vm2559_vm13, %v13703_v17, %v14076_v57  ;;  %v14078_v49 = vrot.slane %v7291_v13, 4  ;;  %v7594_v57 = vmul.f32 %v7258_v59, %v1505_v39  ;;  %v1561_v17 = vadd.f32 %v1537_v2, %v1284_v8 }
  0xc2   :  { %v1589_v9 = vmul.f32 %v7297_v15, %v1505_v39  ;;  %v2266_v60 = vsel %vm13732_vm6, %v2258_v47, 0.0  ;;  %v2595_v21 = vsel %vm13728_vm4, %v2587_v63, 0.0  ;;  %v2859_v28 = vsel %vm2795_vm8, %v7444_v45, 0.0 }
  0xc3   :  { %v7591_v30 = vsel %vm481_vm0, %v14078_v49, %v14077_v12  ;;  %14079 = vst [vmem:[#allocation57_spill] sm:$0xff] %v7594_v57  ;;  %v13708_v12 = vrot.slane %v7575_v22, 4  ;;  %v7607_v48 = vmul.f32 %v7263_v62, %v1937_v25  ;;  %v13711_v39 = vrot.slane %v7575_v22, 5  ;;  %v7899_v57 = vpop.permute.xlu1 %135 }
  0xc4   :  { %v1613_v49 = vadd.f32 %v1589_v9, %v1561_v17  ;;  %v603_v2 = vmul.f32 %v7285_v10, %v7591_v30  ;;  %v7613_v47 = vmul.f32 %v7302_v18, %v2266_v60  ;;  %v14082_v35 = vrot.slane %v7317_v26, 4 }
  0xc5   :  { %14080 = vst [vmem:[#allocation58_spill] sm:$0xff] %v7607_v48  ;;  %v14083_v9 = vrot.slane %v7317_v26, 5  ;;  %v7635_v27 = vmul.f32 %v7304_v19, %v2595_v21  ;;  %v14088_v8 = vrot.slane %v7511_v42, 6  ;;  %v14090_v16 = vrot.slane %v7575_v22, 6 }
  0xc6   :  { %14081 = vst [vmem:[#allocation59_spill] sm:$0xff] %v7613_v47  ;;  %v7622_v45 = vsel %vm481_vm0, %v14082_v35, %v13708_v12  ;;  %v1665_v63 = vadd.f32 %v1641_v4, %v1613_v49  ;;  %v7638_v35 = vmul.f32 %v7315_v24, %v2859_v28  ;;  %v14086_v4 = vrot.slane %v7511_v42, 5 }
  0xc7   :  { %v551_v25 = vmul.f32 %v7244_v53, %v7622_v45  ;;  %v841_v60 = vsel %vm810_vm1, %v14083_v9, %v13711_v39  ;;  %14084 = vst [vmem:[#allocation60_spill] sm:$0xff] %v7635_v27  ;;  %v14087_v49 = vrot.slane %v7291_v13, 5  ;;  %v14089_v28 = vrot.slane %v7291_v13, 6 }
  0xc8   :  { %14085 = vst [vmem:[#allocation61_spill] sm:$0xff] %v7638_v35  ;;  %v1717_v9 = vadd.f32 %v7415_v38, %v1665_v63  ;;  %v880_v21 = vmul.f32 %v7247_v54, %v841_v60  ;;  %v14092_v38 = vrot.slane %v7575_v22, 1  ;;  %v7674_v17 = vmul.f32 %v7241_v52, %v7511_v42 }
  0xc9   :  { %v837_v12 = vsel %vm810_vm1, %v14087_v49, %v14086_v4  ;;  %v627_v39 = vadd.f32 %v603_v2, %v551_v25  ;;  %v1166_v29 = vsel %vm1139_vm5, %v14089_v28, %v14088_v8  ;;  %v14091_v4 = vrot.slane %v7317_v26, 6 }
  0xca   :  { %v14093_v2 = vrot.slane %v7317_v26, 1  ;;  %v932_v25 = vmul.f32 %v7288_v11, %v837_v12  ;;  %14094 = vst [vmem:[#allocation62_spill] sm:$0xff] %v7674_v17  ;;  %v7693_v33 = vmul.f32 %v7244_v53, %v7591_v30  ;;  %v14104_v31 = vrot.slane %v7511_v42, 3 }
  0xcb   :  { %v1170_v49 = vsel %vm1139_vm5, %v14091_v4, %v14090_v16  ;;  %v904_v60 = vadd.f32 %v880_v21, %v627_v39  ;;  %v14095_v16 = vrot.slane %v7511_v42, 1  ;;  %v14096_v4 = vrot.slane %v7291_v13, 1 }
  0xcc   :  { %v1932_v63 = vsel %vm1901_vm9, %v14093_v2, %v14092_v38  ;;  %v7686_v39 = vmul.f32 %v7250_v56, %v7511_v42  ;;  %14097 = vst [vmem:[#allocation63_spill] sm:$0xff] %v7693_v33  ;;  %v14100_v2 = vrot.slane %v7575_v22, 7  ;;  %v14101_v38 = vrot.slane %v7317_v26, 7 }
  0xcd   :  { %v1970_v28 = vmul.f32 %v7263_v62, %v1932_v63  ;;  %v1928_v32 = vsel %vm1901_vm9, %v14096_v4, %v14095_v16  ;;  %v956_v21 = vadd.f32 %v932_v25, %v904_v60  ;;  %v1209_v63 = vmul.f32 %v7256_v58, %v1170_v49 }
  0xce   :  { %v7696_v16 = vmul.f32 %v7247_v54, %v837_v12  ;;  %v7699_v4 = vmul.f32 %v7256_v58, %v1166_v29  ;;  %v1499_v49 = vsel %vm1468_vm7, %v14101_v38, %v14100_v2  ;;  %v14102_v25 = vrot.slane %v7511_v42, 2 }
  0xcf   :  { %v1994_v8 = vadd.f32 %v1970_v28, %v1717_v9  ;;  %v2022_v9 = vmul.f32 %v7269_v1, %v1928_v32  ;;  %v14103_v60 = vrot.slane %v7291_v13, 2  ;;  %v1261_v28 = vmul.f32 %v7295_v14, %v1166_v29 }
  0xd0   :  { %14098 = vst [vmem:[#allocation64_spill] sm:$0xff] %v7696_v16  ;;  %14099 = vst [vmem:[#allocation65_spill] sm:$0xff] %v7699_v4  ;;  %v1233_v46 = vadd.f32 %v1209_v63, %v956_v21  ;;  %v14105_v17 = vrot.slane %v7291_v13, 3  ;;  %v14106_v38 = vrot.slane %v7511_v42, 7  ;;  %v14107_v2 = vrot.slane %v7291_v13, 7 }
  0xd1   :  { %v2257_v12 = vsel %vm2230_vm11, %v14103_v60, %v14102_v25  ;;  %v14108_v27 = vrot.slane %v7575_v22, 2  ;;  %v14109_v25 = vrot.slane %v7317_v26, 2  ;;  %v13716_v21 = vrot.slane %v7689_v44, 4 }
  0xd2   :  { %v2586_v35 = vsel %vm2559_vm13, %v14105_v17, %v14104_v31  ;;  %v1495_v4 = vsel %vm1468_vm7, %v14107_v2, %v14106_v38  ;;  %v1285_v63 = vadd.f32 %v1261_v28, %v1233_v46  ;;  %v1538_v60 = vmul.f32 %v7258_v59, %v1499_v49 }
  0xd3   :  { %v2261_v29 = vsel %vm2230_vm11, %v14109_v25, %v14108_v27  ;;  %v2046_v31 = vadd.f32 %v2022_v9, %v1994_v8  ;;  %v13717_v17 = vrot.slane %v7575_v22, 3  ;;  %v7737_v13 = vmul.f32 %v7263_v62, %v1928_v32  ;;  %v7752_v9 = vpop.permute.xlu0 %105 }
  0xd4   :  { %v7740_v38 = vmul.f32 %v7302_v18, %v2257_v12  ;;  %v2351_v2 = vmul.f32 %v7275_v5, %v2257_v12  ;;  %v7745_v16 = vmul.f32 %v7315_v24, %v7591_v30  ;;  %v7748_v27 = vmul.f32 %v7304_v19, %v2586_v35 }
  0xd5   :  { %14110 = vst [vmem:[#allocation66_spill] sm:$0xff] %v7737_v13  ;;  %v1562_v46 = vadd.f32 %v1538_v60, %v1285_v63  ;;  %v2299_v8 = vmul.f32 %v7302_v18, %v2261_v29  ;;  %v2680_v32 = vmul.f32 %v7278_v6, %v2586_v35  ;;  %v7756_v28 = vmul.f32 %v7258_v59, %v1495_v4 }
  0xd6   :  { %14111 = vst [vmem:[#allocation67_spill] sm:$0xff] %v7740_v38  ;;  %14112 = vst [vmem:[#allocation68_spill] sm:$0xff] %v7745_v16  ;;  %v7760_v12 = vmul.f32 %v7281_v7, %v7591_v30  ;;  %v14115_v25 = vrot.slane %v7511_v42, 4  ;;  %v1590_v63 = vmul.f32 %v7297_v15, %v1495_v4  ;;  %v14116_v35 = vrot.slane %v7317_v26, 3 }
  0xd7   :  { %14113 = vst [vmem:[#allocation69_spill] sm:$0xff] %v7748_v27  ;;  %14114 = vst [vmem:[#allocation70_spill] sm:$0xff] %v7756_v28  ;;  %v2323_v60 = vadd.f32 %v2299_v8, %v2046_v31  ;;  %v13719_v30 = vrot.slane %v7689_v44, 6  ;;  %v1642_v16 = vmul.f32 %v7241_v52, %v7575_v22  ;;  %v7782_v27 = vmul.f32 %v7315_v24, %v7622_v45 }
  0xd8   :  { %v7768_v29 = vsel %vm481_vm0, %v14115_v25, %v13716_v21  ;;  %v2590_v49 = vsel %vm2559_vm13, %v14116_v35, %v13717_v17  ;;  %v13718_v4 = vrot.slane %v7752_v9, 4  ;;  %v1614_v31 = vadd.f32 %v1590_v63, %v1562_v46 }
  0xd9   :  { %v14117_v8 = vrot.slane %v7689_v44, 5  ;;  %v14118_v26 = vrot.slane %v7511_v42, 5  ;;  %v604_v21 = vmul.f32 %v7285_v10, %v7768_v29  ;;  %v2628_v45 = vmul.f32 %v7304_v19, %v2590_v49 }
  0xda   :  { %v7798_v25 = vmul.f32 %v7244_v53, %v7768_v29  ;;  %v14120_v46 = vrot.slane %v7575_v22, 4  ;;  %v14121_v17 = vrot.slane %v7511_v42, 6  ;;  %v14128_v33 = vrot.slane %v7575_v22, 6 }
  0xdb   :  { %v836_v35 = vsel %vm810_vm1, %v14118_v26, %v14117_v8  ;;  %v2375_v26 = vadd.f32 %v2351_v2, %v2323_v60  ;;  %v14124_v60 = vrot.slane %v7752_v9, 5  ;;  %v14127_v2 = vrot.slane %v7752_v9, 6 }
  0xdc   :  { %14119 = vst [vmem:[#allocation71_spill] sm:$0xff] %v7798_v25  ;;  %v7806_v63 = vsel %vm481_vm0, %v14120_v46, %v13718_v4  ;;  %v1165_v49 = vsel %vm1139_vm5, %v14121_v17, %v13719_v30  ;;  %v7819_v13 = vmul.f32 %v7247_v54, %v836_v35  ;;  %v7823_v46 = vmul.f32 %v7241_v52, %v7689_v44 }
  0xdd   :  { %v552_v38 = vmul.f32 %v7244_v53, %v7806_v63  ;;  %v14125_v4 = vrot.slane %v7575_v22, 5  ;;  %v1666_v30 = vadd.f32 %v1642_v16, %v1614_v31  ;;  %v933_v28 = vmul.f32 %v7288_v11, %v836_v35 }
  0xde   :  { %14122 = vst [vmem:[#allocation72_spill] sm:$0xff] %v7819_v13  ;;  %14123 = vst [vmem:[#allocation73_spill] sm:$0xff] %v7823_v46  ;;  %v7835_v13 = vmul.f32 %v7256_v58, %v1165_v49  ;;  %v1169_v47 = vsel %vm1139_vm5, %v14128_v33, %v14127_v2  ;;  %v2652_v16 = vadd.f32 %v2628_v45, %v2375_v26  ;;  %v14130_v31 = vrot.slane %v7511_v42, 1 }
  0xdf   :  { %v840_v17 = vsel %vm810_vm1, %v14125_v4, %v14124_v60  ;;  %v628_v8 = vadd.f32 %v604_v21, %v552_v38  ;;  %v7847_v21 = vmul.f32 %v7250_v56, %v7689_v44  ;;  %v14129_v38 = vrot.slane %v7689_v44, 1 }
  0xe0   :  { %v881_v25 = vmul.f32 %v7247_v54, %v840_v17  ;;  %14126 = vst [vmem:[#allocation74_spill] sm:$0xff] %v7835_v13  ;;  %v14131_v17 = vrot.slane %v7689_v44, 2  ;;  %v14132_v46 = vrot.slane %v7511_v42, 2  ;;  %v7863_v45 = vmul.f32 %v7315_v24, %v7768_v29 }
  0xe1   :  { %v1927_v35 = vsel %vm1901_vm9, %v14130_v31, %v14129_v38  ;;  %vm361_vm8 = vcmp.ge.s32.totalorder %v7336_v37, 0  ;;  %v1718_v38 = vadd.f32 %v7686_v39, %v1666_v30  ;;  %v1210_v31 = vmul.f32 %v7256_v58, %v1169_v47 }
  0xe2   :  { %v905_v60 = vadd.f32 %v881_v25, %v628_v8  ;;  %v2256_v33 = vsel %vm2230_vm11, %v14132_v46, %v14131_v17  ;;  %14133 = vst [vmem:[#allocation75_spill] sm:$0xff] %v7863_v45  ;;  %v1262_v25 = vmul.f32 %v7295_v14, %v1165_v49  ;;  %v7872_v4 = vmul.f32 %v7263_v62, %v1927_v35 }
  0xe3   :  { %v14135_v46 = vrot.slane %v7689_v44, 3  ;;  %v14136_v17 = vrot.slane %v7511_v42, 3  ;;  %v14137_v2 = vrot.slane %v7752_v9, 7  ;;  %v14138_v45 = vrot.slane %v7575_v22, 7 }
  0xe4   :  { %v957_v8 = vadd.f32 %v933_v28, %v905_v60  ;;  %14134 = vst [vmem:[#allocation76_spill] sm:$0xff] %v7872_v4  ;;  %v14139_v28 = vrot.slane %v7752_v9, 1  ;;  %v14140_v47 = vrot.slane %v7575_v22, 1  ;;  %v2704_v49 = vadd.f32 %v2680_v32, %v2652_v16 }
  0xe5   :  { %v2585_v26 = vsel %vm2559_vm13, %v14136_v17, %v14135_v46  ;;  %v1498_v39 = vsel %vm1468_vm7, %v14138_v45, %v14137_v2  ;;  %v14141_v60 = vrot.slane %v7689_v44, 7  ;;  %v14142_v4 = vrot.slane %v7511_v42, 7 }
  0xe6   :  { %v1931_v30 = vsel %vm1901_vm9, %v14140_v47, %v14139_v28  ;;  %v1234_v17 = vadd.f32 %v1210_v31, %v957_v8  ;;  %v2023_v45 = vmul.f32 %v7269_v1, %v1927_v35  ;;  %v7903_v2 = vmul.f32 %v7302_v18, %v2256_v33  ;;  %v7917_v47 = vpop.permute.xlu0 %130 }
  0xe7   :  { %v1494_v46 = vsel %vm1468_vm7, %v14142_v4, %v14141_v60  ;;  %v1971_v13 = vmul.f32 %v7263_v62, %v1931_v30  ;;  %v2352_v28 = vmul.f32 %v7275_v5, %v2256_v33  ;;  %v14144_v32 = vrot.slane %v7752_v9, 2 }
  0xe8   :  { %14143 = vst [vmem:[#allocation77_spill] sm:$0xff] %v7903_v2  ;;  %v14145_v16 = vrot.slane %v7575_v22, 2  ;;  %vm690_vm10 = vcmp.ge.s32.totalorder %v7340_v41, 0  ;;  %v7914_v4 = vmul.f32 %v7304_v19, %v2585_v26  ;;  %v1286_v8 = vadd.f32 %v1262_v25, %v1234_v17 }
  0xe9   :  { %v1539_v35 = vmul.f32 %v7258_v59, %v1498_v39  ;;  %v1995_v31 = vadd.f32 %v1971_v13, %v1718_v38  ;;  %v2681_v33 = vmul.f32 %v7278_v6, %v2585_v26  ;;  %v7921_v30 = vmul.f32 %v7258_v59, %v1494_v46 }
  0xea   :  { %v2260_v42 = vsel %vm2230_vm11, %v14145_v16, %v14144_v32  ;;  %14146 = vst [vmem:[#allocation78_spill] sm:$0xff] %v7914_v4  ;;  %v13720_v60 = vrot.slane %v7752_v9, 3  ;;  %v2916_v16 = vadd.f32 %v7782_v27, %v2704_v49  ;;  %v1591_v39 = vmul.f32 %v7297_v15, %v1494_v46 }
  0xeb   :  { %14147 = vst [vmem:[#allocation79_spill] sm:$0xff] %v7921_v30  ;;  %v1563_v2 = vadd.f32 %v1539_v35, %v1286_v8  ;;  %v2047_v48 = vadd.f32 %v2023_v45, %v1995_v31  ;;  %v2300_v25 = vmul.f32 %v7302_v18, %v2260_v42  ;;  %v456_v38 = vrot.slane %v7917_v47, 4 }
  0xec   :  { %v785_v26 = vrot.slane %v7917_v47, 5  ;;  %v7933_v17 = vmul.f32 %v7281_v7, %v7768_v29  ;;  %v14148_v32 = vrot.slane %v7394_v20, 4  ;;  %v14149_v27 = vrot.slane %v7752_v9, 4 }
  0xed   :  { %v1643_v46 = vmul.f32 %v7241_v52, %v7752_v9  ;;  %v2324_v45 = vadd.f32 %v2300_v25, %v2047_v48  ;;  %v14150_v42 = vrot.slane %v7394_v20, 5  ;;  %v14151_v8 = vrot.slane %v7752_v9, 5 }
  0xee   :  { %v510_v49 = vsel %vm481_vm0, %v14149_v27, %v14148_v32  ;;  %v14152_v29 = vrot.slane %v7575_v22, 3  ;;  %v14153_v32 = vrot.slane %v7899_v57, 4  ;;  %v14155_v48 = vrot.slane %v7689_v44, 4 }
  0xef   :  { %v839_v35 = vsel %vm810_vm1, %v14151_v8, %v14150_v42  ;;  %v2968_v42 = vadd.f32 %v7760_v12, %v2916_v16  ;;  %v1615_v8 = vadd.f32 %v1591_v39, %v1563_v2  ;;  %v2376_v13 = vadd.f32 %v2352_v28, %v2324_v45 }
  0xf0   :  { %v2589_v31 = vsel %vm2559_vm13, %v14152_v29, %v13720_v60  ;;  %v7959_v27 = vsel %vm481_vm0, %v456_v38, %v14153_v32  ;;  %v7965_v25 = vsel %vm481_vm0, %v14155_v48, %v456_v38  ;;  %v553_v29 = vmul.f32 %v7244_v53, %v510_v49 }
  0xf1   :  { %14154 = vst [vmem:[#allocation80_spill] sm:$0xff] %v7959_v27  ;;  %v7971_v22 = vsel %vm361_vm8, %v7959_v27, 0.0  ;;  %vm13729_vm12 = vcmp.ge.s32.totalorder %v7342_v43, 0  ;;  %v605_v32 = vmul.f32 %v7285_v10, %v7965_v25  ;;  %v14156_v48 = vrot.slane %v7899_v57, 5  ;;  %v14182_v43 = vld [vmem:[#allocation23_spill] sm:$0xff] }
  0xf2   :  { %v606_v38 = vmul.f32 %v7285_v10, %v7971_v22  ;;  %v14157_v2 = vrot.slane %v7394_v20, 6  ;;  %v14158_v37 = vrot.slane %v7752_v9, 6  ;;  %v2629_v16 = vmul.f32 %v7304_v19, %v2589_v31 }
  0xf3   :  { %v834_v12 = vsel %vm810_vm1, %v785_v26, %v14156_v48  ;;  %v14159_v39 = vrot.slane %v7689_v44, 5  ;;  %v1114_v60 = vrot.slane %v7917_v47, 6  ;;  %v882_v4 = vmul.f32 %v7247_v54, %v839_v35 }
  0xf4   :  { %v1168_v28 = vsel %vm1139_vm5, %v14158_v37, %v14157_v2  ;;  %v14160_v48 = vrot.slane %v7394_v20, 7  ;;  %v14161_v30 = vrot.slane %v7752_v9, 7  ;;  %v629_v2 = vadd.f32 %v605_v32, %v553_v29 }
  0xf5   :  { %v7994_v45 = vsel %vm810_vm1, %v14159_v39, %v785_v26  ;;  %v630_v31 = vadd.f32 %v606_v38, %v7563_v3  ;;  %v8006_v37 = vadd.f32 %v7334_v36, %v2968_v42  ;;  %v1667_v27 = vadd.f32 %v1643_v46, %v1615_v8 }
  0xf6   :  { %v1497_v7 = vsel %vm1468_vm7, %v14161_v30, %v14160_v48  ;;  %v2653_v26 = vadd.f32 %v2629_v16, %v2376_v13  ;;  %v8010_v39 = vsel %vm690_vm10, %v834_v12, 0.0  ;;  %v13731_v35 = vrot.slane %v7899_v57, 6 }
  0xf7   :  { %14162 = vst [vmem:[#allocation81_spill] sm:$0xff] %v8006_v37  ;;  %v906_v10 = vadd.f32 %v882_v4, %v629_v2  ;;  %v907_v6 = vadd.f32 %v7578_v23, %v630_v31  ;;  %v934_v30 = vmul.f32 %v7288_v11, %v7994_v45  ;;  %v1211_v29 = vmul.f32 %v7256_v58, %v1168_v28 }
  0xf8   :  { %v1540_v3 = vmul.f32 %v7258_v59, %v1497_v7  ;;  %v14163_v42 = vrot.slane %v7689_v44, 6  ;;  %v1443_v46 = vrot.slane %v7917_v47, 7  ;;  %v14164_v8 = vrot.slane %v7394_v20, 1 }
  0xf9   :  { %v14165_v4 = vrot.slane %v7752_v9, 1  ;;  %v2893_v32 = vmul.f32 %v7315_v24, %v7806_v63  ;;  %vm13796_vm15 = vcmp.lt.s32.totalorder %v7350_v51, 32  ;;  %v935_v7 = vmul.f32 %v7288_v11, %v8010_v39 }
  0xfa   :  { %v8022_v13 = vsel %vm1139_vm5, %v14163_v42, %v1114_v60  ;;  %v958_v38 = vadd.f32 %v934_v30, %v906_v10  ;;  %v8038_v12 = vmul.f32 %v8006_v37, %v8006_v37  ;;  %v1719_v28 = vadd.f32 %v7847_v21, %v1667_v27 }
  0xfb   :  { %v1930_v23 = vsel %vm1901_vm9, %v14165_v4, %v14164_v8  ;;  %v2705_v16 = vadd.f32 %v2681_v33, %v2653_v26  ;;  %v8042_v48 = vmul.f32 %v7315_v24, %v510_v49  ;;  %v959_v2 = vadd.f32 %v935_v7, %v907_v6 }
  0xfc   :  { %v1163_v63 = vsel %vm1139_vm5, %v1114_v60, %v13731_v35  ;;  %v1235_v31 = vadd.f32 %v1211_v29, %v958_v38  ;;  %v1263_v10 = vmul.f32 %v7295_v14, %v8022_v13  ;;  %v1972_v30 = vmul.f32 %v7263_v62, %v1930_v23 }
  0xfd   :  { %v14166_v42 = vrot.slane %v7394_v20, 2  ;;  %v14167_v21 = vrot.slane %v7752_v9, 2  ;;  %vm13799_vm8 = vcmp.ge.s32.totalorder %v7348_v50, 0  ;;  %v14168_v6 = vrot.slane %v7689_v44, 7  ;;  %v14186_v50 = vld [vmem:[#allocation80_spill] sm:$0xff] }
  0xfe   :  { %v1876_v49 = vrot.slane %v7917_v47, 1  ;;  %v14169_v27 = vrot.slane %v7394_v20, 3  ;;  %v14170_v26 = vrot.slane %v7752_v9, 3  ;;  %v13730_v8 = vrot.slane %v7899_v57, 1 }
  0xff   :  { %v2259_v33 = vsel %vm2230_vm11, %v14167_v21, %v14166_v42  ;;  %v8062_v60 = vsel %vm1468_vm7, %v14168_v6, %v1443_v46  ;;  %v1287_v4 = vadd.f32 %v1263_v10, %v1235_v31  ;;  %v2205_v23 = vrot.slane %v7917_v47, 2 }
 0x100   :  { %v2588_v29 = vsel %vm2559_vm13, %v14170_v26, %v14169_v27  ;;  %v1996_v7 = vadd.f32 %v1972_v30, %v1719_v28  ;;  %v13733_v38 = vrot.slane %v7899_v57, 7  ;;  %v1180_v42 = vsel %vm13729_vm12, %v1163_v63, 0.0 }
 0x101   :  { %v14171_v21 = vrot.slane %v7689_v44, 1  ;;  %v2917_v9 = vadd.f32 %v2893_v32, %v2705_v16  ;;  %vm13755_vm4 = vcmp.lt.s32.totalorder %v7352_v55, 32  ;;  %v1236_v6 = vadd.f32 %v7581_v40, %v959_v2  ;;  %v14185_v55 = vld [vmem:[#allocation25_spill] sm:$0xff] }
 0x102   :  { %v1564_v31 = vadd.f32 %v1540_v3, %v1287_v4  ;;  %v1592_v28 = vmul.f32 %v7297_v15, %v8062_v60  ;;  %v2301_v10 = vmul.f32 %v7302_v18, %v2259_v33  ;;  %v2630_v30 = vmul.f32 %v7304_v19, %v2588_v29 }
 0x103   :  { %v8080_v20 = vsel %vm1901_vm9, %v14171_v21, %v1876_v49  ;;  %v8090_v63 = vmul.f32 %v7241_v52, %v7899_v57  ;;  %v1264_v32 = vmul.f32 %v7295_v14, %v1180_v42  ;;  %v1925_v40 = vsel %vm1901_vm9, %v1876_v49, %v13730_v8 }
 0x104   :  { %v2024_v27 = vmul.f32 %v7269_v1, %v8080_v20  ;;  %v1616_v16 = vadd.f32 %v1592_v28, %v1564_v31  ;;  %v14173_v3 = vrot.slane %v7689_v44, 2  ;;  %v8107_v33 = vmul.f32 %v7250_v56, %v7899_v57 }
 0x105   :  { %14172 = vst [vmem:[#allocation82_spill] sm:$0xff] %v8090_v63  ;;  %v13734_v26 = vrot.slane %v7899_v57, 2  ;;  %v1492_v29 = vsel %vm1468_vm7, %v1443_v46, %v13733_v38  ;;  %v2969_v49 = vadd.f32 %v7933_v17, %v2917_v9  ;;  %vm2799_vm12 = vcmp.lt.s32.totalorder %v7360_v0, 32  ;;  %v14191_v0 = vld [vmem:[#allocation51_spill] sm:$0xff] }
 0x106   :  { %v8103_v2 = vsel %vm2230_vm11, %v14173_v3, %v2205_v23  ;;  %v2048_v4 = vadd.f32 %v2024_v27, %v1996_v7  ;;  %v1288_v21 = vadd.f32 %v1264_v32, %v1236_v6  ;;  %v1668_v31 = vadd.f32 %v7567_v61, %v1616_v16  ;;  %v8135_v6 = vpop.permute.xlu1 %145 }
 0x107   :  { %v1696_v28 = vmul.f32 %v7250_v56, %v7917_v47  ;;  %v8121_v3 = vsel %vm13796_vm15, %v1925_v40, 0.0  ;;  %v2353_v35 = vmul.f32 %v7275_v5, %v8103_v2  ;;  %v2534_v46 = vrot.slane %v7917_v47, 3  ;;  %v14175_v40 = vld [vmem:[#allocation43_spill] sm:$0xff] }
 0x108   :  { %v2325_v8 = vadd.f32 %v2301_v10, %v2048_v4  ;;  %v8129_v7 = vmul.f32 %v7244_v53, %v7965_v25  ;;  %v8133_v61 = vmul.f32 %v7241_v52, %v7917_v47  ;;  %v8139_v10 = vmul.f32 %v7244_v53, %v7971_v22  ;;  %v14176_v4 = vld [vmem:[#allocation58_spill] sm:$0xff]  ;;  %v14190_v53 = vld [vmem:[#allocation71_spill] sm:$0xff] }
 0x109   :  { %v1720_v9 = vadd.f32 %v1696_v28, %v1668_v31  ;;  %v8143_v27 = vmul.f32 %v7247_v54, %v7994_v45  ;;  %v8147_v32 = vmul.f32 %v7247_v54, %v8010_v39  ;;  %vm13752_vm6 = vcmp.lt.s32.totalorder %v14175_v40, 32  ;;  %v8159_v28 = vpop.permute.xlu0 %140 }
 0x10a   :  { %14174 = vst [vmem:[#allocation83_spill] sm:$0xff] %v8133_v61  ;;  %v2377_v16 = vadd.f32 %v2353_v35, %v2325_v8  ;;  %v1509_v47 = vsel %vm13799_vm8, %v1492_v29, 0.0  ;;  %v2025_v22 = vmul.f32 %v7269_v1, %v8121_v3  ;;  %v2254_v45 = vsel %vm2230_vm11, %v2205_v23, %v13734_v26  ;;  %v14178_v35 = vld [vmem:[#allocation57_spill] sm:$0xff] }
 0x10b   :  { %v1997_v31 = vadd.f32 %v14176_v4, %v1720_v9  ;;  %v8162_v39 = vadd.f32 %v7334_v36, %v2969_v49  ;;  %v1565_v8 = vadd.f32 %v14178_v35, %v1288_v21  ;;  %v14179_v38 = vrot.slane %v7689_v44, 3 }
 0x10c   :  { %v8172_v4 = vmul.f32 %v7256_v58, %v8022_v13  ;;  %v8175_v23 = vmul.f32 %v7256_v58, %v1180_v42  ;;  %v2654_v17 = vadd.f32 %v2630_v30, %v2377_v16  ;;  %v1593_v49 = vmul.f32 %v7297_v15, %v1509_v47  ;;  %v14181_v13 = vld [vmem:[#allocation59_spill] sm:$0xff] }
 0x10d   :  { %14177 = vst [vmem:[#allocation58_spill] sm:$0xff] %v8162_v39  ;;  %v2584_v29 = vsel %vm2559_vm13, %v14179_v38, %v2534_v46  ;;  %v2049_v26 = vadd.f32 %v2025_v22, %v1997_v31  ;;  %v2270_v21 = vsel %vm13755_vm4, %v2254_v45, 0.0  ;;  %v458_v38 = vrot.slane %v8159_v28, 4 }
 0x10e   :  { %v8184_v35 = vmul.f32 %v7258_v59, %v8062_v60  ;;  %v2682_v42 = vmul.f32 %v14182_v43, %v2584_v29  ;;  %v787_v31 = vrot.slane %v8159_v28, 5  ;;  %v3022_v30 = vmul.f32 %v8162_v39, %v8162_v39 }
 0x10f   :  { %v2326_v9 = vadd.f32 %v14181_v13, %v2049_v26  ;;  %v1617_v16 = vadd.f32 %v1593_v49, %v1565_v8  ;;  %v14183_v22 = vrot.slane %v8135_v6, 4  ;;  %v14184_v44 = vrot.slane %v7899_v57, 4 }
 0x110   :  { %14180 = vst [vmem:[#allocation57_spill] sm:$0xff] %v8184_v35  ;;  %v2354_v26 = vmul.f32 %v7275_v5, %v2270_v21  ;;  %v2706_v13 = vadd.f32 %v2682_v42, %v2654_v17  ;;  %v8210_v49 = vadd.f32 %v8162_v39, %v8006_v37  ;;  %v14188_v41 = vrot.slane %v7899_v57, 3  ;;  %v14189_v37 = vld [vmem:[#allocation63_spill] sm:$0xff] }
 0x111   :  { %v8195_v45 = vsel %vm481_vm0, %v458_v38, %v14183_v22  ;;  %v8201_v60 = vsel %vm481_vm0, %v14184_v44, %v458_v38  ;;  %v8213_v22 = vmul.f32 %v7258_v59, %v1509_v47  ;;  %v2863_v44 = vsel %vm2799_vm12, %v14186_v50, 0.0 }
 0x112   :  { %v607_v51 = vmul.f32 %v14185_v55, %v8201_v60  ;;  %v608_v8 = vmul.f32 %v14185_v55, %v8195_v45  ;;  %v14187_v38 = vrot.slane %v8135_v6, 5  ;;  %v2378_v42 = vadd.f32 %v2354_v26, %v2326_v9 }
 0x113   :  { %v2583_v61 = vsel %vm2559_vm13, %v2534_v46, %v14188_v41  ;;  %v8229_v63 = vadd.f32 %v3022_v30, %v8038_v12  ;;  %v1669_v50 = vadd.f32 %v14191_v0, %v1617_v16  ;;  %v8234_v35 = vmul.f32 %v7263_v62, %v8080_v20  ;;  %v14193_v46 = vld [vmem:[#allocation64_spill] sm:$0xff] }
 0x114   :  { %v832_v17 = vsel %vm810_vm1, %v787_v31, %v14187_v38  ;;  %v631_v39 = vadd.f32 %v607_v51, %v14189_v37  ;;  %v632_v47 = vadd.f32 %v608_v8, %v14190_v53  ;;  %v14192_v9 = vrot.slane %v7899_v57, 5  ;;  %v14194_v37 = vld [vmem:[#allocation72_spill] sm:$0xff] }
 0x115   :  { %v2918_v41 = vadd.f32 %v8042_v48, %v2706_v13  ;;  %v937_v12 = vmul.f32 %v7288_v11, %v832_v17  ;;  %v8246_v30 = vmul.f32 %v7302_v18, %v8103_v2  ;;  %v2599_v20 = vsel %vm13752_vm6, %v2583_v61, 0.0  ;;  %v14196_v48 = vld [vmem:[#allocation24_spill] sm:$0xff] }
 0x116   :  { %v833_v26 = vsel %vm810_vm1, %v14192_v9, %v787_v31  ;;  %v908_v51 = vadd.f32 %v14193_v46, %v631_v39  ;;  %v909_v53 = vadd.f32 %v14194_v37, %v632_v47  ;;  %v13749_v16 = vrot.slane %v8135_v6, 6  ;;  %v14195_v31 = vld [vmem:[#allocation60_spill] sm:$0xff] }
 0x117   :  { %v1116_v8 = vrot.slane %v8159_v28, 6  ;;  %v2655_v38 = vadd.f32 %v14195_v31, %v2378_v42  ;;  %v2946_v39 = vmul.f32 %v14196_v48, %v7965_v25  ;;  %v936_v13 = vmul.f32 %v7288_v11, %v833_v26 }
 0x118   :  { %v961_v47 = vadd.f32 %v937_v12, %v909_v53  ;;  %v8257_v0 = vmul.f32 %v7302_v18, %v2270_v21  ;;  %v8260_v2 = vmul.f32 %v7304_v19, %v2584_v29  ;;  %v8264_v61 = vmul.f32 %v7315_v24, %v7965_v25 }
 0x119   :  { %v1721_v9 = vadd.f32 %v8107_v33, %v1669_v50  ;;  %v8268_v42 = vmul.f32 %v7304_v19, %v2599_v20  ;;  %v2683_v46 = vmul.f32 %v14182_v43, %v2599_v20  ;;  %v2970_v37 = vadd.f32 %v2946_v39, %v2918_v41  ;;  %v14203_v41 = vld [vmem:[#allocation74_spill] sm:$0xff] }
 0x11a   :  { %14197 = vst [vmem:[#allocation59_spill] sm:$0xff] %v8257_v0  ;;  %14198 = vst [vmem:[#allocation23_spill] sm:$0xff] %v8260_v2  ;;  %v960_v31 = vadd.f32 %v936_v13, %v908_v51  ;;  %v8272_v53 = vmul.f32 %v7315_v24, %v2863_v44  ;;  %v2947_v21 = vmul.f32 %v14196_v48, %v2863_v44  ;;  %v13750_v29 = vrot.slane %v8159_v28, 1  ;;  %v14205_v13 = vld [vmem:[#allocation66_spill] sm:$0xff]  ;;  %v14220_v0 = vld [vmem:[#allocation67_spill] sm:$0xff]  ;;  %v8363_v24 = vpop.permute.xlu0 %150 }
 0x11b   :  { %14199 = vst [vmem:[#allocation80_spill] sm:$0xff] %v8264_v61  ;;  %14200 = vst [vmem:[#allocation63_spill] sm:$0xff] %v8268_v42  ;;  %v1161_v25 = vsel %vm1139_vm5, %v1116_v8, %v13749_v16  ;;  %v2707_v33 = vadd.f32 %v2683_v46, %v2655_v38  ;;  %v14202_v50 = vrot.slane %v7899_v57, 6  ;;  %v1238_v51 = vadd.f32 %v14203_v41, %v961_v47 }
 0x11c   :  { %14201 = vst [vmem:[#allocation71_spill] sm:$0xff] %v8272_v53  ;;  %v8289_v44 = vmul.f32 %v7241_v52, %v8135_v6  ;;  %v1998_v16 = vadd.f32 %v14205_v13, %v1721_v9  ;;  %v14206_v38 = vrot.slane %v7899_v57, 1  ;;  %v8305_v47 = vmul.f32 %v7250_v56, %v8135_v6 }
 0x11d   :  { %v1162_v12 = vsel %vm1139_vm5, %v14202_v50, %v1116_v8  ;;  %v8301_v8 = vadd.f32 %v7334_v36, %v2970_v37  ;;  %v14208_v50 = vld [vmem:[#allocation65_spill] sm:$0xff]  ;;  %v1266_v39 = vmul.f32 %v7295_v14, %v1161_v25  ;;  %v1445_v20 = vrot.slane %v8159_v28, 7 }
 0x11e   :  { %14204 = vst [vmem:[#allocation51_spill] sm:$0xff] %v8289_v44  ;;  %v8298_v46 = vsel %vm1901_vm9, %v14206_v38, %v13750_v29  ;;  %v1237_v41 = vadd.f32 %v14208_v50, %v960_v31  ;;  %v1265_v13 = vmul.f32 %v7295_v14, %v1162_v12  ;;  %v14209_v29 = vld [vmem:[#allocation44_spill] sm:$0xff]  ;;  %v14210_v37 = vld [vmem:[#allocation61_spill] sm:$0xff]  ;;  %v14211_v42 = vrot.slane %v8159_v28, 2 }
 0x11f   :  { %14207 = vst [vmem:[#allocation64_spill] sm:$0xff] %v8301_v8  ;;  %v2026_v38 = vmul.f32 %v7269_v1, %v8298_v46  ;;  %vm365_vm12 = vcmp.ge.s32.totalorder %v14209_v29, 0  ;;  %v2919_v40 = vadd.f32 %v14210_v37, %v2707_v33  ;;  %v1290_v53 = vadd.f32 %v1266_v39, %v1238_v51  ;;  %v14214_v33 = vld [vmem:[#allocation45_spill] sm:$0xff]  ;;  %v14235_v29 = vld [vmem:[#allocation47_spill] sm:$0xff] }
 0x120   :  { %v14212_v31 = vrot.slane %v7899_v57, 2  ;;  %v2536_v9 = vrot.slane %v8159_v28, 3  ;;  %v8328_v61 = vmul.f32 %v7247_v54, %v832_v17  ;;  %vm13764_vm6 = vcmp.ge.s32.totalorder %v14214_v33, 0  ;;  %v14243_v33 = vld [vmem:[#allocation50_spill] sm:$0xff] }
 0x121   :  { %v2050_v2 = vadd.f32 %v2026_v38, %v1998_v16  ;;  %v3023_v51 = vmul.f32 %v8301_v8, %v8301_v8  ;;  %v8334_v39 = vmul.f32 %v7247_v54, %v833_v26  ;;  %v1289_v37 = vadd.f32 %v1265_v13, %v1237_v41  ;;  %v14221_v13 = vld [vmem:[#allocation79_spill] sm:$0xff] }
 0x122   :  { %v8322_v50 = vsel %vm2230_vm11, %v14212_v31, %v14211_v42  ;;  %14213 = vst [vmem:[#allocation72_spill] sm:$0xff] %v8328_v61  ;;  %v8337_v42 = vmul.f32 %v7256_v58, %v1162_v12  ;;  %v8339_v31 = vpop.permute.xlu1 %155  ;;  %v14217_v44 = vrot.slane %v8135_v6, 7  ;;  %v14218_v16 = vrot.slane %v7899_v57, 7 }
 0x123   :  { %14215 = vst [vmem:[#allocation60_spill] sm:$0xff] %v8334_v39  ;;  %v2327_v26 = vadd.f32 %v14220_v0, %v2050_v2  ;;  %v2355_v12 = vmul.f32 %v7275_v5, %v8322_v50  ;;  %v3046_v41 = vadd.f32 %v8210_v49, %v8301_v8  ;;  %v1567_v61 = vadd.f32 %v14221_v13, %v1290_v53  ;;  %v14225_v53 = vld [vmem:[#allocation70_spill] sm:$0xff]  ;;  %v14226_v13 = vld [vmem:[#allocation69_spill] sm:$0xff] }
 0x124   :  { %14216 = vst [vmem:[#allocation74_spill] sm:$0xff] %v8337_v42  ;;  %v1490_v17 = vsel %vm1468_vm7, %v1445_v20, %v14217_v44  ;;  %v8349_v38 = vsel %vm1468_vm7, %v14218_v16, %v1445_v20  ;;  %v2971_v42 = vadd.f32 %v2947_v21, %v2919_v40  ;;  %v14222_v39 = vrot.slane %v7899_v57, 3  ;;  %v14224_v21 = vld [vmem:[#allocation46_spill] sm:$0xff] }
 0x125   :  { %14219 = vst [vmem:[#allocation66_spill] sm:$0xff] %v8349_v38  ;;  %v8366_v20 = vmul.f32 %v7256_v58, %v1161_v25  ;;  %v2379_v0 = vadd.f32 %v2355_v12, %v2327_v26  ;;  %v13758_v2 = vrot.slane %v8339_v31, 4  ;;  %vm13768_vm4 = vcmp.ge.s32.totalorder %v14224_v21, 0 }
 0x126   :  { %v8361_v44 = vsel %vm2559_vm13, %v14222_v39, %v2536_v9  ;;  %v3075_v49 = vadd.f32 %v8229_v63, %v3023_v51  ;;  %v1566_v57 = vadd.f32 %v14225_v53, %v1289_v37  ;;  %v1594_v39 = vmul.f32 %v7297_v15, %v8349_v38  ;;  %v14233_v51 = vld [vmem:[#allocation73_spill] sm:$0xff] }
 0x127   :  { %14223 = vst [vmem:[#allocation65_spill] sm:$0xff] %v8366_v20  ;;  %v1595_v16 = vmul.f32 %v7297_v15, %v1490_v17  ;;  %v2656_v8 = vadd.f32 %v14226_v13, %v2379_v0  ;;  %v2684_v25 = vmul.f32 %v14182_v43, %v8361_v44  ;;  %v460_v26 = vrot.slane %v8363_v24, 4 }
 0x128   :  { %v789_v12 = vrot.slane %v8363_v24, 5  ;;  %v8382_v40 = vadd.f32 %v7334_v36, %v2971_v42  ;;  %v1118_v37 = vrot.slane %v8363_v24, 6  ;;  %v14228_v13 = vrot.slane %v8135_v6, 4 }
 0x129   :  { %v1619_v63 = vadd.f32 %v1595_v16, %v1567_v61  ;;  %v2708_v53 = vadd.f32 %v2684_v25, %v2656_v8  ;;  %v8390_v0 = vsel %vm481_vm0, %v460_v26, %v13758_v2  ;;  %v14230_v42 = vrot.slane %v8339_v31, 5 }
 0x12a   :  { %14227 = vst [vmem:[#allocation44_spill] sm:$0xff] %v8382_v40  ;;  %v8396_v38 = vsel %vm481_vm0, %v14228_v13, %v460_v26  ;;  %v8403_v16 = vmul.f32 %v7258_v59, %v1490_v17  ;;  %v8407_v8 = vmul.f32 %v7241_v52, %v8159_v28  ;;  %v526_v25 = vsel %vm365_vm12, %v8390_v0, 0.0 }
 0x12b   :  { %14229 = vst [vmem:[#allocation61_spill] sm:$0xff] %v8396_v38  ;;  %v830_v61 = vsel %vm810_vm1, %v789_v12, %v14230_v42  ;;  %v609_v26 = vmul.f32 %v14185_v55, %v8396_v38  ;;  %v1618_v13 = vadd.f32 %v1594_v39, %v1566_v57  ;;  %v1698_v2 = vmul.f32 %v7250_v56, %v8159_v28  ;;  %v14236_v38 = vld [vmem:[#allocation68_spill] sm:$0xff] }
 0x12c   :  { %14231 = vst [vmem:[#allocation67_spill] sm:$0xff] %v8403_v16  ;;  %14232 = vst [vmem:[#allocation79_spill] sm:$0xff] %v8407_v8  ;;  %v2948_v42 = vmul.f32 %v14196_v48, %v8201_v60  ;;  %v610_v17 = vmul.f32 %v14185_v55, %v526_v25  ;;  %v1671_v16 = vadd.f32 %v14233_v51, %v1619_v63  ;;  %vm13770_vm12 = vcmp.ge.s32.totalorder %v14235_v29, 0 }
 0x12d   :  { %v8422_v8 = vmul.f32 %v14196_v48, %v8195_v45  ;;  %v633_v59 = vadd.f32 %v609_v26, %v8129_v7  ;;  %v855_v57 = vsel %vm13764_vm6, %v830_v61, 0.0  ;;  %v3024_v39 = vmul.f32 %v8382_v40, %v8382_v40 }
 0x12e   :  { %v2920_v20 = vadd.f32 %v14236_v38, %v2708_v53  ;;  %v634_v25 = vadd.f32 %v610_v17, %v8139_v10  ;;  %v14237_v63 = vrot.slane %v8339_v31, 6  ;;  %v14238_v7 = vrot.slane %v8135_v6, 2 }
 0x12f   :  { %14234 = vst [vmem:[#allocation70_spill] sm:$0xff] %v8422_v8  ;;  %v8437_v8 = vadd.f32 %v3046_v41, %v8382_v40  ;;  %v14239_v26 = vrot.slane %v8159_v28, 2  ;;  %v14240_v38 = vrot.slane %v8135_v6, 3  ;;  %v14241_v53 = vrot.slane %v8135_v6, 5  ;;  %v14242_v41 = vld [vmem:[#allocation62_spill] sm:$0xff] }
 0x130   :  { %v1159_v51 = vsel %vm1139_vm5, %v1118_v37, %v14237_v63  ;;  %v1670_v63 = vadd.f32 %v14242_v41, %v1618_v13  ;;  %vm2803_vm6 = vcmp.lt.s32.totalorder %v14243_v33, 32  ;;  %v910_v40 = vadd.f32 %v8143_v27, %v633_v59 }
 0x131   :  { %v8445_v61 = vsel %vm2230_vm11, %v14239_v26, %v14238_v7  ;;  %v2581_v10 = vsel %vm2559_vm13, %v2536_v9, %v14240_v38  ;;  %v831_v17 = vsel %vm810_vm1, %v14241_v53, %v789_v12  ;;  %v911_v48 = vadd.f32 %v8147_v32, %v634_v25 }
 0x132   :  { %v939_v7 = vmul.f32 %v7288_v11, %v855_v57  ;;  %v13771_v26 = vrot.slane %v8339_v31, 7  ;;  %v1723_v55 = vadd.f32 %v8305_v47, %v1671_v16  ;;  %v1184_v9 = vsel %vm13768_vm4, %v1159_v51, 0.0  ;;  %v14244_v16 = vld [vmem:[#allocation48_spill] sm:$0xff] }
 0x133   :  { %v1447_v38 = vrot.slane %v8363_v24, 7  ;;  %v2972_v12 = vadd.f32 %v2948_v42, %v2920_v20  ;;  %v938_v13 = vmul.f32 %v7288_v11, %v831_v17  ;;  %v13769_v41 = vrot.slane %v8363_v24, 1 }
 0x134   :  { %v963_v53 = vadd.f32 %v939_v7, %v911_v48  ;;  %v3076_v59 = vadd.f32 %v3075_v49, %v3024_v39  ;;  %v8469_v27 = vmul.f32 %v7263_v62, %v8298_v46  ;;  %v8473_v32 = vmul.f32 %v7302_v18, %v8322_v50 }
 0x135   :  { %v8477_v47 = vmul.f32 %v7275_v5, %v8445_v61  ;;  %vm13793_vm4 = vcmp.lt.s32.totalorder %v14244_v16, 32  ;;  %v962_v20 = vadd.f32 %v938_v13, %v910_v40  ;;  %v1268_v42 = vmul.f32 %v7295_v14, %v1184_v9 }
 0x136   :  { %v1240_v48 = vadd.f32 %v8175_v23, %v963_v53  ;;  %v14245_v46 = vrot.slane %v8135_v6, 1  ;;  %v1722_v50 = vadd.f32 %v1698_v2, %v1670_v63  ;;  %v8489_v57 = vmul.f32 %v7304_v19, %v2581_v10  ;;  %v14249_v53 = vld [vmem:[#allocation76_spill] sm:$0xff] }
 0x137   :  { %v2000_v39 = vadd.f32 %v8234_v35, %v1723_v55  ;;  %v1488_v23 = vsel %vm1468_vm7, %v1447_v38, %v13771_v26  ;;  %v8498_v40 = vmul.f32 %v7304_v19, %v8361_v44  ;;  %v8501_v25 = vmul.f32 %v14182_v43, %v2581_v10  ;;  %v8582_v55 = vpop.permute.xlu0 %160 }
 0x138   :  { %v1922_v49 = vsel %vm1901_vm9, %v14245_v46, %v13769_v41  ;;  %14246 = vst [vmem:[#allocation69_spill] sm:$0xff] %v8489_v57  ;;  %v8504_v51 = vadd.f32 %v7334_v36, %v2972_v12  ;;  %v1292_v2 = vadd.f32 %v1268_v42, %v1240_v48  ;;  %v8508_v63 = vmul.f32 %v7250_v56, %v8339_v31  ;;  %v14277_v57 = vld [vmem:[#allocation60_spill] sm:$0xff] }
 0x139   :  { %v14248_v35 = vrot.slane %v8135_v6, 6  ;;  %v2028_v44 = vmul.f32 %v7269_v1, %v1922_v49  ;;  %v13772_v10 = vrot.slane %v8339_v31, 2  ;;  %v1239_v9 = vadd.f32 %v8172_v4, %v962_v20 }
 0x13a   :  { %14247 = vst [vmem:[#allocation73_spill] sm:$0xff] %v8504_v51  ;;  %v1513_v12 = vsel %vm13770_vm12, %v1488_v23, 0.0  ;;  %v2209_v13 = vrot.slane %v8363_v24, 2  ;;  %v1999_v48 = vadd.f32 %v14249_v53, %v1722_v50  ;;  %v8525_v46 = vmul.f32 %v7263_v62, %v8121_v3  ;;  %v14251_v23 = vld [vmem:[#allocation49_spill] sm:$0xff] }
 0x13b   :  { %v1160_v7 = vsel %vm1139_vm5, %v14248_v35, %v1118_v37  ;;  %v2052_v37 = vadd.f32 %v2028_v44, %v2000_v39  ;;  %v3025_v35 = vmul.f32 %v8504_v51, %v8504_v51  ;;  %v14250_v4 = vrot.slane %v8135_v6, 7 }
 0x13c   :  { %v1267_v41 = vmul.f32 %v7295_v14, %v1160_v7  ;;  %v1569_v50 = vadd.f32 %v8213_v22, %v1292_v2  ;;  %vm13786_vm12 = vcmp.lt.s32.totalorder %v14251_v23, 32  ;;  %v8539_v53 = vmul.f32 %v7247_v54, %v831_v17 }
 0x13d   :  { %v8534_v20 = vsel %vm1468_vm7, %v14250_v4, %v1447_v38  ;;  %v1597_v3 = vmul.f32 %v7297_v15, %v1513_v12  ;;  %v8544_v39 = vmul.f32 %v7241_v52, %v8363_v24  ;;  %v8549_v44 = vsel %vm2803_vm6, %v8390_v0, 0.0  ;;  %v8560_v4 = vpop.permute.xlu1 %165 }
 0x13e   :  { %14252 = vst [vmem:[#allocation68_spill] sm:$0xff] %v8539_v53  ;;  %v1291_v38 = vadd.f32 %v1267_v41, %v1239_v9  ;;  %v2250_v22 = vsel %vm2230_vm11, %v2209_v13, %v13772_v10  ;;  %v14254_v17 = vrot.slane %v8135_v6, 2  ;;  %v2538_v12 = vrot.slane %v8363_v24, 3  ;;  %v14258_v10 = vld [vmem:[#allocation31_spill] sm:$0xff] }
 0x13f   :  { %14253 = vst [vmem:[#allocation62_spill] sm:$0xff] %v8544_v39  ;;  %v8563_v26 = vmul.f32 %v7256_v58, %v1160_v7  ;;  %v1596_v33 = vmul.f32 %v7297_v15, %v8534_v20  ;;  %v8569_v0 = vmul.f32 %v7250_v56, %v8363_v24  ;;  %v2329_v41 = vadd.f32 %v8246_v30, %v2052_v37  ;;  %v14274_v39 = vld [vmem:[#allocation23_spill] sm:$0xff] }
 0x140   :  { %v2251_v2 = vsel %vm2230_vm11, %v14254_v17, %v2209_v13  ;;  %v8574_v9 = vadd.f32 %v8437_v8, %v8504_v51  ;;  %v8576_v13 = vadd.f32 %v3076_v59, %v3025_v35  ;;  %v1621_v17 = vadd.f32 %v1597_v3, %v1569_v50  ;;  %v14263_v35 = vld [vmem:[#allocation57_spill] sm:$0xff] }
 0x141   :  { %14255 = vst [vmem:[#allocation50_spill] sm:$0xff] %v8563_v26  ;;  %v8580_v7 = vmul.f32 %v14258_v10, %v8549_v44  ;;  %v8586_v42 = vsel %vm13793_vm4, %v2250_v22, 0.0  ;;  %v2357_v29 = vmul.f32 %v7275_v5, %v2251_v2  ;;  %v14261_v8 = vrot.slane %v8135_v6, 1 }
 0x142   :  { %14256 = vst [vmem:[#allocation76_spill] sm:$0xff] %v8574_v9  ;;  %14257 = vst [vmem:[#allocation84_spill] sm:$0xff] %v8576_v13  ;;  %v14262_v59 = vrot.slane %v8159_v28, 1  ;;  %v1568_v50 = vadd.f32 %v14263_v35, %v1291_v38  ;;  %v8600_v3 = vmul.f32 %v7263_v62, %v1922_v49  ;;  %v14265_v22 = vrot.slane %v8339_v31, 3  ;;  %v14267_v38 = vld [vmem:[#allocation82_spill] sm:$0xff] }
 0x143   :  { %14259 = vst [vmem:[#allocation85_spill] sm:$0xff] %v8580_v7  ;;  %14260 = vst [vmem:[#allocation86_spill] sm:$0xff] %v8586_v42  ;;  %v8609_v21 = vmul.f32 %v7302_v18, %v2251_v2  ;;  %v2381_v28 = vadd.f32 %v2357_v29, %v2329_v41  ;;  %v8615_v49 = vmul.f32 %v7275_v5, %v8586_v42  ;;  %v14268_v7 = vrot.slane %v8135_v6, 3  ;;  %v14269_v29 = vld [vmem:[#allocation18_spill] sm:$0xff] }
 0x144   :  { %v8596_v37 = vsel %vm1901_vm9, %v14262_v59, %v14261_v8  ;;  %14264 = vst [vmem:[#allocation57_spill] sm:$0xff] %v8600_v3  ;;  %v2579_v16 = vsel %vm2559_vm13, %v2538_v12, %v14265_v22  ;;  %v462_v59 = vrot.slane %v8582_v55, 4  ;;  %v1673_v35 = vadd.f32 %v14267_v38, %v1621_v17  ;;  %v14272_v17 = vld [vmem:[#allocation77_spill] sm:$0xff] }
 0x145   :  { %v2027_v30 = vmul.f32 %v7269_v1, %v8596_v37  ;;  %14266 = vst [vmem:[#allocation87_spill] sm:$0xff] %v8609_v21  ;;  %v791_v22 = vrot.slane %v8582_v55, 5  ;;  %v2580_v2 = vsel %vm2559_vm13, %v14268_v7, %v2538_v12  ;;  %v559_v41 = vmul.f32 %v14269_v29, %v8201_v60  ;;  %v14273_v7 = vld [vmem:[#allocation25_spill] sm:$0xff] }
 0x146   :  { %v14270_v8 = vrot.slane %v8560_v4, 4  ;;  %v14271_v54 = vrot.slane %v8339_v31, 4  ;;  %v560_v6 = vmul.f32 %v14269_v29, %v8195_v45  ;;  %v14275_v21 = vrot.slane %v8560_v4, 5 }
 0x147   :  { %v2051_v51 = vadd.f32 %v2027_v30, %v1999_v48  ;;  %v1725_v9 = vadd.f32 %v8508_v63, %v1673_v35  ;;  %v13784_v42 = vrot.slane %v8560_v4, 6  ;;  %v14279_v63 = vrot.slane %v8339_v31, 6 }
 0x148   :  { %v8629_v58 = vsel %vm481_vm0, %v462_v59, %v14270_v8  ;;  %v8635_v48 = vsel %vm481_vm0, %v14271_v54, %v462_v59  ;;  %v2658_v8 = vadd.f32 %v14274_v39, %v2381_v28  ;;  %v828_v13 = vsel %vm810_vm1, %v791_v22, %v14275_v21 }
 0x149   :  { %v2328_v12 = vadd.f32 %v14272_v17, %v2051_v51  ;;  %v611_v30 = vmul.f32 %v14273_v7, %v8635_v48  ;;  %v612_v38 = vmul.f32 %v14273_v7, %v8629_v58  ;;  %v14276_v54 = vrot.slane %v8339_v31, 5  ;;  %v14278_v7 = vld [vmem:[#allocation72_spill] sm:$0xff] }
 0x14a   :  { %v1120_v51 = vrot.slane %v8582_v55, 6  ;;  %v2603_v17 = vsel %vm13786_vm12, %v2579_v16, 0.0  ;;  %v1620_v39 = vadd.f32 %v1596_v33, %v1568_v50  ;;  %v2686_v28 = vmul.f32 %v14182_v43, %v2580_v2 }
 0x14b   :  { %v829_v59 = vsel %vm810_vm1, %v14276_v54, %v791_v22  ;;  %v635_v26 = vadd.f32 %v611_v30, %v559_v41  ;;  %v636_v53 = vadd.f32 %v612_v38, %v560_v6  ;;  %v2380_v21 = vadd.f32 %v8477_v47, %v2328_v12  ;;  %v14280_v41 = vld [vmem:[#allocation78_spill] sm:$0xff] }
 0x14c   :  { %v940_v54 = vmul.f32 %v7288_v11, %v829_v59  ;;  %v941_v23 = vmul.f32 %v7288_v11, %v828_v13  ;;  %v2710_v16 = vadd.f32 %v2686_v28, %v2658_v8  ;;  %v1158_v33 = vsel %vm1139_vm5, %v14279_v63, %v1120_v51  ;;  %v14283_v8 = vld [vmem:[#allocation65_spill] sm:$0xff]  ;;  %v14285_v28 = vld [vmem:[#allocation80_spill] sm:$0xff] }
 0x14d   :  { %v912_v3 = vadd.f32 %v14277_v57, %v635_v26  ;;  %v913_v22 = vadd.f32 %v14278_v7, %v636_v53  ;;  %v1449_v50 = vrot.slane %v8582_v55, 7  ;;  %v1882_v35 = vrot.slane %v8582_v55, 1 }
 0x14e   :  { %v8671_v47 = vmul.f32 %v7304_v19, %v2580_v2  ;;  %v2002_v26 = vadd.f32 %v8469_v27, %v1725_v9  ;;  %v2657_v6 = vadd.f32 %v14280_v41, %v2380_v21  ;;  %v1157_v13 = vsel %vm1139_vm5, %v1120_v51, %v13784_v42  ;;  %v14282_v2 = vld [vmem:[#allocation74_spill] sm:$0xff] }
 0x14f   :  { %v964_v57 = vadd.f32 %v940_v54, %v912_v3  ;;  %v965_v53 = vadd.f32 %v941_v23, %v913_v22  ;;  %v14281_v12 = vrot.slane %v8339_v31, 1  ;;  %v2211_v30 = vrot.slane %v8582_v55, 2  ;;  %v14284_v3 = vld [vmem:[#allocation83_spill] sm:$0xff]  ;;  %v14286_v51 = vld [vmem:[#allocation66_spill] sm:$0xff]  ;;  %v14287_v22 = vld [vmem:[#allocation21_spill] sm:$0xff] }
 0x150   :  { %v1269_v23 = vmul.f32 %v7295_v14, %v1158_v33  ;;  %v1672_v59 = vadd.f32 %v14284_v3, %v1620_v39  ;;  %v2922_v21 = vadd.f32 %v14285_v28, %v2710_v16  ;;  %v1546_v54 = vmul.f32 %v14287_v22, %v14286_v51  ;;  %v14290_v39 = vld [vmem:[#allocation61_spill] sm:$0xff] }
 0x151   :  { %v1920_v7 = vsel %vm1901_vm9, %v14281_v12, %v1882_v35  ;;  %v1241_v38 = vadd.f32 %v14282_v2, %v964_v57  ;;  %v1242_v27 = vadd.f32 %v14283_v8, %v965_v53  ;;  %v14288_v63 = vrot.slane %v8339_v31, 7  ;;  %v14291_v2 = vld [vmem:[#allocation24_spill] sm:$0xff] }
 0x152   :  { %v2030_v9 = vmul.f32 %v7269_v1, %v1920_v7  ;;  %v1270_v57 = vmul.f32 %v7295_v14, %v1157_v13  ;;  %v14289_v33 = vrot.slane %v8339_v31, 2  ;;  %v2950_v16 = vmul.f32 %v14291_v2, %v14290_v39 }
 0x153   :  { %v1487_v41 = vsel %vm1468_vm7, %v14288_v63, %v1449_v50  ;;  %v1293_v12 = vadd.f32 %v1269_v23, %v1241_v38  ;;  %v13788_v8 = vrot.slane %v8560_v4, 7  ;;  %v2709_v28 = vadd.f32 %v8501_v25, %v2657_v6 }
 0x154   :  { %v2054_v53 = vadd.f32 %v2030_v9, %v2002_v26  ;;  %v2249_v7 = vsel %vm2230_vm11, %v14289_v33, %v2211_v30  ;;  %v1294_v51 = vadd.f32 %v1270_v57, %v1242_v27  ;;  %v1598_v13 = vmul.f32 %v7297_v15, %v1487_v41  ;;  %v14293_v41 = vld [vmem:[#allocation67_spill] sm:$0xff] }
 0x155   :  { %v1570_v63 = vadd.f32 %v1546_v54, %v1293_v12  ;;  %v1724_v38 = vadd.f32 %v8569_v0, %v1672_v59  ;;  %v8710_v23 = vmul.f32 %v7304_v19, %v2603_v17  ;;  %v8713_v9 = vmul.f32 %v14182_v43, %v2603_v17  ;;  %v14292_v59 = vld [vmem:[#allocation75_spill] sm:$0xff] }
 0x156   :  { %v2331_v26 = vadd.f32 %v8473_v32, %v2054_v53  ;;  %v2359_v33 = vmul.f32 %v7275_v5, %v2249_v7  ;;  %v2974_v42 = vadd.f32 %v2950_v16, %v2922_v21  ;;  %v13787_v3 = vrot.slane %v8560_v4, 2  ;;  %v14294_v57 = vld [vmem:[#allocation79_spill] sm:$0xff] }
 0x157   :  { %v1622_v25 = vadd.f32 %v1598_v13, %v1570_v63  ;;  %v2540_v6 = vrot.slane %v8582_v55, 3  ;;  %v13785_v27 = vrot.slane %v8560_v4, 3  ;;  %v1486_v32 = vsel %vm1468_vm7, %v1449_v50, %v13788_v8  ;;  %v14319_v8 = vld [vmem:[#allocation68_spill] sm:$0xff] }
 0x158   :  { %v1702_v0 = vmul.f32 %v7250_v56, %v8582_v55  ;;  %v2383_v17 = vadd.f32 %v2359_v33, %v2331_v26  ;;  %v2921_v54 = vadd.f32 %v14292_v59, %v2709_v28  ;;  %v1571_v21 = vadd.f32 %v14293_v41, %v1294_v51  ;;  %v14300_v33 = vld [vmem:[#allocation70_spill] sm:$0xff] }
 0x159   :  { %v1674_v12 = vadd.f32 %v14294_v57, %v1622_v25  ;;  %v14295_v53 = vrot.slane %v8560_v4, 1  ;;  %v2001_v16 = vadd.f32 %v8525_v46, %v1724_v38  ;;  %v8735_v50 = vmul.f32 %v14291_v2, %v8549_v44  ;;  %v14298_v38 = vld [vmem:[#allocation39_spill] sm:$0xff] }
 0x15a   :  { %v1703_v55 = vmul.f32 %v7250_v56, %v8560_v4  ;;  %v1979_v28 = vmul.f32 %v7263_v62, %v8596_v37  ;;  %v8742_v51 = vadd.f32 %v7334_v36, %v2974_v42  ;;  %v1599_v63 = vmul.f32 %v7297_v15, %v1486_v32 }
 0x15b   :  { %v1919_v7 = vsel %vm1901_vm9, %v1882_v35, %v14295_v53  ;;  %v1726_v13 = vadd.f32 %v1702_v0, %v1674_v12  ;;  %v14297_v35 = vrot.slane %v8339_v31, 3  ;;  %v2248_v26 = vsel %vm2230_vm11, %v2211_v30, %v13787_v3  ;;  %v8778_v12 = vpop.permute.xlu1 %175 }
 0x15c   :  { %14296 = vst [vmem:[#allocation82_spill] sm:$0xff] %v8742_v51  ;;  %v2031_v44 = vmul.f32 %v7269_v1, %v1919_v7  ;;  %v2660_v37 = vadd.f32 %v8498_v40, %v2383_v17  ;;  %v8756_v42 = vadd.s32 1, %v14298_v38  ;;  %v2973_v25 = vadd.f32 %v14300_v33, %v2921_v54 }
 0x15d   :  { %v2578_v46 = vsel %vm2559_vm13, %v14297_v35, %v2540_v6  ;;  %v1623_v32 = vadd.f32 %v1599_v63, %v1571_v21  ;;  %v2003_v0 = vadd.f32 %v1979_v28, %v1726_v13  ;;  %v2577_v59 = vsel %vm2559_vm13, %v2540_v6, %v13785_v27 }
 0x15e   :  { %14299 = vst [vmem:[#allocation77_spill] sm:$0xff] %v8756_v42  ;;  %v2308_v41 = vmul.f32 %v7302_v18, %v8445_v61  ;;  %v2900_v30 = vmul.f32 %v14258_v10, %v8201_v60  ;;  %v2688_v40 = vmul.f32 %v14182_v43, %v2578_v46  ;;  %v14301_v17 = vrot.slane %v8339_v31, 1 }
 0x15f   :  { %v14302_v57 = vrot.slane %v8363_v24, 1  ;;  %v8776_v21 = vmul.f32 %v14258_v10, %v8195_v45  ;;  %v2055_v6 = vadd.f32 %v2031_v44, %v2003_v0  ;;  %v273_v61 = vadd.s32 128, %v7209_v34  ;;  %v14304_v45 = vld [vmem:[#allocation51_spill] sm:$0xff] }
 0x160   :  { %vm13794_vm6 = vcmp.lt.s32.totalorder %v8756_v42, 32  ;;  %v8784_v60 = vmul.f32 %v8742_v51, %v8742_v51  ;;  %v2360_v24 = vmul.f32 %v7275_v5, %v2248_v26  ;;  %v2689_v31 = vmul.f32 %v14182_v43, %v2577_v59 }
 0x161   :  { %v1921_v54 = vsel %vm1901_vm9, %v14302_v57, %v14301_v17  ;;  %v2712_v53 = vadd.f32 %v2688_v40, %v2660_v37  ;;  %v8789_v7 = vadd.f32 %v7334_v36, %v2973_v25  ;;  %v1675_v28 = vadd.f32 %v14304_v45, %v1623_v32  ;;  %v8803_v37 = vpop.permute.xlu0 %170  ;;  %v14306_v45 = vld [vmem:[#allocation59_spill] sm:$0xff] }
 0x162   :  { %v2952_v63 = vmul.f32 %v14291_v2, %v8635_v48  ;;  %v1945_v13 = vsel %vm13794_vm6, %v1921_v54, 0.0  ;;  %v8798_v35 = vmul.f32 %v14291_v2, %v8629_v58  ;;  %v272_v44 = vadd.s32 120, %v7209_v34  ;;  %v14315_v48 = vld [vmem:[#allocation69_spill] sm:$0xff] }
 0x163   :  { %14303 = vst [vmem:[#allocation23_spill] sm:$0xff] %v8789_v7  ;;  %v2029_v26 = vmul.f32 %v7269_v1, %v1945_v13  ;;  %v2332_v38 = vadd.f32 %v2308_v41, %v2055_v6  ;;  %v305_v25 = vand.u32 31, %v273_v61  ;;  %v2924_v32 = vadd.f32 %v2900_v30, %v2712_v53 }
 0x164   :  { %v8810_v58 = vmul.f32 %v7241_v52, %v8778_v12  ;;  %v1727_v57 = vadd.f32 %v1703_v55, %v1675_v28  ;;  %v464_v41 = vrot.slane %v8803_v37, 4  ;;  %v304_v6 = vand.u32 31, %v272_v44 }
 0x165   :  { %v2053_v59 = vadd.f32 %v2029_v26, %v2001_v16  ;;  %v793_v30 = vrot.slane %v8803_v37, 5  ;;  %v2384_v53 = vadd.f32 %v2360_v24, %v2332_v38  ;;  %v337_v27 = vadd.s32 4294967292, %v305_v25  ;;  %v14310_v38 = vld [vmem:[#allocation57_spill] sm:$0xff] }
 0x166   :  { %14305 = vst [vmem:[#allocation60_spill] sm:$0xff] %v8810_v58  ;;  %v561_v0 = vmul.f32 %v14269_v29, %v14290_v39  ;;  %v14307_v16 = vrot.slane %v8560_v4, 4  ;;  %v2976_v55 = vadd.f32 %v2952_v63, %v2924_v32  ;;  %v1548_v28 = vmul.f32 %v14287_v22, %v8534_v20  ;;  %v14314_v20 = vld [vmem:[#allocation63_spill] sm:$0xff] }
 0x167   :  { %v2330_v61 = vadd.f32 %v14306_v45, %v2053_v59  ;;  %v14308_v59 = vld [vmem:[#allocation25_spill] sm:$0xff]  ;;  %v8831_v24 = vadd.s32 4294967293, %v305_v25  ;;  %v2004_v54 = vadd.f32 %v14310_v38, %v1727_v57  ;;  %v14311_v17 = vrot.slane %v8560_v4, 5  ;;  %v14317_v57 = vld [vmem:[#allocation86_spill] sm:$0xff] }
 0x168   :  { %v8824_v26 = vsel %vm481_vm0, %v14307_v16, %v464_v41  ;;  %v1122_v16 = vrot.slane %v8803_v37, 6  ;;  %v8839_v63 = vadd.s32 4294967294, %v305_v25  ;;  %v8841_v32 = vadd.s32 1, %v304_v6 }
 0x169   :  { %v2382_v44 = vadd.f32 %v8615_v49, %v2330_v61  ;;  %v613_v45 = vmul.f32 %v14308_v59, %v8824_v26  ;;  %14309 = vst [vmem:[#allocation72_spill] sm:$0xff] %v8831_v24  ;;  %v827_v40 = vsel %vm810_vm1, %v14311_v17, %v793_v30  ;;  %v2661_v33 = vadd.f32 %v14315_v48, %v2384_v53 }
 0x16a   :  { %14312 = vst [vmem:[#allocation78_spill] sm:$0xff] %v8839_v63  ;;  %14313 = vst [vmem:[#allocation74_spill] sm:$0xff] %v8841_v32  ;;  %vm369_vm12 = vcmp.ge.s32.totalorder %v337_v27, 0  ;;  %v8845_v3 = vadd.s32 4294967295, %v305_v25  ;;  %v8849_v38 = vmul.f32 %v7302_v18, %v14317_v57  ;;  %v8852_v17 = vadd.f32 %v7334_v36, %v2976_v55 }
 0x16b   :  { %v2659_v49 = vadd.f32 %v14314_v20, %v2382_v44  ;;  %v637_v61 = vadd.f32 %v613_v45, %v561_v0  ;;  %v942_v19 = vmul.f32 %v7288_v11, %v827_v40  ;;  %vm698_vm4 = vcmp.ge.s32.totalorder %v8831_v24, 0  ;;  %v14323_v44 = vld [vmem:[#allocation71_spill] sm:$0xff] }
 0x16c   :  { %14316 = vst [vmem:[#allocation65_spill] sm:$0xff] %v8845_v3  ;;  %14318 = vst [vmem:[#allocation83_spill] sm:$0xff] %v8852_v17  ;;  %v8859_v48 = vmul.f32 %v7263_v62, %v1945_v13  ;;  %v14320_v25 = vrot.slane %v8560_v4, 6  ;;  %v1451_v53 = vrot.slane %v8803_v37, 7  ;;  %vm13818_vm6 = vcmp.ge.s32.totalorder %v8839_v63, 0 }
 0x16d   :  { %v2711_v46 = vadd.f32 %v8713_v9, %v2659_v49  ;;  %v914_v42 = vadd.f32 %v14319_v8, %v637_v61  ;;  %vm13812_vm3 = vcmp.lt.s32.totalorder %v8841_v32, 32  ;;  %v8868_v9 = vadd.s32 2, %v304_v6 }
 0x16e   :  { %v1156_v0 = vsel %vm1139_vm5, %v14320_v25, %v1122_v16  ;;  %v8870_v8 = vadd.s32 3, %v304_v6  ;;  %v1884_v55 = vrot.slane %v8803_v37, 1  ;;  %v2713_v13 = vadd.f32 %v2689_v31, %v2661_v33  ;;  %v14324_v25 = vld [vmem:[#allocation50_spill] sm:$0xff] }
 0x16f   :  { %14321 = vst [vmem:[#allocation80_spill] sm:$0xff] %v8868_v9  ;;  %v966_v40 = vadd.f32 %v942_v19, %v914_v42  ;;  %v2923_v45 = vadd.f32 %v14323_v44, %v2711_v46  ;;  %v3026_v20 = vmul.f32 %v8789_v7, %v8789_v7  ;;  %v2213_v49 = vrot.slane %v8803_v37, 2  ;;  %v14325_v46 = vld [vmem:[#allocation76_spill] sm:$0xff] }
 0x170   :  { %14322 = vst [vmem:[#allocation66_spill] sm:$0xff] %v8870_v8  ;;  %v8879_v61 = vmul.f32 %v8852_v17, %v8852_v17  ;;  %vm1356_vm15 = vcmp.ge.s32.totalorder %v8845_v3, 0  ;;  %v8882_v57 = vadd.s32 4, %v304_v6  ;;  %v1271_v42 = vmul.f32 %v7295_v14, %v1156_v0 }
 0x171   :  { %v1243_v19 = vadd.f32 %v14324_v25, %v966_v40  ;;  %v8888_v31 = vmul.f32 %v14258_v10, %v14290_v39  ;;  %v3049_v33 = vadd.f32 %v14325_v46, %v8789_v7  ;;  %v14326_v44 = vrot.slane %v8560_v4, 7  ;;  %v14329_v7 = vld [vmem:[#allocation84_spill] sm:$0xff] }
 0x172   :  { %v14327_v58 = vrot.slane %v8560_v4, 1  ;;  %vm13808_vm8 = vcmp.lt.s32.totalorder %v8868_v9, 32  ;;  %vm13807_vm14 = vcmp.lt.s32.totalorder %v8870_v8, 32  ;;  %v14328_v39 = vrot.slane %v8778_v12, 4 }
 0x173   :  { %v1485_v18 = vsel %vm1468_vm7, %v14326_v44, %v1451_v53  ;;  %v1295_v40 = vadd.f32 %v1271_v42, %v1243_v19  ;;  %v2925_v46 = vadd.f32 %v8776_v21, %v2713_v13  ;;  %v2975_v44 = vadd.f32 %v8735_v50, %v2923_v45 }
 0x174   :  { %v1918_v6 = vsel %vm1901_vm9, %v14327_v58, %v1884_v55  ;;  %v8906_v0 = vsel %vm481_vm0, %v464_v41, %v14328_v39  ;;  %v3078_v10 = vadd.f32 %v14329_v7, %v3026_v20  ;;  %v14330_v58 = vrot.slane %v8560_v4, 2 }
 0x175   :  { %v2032_v25 = vmul.f32 %v7269_v1, %v1918_v6  ;;  %v14331_v14 = vrot.slane %v8778_v12, 5  ;;  %v1572_v39 = vadd.f32 %v1548_v28, %v1295_v40  ;;  %v1600_v19 = vmul.f32 %v7297_v15, %v1485_v18  ;;  %v14334_v18 = vld [vmem:[#allocation87_spill] sm:$0xff] }
 0x176   :  { %v2247_v62 = vsel %vm2230_vm11, %v14330_v58, %v2213_v49  ;;  %v3050_v21 = vadd.f32 %v3049_v33, %v8742_v51  ;;  %v530_v50 = vsel %vm369_vm12, %v8906_v0, 0.0  ;;  %v14332_v7 = vrot.slane %v8778_v12, 6 }
 0x177   :  { %v826_v41 = vsel %vm810_vm1, %v793_v30, %v14331_v14  ;;  %v2056_v42 = vadd.f32 %v2032_v25, %v2004_v54  ;;  %v2542_v45 = vrot.slane %v8803_v37, 3  ;;  %v1624_v20 = vadd.f32 %v1600_v19, %v1572_v39  ;;  %v14337_v25 = vld [vmem:[#allocation62_spill] sm:$0xff] }
 0x178   :  { %v1155_v13 = vsel %vm1139_vm5, %v1122_v16, %v14332_v7  ;;  %v14333_v6 = vrot.slane %v8778_v12, 1  ;;  %v2361_v30 = vmul.f32 %v7275_v5, %v2247_v62  ;;  %v2977_v27 = vadd.f32 %v8798_v35, %v2925_v46 }
 0x179   :  { %v2333_v54 = vadd.f32 %v14334_v18, %v2056_v42  ;;  %v8937_v28 = vadd.f32 %v7334_v36, %v2975_v44  ;;  %v3079_v33 = vadd.f32 %v3078_v10, %v8784_v60  ;;  %v859_v16 = vsel %vm698_vm4, %v826_v41, 0.0 }
 0x17a   :  { %v1917_v14 = vsel %vm1901_vm9, %v1884_v55, %v14333_v6  ;;  %vm2807_vm12 = vcmp.lt.s32.totalorder %v8882_v57, 32  ;;  %v14336_v40 = vrot.slane %v8778_v12, 7  ;;  %v1676_v58 = vadd.f32 %v14337_v25, %v1624_v20 }
 0x17b   :  { %14335 = vst [vmem:[#allocation21_spill] sm:$0xff] %v8937_v28  ;;  %v1704_v62 = vmul.f32 %v7250_v56, %v8803_v37  ;;  %v2385_v35 = vadd.f32 %v2361_v30, %v2333_v54  ;;  %v8951_v46 = vmul.f32 %v14269_v29, %v530_v50  ;;  %v1188_v10 = vsel %vm13818_vm6, %v1155_v13, 0.0  ;;  %v14342_v13 = vld [vmem:[#allocation19_spill] sm:$0xff]  ;;  %v14343_v30 = vld [vmem:[#allocation20_spill] sm:$0xff] }
 0x17c   :  { %v1484_v55 = vsel %vm1468_vm7, %v1451_v53, %v14336_v40  ;;  %v1949_v60 = vsel %vm13812_vm3, %v1917_v14, 0.0  ;;  %v14338_v44 = vrot.slane %v8560_v4, 3  ;;  %v14339_v39 = vrot.slane %v8778_v12, 2  ;;  %v8982_v14 = vpop.permute.xlu0 %190 }
 0x17d   :  { %v1728_v41 = vadd.f32 %v1704_v62, %v1676_v58  ;;  %v14340_v19 = vrot.slane %v8778_v12, 3  ;;  %v2662_v50 = vadd.f32 %v8671_v47, %v2385_v35  ;;  %v8971_v7 = vadd.f32 %v7334_v36, %v2977_v27 }
 0x17e   :  { %v2576_v53 = vsel %vm2559_vm13, %v14338_v44, %v2542_v45  ;;  %v2246_v37 = vsel %vm2230_vm11, %v2213_v49, %v14339_v39  ;;  %v3028_v4 = vmul.f32 %v8937_v28, %v8937_v28  ;;  %v8976_v20 = vmul.f32 %v14342_v13, %v859_v16  ;;  %v8980_v49 = vpop.permute.xlu1 %195 }
 0x17f   :  { %v2575_v42 = vsel %vm2559_vm13, %v2542_v45, %v14340_v19  ;;  %14341 = vst [vmem:[#allocation61_spill] sm:$0xff] %v8971_v7  ;;  %v1517_v6 = vsel %vm1356_vm15, %v1484_v55, 0.0  ;;  %v3051_v45 = vadd.f32 %v3050_v21, %v8937_v28  ;;  %v2005_v47 = vadd.f32 %v8859_v48, %v1728_v41 }
 0x180   :  { %v2033_v18 = vmul.f32 %v7269_v1, %v1949_v60  ;;  %v2690_v54 = vmul.f32 %v14182_v43, %v2576_v53  ;;  %v8989_v27 = vmul.f32 %v14343_v30, %v1188_v10  ;;  %v2278_v16 = vsel %vm13808_vm8, %v2246_v37, 0.0 }
 0x181   :  { %v2607_v40 = vsel %vm13807_vm14, %v2575_v42, 0.0  ;;  %v277_v55 = vadd.s32 160, %v7209_v34  ;;  %v13826_v21 = vrot.slane %v8980_v49, 4  ;;  %v13809_v48 = vrot.slane %v8982_v14, 4 }
 0x182   :  { %v2057_v25 = vadd.f32 %v2033_v18, %v2005_v47  ;;  %v2714_v58 = vadd.f32 %v2690_v54, %v2662_v50  ;;  %v3030_v62 = vmul.f32 %v8971_v7, %v8971_v7  ;;  %v3080_v35 = vadd.f32 %v3079_v33, %v3028_v4 }
 0x183   :  { %v9001_v10 = vmul.f32 %v14287_v22, %v1517_v6  ;;  %v309_v60 = vand.u32 31, %v277_v55  ;;  %v3052_v44 = vadd.f32 %v3051_v45, %v8852_v17  ;;  %v2362_v41 = vmul.f32 %v7275_v5, %v2278_v16 }
 0x184   :  { %v2334_v53 = vadd.f32 %v8849_v38, %v2057_v25  ;;  %v2691_v39 = vmul.f32 %v14182_v43, %v2607_v40  ;;  %v13817_v37 = vrot.slane %v8980_v49, 5  ;;  %v13814_v50 = vrot.slane %v8982_v14, 5 }
 0x185   :  { %v341_v19 = vadd.s32 4294967292, %v309_v60  ;;  %v9008_v42 = vadd.s32 4294967293, %v309_v60  ;;  %v2926_v4 = vadd.f32 %v8888_v31, %v2714_v58  ;;  %v276_v6 = vadd.s32 152, %v7209_v34 }
 0x186   :  { %v2386_v33 = vadd.f32 %v2362_v41, %v2334_v53  ;;  %v9019_v38 = vsel %vm481_vm0, %v13809_v48, %v13826_v21  ;;  %v3081_v45 = vadd.f32 %v3080_v35, %v8879_v61  ;;  %v2871_v47 = vsel %vm2807_vm12, %v8906_v0, 0.0  ;;  %v14347_v41 = vld [vmem:[#allocation85_spill] sm:$0xff]  ;;  %v14356_v21 = vld [vmem:[#allocation31_spill] sm:$0xff] }
 0x187   :  { %14344 = vst [vmem:[#allocation75_spill] sm:$0xff] %v9008_v42  ;;  %v2954_v18 = vmul.f32 %v14291_v2, %v8824_v26  ;;  %vm373_vm14 = vcmp.ge.s32.totalorder %v341_v19, 0  ;;  %v3053_v31 = vadd.f32 %v3052_v44, %v8971_v7  ;;  %v13816_v16 = vrot.slane %v8980_v49, 6 }
 0x188   :  { %v2663_v54 = vadd.f32 %v8710_v23, %v2386_v33  ;;  %v13810_v40 = vrot.slane %v8982_v14, 6  ;;  %vm13819_vm8 = vcmp.ge.s32.totalorder %v9008_v42, 0  ;;  %v9032_v55 = vadd.s32 4294967294, %v309_v60 }
 0x189   :  { %v534_v61 = vsel %vm373_vm14, %v9019_v38, 0.0  ;;  %v822_v26 = vsel %vm810_vm1, %v13814_v50, %v13817_v37  ;;  %v2955_v23 = vmul.f32 %v14291_v2, %v2871_v47  ;;  %v2978_v0 = vadd.f32 %v2954_v18, %v2926_v4 }
 0x18a   :  { %14345 = vst [vmem:[#allocation67_spill] sm:$0xff] %v9032_v55  ;;  %v2715_v57 = vadd.f32 %v2691_v39, %v2663_v54  ;;  %v308_v25 = vand.u32 31, %v276_v6  ;;  %v3082_v58 = vadd.f32 %v3081_v45, %v3030_v62  ;;  %v13815_v35 = vrot.slane %v8980_v49, 7 }
 0x18b   :  { %v9043_v44 = vadd.s32 4294967295, %v309_v60  ;;  %v614_v53 = vmul.f32 %v14308_v59, %v534_v61  ;;  %v13823_v33 = vrot.slane %v8980_v49, 1  ;;  %v863_v48 = vsel %vm13819_vm8, %v822_v26, 0.0 }
 0x18c   :  { %v2927_v19 = vadd.f32 %v14347_v41, %v2715_v57  ;;  %v13813_v39 = vrot.slane %v8982_v14, 7  ;;  %v13822_v47 = vrot.slane %v8980_v49, 2  ;;  %vm13811_vm14 = vcmp.ge.s32.totalorder %v9032_v55, 0 }
 0x18d   :  { %14346 = vst [vmem:[#allocation79_spill] sm:$0xff] %v9043_v44  ;;  %v638_v62 = vadd.f32 %v614_v53, %v8951_v46  ;;  %v1151_v60 = vsel %vm1139_vm5, %v13810_v40, %v13816_v16  ;;  %v9061_v4 = vadd.f32 %v7334_v36, %v2978_v0  ;;  %v13825_v6 = vrot.slane %v8980_v49, 3 }
 0x18e   :  { %v9064_v45 = vadd.s32 1, %v308_v25  ;;  %v9066_v18 = vadd.s32 2, %v308_v25  ;;  %v2979_v54 = vadd.f32 %v2955_v23, %v2927_v19  ;;  %vm13859_vm12 = vcmp.ge.s32.totalorder %v9043_v44, 0 }
 0x18f   :  { %14348 = vst [vmem:[#allocation39_spill] sm:$0xff] %v9061_v4  ;;  %v915_v46 = vadd.f32 %v8976_v20, %v638_v62  ;;  %v943_v26 = vmul.f32 %v7288_v11, %v863_v48  ;;  %v2747_v57 = vadd.s32 4, %v308_v25  ;;  %v1192_v53 = vsel %vm13811_vm14, %v1151_v60, 0.0 }
 0x190   :  { %14349 = vst [vmem:[#allocation70_spill] sm:$0xff] %v9064_v45  ;;  %14350 = vst [vmem:[#allocation51_spill] sm:$0xff] %v9066_v18  ;;  %v1480_v0 = vsel %vm1468_vm7, %v13813_v39, %v13815_v35  ;;  %v13820_v41 = vrot.slane %v8982_v14, 1  ;;  %v9080_v23 = vadd.s32 3, %v308_v25  ;;  %v13821_v20 = vrot.slane %v8982_v14, 2  ;;  %v9099_v35 = vpop.permute.xlu1 %200 }
 0x191   :  { %v967_v19 = vadd.f32 %v943_v26, %v915_v46  ;;  %v13824_v62 = vrot.slane %v8982_v14, 3  ;;  %v9086_v40 = vmul.f32 %v7241_v52, %v8980_v49  ;;  %v1705_v60 = vmul.f32 %v7250_v56, %v8980_v49  ;;  %v14354_v46 = vld [vmem:[#allocation26_spill] sm:$0xff] }
 0x192   :  { %14351 = vst [vmem:[#allocation59_spill] sm:$0xff] %v9080_v23  ;;  %vm13880_vm14 = vcmp.lt.s32.totalorder %v9064_v45, 32  ;;  %vm13858_vm3 = vcmp.lt.s32.totalorder %v9066_v18, 32  ;;  %v9093_v39 = vadd.f32 %v7334_v36, %v2979_v54  ;;  %v1272_v26 = vmul.f32 %v14354_v46, %v1192_v53 }
 0x193   :  { %14352 = vst [vmem:[#allocation25_spill] sm:$0xff] %v9086_v40  ;;  %v1244_v25 = vadd.f32 %v8989_v27, %v967_v19  ;;  %v1521_v50 = vsel %vm13859_vm12, %v1480_v0, 0.0  ;;  %v3031_v16 = vmul.f32 %v9061_v4, %v9061_v4  ;;  %v3054_v37 = vadd.f32 %v3053_v31, %v9061_v4 }
 0x194   :  { %14353 = vst [vmem:[#allocation57_spill] sm:$0xff] %v9093_v39  ;;  %vm2811_vm6 = vcmp.lt.s32.totalorder %v2747_v57, 32  ;;  %v1913_v27 = vsel %vm1901_vm9, %v13820_v41, %v13823_v33  ;;  %vm13853_vm8 = vcmp.lt.s32.totalorder %v9080_v23, 32  ;;  %v2242_v0 = vsel %vm2230_vm11, %v13821_v20, %v13822_v47 }
 0x195   :  { %v1296_v54 = vadd.f32 %v1272_v26, %v1244_v25  ;;  %v2571_v31 = vsel %vm2559_vm13, %v13824_v62, %v13825_v6  ;;  %v3083_v57 = vadd.f32 %v3082_v58, %v3031_v16  ;;  %v9124_v19 = vmul.f32 %v14269_v29, %v534_v61 }
 0x196   :  { %v1601_v25 = vmul.f32 %v7297_v15, %v1521_v50  ;;  %v13836_v26 = vrot.slane %v9099_v35, 4  ;;  %v3032_v41 = vmul.f32 %v9093_v39, %v9093_v39  ;;  %v1953_v47 = vsel %vm13880_vm14, %v1913_v27, 0.0 }
 0x197   :  { %v1573_v20 = vadd.f32 %v9001_v10, %v1296_v54  ;;  %v2875_v33 = vsel %vm2811_vm6, %v9019_v38, 0.0  ;;  %v9135_v62 = vmul.f32 %v14342_v13, %v863_v48  ;;  %v9138_v16 = vmul.f32 %v14343_v30, %v1192_v53  ;;  %v9152_v38 = vpop.permute.xlu0 %180  ;;  %v14355_v54 = vld [vmem:[#allocation22_spill] sm:$0xff]  ;;  %v14359_v48 = vld [vmem:[#allocation60_spill] sm:$0xff] }
 0x198   :  { %v2282_v61 = vsel %vm13858_vm3, %v2242_v0, 0.0  ;;  %v2611_v58 = vsel %vm13853_vm8, %v2571_v31, 0.0  ;;  %v9145_v6 = vmul.f32 %v14287_v22, %v1521_v50  ;;  %v9149_v27 = vmul.f32 %v7241_v52, %v8982_v14 }
 0x199   :  { %v1625_v10 = vadd.f32 %v1601_v25, %v1573_v20  ;;  %v9155_v53 = vadd.f32 %v3054_v37, %v9093_v39  ;;  %v9158_v0 = vmul.f32 %v14355_v54, %v1953_v47  ;;  %v9161_v31 = vmul.f32 %v14356_v21, %v2875_v33  ;;  %v14360_v37 = vld [vmem:[#allocation27_spill] sm:$0xff]  ;;  %v14362_v47 = vld [vmem:[#allocation28_spill] sm:$0xff] }
 0x19a   :  { %v14358_v50 = vrot.slane %v8980_v49, 4  ;;  %v9171_v25 = vadd.f32 %v3083_v57, %v3032_v41  ;;  %v9175_v8 = vmul.f32 %v14360_v37, %v2282_v61  ;;  %v9178_v23 = vmul.f32 %v14362_v47, %v2611_v58 }
 0x19b   :  { %14357 = vst [vmem:[#allocation63_spill] sm:$0xff] %v9161_v31  ;;  %v1677_v55 = vadd.f32 %v14359_v48, %v1625_v10  ;;  %v13839_v32 = vrot.slane %v9152_v38, 4  ;;  %v14365_v41 = vrot.slane %v8980_v49, 5  ;;  %v9192_v61 = vmul.f32 %v7241_v52, %v9099_v35 }
 0x19c   :  { %v9169_v20 = vsel %vm481_vm0, %v14358_v50, %v13836_v26  ;;  %14361 = vst [vmem:[#allocation69_spill] sm:$0xff] %v9175_v8  ;;  %14363 = vst [vmem:[#allocation86_spill] sm:$0xff] %v9178_v23  ;;  %v14364_v50 = vrot.slane %v9099_v35, 5  ;;  %v14367_v48 = vrot.slane %v8778_v12, 4  ;;  %v9208_v33 = vmul.f32 %v7250_v56, %v9099_v35 }
 0x19d   :  { %14366 = vst [vmem:[#allocation68_spill] sm:$0xff] %v9192_v61  ;;  %v615_v58 = vmul.f32 %v14308_v59, %v9169_v20  ;;  %v1729_v9 = vadd.f32 %v1705_v60, %v1677_v55  ;;  %v14368_v44 = vrot.slane %v9152_v38, 5  ;;  %v14369_v45 = vrot.slane %v8778_v12, 5 }
 0x19e   :  { %v821_v57 = vsel %vm810_vm1, %v14365_v41, %v14364_v50  ;;  %v496_v26 = vsel %vm481_vm0, %v14367_v48, %v13839_v32  ;;  %v14370_v32 = vrot.slane %v9099_v35, 1  ;;  %v14371_v18 = vrot.slane %v8980_v49, 1 }
 0x19f   :  { %v563_v10 = vmul.f32 %v14269_v29, %v496_v26  ;;  %v825_v48 = vsel %vm810_vm1, %v14369_v45, %v14368_v44  ;;  %v14372_v60 = vrot.slane %v9152_v38, 1  ;;  %v14373_v63 = vrot.slane %v8778_v12, 1 }
 0x1a0   :  { %v1912_v41 = vsel %vm1901_vm9, %v14371_v18, %v14370_v32  ;;  %v9233_v44 = vmul.f32 %v14269_v29, %v9169_v20  ;;  %v892_v3 = vmul.f32 %v14342_v13, %v825_v48  ;;  %v944_v18 = vmul.f32 %v7288_v11, %v821_v57 }
 0x1a1   :  { %v1916_v42 = vsel %vm1901_vm9, %v14373_v63, %v14372_v60  ;;  %v639_v45 = vadd.f32 %v615_v58, %v563_v10  ;;  %v14375_v55 = vrot.slane %v9152_v38, 6  ;;  %v14376_v50 = vrot.slane %v8778_v12, 6 }
 0x1a2   :  { %14374 = vst [vmem:[#allocation71_spill] sm:$0xff] %v9233_v44  ;;  %v1982_v32 = vmul.f32 %v14355_v54, %v1916_v42  ;;  %v14377_v63 = vrot.slane %v9152_v38, 2  ;;  %v14378_v60 = vrot.slane %v8778_v12, 2  ;;  %v14379_v42 = vrot.slane %v9099_v35, 6 }
 0x1a3   :  { %v1154_v24 = vsel %vm1139_vm5, %v14376_v50, %v14375_v55  ;;  %v14380_v48 = vrot.slane %v8980_v49, 6  ;;  %v2034_v4 = vmul.f32 %v7269_v1, %v1912_v41  ;;  %v916_v7 = vadd.f32 %v892_v3, %v639_v45  ;;  %v9258_v55 = vpop.permute.xlu1 %205 }
 0x1a4   :  { %v2245_v58 = vsel %vm2230_vm11, %v14378_v60, %v14377_v63  ;;  %v2006_v50 = vadd.f32 %v1982_v32, %v1729_v9  ;;  %v9261_v17 = vmul.f32 %v14342_v13, %v821_v57  ;;  %v14382_v63 = vrot.slane %v9099_v35, 2 }
 0x1a5   :  { %v1150_v39 = vsel %vm1139_vm5, %v14380_v48, %v14379_v42  ;;  %v14383_v60 = vrot.slane %v8980_v49, 2  ;;  %v14384_v42 = vrot.slane %v9152_v38, 7  ;;  %v14385_v48 = vrot.slane %v8778_v12, 7 }
 0x1a6   :  { %14381 = vst [vmem:[#allocation50_spill] sm:$0xff] %v9261_v17  ;;  %v968_v9 = vadd.f32 %v944_v18, %v916_v7  ;;  %v1221_v57 = vmul.f32 %v14343_v30, %v1154_v24  ;;  %v2058_v45 = vadd.f32 %v2034_v4, %v2006_v50  ;;  %v2311_v32 = vmul.f32 %v14360_v37, %v2245_v58 }
 0x1a7   :  { %v2241_v10 = vsel %vm2230_vm11, %v14383_v60, %v14382_v63  ;;  %v1483_v3 = vsel %vm1468_vm7, %v14385_v48, %v14384_v42  ;;  %v9279_v51 = vmul.f32 %v14343_v30, %v1150_v39  ;;  %v1273_v63 = vmul.f32 %v14354_v46, %v1150_v39 }
 0x1a8   :  { %v14387_v60 = vrot.slane %v9152_v38, 3  ;;  %v14388_v28 = vrot.slane %v8778_v12, 3  ;;  %v2363_v7 = vmul.f32 %v7275_v5, %v2241_v10  ;;  %v14389_v24 = vrot.slane %v9099_v35, 7 }
 0x1a9   :  { %14386 = vst [vmem:[#allocation76_spill] sm:$0xff] %v9279_v51  ;;  %v14390_v4 = vrot.slane %v8980_v49, 7  ;;  %v1245_v58 = vadd.f32 %v1221_v57, %v968_v9  ;;  %v2335_v39 = vadd.f32 %v2311_v32, %v2058_v45  ;;  %v9297_v50 = vmul.f32 %v14355_v54, %v1912_v41 }
 0x1aa   :  { %v2574_v61 = vsel %vm2559_vm13, %v14388_v28, %v14387_v60  ;;  %v14392_v12 = vrot.slane %v9099_v35, 3  ;;  %v14393_v28 = vrot.slane %v8980_v49, 3  ;;  %v9307_v60 = vmul.f32 %v14356_v21, %v9169_v20 }
 0x1ab   :  { %v1479_v18 = vsel %vm1468_vm7, %v14390_v4, %v14389_v24  ;;  %14391 = vst [vmem:[#allocation84_spill] sm:$0xff] %v9297_v50  ;;  %v1550_v42 = vmul.f32 %v14287_v22, %v1483_v3  ;;  %v1297_v51 = vadd.f32 %v1273_v63, %v1245_v58  ;;  %v2387_v24 = vadd.f32 %v2363_v7, %v2335_v39  ;;  %v9331_v58 = vpop.permute.xlu0 %185 }
 0x1ac   :  { %v2570_v48 = vsel %vm2559_vm13, %v14393_v28, %v14392_v12  ;;  %14394 = vst [vmem:[#allocation87_spill] sm:$0xff] %v9307_v60  ;;  %v2640_v9 = vmul.f32 %v14362_v47, %v2574_v61  ;;  %v13850_v41 = vrot.slane %v9258_v55, 5  ;;  %v9313_v57 = vmul.f32 %v14360_v37, %v2241_v10 }
 0x1ad   :  { %v9316_v49 = vmul.f32 %v14287_v22, %v1479_v18  ;;  %v14397_v45 = vrot.slane %v9258_v55, 4  ;;  %v14398_v32 = vrot.slane %v9099_v35, 4  ;;  %v9328_v61 = vmul.f32 %v14362_v47, %v2570_v48 }
 0x1ae   :  { %14395 = vst [vmem:[#allocation62_spill] sm:$0xff] %v9313_v57  ;;  %v1602_v63 = vmul.f32 %v7297_v15, %v1479_v18  ;;  %v1574_v10 = vadd.f32 %v1550_v42, %v1297_v51  ;;  %v2664_v7 = vadd.f32 %v2640_v9, %v2387_v24  ;;  %v2692_v39 = vmul.f32 %v14182_v43, %v2570_v48 }
 0x1af   :  { %14396 = vst [vmem:[#allocation19_spill] sm:$0xff] %v9316_v49  ;;  %v9324_v4 = vsel %vm481_vm0, %v14398_v32, %v14397_v45  ;;  %14399 = vst [vmem:[#allocation20_spill] sm:$0xff] %v9328_v61  ;;  %v2956_v12 = vmul.f32 %v14291_v2, %v9169_v20  ;;  %v1654_v28 = vmul.f32 %v7241_v52, %v9152_v38  ;;  %v14401_v51 = vrot.slane %v9099_v35, 5 }
 0x1b0   :  { %v2904_v45 = vmul.f32 %v14356_v21, %v496_v26  ;;  %v1626_v32 = vadd.f32 %v1602_v63, %v1574_v10  ;;  %v9341_v3 = vmul.f32 %v14269_v29, %v9324_v4  ;;  %v14402_v20 = vrot.slane %v9258_v55, 6 }
 0x1b1   :  { %v820_v42 = vsel %vm810_vm1, %v14401_v51, %v13850_v41  ;;  %v14403_v48 = vrot.slane %v9099_v35, 6  ;;  %v467_v9 = vrot.slane %v9331_v58, 4  ;;  %v796_v63 = vrot.slane %v9331_v58, 5 }
 0x1b2   :  { %14400 = vst [vmem:[#allocation85_spill] sm:$0xff] %v9341_v3  ;;  %v2716_v10 = vadd.f32 %v2692_v39, %v2664_v7  ;;  %v616_v51 = vmul.f32 %v14308_v59, %v9324_v4  ;;  %v1125_v41 = vrot.slane %v9331_v58, 6  ;;  %v1678_v18 = vadd.f32 %v1654_v28, %v1626_v32 }
 0x1b3   :  { %v1149_v26 = vsel %vm1139_vm5, %v14403_v48, %v14402_v20  ;;  %v14404_v61 = vrot.slane %v9152_v38, 4  ;;  %v14405_v48 = vrot.slane %v9152_v38, 5  ;;  %v1887_v7 = vrot.slane %v9331_v58, 1 }
 0x1b4   :  { %v9375_v39 = vmul.f32 %v14342_v13, %v820_v42  ;;  %v945_v60 = vmul.f32 %v7288_v11, %v820_v42  ;;  %v9380_v28 = vmul.f32 %v7241_v52, %v9258_v55  ;;  %v9385_v32 = vmul.f32 %v14343_v30, %v1149_v26 }
 0x1b5   :  { %v9367_v20 = vsel %vm481_vm0, %v14404_v61, %v467_v9  ;;  %v824_v24 = vsel %vm810_vm1, %v14405_v48, %v796_v63  ;;  %v9389_v48 = vmul.f32 %v7250_v56, %v9258_v55  ;;  %v14409_v57 = vrot.slane %v9258_v55, 1 }
 0x1b6   :  { %14406 = vst [vmem:[#allocation26_spill] sm:$0xff] %v9375_v39  ;;  %14407 = vst [vmem:[#allocation60_spill] sm:$0xff] %v9380_v28  ;;  %v564_v61 = vmul.f32 %v14269_v29, %v9367_v20  ;;  %v14410_v49 = vrot.slane %v9099_v35, 1  ;;  %v13851_v50 = vrot.slane %v9258_v55, 3  ;;  %v2928_v28 = vadd.f32 %v2904_v45, %v2716_v10 }
 0x1b7   :  { %14408 = vst [vmem:[#allocation27_spill] sm:$0xff] %v9385_v32  ;;  %v14411_v31 = vrot.slane %v9258_v55, 2  ;;  %v14412_v39 = vrot.slane %v9099_v35, 2  ;;  %v893_v3 = vmul.f32 %v14342_v13, %v824_v24  ;;  %v1730_v44 = vadd.f32 %v9208_v33, %v1678_v18 }
 0x1b8   :  { %v1911_v42 = vsel %vm1901_vm9, %v14410_v49, %v14409_v57  ;;  %v640_v17 = vadd.f32 %v616_v51, %v564_v61  ;;  %v9408_v23 = vmul.f32 %v14356_v21, %v9324_v4  ;;  %v14414_v57 = vrot.slane %v9152_v38, 6 }
 0x1b9   :  { %v2240_v32 = vsel %vm2230_vm11, %v14412_v39, %v14411_v31  ;;  %v14415_v45 = vrot.slane %v9152_v38, 1  ;;  %v9419_v31 = vmul.f32 %v14355_v54, %v1911_v42  ;;  %v2035_v24 = vmul.f32 %v7269_v1, %v1911_v42 }
 0x1ba   :  { %14413 = vst [vmem:[#allocation88_spill] sm:$0xff] %v9408_v23  ;;  %v1153_v49 = vsel %vm1139_vm5, %v14414_v57, %v1125_v41  ;;  %v1274_v33 = vmul.f32 %v14354_v46, %v1149_v26  ;;  %v917_v18 = vadd.f32 %v893_v3, %v640_v17  ;;  %v9424_v51 = vmul.f32 %v14360_v37, %v2240_v32 }
 0x1bb   :  { %v1915_v10 = vsel %vm1901_vm9, %v14415_v45, %v1887_v7  ;;  %14416 = vst [vmem:[#allocation89_spill] sm:$0xff] %v9419_v31  ;;  %v14418_v39 = vrot.slane %v9099_v35, 3  ;;  %v2216_v45 = vrot.slane %v9331_v58, 2  ;;  %v2980_v23 = vadd.f32 %v2956_v12, %v2928_v28 }
 0x1bc   :  { %14417 = vst [vmem:[#allocation90_spill] sm:$0xff] %v9424_v51  ;;  %v1983_v57 = vmul.f32 %v14355_v54, %v1915_v10  ;;  %v969_v31 = vadd.f32 %v945_v60, %v917_v18  ;;  %v1222_v42 = vmul.f32 %v14343_v30, %v1153_v49  ;;  %v1454_v17 = vrot.slane %v9331_v58, 7 }
 0x1bd   :  { %v2569_v61 = vsel %vm2559_vm13, %v14418_v39, %v13851_v50  ;;  %v2364_v3 = vmul.f32 %v7275_v5, %v2240_v32  ;;  %v14419_v26 = vrot.slane %v9258_v55, 7  ;;  %v14420_v51 = vrot.slane %v9099_v35, 7 }
 0x1be   :  { %v2007_v39 = vadd.f32 %v1983_v57, %v1730_v44  ;;  %v14421_v10 = vrot.slane %v9152_v38, 2  ;;  %v9448_v60 = vmul.f32 %v14362_v47, %v2569_v61  ;;  %v2693_v28 = vmul.f32 %v14182_v43, %v2569_v61 }
 0x1bf   :  { %v1478_v40 = vsel %vm1468_vm7, %v14420_v51, %v14419_v26  ;;  %v1246_v49 = vadd.f32 %v1222_v42, %v969_v31  ;;  %v2545_v32 = vrot.slane %v9331_v58, 3  ;;  %v14423_v18 = vrot.slane %v8982_v14, 4 }
 0x1c0   :  { %v2244_v12 = vsel %vm2230_vm11, %v14421_v10, %v2216_v45  ;;  %14422 = vst [vmem:[#allocation91_spill] sm:$0xff] %v9448_v60  ;;  %v14424_v44 = vrot.slane %v8982_v14, 5  ;;  %v2059_v57 = vadd.f32 %v2035_v24, %v2007_v39  ;;  %v9462_v10 = vadd.f32 %v7334_v36, %v2980_v23 }
 0x1c1   :  { %v494_v35 = vsel %vm481_vm0, %v467_v9, %v14423_v18  ;;  %v2312_v26 = vmul.f32 %v14360_v37, %v2244_v12  ;;  %v9465_v31 = vmul.f32 %v14287_v22, %v1478_v40  ;;  %v9469_v61 = vmul.f32 %v14291_v2, %v9324_v4  ;;  %v9478_v12 = vpop.permute.xlu1 %215  ;;  %v9480_v18 = vpop.permute.xlu0 %210 }
 0x1c2   :  { %v823_v51 = vsel %vm810_vm1, %v796_v63, %v14424_v44  ;;  %14425 = vst [vmem:[#allocation92_spill] sm:$0xff] %v9462_v10  ;;  %v14427_v9 = vrot.slane %v9152_v38, 7  ;;  %v1603_v63 = vmul.f32 %v7297_v15, %v1478_v40  ;;  %v1298_v24 = vadd.f32 %v1274_v33, %v1246_v49 }
 0x1c3   :  { %14426 = vst [vmem:[#allocation93_spill] sm:$0xff] %v9465_v31  ;;  %v1655_v39 = vmul.f32 %v7241_v52, %v9331_v58  ;;  %v2336_v23 = vadd.f32 %v2312_v26, %v2059_v57  ;;  %v565_v44 = vmul.f32 %v14269_v29, %v494_v35  ;;  %v894_v4 = vmul.f32 %v14342_v13, %v823_v51 }
 0x1c4   :  { %v1482_v42 = vsel %vm1468_vm7, %v14427_v9, %v1454_v17  ;;  %v14428_v50 = vrot.slane %v8982_v14, 6  ;;  %v14429_v40 = vrot.slane %v9152_v38, 3  ;;  %v14430_v58 = vrot.slane %v8982_v14, 7 }
 0x1c5   :  { %v1551_v57 = vmul.f32 %v14287_v22, %v1482_v42  ;;  %v2388_v26 = vadd.f32 %v2364_v3, %v2336_v23  ;;  %v281_v51 = vadd.s32 192, %v7209_v34  ;;  %v3033_v60 = vmul.f32 %v9462_v10, %v9462_v10 }
 0x1c6   :  { %v1152_v9 = vsel %vm1139_vm5, %v1125_v41, %v14428_v50  ;;  %v2573_v33 = vsel %vm2559_vm13, %v14429_v40, %v2545_v32  ;;  %v1481_v49 = vsel %vm1468_vm7, %v1454_v17, %v14430_v58  ;;  %v14431_v50 = vrot.slane %v8982_v14, 1 }
 0x1c7   :  { %v472_v40 = vrot.slane %v9480_v18, 4  ;;  %v1223_v31 = vmul.f32 %v14343_v30, %v1152_v9  ;;  %v1575_v17 = vadd.f32 %v1551_v57, %v1298_v24  ;;  %v2641_v42 = vmul.f32 %v14362_v47, %v2573_v33 }
 0x1c8   :  { %v1914_v38 = vsel %vm1901_vm9, %v1887_v7, %v14431_v50  ;;  %v313_v3 = vand.u32 31, %v281_v51  ;;  %v9510_v23 = vadd.f32 %v9155_v53, %v9462_v10  ;;  %v9513_v58 = vmul.f32 %v14287_v22, %v1481_v49 }
 0x1c9   :  { %v13854_v2 = vrot.slane %v9478_v12, 5  ;;  %v801_v7 = vrot.slane %v9480_v18, 5  ;;  %v1984_v50 = vmul.f32 %v14355_v54, %v1914_v38  ;;  %v2665_v41 = vadd.f32 %v2641_v42, %v2388_v26 }
 0x1ca   :  { %v345_v8 = vadd.s32 4294967292, %v313_v3  ;;  %v674_v9 = vadd.s32 4294967293, %v313_v3  ;;  %v9519_v24 = vadd.f32 %v9171_v25, %v3033_v60  ;;  %v14432_v33 = vrot.slane %v8982_v14, 2 }
 0x1cb   :  { %v2905_v49 = vmul.f32 %v14356_v21, %v9367_v20  ;;  %v14433_v57 = vrot.slane %v9478_v12, 4  ;;  %v1627_v26 = vadd.f32 %v1603_v63, %v1575_v17  ;;  %v9534_v38 = vmul.f32 %v14356_v21, %v494_v35 }
 0x1cc   :  { %v2243_v53 = vsel %vm2230_vm11, %v2216_v45, %v14432_v33  ;;  %vm377_vm6 = vcmp.ge.s32.totalorder %v345_v8, 0  ;;  %v14434_v25 = vrot.slane %v9258_v55, 4  ;;  %v14435_v45 = vrot.slane %v8982_v14, 3 }
 0x1cd   :  { %v9531_v51 = vsel %vm481_vm0, %v472_v40, %v14433_v57  ;;  %vm706_vm8 = vcmp.ge.s32.totalorder %v674_v9, 0  ;;  %v818_v35 = vsel %vm810_vm1, %v801_v7, %v13854_v2  ;;  %v2717_v8 = vadd.f32 %v2693_v28, %v2665_v41 }
 0x1ce   :  { %v9540_v60 = vsel %vm481_vm0, %v14434_v25, %v472_v40  ;;  %v2572_v20 = vsel %vm2559_vm13, %v2545_v32, %v14435_v45  ;;  %v280_v63 = vadd.s32 184, %v7209_v34  ;;  %v1003_v17 = vadd.s32 4294967294, %v313_v3 }
 0x1cf   :  { %v538_v40 = vsel %vm377_vm6, %v9531_v51, 0.0  ;;  %v617_v14 = vmul.f32 %v14308_v59, %v9540_v60  ;;  %v14436_v32 = vrot.slane %v9258_v55, 5  ;;  %v1130_v57 = vrot.slane %v9480_v18, 6 }
 0x1d0   :  { %v618_v33 = vmul.f32 %v14308_v59, %v538_v40  ;;  %v1679_v25 = vadd.f32 %v1655_v39, %v1627_v26  ;;  %v9564_v28 = vmul.f32 %v14360_v37, %v2243_v53  ;;  %v9567_v41 = vmul.f32 %v14362_v47, %v2572_v20 }
 0x1d1   :  { %v9560_v9 = vsel %vm810_vm1, %v14436_v32, %v801_v7  ;;  %v9569_v45 = vsel %vm706_vm8, %v818_v35, 0.0  ;;  %v9574_v42 = vmul.f32 %v7241_v52, %v9478_v12  ;;  %v641_v10 = vadd.f32 %v617_v14, %v565_v44 }
 0x1d2   :  { %v642_v7 = vadd.f32 %v618_v33, %v9124_v19  ;;  %v2929_v32 = vadd.f32 %v2905_v49, %v2717_v8  ;;  %v312_v54 = vand.u32 31, %v280_v63  ;;  %vm1035_vm6 = vcmp.ge.s32.totalorder %v1003_v17, 0 }
 0x1d3   :  { %14437 = vst [vmem:[#allocation94_spill] sm:$0xff] %v9574_v42  ;;  %v946_v39 = vmul.f32 %v7288_v11, %v9560_v9  ;;  %v918_v53 = vadd.f32 %v894_v4, %v641_v10  ;;  %v947_v20 = vmul.f32 %v7288_v11, %v9569_v45  ;;  %v14438_v35 = vrot.slane %v9478_v12, 6 }
 0x1d4   :  { %v919_v26 = vadd.f32 %v9135_v62, %v642_v7  ;;  %v1731_v44 = vadd.f32 %v9389_v48, %v1679_v25  ;;  %v9589_v19 = vmul.f32 %v7250_v56, %v9478_v12  ;;  %v14439_v49 = vrot.slane %v9258_v55, 6 }
 0x1d5   :  { %v1147_v2 = vsel %vm1139_vm5, %v1130_v57, %v14438_v35  ;;  %v1459_v62 = vrot.slane %v9480_v18, 7  ;;  %v1332_v8 = vadd.s32 4294967295, %v313_v3  ;;  %v970_v63 = vadd.f32 %v946_v39, %v918_v53 }
 0x1d6   :  { %v1148_v10 = vsel %vm1139_vm5, %v14439_v49, %v1130_v57  ;;  %v971_v14 = vadd.f32 %v947_v20, %v919_v26  ;;  %v2981_v33 = vadd.f32 %v9469_v61, %v2929_v32  ;;  %v13861_v48 = vrot.slane %v9478_v12, 2 }
 0x1d7   :  { %v9599_v25 = vadd.s32 1, %v312_v54  ;;  %v1196_v7 = vsel %vm1035_vm6, %v1147_v2, 0.0  ;;  %v13860_v35 = vrot.slane %v9478_v12, 3  ;;  %v1247_v42 = vadd.f32 %v1223_v31, %v970_v63 }
 0x1d8   :  { %v1248_v57 = vadd.f32 %v9138_v16, %v971_v14  ;;  %v1275_v49 = vmul.f32 %v14354_v46, %v1148_v10  ;;  %v2008_v47 = vadd.f32 %v1984_v50, %v1731_v44  ;;  %v9605_v4 = vadd.s32 2, %v312_v54 }
 0x1d9   :  { %14440 = vst [vmem:[#allocation95_spill] sm:$0xff] %v9599_v25  ;;  %v14442_v3 = vrot.slane %v9258_v55, 7  ;;  %v1892_v32 = vrot.slane %v9480_v18, 1  ;;  %vm1364_vm8 = vcmp.ge.s32.totalorder %v1332_v8, 0  ;;  %v1276_v2 = vmul.f32 %v14354_v46, %v1196_v7 }
 0x1da   :  { %14441 = vst [vmem:[#allocation96_spill] sm:$0xff] %v9605_v4  ;;  %v1299_v17 = vadd.f32 %v1275_v49, %v1247_v42  ;;  %v2221_v31 = vrot.slane %v9480_v18, 2  ;;  %v9615_v16 = vadd.f32 %v7334_v36, %v2981_v33  ;;  %vm13879_vm6 = vcmp.lt.s32.totalorder %v9599_v25, 32  ;;  %v14458_v25 = vld [vmem:[#allocation85_spill] sm:$0xff] }
 0x1db   :  { %v1477_v61 = vsel %vm1468_vm7, %v14442_v3, %v1459_v62  ;;  %v9618_v50 = vadd.s32 3, %v312_v54  ;;  %v14445_v39 = vrot.slane %v9258_v55, 1  ;;  %v1300_v26 = vadd.f32 %v1276_v2, %v1248_v57 }
 0x1dc   :  { %14443 = vst [vmem:[#allocation97_spill] sm:$0xff] %v9615_v16  ;;  %v14446_v20 = vrot.slane %v9478_v12, 7  ;;  %v1576_v44 = vadd.f32 %v9513_v58, %v1299_v17  ;;  %v1604_v63 = vmul.f32 %v7297_v15, %v1477_v61  ;;  %vm13878_vm3 = vcmp.lt.s32.totalorder %v9605_v4, 32 }
 0x1dd   :  { %14444 = vst [vmem:[#allocation98_spill] sm:$0xff] %v9618_v50  ;;  %v9624_v53 = vsel %vm1901_vm9, %v14445_v39, %v1892_v32  ;;  %v9633_v14 = vadd.s32 4, %v312_v54  ;;  %v9637_v33 = vmul.f32 %v14269_v29, %v9540_v60  ;;  %v9642_v49 = vmul.f32 %v14269_v29, %v538_v40 }
 0x1de   :  { %v1476_v42 = vsel %vm1468_vm7, %v1459_v62, %v14446_v20  ;;  %v2036_v57 = vmul.f32 %v7269_v1, %v9624_v53  ;;  %v1628_v3 = vadd.f32 %v1604_v63, %v1576_v44  ;;  %v14447_v62 = vrot.slane %v9478_v12, 1 }
 0x1df   :  { %v14448_v2 = vrot.slane %v9258_v55, 2  ;;  %v3034_v17 = vmul.f32 %v9615_v16, %v9615_v16  ;;  %v1525_v39 = vsel %vm1364_vm8, %v1476_v42, 0.0  ;;  %v2550_v40 = vrot.slane %v9480_v18, 3 }
 0x1e0   :  { %v1909_v58 = vsel %vm1901_vm9, %v1892_v32, %v14447_v62  ;;  %v2060_v20 = vadd.f32 %v2036_v57, %v2008_v47  ;;  %vm13877_vm12 = vcmp.lt.s32.totalorder %v9618_v50, 32  ;;  %v1577_v44 = vadd.f32 %v9145_v6, %v1300_v26  ;;  %v9684_v57 = vpop.permute.xlu1 %225  ;;  %v14457_v50 = vld [vmem:[#allocation71_spill] sm:$0xff] }
 0x1e1   :  { %v9652_v54 = vsel %vm2230_vm11, %v14448_v2, %v2221_v31  ;;  %v1680_v32 = vadd.f32 %v9149_v27, %v1628_v3  ;;  %v1708_v63 = vmul.f32 %v7250_v56, %v9480_v18  ;;  %v9665_v62 = vmul.f32 %v14342_v13, %v9560_v9 }
 0x1e2   :  { %v9669_v8 = vsel %vm13879_vm6, %v1909_v58, 0.0  ;;  %v2337_v47 = vadd.f32 %v9564_v28, %v2060_v20  ;;  %v2365_v42 = vmul.f32 %v7275_v5, %v9652_v54  ;;  %vm2815_vm8 = vcmp.lt.s32.totalorder %v9633_v14, 32 }
 0x1e3   :  { %v9677_v6 = vmul.f32 %v14342_v13, %v9569_v45  ;;  %v1605_v27 = vmul.f32 %v7297_v15, %v1525_v39  ;;  %v1732_v26 = vadd.f32 %v1708_v63, %v1680_v32  ;;  %v2238_v9 = vsel %vm2230_vm11, %v2221_v31, %v13861_v48 }
 0x1e4   :  { %v9688_v28 = vadd.f32 %v9510_v23, %v9615_v16  ;;  %v9691_v3 = vadd.f32 %v9519_v24, %v3034_v17  ;;  %v2389_v58 = vadd.f32 %v2365_v42, %v2337_v47  ;;  %v14449_v45 = vrot.slane %v9258_v55, 3  ;;  %v9703_v23 = vpop.permute.xlu0 %220 }
 0x1e5   :  { %v9698_v20 = vmul.f32 %v14343_v30, %v1148_v10  ;;  %v1629_v32 = vadd.f32 %v1605_v27, %v1577_v44  ;;  %v2009_v31 = vadd.f32 %v9158_v0, %v1732_v26  ;;  %v2037_v63 = vmul.f32 %v7269_v1, %v9669_v8 }
 0x1e6   :  { %v2568_v2 = vsel %vm2559_vm13, %v14449_v45, %v2550_v40  ;;  %v2286_v24 = vsel %vm13878_vm3, %v2238_v9, 0.0  ;;  %v2567_v55 = vsel %vm2559_vm13, %v2550_v40, %v13860_v35  ;;  %v2666_v17 = vadd.f32 %v9567_v41, %v2389_v58  ;;  %v14450_v9 = vld [vmem:[#allocation69_spill] sm:$0xff] }
 0x1e7   :  { %v13862_v10 = vrot.slane %v9684_v57, 4  ;;  %v9714_v44 = vmul.f32 %v14343_v30, %v1196_v7  ;;  %v9718_v0 = vmul.f32 %v7241_v52, %v9480_v18  ;;  %v2061_v47 = vadd.f32 %v2037_v63, %v2009_v31  ;;  %v14452_v63 = vld [vmem:[#allocation25_spill] sm:$0xff] }
 0x1e8   :  { %v2694_v42 = vmul.f32 %v14182_v43, %v2568_v2  ;;  %v9722_v27 = vmul.f32 %v14287_v22, %v1477_v61  ;;  %v13867_v26 = vrot.slane %v9684_v57, 5  ;;  %v474_v40 = vrot.slane %v9703_v23, 4 }
 0x1e9   :  { %v803_v41 = vrot.slane %v9703_v23, 5  ;;  %v2338_v58 = vadd.f32 %v14450_v9, %v2061_v47  ;;  %v2366_v7 = vmul.f32 %v7275_v5, %v2286_v24  ;;  %v2615_v18 = vsel %vm13877_vm12, %v2567_v55, 0.0 }
 0x1ea   :  { %v2718_v45 = vadd.f32 %v2694_v42, %v2666_v17  ;;  %v9732_v31 = vmul.f32 %v14287_v22, %v1525_v39  ;;  %v1681_v61 = vadd.f32 %v14452_v63, %v1629_v32  ;;  %v9739_v35 = vsel %vm481_vm0, %v474_v40, %v13862_v10 }
 0x1eb   :  { %14453 = vst [vmem:[#allocation25_spill] sm:$0xff] %v9739_v35  ;;  %v14454_v48 = vrot.slane %v9478_v12, 4  ;;  %v2390_v9 = vadd.f32 %v2366_v7, %v2338_v58  ;;  %v620_v39 = vmul.f32 %v14308_v59, %v9739_v35  ;;  %v14455_v32 = vrot.slane %v9478_v12, 5  ;;  %v14456_v58 = vld [vmem:[#allocation86_spill] sm:$0xff] }
 0x1ec   :  { %14451 = vst [vmem:[#allocation69_spill] sm:$0xff] %v9732_v31  ;;  %v2695_v42 = vmul.f32 %v14182_v43, %v2615_v18  ;;  %v2930_v10 = vadd.f32 %v9534_v38, %v2718_v45  ;;  %v9771_v63 = vmul.f32 %v14356_v21, %v9540_v60  ;;  %v14462_v45 = vld [vmem:[#allocation26_spill] sm:$0xff] }
 0x1ed   :  { %v9745_v47 = vsel %vm481_vm0, %v14454_v48, %v474_v40  ;;  %v817_v17 = vsel %vm810_vm1, %v14455_v32, %v803_v41  ;;  %v816_v48 = vsel %vm810_vm1, %v803_v41, %v13867_v26  ;;  %v1132_v40 = vrot.slane %v9703_v23, 6  ;;  %v14460_v41 = vld [vmem:[#allocation24_spill] sm:$0xff] }
 0x1ee   :  { %v619_v55 = vmul.f32 %v14308_v59, %v9745_v47  ;;  %v2667_v7 = vadd.f32 %v14456_v58, %v2390_v9  ;;  %v644_v16 = vadd.f32 %v620_v39, %v14458_v25  ;;  %v2879_v32 = vsel %vm2815_vm8, %v9531_v51, 0.0  ;;  %14459 = vst [vmem:[#allocation86_spill] sm:$0xff] %v9771_v63  ;;  %v14461_v58 = vld [vmem:[#allocation50_spill] sm:$0xff] }
 0x1ef   :  { %v2958_v26 = vmul.f32 %v14460_v41, %v9540_v60  ;;  %v948_v29 = vmul.f32 %v7288_v11, %v817_v17  ;;  %v949_v25 = vmul.f32 %v7288_v11, %v816_v48  ;;  %v9785_v51 = vmul.f32 %v14360_v37, %v9652_v54  ;;  %v14467_v54 = vld [vmem:[#allocation28_spill] sm:$0xff] }
 0x1f0   :  { %v643_v4 = vadd.f32 %v619_v55, %v14457_v50  ;;  %v2719_v9 = vadd.f32 %v2695_v42, %v2667_v7  ;;  %v921_v50 = vadd.f32 %v14462_v45, %v644_v16  ;;  %v14463_v55 = vld [vmem:[#allocation22_spill] sm:$0xff]  ;;  %v1733_v39 = vadd.f32 %v9589_v19, %v1681_v61  ;;  %v14469_v61 = vld [vmem:[#allocation63_spill] sm:$0xff] }
 0x1f1   :  { %v9781_v14 = vmul.f32 %v14463_v55, %v9624_v53  ;;  %v14464_v60 = vrot.slane %v9478_v12, 6  ;;  %v9797_v45 = vmul.f32 %v14360_v37, %v2286_v24  ;;  %v9800_v63 = vmul.f32 %v14467_v54, %v2568_v2 }
 0x1f2   :  { %v920_v38 = vadd.f32 %v14461_v58, %v643_v4  ;;  %v2982_v4 = vadd.f32 %v2958_v26, %v2930_v10  ;;  %v973_v16 = vadd.f32 %v949_v25, %v921_v50  ;;  %v14465_v58 = vrot.slane %v9684_v57, 6 }
 0x1f3   :  { %v1146_v42 = vsel %vm1139_vm5, %v14464_v60, %v1132_v40  ;;  %14466 = vst [vmem:[#allocation71_spill] sm:$0xff] %v9797_v45  ;;  %v9803_v19 = vmul.f32 %v14467_v54, %v2615_v18  ;;  %v2931_v31 = vadd.f32 %v14469_v61, %v2719_v9  ;;  %v9807_v10 = vmul.f32 %v14356_v21, %v2879_v32 }
 0x1f4   :  { %v972_v7 = vadd.f32 %v948_v29, %v920_v38  ;;  %v1145_v53 = vsel %vm1139_vm5, %v1132_v40, %v14465_v58  ;;  %v14471_v29 = vld [vmem:[#allocation76_spill] sm:$0xff]  ;;  %v14472_v38 = vld [vmem:[#allocation27_spill] sm:$0xff]  ;;  %v1277_v40 = vmul.f32 %v14354_v46, %v1146_v42  ;;  %v2959_v24 = vmul.f32 %v14460_v41, %v2879_v32 }
 0x1f5   :  { %14468 = vst [vmem:[#allocation85_spill] sm:$0xff] %v9803_v19  ;;  %14470 = vst [vmem:[#allocation24_spill] sm:$0xff] %v9807_v10  ;;  %v1250_v50 = vadd.f32 %v14472_v38, %v973_v16  ;;  %v1278_v25 = vmul.f32 %v14354_v46, %v1145_v53  ;;  %v1461_v2 = vrot.slane %v9703_v23, 7  ;;  %v13869_v18 = vrot.slane %v9703_v23, 1  ;;  %v14474_v58 = vld [vmem:[#allocation84_spill] sm:$0xff] }
 0x1f6   :  { %v1249_v26 = vadd.f32 %v14471_v29, %v972_v7  ;;  %v9817_v60 = vadd.f32 %v7334_v36, %v2982_v4  ;;  %v2010_v61 = vadd.f32 %v14474_v58, %v1733_v39  ;;  %v2983_v29 = vadd.f32 %v2959_v24, %v2931_v31 }
 0x1f7   :  { %v1302_v16 = vadd.f32 %v1278_v25, %v1250_v50  ;;  %v14475_v32 = vrot.slane %v9478_v12, 1  ;;  %v2223_v10 = vrot.slane %v9703_v23, 2  ;;  %v9830_v4 = vmul.f32 %v7241_v52, %v9684_v57 }
 0x1f8   :  { %14473 = vst [vmem:[#allocation50_spill] sm:$0xff] %v9817_v60  ;;  %v1301_v7 = vadd.f32 %v1277_v40, %v1249_v26  ;;  %v9834_v9 = vmul.f32 %v7250_v56, %v9684_v57  ;;  %v14477_v50 = vrot.slane %v9478_v12, 7  ;;  %v9847_v24 = vmul.f32 %v7241_v52, %v9703_v23  ;;  %v14482_v26 = vld [vmem:[#allocation19_spill] sm:$0xff] }
 0x1f9   :  { %v1908_v38 = vsel %vm1901_vm9, %v14475_v32, %v13869_v18  ;;  %14476 = vst [vmem:[#allocation26_spill] sm:$0xff] %v9830_v4  ;;  %v3035_v58 = vmul.f32 %v9817_v60, %v9817_v60  ;;  %v9853_v32 = vmul.f32 %v14342_v13, %v817_v17  ;;  %v14481_v18 = vrot.slane %v9684_v57, 7  ;;  %v14484_v4 = vld [vmem:[#allocation93_spill] sm:$0xff] }
 0x1fa   :  { %v9843_v40 = vsel %vm1468_vm7, %v14477_v50, %v1461_v2  ;;  %14479 = vst [vmem:[#allocation63_spill] sm:$0xff] %v9847_v24  ;;  %v2038_v25 = vmul.f32 %v7269_v1, %v1908_v38  ;;  %v1578_v50 = vadd.f32 %v14482_v26, %v1301_v7  ;;  %v9861_v39 = vadd.f32 %v7334_v36, %v2983_v29 }
 0x1fb   :  { %14478 = vst [vmem:[#allocation22_spill] sm:$0xff] %v9843_v40  ;;  %14480 = vst [vmem:[#allocation76_spill] sm:$0xff] %v9853_v32  ;;  %v1474_v31 = vsel %vm1468_vm7, %v1461_v2, %v14481_v18  ;;  %v1579_v24 = vadd.f32 %v14484_v4, %v1302_v16  ;;  %v14485_v45 = vrot.slane %v9478_v12, 2  ;;  %v9869_v17 = vmul.f32 %v14342_v13, %v816_v48 }
 0x1fc   :  { %14483 = vst [vmem:[#allocation27_spill] sm:$0xff] %v9861_v39  ;;  %v2062_v19 = vadd.f32 %v2038_v25, %v2010_v61  ;;  %v9872_v32 = vmul.f32 %v14343_v30, %v1146_v42  ;;  %v1606_v2 = vmul.f32 %v7297_v15, %v9843_v40  ;;  %v2552_v18 = vrot.slane %v9703_v23, 3  ;;  %v9889_v25 = vpop.permute.xlu1 %235  ;;  %v9891_v40 = vpop.permute.xlu0 %230 }
 0x1fd   :  { %v2237_v21 = vsel %vm2230_vm11, %v14485_v45, %v2223_v10  ;;  %14486 = vst [vmem:[#allocation84_spill] sm:$0xff] %v9869_v17  ;;  %v3058_v7 = vadd.f32 %v9688_v28, %v9817_v60  ;;  %v9880_v61 = vmul.f32 %v14343_v30, %v1145_v53  ;;  %v1607_v29 = vmul.f32 %v7297_v15, %v1474_v31  ;;  %v14489_v45 = vld [vmem:[#allocation62_spill] sm:$0xff] }
 0x1fe   :  { %14487 = vst [vmem:[#allocation19_spill] sm:$0xff] %v9872_v32  ;;  %v2339_v16 = vadd.f32 %v14489_v45, %v2062_v19  ;;  %v3087_v48 = vadd.f32 %v9691_v3, %v3035_v58  ;;  %v9886_v42 = vmul.f32 %v14287_v22, %v1474_v31  ;;  %v1630_v4 = vadd.f32 %v1606_v2, %v1578_v50 }
 0x1ff   :  { %14488 = vst [vmem:[#allocation93_spill] sm:$0xff] %v9880_v61  ;;  %v2367_v26 = vmul.f32 %v7275_v5, %v2237_v21  ;;  %v3036_v28 = vmul.f32 %v9861_v39, %v9861_v39  ;;  %v1631_v53 = vadd.f32 %v1607_v29, %v1579_v24  ;;  %v1710_v60 = vmul.f32 %v7250_v56, %v9703_v23 }
 0x200   :  { %14490 = vst [vmem:[#allocation62_spill] sm:$0xff] %v9886_v42  ;;  %v9899_v3 = vmul.f32 %v14460_v41, %v9745_v47  ;;  %v14491_v19 = vrot.slane %v9684_v57, 2  ;;  %v14493_v50 = vrot.slane %v9684_v57, 3  ;;  %v285_v24 = vadd.s32 224, %v7209_v34 }
 0x201   :  { %v2391_v58 = vadd.f32 %v2367_v26, %v2339_v16  ;;  %v9915_v29 = vadd.f32 %v3058_v7, %v9861_v39  ;;  %v14496_v45 = vrot.slane %v9478_v12, 3  ;;  %v476_v16 = vrot.slane %v9891_v40, 4  ;;  %v14497_v26 = vld [vmem:[#allocation68_spill] sm:$0xff] }
 0x202   :  { %v9905_v31 = vsel %vm2230_vm11, %v2223_v10, %v14491_v19  ;;  %v9911_v2 = vsel %vm2559_vm13, %v2552_v18, %v14493_v50  ;;  %v13876_v10 = vrot.slane %v9889_v25, 4  ;;  %v1682_v19 = vadd.f32 %v14497_v26, %v1630_v4  ;;  %v14501_v39 = vld [vmem:[#allocation60_spill] sm:$0xff] }
 0x203   :  { %14492 = vst [vmem:[#allocation99_spill] sm:$0xff] %v9905_v31  ;;  %14494 = vst [vmem:[#allocation100_spill] sm:$0xff] %v9911_v2  ;;  %v2566_v42 = vsel %vm2559_vm13, %v14496_v45, %v2552_v18  ;;  %v9925_v61 = vmul.f32 %v14463_v55, %v1908_v38  ;;  %v9928_v50 = vmul.f32 %v14360_v37, %v2237_v21  ;;  %v317_v32 = vand.u32 31, %v285_v24  ;;  %v14505_v38 = vld [vmem:[#allocation20_spill] sm:$0xff] }
 0x204   :  { %14495 = vst [vmem:[#allocation101_spill] sm:$0xff] %v9915_v29  ;;  %v9930_v7 = vadd.f32 %v3087_v48, %v3036_v28  ;;  %v1683_v12 = vadd.f32 %v14501_v39, %v1631_v53  ;;  %v9935_v18 = vmul.f32 %v7275_v5, %v9905_v31  ;;  %v9939_v45 = vmul.f32 %v14182_v43, %v9911_v2 }
 0x205   :  { %14498 = vst [vmem:[#allocation68_spill] sm:$0xff] %v9925_v61  ;;  %14499 = vst [vmem:[#allocation102_spill] sm:$0xff] %v9928_v50  ;;  %v9942_v4 = vmul.f32 %v14467_v54, %v2566_v42  ;;  %v2668_v26 = vadd.f32 %v14505_v38, %v2391_v58  ;;  %v349_v24 = vadd.s32 4294967292, %v317_v32  ;;  %v678_v48 = vadd.s32 4294967293, %v317_v32 }
 0x206   :  { %14500 = vst [vmem:[#allocation103_spill] sm:$0xff] %v9930_v7  ;;  %14502 = vst [vmem:[#allocation60_spill] sm:$0xff] %v9935_v18  ;;  %v9950_v39 = vsel %vm481_vm0, %v476_v16, %v13876_v10  ;;  %v14506_v28 = vrot.slane %v9684_v57, 4  ;;  %v805_v2 = vrot.slane %v9891_v40, 5  ;;  %v1734_v31 = vadd.f32 %v1710_v60, %v1682_v19 }
 0x207   :  { %14503 = vst [vmem:[#allocation104_spill] sm:$0xff] %v9939_v45  ;;  %14504 = vst [vmem:[#allocation105_spill] sm:$0xff] %v9942_v4  ;;  %v2696_v58 = vmul.f32 %v14182_v43, %v2566_v42  ;;  %v9962_v38 = vmul.f32 %v14460_v41, %v9739_v35  ;;  %vm381_vm8 = vcmp.ge.s32.totalorder %v349_v24, 0  ;;  %v9968_v4 = vmul.f32 %v7250_v56, %v9889_v25 }
 0x208   :  { %v9956_v53 = vsel %vm481_vm0, %v14506_v28, %v476_v16  ;;  %v284_v16 = vadd.s32 216, %v7209_v34  ;;  %v542_v60 = vsel %vm381_vm8, %v9950_v39, 0.0  ;;  %v1134_v19 = vrot.slane %v9891_v40, 6  ;;  %v5137_v34 = vld [vmem:[#allocation2 + $0x100] sm:$0xff] }
 0x209   :  { %14507 = vst [vmem:[#allocation20_spill] sm:$0xff] %v9956_v53  ;;  %14508 = vst [vmem:[#allocation106_spill] sm:$0xff] %v9962_v38  ;;  %v2720_v28 = vadd.f32 %v2696_v58, %v2668_v26  ;;  %v621_v42 = vmul.f32 %v14308_v59, %v9956_v53  ;;  %vm710_vm12 = vcmp.ge.s32.totalorder %v678_v48, 0  ;;  %v622_v24 = vmul.f32 %v14308_v59, %v542_v60  ;;  %v14512_v58 = vld [vmem:[#allocation87_spill] sm:$0xff] }
 0x20a   :  { %v14509_v21 = vrot.slane %v9889_v25, 5  ;;  %v14510_v7 = vrot.slane %v9684_v57, 5  ;;  %v1735_v50 = vadd.f32 %v9834_v9, %v1683_v12  ;;  %v13881_v60 = vrot.slane %v9889_v25, 3 }
 0x20b   :  { %v645_v48 = vadd.f32 %v621_v42, %v9637_v33  ;;  %v316_v38 = vand.u32 31, %v284_v16  ;;  %v1007_v45 = vadd.s32 4294967294, %v317_v32  ;;  %v646_v61 = vadd.f32 %v622_v24, %v9642_v49 }
 0x20c   :  { %v814_v10 = vsel %vm810_vm1, %v805_v2, %v14509_v21  ;;  %v815_v26 = vsel %vm810_vm1, %v14510_v7, %v805_v2  ;;  %v14511_v21 = vld [vmem:[#allocation89_spill] sm:$0xff]  ;;  %v2932_v29 = vadd.f32 %v14512_v58, %v2720_v28  ;;  %v14513_v33 = vrot.slane %v9684_v57, 6 }
 0x20d   :  { %v9991_v17 = vadd.f32 %v14511_v21, %v1734_v31  ;;  %v871_v18 = vsel %vm710_vm12, %v814_v10, 0.0  ;;  %v922_v2 = vadd.f32 %v9665_v62, %v645_v48  ;;  %v950_v7 = vmul.f32 %v7288_v11, %v815_v26 }
 0x20e   :  { %v923_v9 = vadd.f32 %v9677_v6, %v646_v61  ;;  %v1144_v12 = vsel %vm1139_vm5, %v14513_v33, %v1134_v19  ;;  %v1463_v16 = vrot.slane %v9891_v40, 7  ;;  %v10004_v49 = vmul.f32 %v14463_v55, %v9669_v8 }
 0x20f   :  { %v2012_v31 = vadd.f32 %v9781_v14, %v1735_v50  ;;  %v974_v62 = vadd.f32 %v950_v7, %v922_v2  ;;  %v1896_v10 = vrot.slane %v9891_v40, 1  ;;  %vm1039_vm12 = vcmp.ge.s32.totalorder %v1007_v45, 0 }
 0x210   :  { %v1336_v28 = vadd.s32 4294967295, %v317_v32  ;;  %v1768_v42 = vadd.s32 1, %v316_v38  ;;  %v951_v6 = vmul.f32 %v7288_v11, %v871_v18  ;;  %v14514_v61 = vrot.slane %v9889_v25, 6 }
 0x211   :  { %v1251_v58 = vadd.f32 %v9698_v20, %v974_v62  ;;  %v1279_v8 = vmul.f32 %v14354_v46, %v1144_v12  ;;  %v2225_v48 = vrot.slane %v9891_v40, 2  ;;  %v2984_v14 = vadd.f32 %v9899_v3, %v2932_v29 }
 0x212   :  { %v1143_v24 = vsel %vm1139_vm5, %v1134_v19, %v14514_v61  ;;  %v975_v50 = vadd.f32 %v951_v6, %v923_v9  ;;  %v14515_v21 = vrot.slane %v9684_v57, 7  ;;  %v14516_v18 = vrot.slane %v9684_v57, 1 }
 0x213   :  { %v2097_v19 = vadd.s32 2, %v316_v38  ;;  %v2426_v7 = vadd.s32 3, %v316_v38  ;;  %v1303_v20 = vadd.f32 %v1279_v8, %v1251_v58  ;;  %vm1368_vm8 = vcmp.ge.s32.totalorder %v1336_v28, 0 }
 0x214   :  { %v1473_v32 = vsel %vm1468_vm7, %v14515_v21, %v1463_v16  ;;  %v1906_v2 = vsel %vm1901_vm9, %v14516_v18, %v1896_v10  ;;  %vm1832_vm3 = vcmp.lt.s32.totalorder %v1768_v42, 32  ;;  %v2755_v62 = vadd.s32 4, %v316_v38 }
 0x215   :  { %v2040_v33 = vmul.f32 %v7269_v1, %v1906_v2  ;;  %v1200_v3 = vsel %vm1039_vm12, %v1143_v24, 0.0  ;;  %v1580_v29 = vadd.f32 %v9722_v27, %v1303_v20  ;;  %v1608_v9 = vmul.f32 %v7297_v15, %v1473_v32 }
 0x216   :  { %v14517_v61 = vrot.slane %v9684_v57, 2  ;;  %v10034_v18 = vadd.f32 %v7334_v36, %v2984_v14  ;;  %v1252_v58 = vadd.f32 %v9714_v44, %v975_v50  ;;  %v14518_v8 = vrot.slane %v9889_v25, 7 }
 0x217   :  { %v2064_v6 = vadd.f32 %v2040_v33, %v2012_v31  ;;  %v2554_v27 = vrot.slane %v9891_v40, 3  ;;  %v1632_v38 = vadd.f32 %v1608_v9, %v1580_v29  ;;  %v14519_v31 = vrot.slane %v9889_v25, 1  ;;  %v10053_v9 = vpop.permute.xlu1 %245 }
 0x218   :  { %v2235_v21 = vsel %vm2230_vm11, %v14517_v61, %v2225_v48  ;;  %v1472_v45 = vsel %vm1468_vm7, %v1463_v16, %v14518_v8  ;;  %vm2161_vm12 = vcmp.lt.s32.totalorder %v2097_v19, 32  ;;  %vm2490_vm6 = vcmp.lt.s32.totalorder %v2426_v7, 32 }
 0x219   :  { %v1905_v24 = vsel %vm1901_vm9, %v1896_v10, %v14519_v31  ;;  %v2341_v20 = vadd.f32 %v9785_v51, %v2064_v6  ;;  %v2369_v14 = vmul.f32 %v7275_v5, %v2235_v21  ;;  %v902_v44 = vmul.f32 %v14342_v13, %v815_v26  ;;  %v14523_v31 = vld [vmem:[#allocation69_spill] sm:$0xff] }
 0x21a   :  { %v1280_v50 = vmul.f32 %v14354_v46, %v1200_v3  ;;  %vm2819_vm14 = vcmp.lt.s32.totalorder %v2755_v62, 32  ;;  %v1684_v16 = vadd.f32 %v9718_v0, %v1632_v38  ;;  %v1712_v33 = vmul.f32 %v7250_v56, %v9891_v40 }
 0x21b   :  { %v2393_v29 = vadd.f32 %v2369_v14, %v2341_v20  ;;  %v10057_v51 = vmul.f32 %v10034_v18, %v10034_v18  ;;  %v1529_v6 = vsel %vm1368_vm8, %v1472_v45, 0.0  ;;  %v1961_v13 = vsel %vm1832_vm3, %v1905_v24, 0.0  ;;  %v14524_v20 = vld [vmem:[#allocation35_spill] sm:$0xff] }
 0x21c   :  { %v1304_v10 = vadd.f32 %v1280_v50, %v1252_v58  ;;  %v1231_v26 = vmul.f32 %v14343_v30, %v1144_v12  ;;  %v10064_v0 = vmul.f32 %v7241_v52, %v9891_v40  ;;  %v1736_v3 = vadd.f32 %v1712_v33, %v1684_v16  ;;  %v14527_v16 = vld [vmem:[#allocation18_spill] sm:$0xff] }
 0x21d   :  { %v14520_v61 = vrot.slane %v9684_v57, 3  ;;  %v14522_v38 = vrot.slane %v9889_v25, 2  ;;  %v2670_v42 = vadd.f32 %v9800_v63, %v2393_v29  ;;  %v479_v30 = vrot.slane %v10053_v9, 4 }
 0x21e   :  { %v13884_v12 = vrot.slane %v10053_v9, 5  ;;  %v1560_v52 = vmul.f32 %v14287_v22, %v1473_v32  ;;  %v1609_v40 = vmul.f32 %v7297_v15, %v1529_v6  ;;  %v10082_v58 = vmul.f32 %v14463_v55, %v1906_v2 }
 0x21f   :  { %v10070_v8 = vsel %vm2559_vm13, %v14520_v61, %v2554_v27  ;;  %v2234_v28 = vsel %vm2230_vm11, %v2225_v48, %v14522_v38  ;;  %v10085_v45 = vmul.f32 %v14463_v55, %v1961_v13  ;;  %v1581_v24 = vadd.f32 %v14523_v31, %v1304_v10 }
 0x220   :  { %14521 = vst [vmem:[#allocation89_spill] sm:$0xff] %v10070_v8  ;;  %v2563_v63 = vsel %vm2559_vm13, %v2554_v27, %v13881_v60  ;;  %v2698_v48 = vmul.f32 %v14182_v43, %v10070_v8  ;;  %v14525_v32 = vrot.slane %v14524_v20, 4  ;;  %v2013_v2 = vadd.f32 %v10004_v49, %v1736_v3 }
 0x221   :  { %v2290_v50 = vsel %vm2161_vm12, %v2234_v28, 0.0  ;;  %v573_v33 = vmul.f32 %v14527_v16, %v9956_v53  ;;  %v2041_v27 = vmul.f32 %v7269_v1, %v1961_v13  ;;  %v14528_v6 = vrot.slane %v14524_v20, 5 }
 0x222   :  { %v10098_v14 = vsel %vm481_vm0, %v479_v30, %v14525_v32  ;;  %v2722_v10 = vadd.f32 %v2698_v48, %v2670_v42  ;;  %v1137_v49 = vrot.slane %v10053_v9, 6  ;;  %v2619_v19 = vsel %vm2490_vm6, %v2563_v63, 0.0 }
 0x223   :  { %14526 = vst [vmem:[#allocation87_spill] sm:$0xff] %v10098_v14  ;;  %v625_v29 = vmul.f32 %v14308_v59, %v10098_v14  ;;  %v811_v61 = vsel %vm810_vm1, %v13884_v12, %v14528_v6  ;;  %v13883_v38 = vrot.slane %v10053_v9, 7  ;;  %v13882_v28 = vrot.slane %v10053_v9, 1 }
 0x224   :  { %v1633_v31 = vadd.f32 %v1609_v40, %v1581_v24  ;;  %v10118_v13 = vmul.f32 %v14360_v37, %v2235_v21  ;;  %v10121_v42 = vmul.f32 %v14360_v37, %v2290_v50  ;;  %v2370_v48 = vmul.f32 %v7275_v5, %v2290_v50  ;;  %v14530_v21 = vld [vmem:[#allocation86_spill] sm:$0xff] }
 0x225   :  { %v649_v3 = vadd.f32 %v625_v29, %v573_v33  ;;  %v2065_v32 = vadd.f32 %v2041_v27, %v2013_v2  ;;  %v2883_v6 = vsel %vm2819_vm14, %v9950_v39, 0.0  ;;  %v954_v63 = vmul.f32 %v7288_v11, %v811_v61  ;;  %v14534_v61 = vld [vmem:[#allocation31_spill] sm:$0xff] }
 0x226   :  { %14529 = vst [vmem:[#allocation69_spill] sm:$0xff] %v10118_v13  ;;  %v10128_v33 = vmul.f32 %v14467_v54, %v2619_v19  ;;  %v10131_v40 = vmul.f32 %v14182_v43, %v2619_v19  ;;  %v2934_v24 = vadd.f32 %v14530_v21, %v2722_v10  ;;  %v14531_v29 = vrot.slane %v14524_v20, 6 }
 0x227   :  { %v926_v7 = vadd.f32 %v902_v44, %v649_v3  ;;  %v14532_v62 = vrot.slane %v14524_v20, 7  ;;  %v14533_v44 = vrot.slane %v14524_v20, 1  ;;  %v13885_v10 = vrot.slane %v10053_v9, 2 }
 0x228   :  { %v1140_v50 = vsel %vm1139_vm5, %v1137_v49, %v14531_v29  ;;  %v10152_v19 = vmul.f32 %v14534_v61, %v2883_v6  ;;  %v2962_v3 = vmul.f32 %v14460_v41, %v9956_v53  ;;  %v14536_v21 = vrot.slane %v9703_v23, 1 }
 0x229   :  { %v978_v2 = vadd.f32 %v954_v63, %v926_v7  ;;  %v1469_v39 = vsel %vm1468_vm7, %v13883_v38, %v14532_v62  ;;  %v1902_v27 = vsel %vm1901_vm9, %v13882_v28, %v14533_v44  ;;  %v10157_v7 = vmul.f32 %v14460_v41, %v2883_v6  ;;  %v10167_v62 = vpop.permute.xlu0 %240  ;;  %v14537_v44 = vld [vmem:[#allocation71_spill] sm:$0xff] }
 0x22a   :  { %v14535_v63 = vrot.slane %v9684_v57, 1  ;;  %v2342_v60 = vadd.f32 %v14537_v44, %v2065_v32  ;;  %v1283_v38 = vmul.f32 %v14354_v46, %v1140_v50  ;;  %v10173_v12 = vmul.f32 %v7250_v56, %v10053_v9  ;;  %v14539_v50 = vld [vmem:[#allocation94_spill] sm:$0xff] }
 0x22b   :  { %v1255_v28 = vadd.f32 %v1231_v26, %v978_v2  ;;  %v10175_v6 = vadd.f32 %v2962_v3, %v2934_v24  ;;  %v1612_v57 = vmul.f32 %v7297_v15, %v1469_v39  ;;  %v10179_v23 = vmul.f32 %v7269_v1, %v1902_v27 }
 0x22c   :  { %v10165_v29 = vsel %vm1901_vm9, %v14536_v21, %v14535_v63  ;;  %v14538_v32 = vrot.slane %v14524_v20, 2  ;;  %v1685_v24 = vadd.f32 %v14539_v50, %v1633_v31  ;;  %v478_v2 = vrot.slane %v10167_v62, 4 }
 0x22d   :  { %v2039_v63 = vmul.f32 %v7269_v1, %v10165_v29  ;;  %v1307_v21 = vadd.f32 %v1283_v38, %v1255_v28  ;;  %v571_v39 = vmul.f32 %v14527_v16, %v9745_v47  ;;  %v572_v27 = vmul.f32 %v14527_v16, %v9739_v35 }
 0x22e   :  { %v10189_v26 = vsel %vm2230_vm11, %v13885_v10, %v14538_v32  ;;  %v807_v28 = vrot.slane %v10167_v62, 5  ;;  %v10201_v44 = vsel %vm481_vm0, %v478_v2, %v479_v30  ;;  %v14541_v32 = vrot.slane %v9889_v25, 4  ;;  %v14542_v10 = vld [vmem:[#allocation90_spill] sm:$0xff] }
 0x22f   :  { %v2063_v38 = vadd.f32 %v2039_v63, %v9991_v17  ;;  %v1584_v3 = vadd.f32 %v1560_v52, %v1307_v21  ;;  %14540 = vst [vmem:[#allocation35_spill] sm:$0xff] %v10201_v44  ;;  %v1136_v50 = vrot.slane %v10167_v62, 6  ;;  %v624_v52 = vmul.f32 %v14308_v59, %v10201_v44 }
 0x230   :  { %v10207_v31 = vsel %vm481_vm0, %v14541_v32, %v478_v2  ;;  %v14543_v16 = vrot.slane %v10053_v9, 5  ;;  %v2394_v63 = vadd.f32 %v2370_v48, %v2342_v60  ;;  %v1737_v2 = vadd.f32 %v9968_v4, %v1685_v24 }
 0x231   :  { %v2340_v14 = vadd.f32 %v14542_v10, %v2063_v38  ;;  %v623_v17 = vmul.f32 %v14308_v59, %v10207_v31  ;;  %v1636_v21 = vadd.f32 %v1612_v57, %v1584_v3  ;;  %v14544_v32 = vrot.slane %v9889_v25, 5  ;;  %v14545_v38 = vld [vmem:[#allocation60_spill] sm:$0xff]  ;;  %v14547_v57 = vld [vmem:[#allocation91_spill] sm:$0xff] }
 0x232   :  { %v812_v30 = vsel %vm810_vm1, %v807_v28, %v14543_v16  ;;  %v648_v8 = vadd.f32 %v624_v52, %v572_v27  ;;  %v1465_v59 = vrot.slane %v10167_v62, 7  ;;  %v1141_v60 = vsel %vm1139_vm5, %v1136_v50, %v1137_v49  ;;  %v14551_v52 = vld [vmem:[#allocation52_spill] sm:$0xff] }
 0x233   :  { %v813_v10 = vsel %vm810_vm1, %v14544_v32, %v807_v28  ;;  %v2392_v35 = vadd.f32 %v14545_v38, %v2340_v14  ;;  %v647_v53 = vadd.f32 %v623_v17, %v571_v39  ;;  %v1688_v44 = vadd.f32 %v10064_v0, %v1636_v21  ;;  %v14548_v28 = vld [vmem:[#allocation76_spill] sm:$0xff]  ;;  %v14550_v17 = vld [vmem:[#allocation85_spill] sm:$0xff] }
 0x234   :  { %v953_v54 = vmul.f32 %v7288_v11, %v812_v30  ;;  %v14546_v4 = vrot.slane %v9889_v25, 6  ;;  %v14549_v39 = vld [vmem:[#allocation84_spill] sm:$0xff]  ;;  %v952_v3 = vmul.f32 %v7288_v11, %v813_v10  ;;  %v2671_v0 = vadd.f32 %v14550_v17, %v2394_v63 }
 0x235   :  { %v2669_v24 = vadd.f32 %v14547_v57, %v2392_v35  ;;  %v924_v14 = vadd.f32 %v14548_v28, %v647_v53  ;;  %v925_v27 = vadd.f32 %v14549_v39, %v648_v8  ;;  %v1740_v16 = vadd.f32 %v14551_v52, %v1688_v44  ;;  %v14552_v30 = vld [vmem:[#allocation68_spill] sm:$0xff]  ;;  %v14558_v57 = vld [vmem:[#allocation93_spill] sm:$0xff] }
 0x236   :  { %v1142_v48 = vsel %vm1139_vm5, %v14546_v4, %v1136_v50  ;;  %v2014_v21 = vadd.f32 %v14552_v30, %v1737_v2  ;;  %v14553_v32 = vld [vmem:[#allocation104_spill] sm:$0xff]  ;;  %v1282_v35 = vmul.f32 %v14354_v46, %v1141_v60  ;;  %v14554_v8 = vrot.slane %v10053_v9, 7  ;;  %v14562_v30 = vld [vmem:[#allocation106_spill] sm:$0xff] }
 0x237   :  { %v1281_v49 = vmul.f32 %v14354_v46, %v1142_v48  ;;  %v2721_v38 = vadd.f32 %v14553_v32, %v2669_v24  ;;  %v976_v13 = vadd.f32 %v952_v3, %v924_v14  ;;  %v977_v50 = vadd.f32 %v953_v54, %v925_v27  ;;  %v14556_v10 = vld [vmem:[#allocation88_spill] sm:$0xff]  ;;  %v14557_v48 = vld [vmem:[#allocation19_spill] sm:$0xff]  ;;  %v14559_v24 = vld [vmem:[#allocation53_spill] sm:$0xff] }
 0x238   :  { %v2017_v53 = vadd.f32 %v10085_v45, %v1740_v16  ;;  %v1470_v11 = vsel %vm1468_vm7, %v1465_v59, %v14554_v8  ;;  %v14555_v63 = vrot.slane %v9889_v25, 7  ;;  %v1898_v2 = vrot.slane %v10167_v62, 1  ;;  %v14560_v14 = vld [vmem:[#allocation22_spill] sm:$0xff] }
 0x239   :  { %v2933_v4 = vadd.f32 %v14556_v10, %v2721_v38  ;;  %v1253_v54 = vadd.f32 %v14557_v48, %v976_v13  ;;  %v1254_v46 = vadd.f32 %v14558_v57, %v977_v50  ;;  %v2227_v45 = vrot.slane %v10167_v62, 2  ;;  %v14563_v38 = vld [vmem:[#allocation62_spill] sm:$0xff] }
 0x23a   :  { %v1471_v44 = vsel %vm1468_vm7, %v14555_v63, %v1465_v59  ;;  %v2723_v60 = vadd.f32 %v10131_v40, %v2671_v0  ;;  %v2069_v28 = vadd.f32 %v14559_v24, %v2017_v53  ;;  %v1558_v39 = vmul.f32 %v14287_v22, %v14560_v14  ;;  %v14565_v63 = vld [vmem:[#allocation54_spill] sm:$0xff] }
 0x23b   :  { %v14561_v27 = vrot.slane %v9889_v25, 1  ;;  %v1305_v3 = vadd.f32 %v1281_v49, %v1253_v54  ;;  %v1306_v17 = vadd.f32 %v1282_v35, %v1254_v46  ;;  %v1610_v13 = vmul.f32 %v7297_v15, %v1471_v44  ;;  %v14566_v44 = vld [vmem:[#allocation24_spill] sm:$0xff]  ;;  %v14568_v46 = vld [vmem:[#allocation102_spill] sm:$0xff] }
 0x23c   :  { %v2346_v16 = vadd.f32 %v10121_v42, %v2069_v28  ;;  %v2985_v40 = vadd.f32 %v14562_v30, %v2933_v4  ;;  %v1611_v0 = vmul.f32 %v7297_v15, %v1470_v11  ;;  %v2556_v32 = vrot.slane %v10167_v62, 3 }
 0x23d   :  { %v1904_v59 = vsel %vm1901_vm9, %v14561_v27, %v1898_v2  ;;  %v1582_v22 = vadd.f32 %v1558_v39, %v1305_v3  ;;  %v1583_v50 = vadd.f32 %v14563_v38, %v1306_v17  ;;  %v14564_v8 = vrot.slane %v9889_v25, 2  ;;  %v14570_v39 = vld [vmem:[#allocation26_spill] sm:$0xff]  ;;  %v14573_v3 = vld [vmem:[#allocation101_spill] sm:$0xff] }
 0x23e   :  { %v2042_v52 = vmul.f32 %v7269_v1, %v1904_v59  ;;  %v10279_v35 = vadd.f32 %v7334_v36, %v10175_v6  ;;  %v2373_v42 = vmul.f32 %v7275_v5, %v10189_v26  ;;  %v2398_v15 = vadd.f32 %v14565_v63, %v2346_v16  ;;  %v14574_v16 = vld [vmem:[#allocation103_spill] sm:$0xff]  ;;  %v14575_v38 = vld [vmem:[#allocation105_spill] sm:$0xff] }
 0x23f   :  { %v2233_v49 = vsel %vm2230_vm11, %v14564_v8, %v2227_v45  ;;  %v2557_v11 = vrot.slane %v10053_v9, 3  ;;  %v2935_v10 = vadd.f32 %v14566_v44, %v2723_v60  ;;  %v1634_v4 = vadd.f32 %v1610_v13, %v1582_v22  ;;  %v14569_v60 = vld [vmem:[#allocation63_spill] sm:$0xff] }
 0x240   :  { %v2066_v53 = vadd.f32 %v2042_v52, %v2014_v21  ;;  %v1635_v21 = vadd.f32 %v1611_v0, %v1583_v50  ;;  %v1714_v48 = vmul.f32 %v7250_v56, %v10167_v62  ;;  %v2675_v54 = vadd.f32 %v10128_v33, %v2398_v15  ;;  %v14572_v62 = vld [vmem:[#allocation55_spill] sm:$0xff] }
 0x241   :  { %v14567_v57 = vrot.slane %v10053_v9, 1  ;;  %v2371_v24 = vmul.f32 %v7275_v5, %v2233_v49  ;;  %v10296_v28 = vadd.f32 %v7334_v36, %v2985_v40  ;;  %v1686_v14 = vadd.f32 %v14569_v60, %v1634_v4  ;;  %v14578_v49 = vld [vmem:[#allocation56_spill] sm:$0xff]  ;;  %v14579_v44 = vld [vmem:[#allocation99_spill] sm:$0xff] }
 0x242   :  { %v2343_v26 = vadd.f32 %v14568_v46, %v2066_v53  ;;  %v1687_v27 = vadd.f32 %v14570_v39, %v1635_v21  ;;  %v14571_v56 = vrot.slane %v9889_v25, 3  ;;  %v2727_v59 = vadd.f32 %v14572_v62, %v2675_v54  ;;  %v14582_v46 = vld [vmem:[#allocation100_spill] sm:$0xff] }
 0x243   :  { %v1903_v6 = vsel %vm1901_vm9, %v1898_v2, %v14567_v57  ;;  %v1991_v2 = vmul.f32 %v14463_v55, %v10165_v29  ;;  %v3060_v17 = vadd.f32 %v14573_v3, %v10034_v18  ;;  %v2987_v52 = vadd.f32 %v10157_v7, %v2935_v10  ;;  %v14581_v57 = vld [vmem:[#allocation69_spill] sm:$0xff]  ;;  %v14586_v3 = vld [vmem:[#allocation20_spill] sm:$0xff] }
 0x244   :  { %v2562_v33 = vsel %vm2559_vm13, %v14571_v56, %v2556_v32  ;;  %v2395_v13 = vadd.f32 %v2371_v24, %v2343_v26  ;;  %v3089_v30 = vadd.f32 %v14574_v16, %v10057_v51  ;;  %v1738_v40 = vadd.f32 %v1714_v48, %v1686_v14  ;;  %v14583_v26 = vld [vmem:[#allocation28_spill] sm:$0xff] }
 0x245   :  { %v1739_v25 = vadd.f32 %v10173_v12, %v1687_v27  ;;  %v2939_v0 = vadd.f32 %v10152_v19, %v2727_v59  ;;  %v2043_v22 = vmul.f32 %v7269_v1, %v1903_v6  ;;  %v2700_v55 = vmul.f32 %v14182_v43, %v2562_v33 }
 0x246   :  { %v2672_v50 = vadd.f32 %v14575_v38, %v2395_v13  ;;  %v3038_v29 = vmul.f32 %v10296_v28, %v10296_v28  ;;  %v2015_v53 = vadd.f32 %v1991_v2, %v1738_v40  ;;  %v14576_v8 = vrot.slane %v10053_v9, 2  ;;  %v14587_v13 = vld [vmem:[#allocation25_spill] sm:$0xff]  ;;  %v14588_v40 = vld [vmem:[#allocation87_spill] sm:$0xff] }
 0x247   :  { %v2016_v7 = vadd.f32 %v10082_v58, %v1739_v25  ;;  %v14577_v12 = vrot.slane %v14524_v20, 3  ;;  %v2912_v19 = vmul.f32 %v14534_v61, %v9745_v47  ;;  %v2991_v63 = vadd.f32 %v14578_v49, %v2939_v0 }
 0x248   :  { %v2232_v51 = vsel %vm2230_vm11, %v2227_v45, %v14576_v8  ;;  %v2724_v15 = vadd.f32 %v2700_v55, %v2672_v50  ;;  %v2320_v10 = vmul.f32 %v14360_v37, %v14579_v44  ;;  %v3061_v58 = vadd.f32 %v3060_v17, %v10296_v28 }
 0x249   :  { %v2560_v1 = vsel %vm2559_vm13, %v2557_v11, %v14577_v12  ;;  %v2067_v9 = vadd.f32 %v2043_v22, %v2015_v53  ;;  %v2068_v4 = vadd.f32 %v10179_v23, %v2016_v7  ;;  %v10336_v45 = vadd.f32 %v7334_v36, %v2987_v52  ;;  %v14584_v23 = vld [vmem:[#allocation89_spill] sm:$0xff] }
 0x24a   :  { %v2372_v20 = vmul.f32 %v7275_v5, %v2232_v51  ;;  %v2936_v21 = vadd.f32 %v2912_v19, %v2724_v15  ;;  %v2964_v47 = vmul.f32 %v14460_v41, %v10207_v31  ;;  %v3090_v48 = vadd.f32 %v3089_v30, %v3038_v29 }
 0x24b   :  { %14580 = vst [vmem:[#allocation18_spill] sm:$0xff] %v10336_v45  ;;  %v2344_v54 = vadd.f32 %v2320_v10, %v2067_v9  ;;  %v2345_v6 = vadd.f32 %v14581_v57, %v2068_v4  ;;  %v2561_v37 = vsel %vm2559_vm13, %v2556_v32, %v2557_v11  ;;  %v2649_v24 = vmul.f32 %v14583_v26, %v14582_v46 }
 0x24c   :  { %v2650_v60 = vmul.f32 %v14583_v26, %v14584_v23  ;;  %v2988_v14 = vadd.f32 %v2964_v47, %v2936_v21  ;;  %v3039_v5 = vmul.f32 %v10279_v35, %v10279_v35  ;;  %v3062_v39 = vadd.f32 %v3061_v58, %v10279_v35 }
 0x24d   :  { %v2396_v31 = vadd.f32 %v2372_v20, %v2344_v54  ;;  %v2397_v27 = vadd.f32 %v2373_v42, %v2345_v6  ;;  %v2702_v56 = vmul.f32 %v14182_v43, %v2560_v1  ;;  %v3040_v33 = vmul.f32 %v10336_v45, %v10336_v45 }
 0x24e   :  { %v2701_v32 = vmul.f32 %v14182_v43, %v2561_v37  ;;  %v3091_v11 = vadd.f32 %v3090_v48, %v3039_v5  ;;  %v10356_v2 = vadd.f32 %v7334_v36, %v2988_v14  ;;  %v2914_v17 = vmul.f32 %v14534_v61, %v14586_v3  ;;  %v14589_v43 = vld [vmem:[#allocation35_spill] sm:$0xff] }
 0x24f   :  { %v2673_v62 = vadd.f32 %v2649_v24, %v2396_v31  ;;  %v2674_v59 = vadd.f32 %v2650_v60, %v2397_v27  ;;  %v2913_v52 = vmul.f32 %v14534_v61, %v14587_v13  ;;  %v3063_v42 = vadd.f32 %v3062_v39, %v10336_v45  ;;  %v6949_v31 = vld [vmem:[%s13657_s2] sm:$0x7]  ;;  %s7029_s2 = smov 32  }
 0x250   :  { %14585 = vst [vmem:[#allocation86_spill] sm:$0xff] %v10356_v2  ;;  %v2966_v25 = vmul.f32 %v14460_v41, %v14588_v40  ;;  %v2965_v0 = vmul.f32 %v14460_v41, %v14589_v43  ;;  %v3092_v22 = vadd.f32 %v3091_v11, %v3040_v33  ;;  %v3041_v55 = vmul.f32 %v10356_v2, %v10356_v2  ;;  %v14596_v40 = vld [vmem:[#allocation64_spill] sm:$0xff]  ;;  %v14597_v43 = vld [vmem:[#allocation81_spill] sm:$0xff] }
 0x251   :  { %v2725_v16 = vadd.f32 %v2701_v32, %v2673_v62  ;;  %v2726_v30 = vadd.f32 %v2702_v56, %v2674_v59  ;;  %v3064_v61 = vadd.f32 %v3063_v42, %v10356_v2  ;;  %v10377_v12 = vadd.f32 %v7334_v36, %v2991_v63  ;;  %v14592_v32 = vld [vmem:[#allocation13_spill] sm:$0xff]  ;;  %v14593_v59 = vld [vmem:[#allocation14_spill] sm:$0xff] }
 0x252   :  { %v3093_v51 = vadd.f32 %v3092_v22, %v3041_v55 }
 0x253   :  { %v2937_v38 = vadd.f32 %v2913_v52, %v2725_v16  ;;  %v2938_v50 = vadd.f32 %v2914_v17, %v2726_v30  ;;  %v3044_v44 = vmul.f32 %v10377_v12, %v10377_v12  ;;  %v14594_v17 = vld [vmem:[#allocation73_spill] sm:$0xff]  ;;  %v14595_v52 = vld [vmem:[#allocation58_spill] sm:$0xff] }
 0x255   :  { %v2989_v29 = vadd.f32 %v2965_v0, %v2937_v38  ;;  %v2990_v53 = vadd.f32 %v2966_v25, %v2938_v50 }
 0x257   :  { %v10371_v7 = vadd.f32 %v7334_v36, %v2989_v29  ;;  %v10374_v8 = vadd.f32 %v7334_v36, %v2990_v53  ;;  %v14598_v29 = vld [vmem:[#allocation44_spill] sm:$0xff] }
 0x259   :  { %14590 = vst [vmem:[#allocation31_spill] sm:$0xff] %v10371_v7  ;;  %14591 = vst [vmem:[#allocation71_spill] sm:$0xff] %v10374_v8  ;;  %v3042_v41 = vmul.f32 %v10371_v7, %v10371_v7  ;;  %v3065_v1 = vadd.f32 %v3064_v61, %v10371_v7  ;;  %v3043_v19 = vmul.f32 %v10374_v8, %v10374_v8  ;;  %v14599_v61 = vld [vmem:[#allocation23_spill] sm:$0xff] }
 0x25b   :  { %v3066_v49 = vadd.f32 %v3065_v1, %v10374_v8  ;;  %v3094_v15 = vadd.f32 %v3093_v51, %v3042_v41 }
 0x25d   :  { %v3067_v10 = vadd.f32 %v3066_v49, %v10377_v12  ;;  %v3095_v58 = vadd.f32 %v3094_v15, %v3043_v19  ;;  %v14601_v15 = vld [vmem:[#allocation82_spill] sm:$0xff] }
 0x25f   :  { %v3068_v9 = vrot.slane %v3067_v10, 4  ;;  %v3096_v36 = vadd.f32 %v3095_v58, %v3044_v44 }
 0x261   :  { %v3069_v63 = vadd.f32 %v3068_v9, %v3067_v10  ;;  %v3097_v4 = vrot.slane %v3096_v36, 4 }
 0x263   :  { %v3070_v20 = vrot.slane %v3069_v63, 2  ;;  %v3098_v21 = vadd.f32 %v3097_v4, %v3096_v36  ;;  %v14602_v36 = vld [vmem:[#allocation21_spill] sm:$0xff]  ;;  %v14603_v4 = vld [vmem:[#allocation83_spill] sm:$0xff] }
 0x265   :  { %v3071_v47 = vadd.f32 %v3070_v20, %v3069_v63  ;;  %v3099_v48 = vrot.slane %v3098_v21, 2 }
 0x267   :  { %v3072_v54 = vrot.slane %v3071_v47, 1  ;;  %v3100_v57 = vadd.f32 %v3099_v48, %v3098_v21  ;;  %v14604_v21 = vld [vmem:[#allocation61_spill] sm:$0xff] }
 0x269   :  { %v3073_v6 = vadd.f32 %v3072_v54, %v3071_v47  ;;  %v3101_v37 = vrot.slane %v3100_v57, 1 }
 0x26b   :  { %v3102_v46 = vadd.f32 %v3101_v37, %v3100_v57  ;;  %v3103_v26 = vmul.f32 0.0052083335, %v3073_v6  ;;  %v14605_v37 = vld [vmem:[#allocation39_spill] sm:$0xff] }
 0x26d   :  { %v3104_v24 = vmul.f32 0.0052083335, %v3102_v46  ;;  %v3105_v23 = vmul.f32 %v3103_v26, %v3103_v26 }
 0x26f   :  { %v3106_v60 = vsub.f32 %v3104_v24, %v3105_v23  ;;  %v14606_v23 = vld [vmem:[#allocation92_spill] sm:$0xff] }
 0x271   :  { %v3107_v14 = vmax.f32 %v3106_v60, 0.0 }
 0x273   :  { %v3108_v5 = vadd.f32 1e-05, %v3107_v14 }
 0x275   :  { %6943 = vrsqrt.f32 %v3108_v5 }
 0x27f   :  { %v6944_v39 = vpop.eup %6943 }
 0x280   :  { %v3110_v27 = vmul.f32 %v6949_v31, %v6944_v39  ;;  %v14607_v39 = vld [vmem:[#allocation57_spill] sm:$0xff] }
 0x282   :  { %v3111_v56 = vmul.f32 %v3110_v27, %v3103_v26  ;;  %v10392_v11 = vrot.slane %v3110_v27, %v14592_v32 }
 0x284   :  { %v3113_v33 = vrot.slane %v3111_v56, 7  ;;  %v3124_v13 = vmul.f32 %v10392_v11, %v14594_v17  ;;  %v3121_v42 = vmul.f32 %v10392_v11, %v14595_v52  ;;  %v3122_v25 = vmul.f32 %v10392_v11, %v14596_v40 }
 0x285   :  { %v3120_v0 = vmul.f32 %v10392_v11, %v14597_v43  ;;  %v3123_v53 = vmul.f32 %v10392_v11, %v14598_v29  ;;  %v3125_v51 = vmul.f32 %v10392_v11, %v14599_v61  ;;  %v3126_v44 = vmul.f32 %v10392_v11, %v14601_v15 }
 0x286   :  { %v3115_v62 = vsub.f32 %v6949_v31, %v3113_v33  ;;  %v3127_v63 = vmul.f32 %v10392_v11, %v14602_v36  ;;  %v3128_v20 = vmul.f32 %v10392_v11, %v14603_v4  ;;  %v3129_v47 = vmul.f32 %v10392_v11, %v14604_v21 }
 0x287   :  { %v3130_v46 = vmul.f32 %v10392_v11, %v14605_v37  ;;  %v3132_v60 = vmul.f32 %v10392_v11, %v14606_v23  ;;  %v3131_v31 = vmul.f32 %v10392_v11, %v14607_v39 }
 0x288   :  { %v10395_v3 = vrot.slane %v3115_v62, %v14593_v59  ;;  %v3136_v62 = vmul.f32 %v10392_v11, %v10034_v18 }
 0x28a   :  { %v3152_v16 = vadd.f32 %v10395_v3, %v3124_v13  ;;  %v3149_v30 = vadd.f32 %v10395_v3, %v3121_v42  ;;  %v3150_v50 = vadd.f32 %v10395_v3, %v3122_v25  ;;  %v3148_v55 = vadd.f32 %v10395_v3, %v3120_v0 }
 0x28b   :  { %v3151_v19 = vadd.f32 %v10395_v3, %v3123_v53  ;;  %v3153_v49 = vadd.f32 %v10395_v3, %v3125_v51  ;;  %v3154_v9 = vadd.f32 %v10395_v3, %v3126_v44  ;;  %v3155_v54 = vadd.f32 %v10395_v3, %v3127_v63 }
 0x28c   :  { %v10407_v22 = vmax.f32 %v3152_v16, 0.0  ;;  %v10409_v38 = vmax.f32 %v3149_v30, 0.0  ;;  %v10421_v41 = vmax.f32 %v3150_v50, 0.0  ;;  %v10423_v1 = vmax.f32 %v3148_v55, 0.0 }
 0x28d   :  { %v10433_v10 = vmax.f32 %v3151_v19, 0.0  ;;  %v10435_v58 = vmax.f32 %v3153_v49, 0.0  ;;  %v10448_v48 = vmax.f32 %v3154_v9, 0.0  ;;  %v3156_v57 = vadd.f32 %v10395_v3, %v3128_v20 }
 0x28e   :  { %3684 = vrot.lane.b32.xlu1 %v10407_v22, %s7029_s2  ;;  %3638 = vrot.lane.b32.xlu0 %v10409_v38, %s7030_s7  ;;  %14600 = vst [vmem:[#allocation94_spill] sm:$0xff] %v10423_v1  ;;  %v3157_v6 = vadd.f32 %v10395_v3, %v3129_v47  ;;  %v10459_v26 = vmax.f32 %v3155_v54, 0.0  ;;  %v3158_v5 = vadd.f32 %v10395_v3, %v3130_v46  ;;  %v13893_v27 = vrot.slane %v10421_v41, 2 }
 0x28f   :  { %v10461_v24 = vmax.f32 %v3156_v57, 0.0  ;;  %v3160_v56 = vadd.f32 %v10395_v3, %v3132_v60  ;;  %v3159_v33 = vadd.f32 %v10395_v3, %v3131_v31  ;;  %v13903_v17 = vrot.slane %v10433_v10, 2 }
 0x290   :  { %v10465_v14 = vmax.f32 %v3157_v6, 0.0  ;;  %v13898_v13 = vrot.slane %v10423_v1, 6  ;;  %v13899_v52 = vrot.slane %v10409_v38, 6  ;;  %v13892_v42 = vrot.slane %v10421_v41, 3 }
 0x291   :  { %v3204_v16 = vrot.slane %v10461_v24, 5  ;;  %v10484_v30 = vmax.f32 %v3158_v5, 0.0  ;;  %v10487_v40 = vadd.f32 %v10395_v3, %v3136_v62  ;;  %v10495_v18 = vsel %vm2230_vm11, %v13893_v27, %v13903_v17 }
 0x292   :  { %3640 = vrot.lane.b32.xlu0 %v10421_v41, %s7030_s7  ;;  %3636 = vrot.lane.b32.xlu1 %v10423_v1, %s7030_s7  ;;  %v3205_v25 = vrot.slane %v10465_v14, 5  ;;  %v10502_v43 = vmax.f32 %v3160_v56, 0.0  ;;  %v13909_v0 = vrot.slane %v10407_v22, 6  ;;  %v3337_v50 = vrot.slane %v10435_v58, 6 }
 0x293   :  { %v13895_v55 = vrot.slane %v10433_v10, 3  ;;  %v10507_v29 = vmax.f32 %v3159_v33, 0.0  ;;  %v13907_v61 = vrot.slane %v10461_v24, 1  ;;  %v3741_v51 = vrot.slane %v10465_v14, 1 }
 0x294   :  { %14608 = vst [vmem:[#allocation90_spill] sm:$0xff] %v10502_v43  ;;  %v10513_v53 = vsel %vm810_vm1, %v3204_v16, %v3205_v25  ;;  %v10521_v19 = vsel %vm1139_vm5, %v13909_v0, %v3337_v50  ;;  %v13908_v15 = vrot.slane %v10461_v24, 7  ;;  %v3477_v44 = vrot.slane %v10465_v14, 7 }
 0x295   :  { %v10529_v49 = vsel %vm2559_vm13, %v13892_v42, %v13895_v55  ;;  %v10537_v9 = vsel %vm1901_vm9, %v13907_v61, %v3741_v51  ;;  %v3206_v36 = vrot.slane %v10484_v30, 5  ;;  %v13905_v63 = vrot.slane %v10461_v24, 2 }
 0x296   :  { %3642 = vrot.lane.b32.xlu0 %v10433_v10, %s7030_s7  ;;  %3686 = vrot.lane.b32.xlu1 %v10435_v58, %s7029_s2  ;;  %v3909_v4 = vrot.slane %v10465_v14, 2  ;;  %v10550_v20 = vsel %vm1468_vm7, %v13908_v15, %v3477_v44  ;;  %v3338_v21 = vrot.slane %v10448_v48, 6  ;;  %v3478_v47 = vrot.slane %v10484_v30, 7 }
 0x297   :  { %v13902_v54 = vrot.slane %v10461_v24, 3  ;;  %v10557_v57 = vsel %vm810_vm1, %v3205_v25, %v3206_v36  ;;  %v4077_v37 = vrot.slane %v10465_v14, 3  ;;  %v3742_v46 = vrot.slane %v10484_v30, 1 }
 0x298   :  { %v10563_v6 = vsel %vm2230_vm11, %v13905_v63, %v3909_v4  ;;  %v10569_v23 = vsel %vm1139_vm5, %v3337_v50, %v3338_v21  ;;  %v10573_v60 = vsel %vm1468_vm7, %v3477_v44, %v3478_v47  ;;  %v13894_v5 = vrot.slane %v10507_v29, 5 }
 0x299   :  { %v3910_v39 = vrot.slane %v10484_v30, 2  ;;  %v10581_v31 = vsel %vm2559_vm13, %v13902_v54, %v4077_v37  ;;  %v10585_v56 = vsel %vm1901_vm9, %v3741_v51, %v3742_v46  ;;  %v13896_v33 = vrot.slane %v10459_v26, 6 }
 0x29a   :  { %3644 = vrot.lane.b32.xlu0 %v10407_v22, %s7030_s7  ;;  %3688 = vrot.lane.b32.xlu1 %v10448_v48, %s7029_s2  ;;  %v13897_v62 = vrot.slane %v10507_v29, 7  ;;  %v10597_v25 = vsel %vm810_vm1, %v3206_v36, %v13894_v5  ;;  %v4078_v51 = vrot.slane %v10484_v30, 3  ;;  %v13901_v44 = vrot.slane %v10507_v29, 1 }
 0x29b   :  { %v10601_v50 = vsel %vm2230_vm11, %v3909_v4, %v3910_v39  ;;  %v3472_v42 = vrot.slane %v10407_v22, 7  ;;  %v10610_v27 = vsel %vm1139_vm5, %v3338_v21, %v13896_v33  ;;  %v13900_v4 = vrot.slane %v10507_v29, 2 }
 0x29c   :  { %v10616_v36 = vsel %vm1468_vm7, %v3478_v47, %v13897_v62  ;;  %v3378_v5 = vsel %vm1139_vm5, %v13898_v13, %v13899_v52  ;;  %v10627_v55 = vsel %vm2559_vm13, %v4077_v37, %v4078_v51  ;;  %v10633_v21 = vsel %vm1901_vm9, %v3742_v46, %v13901_v44 }
 0x29d   :  { %v13904_v47 = vrot.slane %v10507_v29, 3  ;;  %v13910_v33 = vrot.slane %v10435_v58, 7  ;;  %v10641_v62 = vsel %vm2230_vm11, %v3910_v39, %v13900_v4  ;;  %v3197_v13 = vrot.slane %v10409_v38, 5 }
 0x29e   :  { %3646 = vrot.lane.b32.xlu0 %v10435_v58, %s7030_s7  ;;  %3690 = vrot.lane.b32.xlu1 %v10459_v26, %s7029_s2  ;;  %v13906_v37 = vrot.slane %v10423_v1, 5  ;;  %v13911_v46 = vrot.slane %v10433_v10, 7  ;;  %v3198_v39 = vrot.slane %v10421_v41, 5  ;;  %v3200_v4 = vrot.slane %v10407_v22, 5 }
 0x29f   :  { %v10653_v52 = vsel %vm2559_vm13, %v4078_v51, %v13904_v47  ;;  %v13912_v44 = vrot.slane %v10459_v26, 5  ;;  %v3201_v17 = vrot.slane %v10435_v58, 5  ;;  %v10677_v63 = vsel %vm1468_vm7, %v3472_v42, %v13910_v33 }
 0x2a0   :  { %v10662_v54 = vsel %vm810_vm1, %v13906_v37, %v3197_v13  ;;  %v10671_v47 = vsel %vm810_vm1, %v3197_v13, %v3198_v39  ;;  %v3736_v13 = vrot.slane %v10407_v22, 1  ;;  %v10693_v33 = vsel %vm1468_vm7, %v13911_v46, %v3472_v42 }
 0x2a1   :  { %14609 = vst [vmem:[#allocation60_spill] sm:$0xff] %v10662_v54  ;;  %14610 = vst [vmem:[#allocation91_spill] sm:$0xff] %v10671_v47  ;;  %v10707_v15 = vsel %vm810_vm1, %v13912_v44, %v3204_v16  ;;  %v10711_v42 = vsel %vm810_vm1, %v3200_v4, %v3201_v17  ;;  %v14612_v46 = vrot.slane %v10448_v48, 5  ;;  %v3904_v59 = vrot.slane %v10407_v22, 2 }
 0x2a2   :  { %3648 = vrot.lane.b32.xlu0 %v10448_v48, %s7030_s7  ;;  %3692 = vrot.lane.b32.xlu1 %v10461_v24, %s7029_s2  ;;  %14611 = vst [vmem:[#allocation76_spill] sm:$0xff] %v10711_v42  ;;  %v14614_v32 = vrot.slane %v10407_v22, 6  ;;  %v14615_v16 = vrot.slane %v10433_v10, 6  ;;  %v14616_v44 = vrot.slane %v10461_v24, 7  ;;  %v14617_v8 = vrot.slane %v10459_v26, 7 }
 0x2a3   :  { %v10717_v37 = vsel %vm810_vm1, %v3201_v17, %v14612_v46  ;;  %v14620_v61 = vrot.slane %v10461_v24, 1  ;;  %v14625_v0 = vrot.slane %v10461_v24, 2  ;;  %v3469_v47 = vrot.slane %v10409_v38, 7 }
 0x2a4   :  { %14613 = vst [vmem:[#allocation84_spill] sm:$0xff] %v10717_v37  ;;  %v10736_v17 = vsel %vm1468_vm7, %v14617_v8, %v14616_v44  ;;  %v14621_v8 = vrot.slane %v10459_v26, 1  ;;  %v14631_v54 = vrot.slane %v10433_v10, 2  ;;  %v3343_v7 = vrot.slane %v10507_v29, 6 }
 0x2a5   :  { %14618 = vst [vmem:[#allocation85_spill] sm:$0xff] %v10736_v17  ;;  %v3474_v2 = vrot.slane %v10448_v48, 7  ;;  %v14641_v45 = vrot.slane %v10502_v43, 1  ;;  %v3734_v17 = vrot.slane %v10421_v41, 1 }
 0x2a6   :  { %3650 = vrot.lane.b32.xlu0 %v10459_v26, %s7030_s7  ;;  %3694 = vrot.lane.b32.xlu1 %v10465_v14, %s7029_s2  ;;  %v10754_v44 = vsel %vm1901_vm9, %v14621_v8, %v14620_v61  ;;  %v14629_v8 = vrot.slane %v10409_v38, 1 }
 0x2a7   :  { %14622 = vst [vmem:[#allocation68_spill] sm:$0xff] %v10754_v44 }
 0x2aa   :  { %3652 = vrot.lane.b32.xlu0 %v10502_v43, %s7030_s7  ;;  %3696 = vrot.lane.b32.xlu1 %v10484_v30, %s7029_s2 }
 0x2ae   :  { %3698 = vrot.lane.b32.xlu1 %v10507_v29, %s7029_s2  ;;  %3406 = vrot.lane.b32.xlu0 %v3378_v5, %s7027_s10  ;;  %v10665_v5 = vmax.f32 %v10487_v40, 0.0  ;;  %v3199_v40 = vrot.slane %v10433_v10, 5 }
 0x2b0   :  { %v10699_v51 = vsel %vm810_vm1, %v3199_v40, %v3200_v4  ;;  %v10728_v4 = vsel %vm1139_vm5, %v14615_v16, %v14614_v32  ;;  %v10740_v46 = vsel %vm810_vm1, %v3198_v39, %v3199_v40  ;;  %v4072_v32 = vrot.slane %v10407_v22, 3 }
 0x2b1   :  { %14619 = vst [vmem:[#allocation52_spill] sm:$0xff] %v10740_v46  ;;  %v14623_v39 = vrot.slane %v10433_v10, 1  ;;  %v14626_v22 = vrot.slane %v10459_v26, 2  ;;  %v3334_v46 = vrot.slane %v10421_v41, 6 }
 0x2b2   :  { %3700 = vrot.lane.b32.xlu1 %v10665_v5, %s7029_s2  ;;  %3590 = vrot.lane.b32.xlu0 %v10677_v63, %s7027_s10 }
 0x2b3   :  { %v10760_v40 = vsel %vm1901_vm9, %v14623_v39, %v3736_v13  ;;  %v10768_v16 = vsel %vm2230_vm11, %v14626_v22, %v14625_v0  ;;  %v3905_v0 = vrot.slane %v10435_v58, 2  ;;  %v14636_v22 = vrot.slane %v10433_v10, 3 }
 0x2b4   :  { %14624 = vst [vmem:[#allocation104_spill] sm:$0xff] %v10760_v40  ;;  %14627 = vst [vmem:[#allocation88_spill] sm:$0xff] %v10768_v16  ;;  %v14648_v16 = vrot.slane %v10507_v29, 2  ;;  %v3738_v40 = vrot.slane %v10448_v48, 1 }
 0x2b6   :  { %3286 = vrot.lane.b32.xlu1 %v10711_v42, %s7031_s21  ;;  %3288 = vrot.lane.b32.xlu0 %v10717_v37, %s7031_s21  ;;  %v14628_v37 = vrot.slane %v10435_v58, 1  ;;  %v14630_v42 = vrot.slane %v10423_v1, 1 }
 0x2b8   :  { %v10774_v61 = vsel %vm1901_vm9, %v3736_v13, %v14628_v37  ;;  %v3778_v39 = vsel %vm1901_vm9, %v14630_v42, %v14629_v8  ;;  %v10790_v37 = vsel %vm2230_vm11, %v14631_v54, %v3904_v59  ;;  %v14633_v13 = vrot.slane %v10461_v24, 3 }
 0x2b9   :  { %14632 = vst [vmem:[#allocation19_spill] sm:$0xff] %v10790_v37  ;;  %v14634_v42 = vrot.slane %v10459_v26, 3  ;;  %v10807_v54 = vsel %vm2559_vm13, %v14636_v22, %v4072_v32  ;;  %v14642_v37 = vrot.slane %v10507_v29, 1 }
 0x2ba   :  { %3852 = vrot.lane.b32.xlu1 %v10774_v61, %s7030_s7  ;;  %3804 = vrot.lane.b32.xlu0 %v3778_v39, %s7032_s22  ;;  %14637 = vst [vmem:[#allocation53_spill] sm:$0xff] %v10807_v54  ;;  %v10822_v54 = vsel %vm2230_vm11, %v3904_v59, %v3905_v0  ;;  %v14644_v59 = vrot.slane %v10502_v43, 7 }
 0x2bb   :  { %v10801_v8 = vsel %vm2559_vm13, %v14634_v42, %v14633_v13  ;;  %v14638_v42 = vrot.slane %v10423_v1, 7  ;;  %v10836_v13 = vsel %vm1901_vm9, %v14642_v37, %v14641_v45  ;;  %v14650_v37 = vrot.slane %v10502_v43, 3 }
 0x2bc   :  { %14635 = vst [vmem:[#allocation93_spill] sm:$0xff] %v10801_v8  ;;  %v14639_v8 = vrot.slane %v10502_v43, 6  ;;  %14643 = vst [vmem:[#allocation106_spill] sm:$0xff] %v10836_v13 }
 0x2bd   :  { %v3514_v22 = vsel %vm1468_vm7, %v14638_v42, %v3469_v47  ;;  %v14645_v42 = vrot.slane %v10507_v29, 7 }
 0x2be   :  { %v10828_v39 = vsel %vm1139_vm5, %v3343_v7, %v14639_v8  ;;  %3542 = vrot.lane.b32.xlu1 %v3514_v22, %s7029_s2  ;;  %4020 = vrot.lane.b32.xlu0 %v10822_v54, %s7032_s22  ;;  %v14651_v22 = vrot.slane %v10507_v29, 3 }
 0x2bf   :  { %14640 = vst [vmem:[#allocation22_spill] sm:$0xff] %v10828_v39  ;;  %v10847_v8 = vsel %vm1468_vm7, %v14645_v42, %v14644_v59  ;;  %v14647_v39 = vrot.slane %v10502_v43, 2  ;;  %v14653_v59 = vrot.slane %v10409_v38, 6 }
 0x2c0   :  { %14646 = vst [vmem:[#allocation62_spill] sm:$0xff] %v10847_v8  ;;  %v10863_v13 = vsel %vm2559_vm13, %v14651_v22, %v14650_v37  ;;  %v14654_v8 = vrot.slane %v10435_v58, 7  ;;  %v3340_v37 = vrot.slane %v10461_v24, 6  ;;  %v3341_v22 = vrot.slane %v10465_v14, 6 }
 0x2c1   :  { %v10855_v45 = vsel %vm2230_vm11, %v14648_v16, %v14647_v39  ;;  %14652 = vst [vmem:[#allocation24_spill] sm:$0xff] %v10863_v13  ;;  %v3377_v42 = vsel %vm1139_vm5, %v14653_v59, %v3334_v46  ;;  %v3901_v39 = vrot.slane %v10409_v38, 2  ;;  %v3342_v59 = vrot.slane %v10484_v30, 6 }
 0x2c2   :  { %14649 = vst [vmem:[#allocation54_spill] sm:$0xff] %v10855_v45  ;;  %v10874_v16 = vsel %vm1468_vm7, %v14654_v8, %v3474_v2  ;;  %v4073_v45 = vrot.slane %v10435_v58, 3  ;;  %3408 = vrot.lane.b32.xlu1 %v3377_v42, %s7027_s10  ;;  %v10887_v8 = vsel %vm1139_vm5, %v3340_v37, %v3341_v22  ;;  %v14656_v13 = vrot.slane %v10423_v1, 2 }
 0x2c3   :  { %3592 = vrot.lane.b32.xlu0 %v10874_v16, %s7027_s10  ;;  %14655 = vst [vmem:[#allocation102_spill] sm:$0xff] %v10887_v8  ;;  %v3470_v24 = vrot.slane %v10421_v41, 7  ;;  %v10900_v14 = vsel %vm1139_vm5, %v3341_v22, %v3342_v59  ;;  %v14658_v30 = vrot.slane %v10435_v58, 1  ;;  %v13919_v8 = vrot.slane %v10423_v1, 3 }
 0x2c4   :  { %v3946_v42 = vsel %vm2230_vm11, %v14656_v13, %v3901_v39  ;;  %v10895_v44 = vsel %vm2559_vm13, %v4072_v32, %v4073_v45  ;;  %14657 = vst [vmem:[#allocation63_spill] sm:$0xff] %v10900_v14  ;;  %v4069_v22 = vrot.slane %v10409_v38, 3  ;;  %v14660_v58 = vrot.slane %v10459_v26, 5 }
 0x2c5   :  { %v10909_v13 = vsel %vm1901_vm9, %v14658_v30, %v3738_v40  ;;  %v3513_v32 = vsel %vm1468_vm7, %v3469_v47, %v3470_v24  ;;  %v14661_v30 = vrot.slane %v10448_v48, 5 }
 0x2c6   :  { %3972 = vrot.lane.b32.xlu1 %v3946_v42, %s7033_s23  ;;  %v10920_v42 = vsel %vm1139_vm5, %v3342_v59, %v3343_v7  ;;  %v4114_v14 = vsel %vm2559_vm13, %v13919_v8, %v4069_v22  ;;  %v14663_v7 = vrot.slane %v10409_v38, 1 }
 0x2c7   :  { %4188 = vrot.lane.b32.xlu0 %v10895_v44, %s7033_s23  ;;  %14659 = vst [vmem:[#allocation26_spill] sm:$0xff] %v10920_v42  ;;  %v10928_v47 = vsel %vm810_vm1, %v14661_v30, %v14660_v58  ;;  %v14664_v30 = vrot.slane %v10433_v10, 6 }
 0x2c8   :  { %14662 = vst [vmem:[#allocation55_spill] sm:$0xff] %v10928_v47  ;;  %v3777_v59 = vsel %vm1901_vm9, %v14663_v7, %v3734_v17  ;;  %v13921_v7 = vrot.slane %v10502_v43, 5 }
 0x2c9   :  { %v3376_v8 = vsel %vm1139_vm5, %v3334_v46, %v14664_v30  ;;  %v14672_v30 = vrot.slane %v10433_v10, 1 }
 0x2ca   :  { %3854 = vrot.lane.b32.xlu1 %v10909_v13, %s7030_s7 }
 0x2cb   :  { %3544 = vrot.lane.b32.xlu0 %v3513_v32, %s7029_s2  ;;  %v3906_v32 = vrot.slane %v10448_v48, 2 }
 0x2cd   :  { %v3941_v58 = vsel %vm2230_vm11, %v3905_v0, %v3906_v32  ;;  %v14666_v0 = vrot.slane %v10459_v26, 6 }
 0x2ce   :  { %3290 = vrot.lane.b32.xlu1 %v10928_v47, %s7031_s21  ;;  %v14665_v47 = vrot.slane %v10459_v26, 7 }
 0x2cf   :  { %4140 = vrot.lane.b32.xlu0 %v4114_v14, %s7034_s24  ;;  %v4074_v14 = vrot.slane %v10448_v48, 3  ;;  %v10966_v46 = vsel %vm1139_vm5, %v14666_v0, %v3340_v37  ;;  %v14670_v37 = vrot.slane %v10459_v26, 1  ;;  %v3776_v0 = vsel %vm1901_vm9, %v3734_v17, %v14672_v30 }
 0x2d0   :  { %v10955_v38 = vsel %vm1468_vm7, %v3474_v2, %v14665_v47 }
 0x2d1   :  { %v10974_v48 = vsel %vm2559_vm13, %v4073_v45, %v4074_v14  ;;  %v14671_v45 = vrot.slane %v10433_v10, 7 }
 0x2d2   :  { %3806 = vrot.lane.b32.xlu1 %v3777_v59, %s7032_s22  ;;  %v14667_v59 = vrot.slane %v10421_v41, 2 }
 0x2d3   :  { %4022 = vrot.lane.b32.xlu0 %v3941_v58, %s7032_s22 }
 0x2d4   :  { %v3945_v2 = vsel %vm2230_vm11, %v3901_v39, %v14667_v59  ;;  %v10991_v39 = vsel %vm1901_vm9, %v3738_v40, %v14670_v37  ;;  %v14673_v59 = vrot.slane %v10421_v41, 3  ;;  %v14675_v41 = vrot.slane %v10459_v26, 3 }
 0x2d6   :  { %3410 = vrot.lane.b32.xlu1 %v3376_v8, %s7027_s10  ;;  %v14668_v8 = vrot.slane %v10507_v29, 5  ;;  %v3512_v29 = vsel %vm1468_vm7, %v3470_v24, %v14671_v45  ;;  %v4113_v40 = vsel %vm2559_vm13, %v4069_v22, %v14673_v59  ;;  %v14674_v24 = vrot.slane %v10459_v26, 2  ;;  %v4255_v22 = vld [vmem:[%s13658_s3 + $0x98] sm:$0xff]  ;;  %v4257_v59 = vld [vmem:[%s13658_s3 + $0xa8] sm:$0xff] }
 0x2d7   :  { %3594 = vrot.lane.b32.xlu0 %v10955_v38, %s7027_s10  ;;  %v11024_v10 = vsel %vm2559_vm13, %v4074_v14, %v14675_v41 }
 0x2d8   :  { %v10982_v47 = vsel %vm810_vm1, %v14668_v8, %v13921_v7  ;;  %v4265_v7 = vld [vmem:[%s13658_s3 + $0xe8] sm:$0xff] }
 0x2d9   :  { %14669 = vst [vmem:[#allocation101_spill] sm:$0xff] %v10982_v47  ;;  %v14720_v47 = vld [vmem:[#allocation88_spill] sm:$0xff] }
 0x2da   :  { %3974 = vrot.lane.b32.xlu1 %v3945_v2, %s7033_s23  ;;  %v11014_v2 = vsel %vm2230_vm11, %v3906_v32, %v14674_v24  ;;  %v14685_v32 = vld [vmem:[#allocation97_spill] sm:$0xff]  ;;  %v4240_v24 = vld [vmem:[%s13658_s3 + $0x20] sm:$0xff] }
 0x2db   :  { %4190 = vrot.lane.b32.xlu0 %v10974_v48, %s7033_s23 }
 0x2de   :  { %3856 = vrot.lane.b32.xlu1 %v10991_v39, %s7030_s7 }
 0x2df   :  { %3546 = vrot.lane.b32.xlu0 %v3512_v29, %s7029_s2 }
 0x2e2   :  { %3808 = vrot.lane.b32.xlu1 %v3776_v0, %s7032_s22  ;;  %v4256_v0 = vld [vmem:[%s13658_s3 + $0xa0] sm:$0xff] }
 0x2e3   :  { %4142 = vrot.lane.b32.xlu0 %v4113_v40, %s7034_s24  ;;  %v6574_v40 = vpack.c.bf16 %v4257_v59, %v4256_v0  ;;  %v4244_v0 = vld [vmem:[%s13658_s3 + $0x40] sm:$0xff] }
 0x2e6   :  { %3976 = vrot.lane.b32.xlu1 %v10495_v18, %s7033_s23 }
 0x2e7   :  { %4024 = vrot.lane.b32.xlu0 %v11014_v2, %s7032_s22 }
 0x2ea   :  { %3294 = vrot.lane.b32.xlu1 %v10513_v53, %s7031_s21 }
 0x2eb   :  { %4192 = vrot.lane.b32.xlu0 %v11024_v10, %s7033_s23 }
 0x2ee   :  { %3414 = vrot.lane.b32.xlu1 %v10521_v19, %s7027_s10 }
 0x2ef   :  { %4144 = vrot.lane.b32.xlu0 %v10529_v49, %s7034_s24 }
 0x2f2   :  { %3860 = vrot.lane.b32.xlu1 %v10537_v9, %s7030_s7 }
 0x2f3   :  { %3598 = vrot.lane.b32.xlu0 %v10550_v20, %s7027_s10 }
 0x2f6   :  { %3296 = vrot.lane.b32.xlu1 %v10557_v57, %s7031_s21 }
 0x2f7   :  { %3550 = vrot.lane.b32.xlu0 %v10677_v63, %s7029_s2 }
 0x2fa   :  { %3812 = vrot.lane.b32.xlu1 %v10774_v61, %s7032_s22 }
 0x2fb   :  { %4028 = vrot.lane.b32.xlu0 %v10563_v6, %s7032_s22 }
 0x2fe   :  { %3416 = vrot.lane.b32.xlu1 %v10569_v23, %s7027_s10 }
 0x2ff   :  { %3600 = vrot.lane.b32.xlu0 %v10573_v60, %s7027_s10 }
 0x300   :  { %v11050_v26 = vpop.permute.xlu1 %3684  ;;  %v11052_v18 = vpop.permute.xlu0 %3638 }
 0x302   :  { %3980 = vrot.lane.b32.xlu1 %v10822_v54, %s7033_s23 }
 0x303   :  { %4196 = vrot.lane.b32.xlu0 %v10581_v31, %s7033_s23 }
 0x304   :  { %v11058_v53 = vpop.permute.xlu0 %3640  ;;  %v11060_v49 = vpop.permute.xlu1 %3636 }
 0x305   :  { %14676 = vst [vmem:[#allocation103_spill] sm:$0xff] %v11058_v53 }
 0x306   :  { %3862 = vrot.lane.b32.xlu1 %v10585_v56, %s7030_s7 }
 0x307   :  { %3552 = vrot.lane.b32.xlu0 %v10874_v16, %s7029_s2 }
 0x308   :  { %v11066_v9 = vpop.permute.xlu0 %3642  ;;  %v11068_v63 = vpop.permute.xlu1 %3686 }
 0x309   :  { %14677 = vst [vmem:[#allocation105_spill] sm:$0xff] %v11066_v9 }
 0x30a   :  { %3298 = vrot.lane.b32.xlu1 %v10597_v25, %s7031_s21  ;;  %v4252_v25 = vld [vmem:[%s13658_s3 + $0x80] sm:$0xff] }
 0x30b   :  { %4148 = vrot.lane.b32.xlu0 %v10895_v44, %s7034_s24  ;;  %v4236_v44 = vld [vmem:[%s13658_s3] sm:$0xff] }
 0x30c   :  { %v11074_v20 = vpop.permute.xlu0 %3644  ;;  %v11076_v57 = vpop.permute.xlu1 %3688 }
 0x30d   :  { %14678 = vst [vmem:[#allocation56_spill] sm:$0xff] %v11074_v20  ;;  %v14749_v20 = vld [vmem:[#allocation62_spill] sm:$0xff] }
 0x30e   :  { %3814 = vrot.lane.b32.xlu1 %v10909_v13, %s7032_s22 }
 0x30f   :  { %4030 = vrot.lane.b32.xlu0 %v10601_v50, %s7032_s22  ;;  %v4253_v50 = vld [vmem:[%s13658_s3 + $0x88] sm:$0xff] }
 0x310   :  { %v11082_v6 = vpop.permute.xlu0 %3646  ;;  %v11084_v60 = vpop.permute.xlu1 %3690  ;;  %v6566_v17 = vpack.c.bf16 %v4253_v50, %v4252_v25  ;;  %v13928_v50 = vrot.slane %v10665_v5, 5 }
 0x311   :  { %14679 = vst [vmem:[#allocation99_spill] sm:$0xff] %v11082_v6  ;;  %14680 = vst [vmem:[#allocation69_spill] sm:$0xff] %v11084_v60 }
 0x312   :  { %3418 = vrot.lane.b32.xlu1 %v10610_v27, %s7027_s10  ;;  %6567 = vmatprep.subr.bf16.mxu1 %v6566_v17 }
 0x313   :  { %3602 = vrot.lane.b32.xlu0 %v10616_v36, %s7027_s10  ;;  %v3137_v36 = vmul.f32 %v10392_v11, %v10296_v28  ;;  %v4254_v28 = vld [vmem:[%s13658_s3 + $0x90] sm:$0xff] }
 0x314   :  { %v11090_v31 = vpop.permute.xlu0 %3648  ;;  %v11092_v56 = vpop.permute.xlu1 %3692  ;;  %v6570_v14 = vpack.c.bf16 %v4255_v22, %v4254_v28 }
 0x315   :  { %14681 = vst [vmem:[#allocation100_spill] sm:$0xff] %v11090_v31  ;;  %14682 = vst [vmem:[#allocation28_spill] sm:$0xff] %v11092_v56  ;;  %v3165_v13 = vadd.f32 %v10395_v3, %v3137_v36 }
 0x316   :  { %3982 = vrot.lane.b32.xlu1 %v3941_v58, %s7033_s23  ;;  %v3133_v58 = vmul.f32 %v10392_v11, %v14685_v32  ;;  %v3143_v32 = vmul.f32 %v10392_v11, %v10377_v12 }
 0x317   :  { %4198 = vrot.lane.b32.xlu0 %v10627_v55, %s7033_s23  ;;  %v4237_v55 = vld [vmem:[%s13658_s3 + $0x8] sm:$0xff]  ;;  %v11138_v29 = vmax.f32 %v3165_v13, 0.0 }
 0x318   :  { %v11111_v61 = vpop.permute.xlu0 %3650  ;;  %v11113_v54 = vpop.permute.xlu1 %3694  ;;  %v6568_v16 = vpack.c.bf16 %v4237_v55, %v4236_v44  ;;  %v3161_v30 = vadd.f32 %v10395_v3, %v3133_v58  ;;  %v4258_v44 = vld [vmem:[%s13658_s3 + $0xb0] sm:$0xff]  ;;  %v4259_v55 = vld [vmem:[%s13658_s3 + $0xb8] sm:$0xff]  ;;  %v3171_v12 = vadd.f32 %v10395_v3, %v3143_v32 }
 0x319   :  { %14683 = vst [vmem:[#allocation89_spill] sm:$0xff] %v11111_v61  ;;  %14684 = vst [vmem:[#allocation20_spill] sm:$0xff] %v11113_v54  ;;  %v3213_v36 = vrot.slane %v11138_v29, 5  ;;  %v6578_v13 = vpack.c.bf16 %v4259_v55, %v4258_v44  ;;  %v14692_v44 = vrot.slane %v10502_v43, 6  ;;  %v4262_v32 = vld [vmem:[%s13658_s3 + $0xd0] sm:$0xff] }
 0x31a   :  { %3864 = vrot.lane.b32.xlu1 %v10633_v21, %s7030_s7  ;;  %6569 = vmatpush3.bf16.msra.mxu1 %v6568_v16  ;;  %v4238_v21 = vld [vmem:[%s13658_s3 + $0x10] sm:$0xff]  ;;  %v11163_v17 = vmax.f32 %v3161_v30, 0.0  ;;  %v3138_v16 = vmul.f32 %v10392_v11, %v10279_v35 }
 0x31b   :  { %3554 = vrot.lane.b32.xlu0 %v10955_v38, %s7029_s2  ;;  %v4239_v38 = vld [vmem:[%s13658_s3 + $0x18] sm:$0xff]  ;;  %6571 = vmatprep.subr.bf16.mxu1 %v6570_v14  ;;  %v11193_v35 = vsel %vm810_vm1, %v13928_v50, %v3213_v36  ;;  %v14701_v50 = vld [vmem:[#allocation16_spill] sm:$0xff] }
 0x31c   :  { %v11134_v8 = vpop.permute.xlu0 %3652  ;;  %v11136_v37 = vpop.permute.xlu1 %3696  ;;  %v6572_v45 = vpack.c.bf16 %v4239_v38, %v4238_v21  ;;  %14689 = vst [vmem:[#allocation73_spill] sm:$0xff] %v11163_v17  ;;  %14691 = vst [vmem:[#allocation64_spill] sm:$0xff] %v11193_v35  ;;  %v13926_v14 = vrot.slane %v11163_v17, 6  ;;  %v3166_v21 = vadd.f32 %v10395_v3, %v3138_v16  ;;  %v4260_v38 = vld [vmem:[%s13658_s3 + $0xc0] sm:$0xff]  ;;  %v13927_v16 = vrot.slane %v10665_v5, 7  ;;  %v14747_v54 = vld [vmem:[#allocation77_spill] sm:$0xff] }
 0x31d   :  { %14686 = vst [vmem:[#allocation25_spill] sm:$0xff] %v11134_v8  ;;  %14687 = vst [vmem:[#allocation87_spill] sm:$0xff] %v11136_v37  ;;  %vm14702_vm3 = vcmp.ge.s32.totalorder %v14701_v50, 0  ;;  %v3252_v50 = vsel %vm690_vm10, %v10707_v15, 0.0  ;;  %v14711_v15 = vld [vmem:[#allocation85_spill] sm:$0xff] }
 0x31e   :  { %3816 = vrot.lane.b32.xlu1 %v10991_v39, %s7032_s22  ;;  %6573 = vmatpush3.bf16.msra.mxu1 %v6572_v45  ;;  %v4241_v39 = vld [vmem:[%s13658_s3 + $0x28] sm:$0xff]  ;;  %v3366_v55 = vsel %vm1139_vm5, %v14692_v44, %v13926_v14 }
 0x31f   :  { %4150 = vrot.lane.b32.xlu0 %v10974_v48, %s7034_s24  ;;  %v6576_v25 = vpack.c.bf16 %v4241_v39, %v4240_v24  ;;  %6575 = vmatprep.subr.bf16.mxu1 %v6574_v40  ;;  %v4261_v45 = vld [vmem:[%s13658_s3 + $0xc8] sm:$0xff]  ;;  %v13922_v24 = vrot.slane %v10665_v5, 1  ;;  %v13925_v39 = vrot.slane %v11138_v29, 1 }
 0x320   :  { %v11157_v41 = vpop.permute.xlu1 %3698  ;;  %v11159_v48 = vpop.permute.xlu0 %3406  ;;  %v6582_v30 = vpack.c.bf16 %v4261_v45, %v4260_v38 }
 0x321   :  { %14688 = vst [vmem:[#allocation35_spill] sm:$0xff] %v11157_v41  ;;  %v14724_v41 = vld [vmem:[#allocation34_spill] sm:$0xff] }
 0x322   :  { %3984 = vrot.lane.b32.xlu1 %v11014_v2, %s7033_s23  ;;  %6577 = vmatpush3.bf16.msra.mxu1 %v6576_v25  ;;  %v4242_v2 = vld [vmem:[%s13658_s3 + $0x30] sm:$0xff] }
 0x323   :  { %4032 = vrot.lane.b32.xlu0 %v10641_v62, %s7032_s22  ;;  %v4243_v62 = vld [vmem:[%s13658_s3 + $0x38] sm:$0xff]  ;;  %6579 = vmatprep.subr.bf16.mxu1 %v6578_v13  ;;  %v13924_v13 = vrot.slane %v11138_v29, 7 }
 0x324   :  { %v11183_v28 = vpop.permute.xlu1 %3700  ;;  %v11185_v22 = vpop.permute.xlu0 %3590  ;;  %v6580_v58 = vpack.c.bf16 %v4243_v62, %v4242_v2  ;;  %v11228_v2 = vmax.f32 %v3166_v21, 0.0  ;;  %v11233_v62 = vmax.f32 %v3171_v12, 0.0  ;;  %v4246_v21 = vld [vmem:[%s13658_s3 + $0x50] sm:$0xff]  ;;  %v4247_v12 = vld [vmem:[%s13658_s3 + $0x58] sm:$0xff] }
 0x325   :  { %14690 = vst [vmem:[#allocation58_spill] sm:$0xff] %v11183_v28  ;;  %v14721_v28 = vld [vmem:[#allocation42_spill] sm:$0xff] }
 0x326   :  { %3302 = vrot.lane.b32.xlu1 %v11193_v35, %s7031_s21  ;;  %6581 = vmatpush3.bf16.msra.mxu1 %v6580_v58  ;;  %14693 = vst [vmem:[#allocation81_spill] sm:$0xff] %v11228_v2  ;;  %14694 = vst [vmem:[#allocation44_spill] sm:$0xff] %v11233_v62  ;;  %v4263_v58 = vld [vmem:[%s13658_s3 + $0xd8] sm:$0xff]  ;;  %v13930_v44 = vrot.slane %v11233_v62, 6  ;;  %v3486_v53 = vrot.slane %v11228_v2, 7 }
 0x327   :  { %4200 = vrot.lane.b32.xlu0 %v10653_v52, %s7033_s23  ;;  %v4245_v52 = vld [vmem:[%s13658_s3 + $0x48] sm:$0xff]  ;;  %6583 = vmatprep.subr.bf16.mxu1 %v6582_v30  ;;  %v11257_v30 = vsel %vm1901_vm9, %v13922_v24, %v13925_v39  ;;  %v13932_v24 = vrot.slane %v11233_v62, 7  ;;  %v14706_v35 = vld [vmem:[#allocation17_spill] sm:$0xff] }
 0x328   :  { %v11214_v59 = vpop.permute.xlu1 %3286  ;;  %v11216_v40 = vpop.permute.xlu0 %3288  ;;  %v6584_v25 = vpack.c.bf16 %v4245_v52, %v4244_v0  ;;  %14695 = vst [vmem:[#allocation23_spill] sm:$0xff] %v11257_v30  ;;  %v11265_v0 = vsel %vm1468_vm7, %v13927_v16, %v13924_v13  ;;  %v13923_v52 = vrot.slane %v11228_v2, 5  ;;  %v4249_v13 = vld [vmem:[%s13658_s3 + $0x68] sm:$0xff]  ;;  %vm14707_vm14 = vcmp.ge.s32.totalorder %v14706_v35, 0 }
 0x329   :  { %14696 = vst [vmem:[#allocation82_spill] sm:$0xff] %v11265_v0 }
 0x32a   :  { %3422 = vrot.lane.b32.xlu1 %v3366_v55, %s7027_s10  ;;  %6585 = vmatpush3.bf16.msra.mxu1 %v6584_v25  ;;  %v6588_v25 = vpack.c.bf16 %v4247_v12, %v4246_v21  ;;  %v14698_v21 = vld [vmem:[#allocation29_spill] sm:$0xff] }
 0x32b   :  { %4152 = vrot.lane.b32.xlu0 %v11024_v10, %s7034_s24  ;;  %v6586_v10 = vpack.c.bf16 %v4263_v58, %v4262_v32  ;;  %v11281_v58 = vsel %vm810_vm1, %v3213_v36, %v13923_v52  ;;  %vm14699_vm0 = vcmp.ge.s32.totalorder %v14698_v21, 0 }
 0x32c   :  { %v11244_v38 = vpop.permute.xlu1 %3852  ;;  %v11246_v45 = vpop.permute.xlu0 %3804  ;;  %14697 = vst [vmem:[#allocation21_spill] sm:$0xff] %v11281_v58  ;;  %v11286_v12 = vsel %vm14699_vm0, %v10699_v51, 0.0  ;;  %v14700_v51 = vrot.slane %v10423_v1, 6 }
 0x32d   :  { %6587 = vmatprep.subr.bf16.mxu1 %v6586_v10  ;;  %v4264_v10 = vld [vmem:[%s13658_s3 + $0xe0] sm:$0xff] }
 0x32e   :  { %3868 = vrot.lane.b32.xlu1 %v11257_v30, %s7030_s7  ;;  %6589 = vmatpush3.bf16.msra.mxu1 %v6588_v25  ;;  %v4248_v25 = vld [vmem:[%s13658_s3 + $0x60] sm:$0xff]  ;;  %v3379_v36 = vsel %vm1139_vm5, %v13930_v44, %v14700_v51  ;;  %v6590_v52 = vpack.c.bf16 %v4265_v7, %v4264_v10  ;;  %v3520_v51 = vsel %vm1344_vm2, %v10693_v33, 0.0  ;;  %v4266_v7 = vld [vmem:[%s13658_s3 + $0xf0] sm:$0xff]  ;;  %v14704_v10 = vrot.slane %v10423_v1, 7 }
 0x32f   :  { %3606 = vrot.lane.b32.xlu0 %v11265_v0, %s7027_s10  ;;  %v6592_v39 = vpack.c.bf16 %v4249_v13, %v4248_v25  ;;  %v3380_v21 = vsel %vm14702_vm3, %v3379_v36, 0.0  ;;  %v4267_v13 = vld [vmem:[%s13658_s3 + $0xf8] sm:$0xff]  ;;  %vm14722_vm3 = vcmp.lt.s32.totalorder %v14721_v28, 32 }
 0x330   :  { %v11273_v55 = vpop.permute.xlu1 %3542  ;;  %v11275_v32 = vpop.permute.xlu0 %4020  ;;  %6591 = vmatprep.subr.bf16.mxu1 %v6590_v52  ;;  %v4250_v52 = vld [vmem:[%s13658_s3 + $0x70] sm:$0xff]  ;;  %v3515_v33 = vsel %vm1468_vm7, %v13932_v24, %v14704_v10  ;;  %v4251_v25 = vld [vmem:[%s13658_s3 + $0x78] sm:$0xff]  ;;  %v3955_v61 = vsel %vm14722_vm3, %v14720_v47, 0.0  ;;  %v14729_v47 = vrot.slane %v10665_v5, 5 }
 0x331   :  { %v6596_v36 = vpack.c.bf16 %v4251_v25, %v4250_v52  ;;  %v3516_v8 = vsel %vm14707_vm14, %v3515_v33, 0.0  ;;  %v14708_v52 = vld [vmem:[#allocation27_spill] sm:$0xff]  ;;  %v14712_v24 = vld [vmem:[#allocation40_spill] sm:$0xff]  ;;  %vm14725_vm14 = vcmp.lt.s32.totalorder %v14724_v41, 32  ;;  %v14741_v30 = vld [vmem:[#allocation46_spill] sm:$0xff] }
 0x332   :  { %3304 = vrot.lane.b32.xlu1 %v11281_v58, %s7031_s21  ;;  %6593 = vmatpush3.bf16.msra.mxu1 %v6592_v39  ;;  %v6594_v39 = vpack.c.bf16 %v4267_v13, %v4266_v7  ;;  %v3135_v10 = vmul.f32 %v10392_v11, %v14708_v52  ;;  %vm14713_vm8 = vcmp.ge.s32.totalorder %v14712_v24, 0  ;;  %v14714_v52 = vld [vmem:[#allocation68_spill] sm:$0xff] }
 0x333   :  { %3284 = vrot.lane.b32.xlu0 %v11286_v12, %s7031_s21  ;;  %v3524_v33 = vsel %vm14713_vm8, %v14711_v15, 0.0 }
 0x334   :  { %v11311_v14 = vpop.permute.xlu1 %3408  ;;  %6595 = vmatprep.subr.bf16.mxu1 %v6594_v39  ;;  %v14709_v39 = vld [vmem:[#allocation30_spill] sm:$0xff] }
 0x335   :  { %v11313_v16 = vpop.permute.xlu0 %3592  ;;  %vm14710_vm6 = vcmp.ge.s32.totalorder %v14709_v39, 0 }
 0x336   :  { %3404 = vrot.lane.b32.xlu1 %v3380_v21, %s7027_s10  ;;  %6597 = vmatpush3.bf16.msra.mxu1 %v6596_v36  ;;  %v11360_v25 = vsel %vm14710_vm6, %v10728_v4, 0.0  ;;  %v14715_v21 = vld [vmem:[#allocation41_spill] sm:$0xff] }
 0x337   :  { %3588 = vrot.lane.b32.xlu0 %v3520_v51, %s7027_s10  ;;  %vm14716_vm12 = vcmp.lt.s32.totalorder %v14715_v21, 32  ;;  %v14723_v21 = vld [vmem:[#allocation19_spill] sm:$0xff] }
 0x338   :  { %v11340_v44 = vpop.permute.xlu1 %3972  ;;  %v3787_v4 = vsel %vm14716_vm12, %v14714_v52, 0.0  ;;  %v3951_v31 = vsel %vm14725_vm14, %v14723_v21, 0.0  ;;  %vm14748_vm12 = vcmp.lt.s32.totalorder %v14747_v54, 32 }
 0x339   :  { %v11342_v58 = vpop.permute.xlu0 %4188 }
 0x33a   :  { %3292 = vrot.lane.b32.xlu1 %v3252_v50, %s7031_s21 }
 0x33b   :  { %3540 = vrot.lane.b32.xlu0 %v3516_v8, %s7029_s2  ;;  %v3163_v8 = vadd.f32 %v10395_v3, %v3135_v10  ;;  %v14718_v10 = vld [vmem:[#allocation33_spill] sm:$0xff] }
 0x33c   :  { %v11351_v7 = vpop.permute.xlu1 %3854  ;;  %vm14719_vm0 = vcmp.lt.s32.totalorder %v14718_v10, 32  ;;  %v14726_v10 = vld [vmem:[#allocation93_spill] sm:$0xff] }
 0x33d   :  { %v11353_v13 = vpop.permute.xlu0 %3544  ;;  %v11378_v15 = vmax.f32 %v3163_v8, 0.0 }
 0x33e   :  { %3412 = vrot.lane.b32.xlu1 %v11360_v25, %s7027_s10 }
 0x33f   :  { %3596 = vrot.lane.b32.xlu0 %v3524_v33, %s7027_s10  ;;  %v14717_v33 = vld [vmem:[#allocation104_spill] sm:$0xff]  ;;  %v13937_v28 = vrot.slane %v11378_v15, 7 }
 0x340   :  { %v11369_v50 = vpop.permute.xlu1 %3290  ;;  %v3783_v35 = vsel %vm14719_vm0, %v14717_v33, 0.0  ;;  %v14727_v33 = vld [vmem:[#allocation43_spill] sm:$0xff] }
 0x341   :  { %v11371_v36 = vpop.permute.xlu0 %4140  ;;  %vm14728_vm6 = vcmp.lt.s32.totalorder %v14727_v33, 32  ;;  %v14735_v33 = vld [vmem:[#allocation36_spill] sm:$0xff] }
 0x342   :  { %3858 = vrot.lane.b32.xlu1 %v3787_v4, %s7030_s7  ;;  %v4123_v42 = vsel %vm14728_vm6, %v14726_v10, 0.0  ;;  %vm14736_vm8 = vcmp.lt.s32.totalorder %v14735_v33, 32 }
 0x343   :  { %3548 = vrot.lane.b32.xlu0 %v3520_v51, %s7029_s2  ;;  %v13933_v51 = vrot.slane %v11378_v15, 5 }
 0x344   :  { %v11380_v39 = vpop.permute.xlu1 %3806 }
 0x345   :  { %v11382_v24 = vpop.permute.xlu0 %4022 }
 0x346   :  { %3810 = vrot.lane.b32.xlu1 %v3783_v35, %s7032_s22  ;;  %v3227_v35 = vsel %vm810_vm1, %v13933_v51, %v14729_v47  ;;  %v14737_v47 = vrot.slane %v10665_v5, 7 }
 0x347   :  { %4026 = vrot.lane.b32.xlu0 %v3955_v61, %s7032_s22  ;;  %v11418_v10 = vsel %vm698_vm4, %v3227_v35, 0.0  ;;  %v14740_v35 = vld [vmem:[#allocation22_spill] sm:$0xff]  ;;  %vm14742_vm4 = vcmp.ge.s32.totalorder %v14741_v30, 0  ;;  %v14750_v30 = vld [vmem:[#allocation47_spill] sm:$0xff] }
 0x348   :  { %v11393_v8 = vpop.permute.xlu1 %3410  ;;  %14733 = vst [vmem:[#allocation39_spill] sm:$0xff] %v11418_v10  ;;  %v3499_v51 = vsel %vm1468_vm7, %v13937_v28, %v14737_v47  ;;  %v14746_v28 = vld [vmem:[#allocation106_spill] sm:$0xff]  ;;  %vm14751_vm0 = vcmp.ge.s32.totalorder %v14750_v30, 0  ;;  %v14761_v30 = vld [vmem:[#allocation49_spill] sm:$0xff] }
 0x349   :  { %v11395_v52 = vpop.permute.xlu0 %3594  ;;  %v3791_v9 = vsel %vm14748_vm12, %v14746_v28, 0.0  ;;  %v14757_v28 = vld [vmem:[#allocation50_spill] sm:$0xff]  ;;  %vm14762_vm3 = vcmp.lt.s32.totalorder %v14761_v30, 32 }
 0x34a   :  { %3978 = vrot.lane.b32.xlu1 %v3951_v31, %s7033_s23  ;;  %v14734_v31 = vld [vmem:[#allocation53_spill] sm:$0xff]  ;;  %v3134_v54 = vmul.f32 %v10392_v11, %v14757_v28  ;;  %v14765_v28 = vrot.slane %v10502_v43, 1 }
 0x34b   :  { %4194 = vrot.lane.b32.xlu0 %v4123_v42, %s7033_s23  ;;  %v4119_v6 = vsel %vm14736_vm8, %v14734_v31, 0.0  ;;  %v3392_v31 = vsel %vm14742_vm4, %v14740_v35, 0.0  ;;  %v3528_v35 = vsel %vm14751_vm0, %v14749_v20, 0.0 }
 0x34c   :  { %v11412_v37 = vpop.permute.xlu1 %3974 }
 0x34d   :  { %14730 = vst [vmem:[#allocation83_spill] sm:$0xff] %v11412_v37  ;;  %v11414_v21 = vpop.permute.xlu0 %4190  ;;  %v14785_v37 = vrot.slane %v11228_v2, 5 }
 0x34e   :  { %14731 = vst [vmem:[#allocation61_spill] sm:$0xff] %v11414_v21  ;;  %3300 = vrot.lane.b32.xlu1 %v11418_v10, %s7031_s21  ;;  %v11441_v10 = vsel %vm1356_vm15, %v3499_v51, 0.0 }
 0x34f   :  { %4146 = vrot.lane.b32.xlu0 %v4119_v6, %s7034_s24 }
 0x350   :  { %v11432_v0 = vpop.permute.xlu1 %3856 }
 0x351   :  { %14738 = vst [vmem:[#allocation92_spill] sm:$0xff] %v11432_v0  ;;  %v11434_v41 = vpop.permute.xlu0 %3546  ;;  %v4081_v0 = vrot.slane %v11163_v17, 3 }
 0x352   :  { %14739 = vst [vmem:[#allocation57_spill] sm:$0xff] %v11434_v41  ;;  %3420 = vrot.lane.b32.xlu1 %v3392_v31, %s7027_s10  ;;  %v14754_v31 = vld [vmem:[#allocation54_spill] sm:$0xff] }
 0x353   :  { %3604 = vrot.lane.b32.xlu0 %v11441_v10, %s7027_s10 }
 0x354   :  { %v11446_v6 = vpop.permute.xlu1 %3808 }
 0x355   :  { %14744 = vst [vmem:[#allocation97_spill] sm:$0xff] %v11446_v6  ;;  %v11448_v47 = vpop.permute.xlu0 %4142  ;;  %v14755_v6 = vld [vmem:[#allocation48_spill] sm:$0xff] }
 0x356   :  { %14745 = vst [vmem:[#allocation27_spill] sm:$0xff] %v11448_v47  ;;  %3866 = vrot.lane.b32.xlu1 %v3791_v9, %s7030_s7  ;;  %vm14756_vm15 = vcmp.lt.s32.totalorder %v14755_v6, 32  ;;  %v3481_v6 = vrot.slane %v11163_v17, 7 }
 0x357   :  { %3556 = vrot.lane.b32.xlu0 %v3528_v35, %s7029_s2  ;;  %v3959_v47 = vsel %vm14756_vm15, %v14754_v31, 0.0  ;;  %v14760_v35 = vld [vmem:[#allocation24_spill] sm:$0xff]  ;;  %v3162_v31 = vadd.f32 %v10395_v3, %v3134_v54 }
 0x358   :  { %v11458_v51 = vpop.permute.xlu1 %3976 }
 0x359   :  { %14752 = vst [vmem:[#allocation85_spill] sm:$0xff] %v11458_v51  ;;  %v11460_v33 = vpop.permute.xlu0 %4024  ;;  %v4127_v51 = vsel %vm14762_vm3, %v14760_v35, 0.0  ;;  %v14766_v35 = vrot.slane %v10502_v43, 7 }
 0x35a   :  { %14753 = vst [vmem:[#allocation68_spill] sm:$0xff] %v11460_v33  ;;  %3818 = vrot.lane.b32.xlu1 %v3787_v4, %s7032_s22  ;;  %v3745_v33 = vrot.slane %v11163_v17, 1 }
 0x35b   :  { %4034 = vrot.lane.b32.xlu0 %v3959_v47, %s7032_s22 }
 0x35c   :  { %v11469_v20 = vpop.permute.xlu1 %3294  ;;  %v3766_v30 = vsel %vm1901_vm9, %v14765_v28, %v3745_v33  ;;  %v3917_v28 = vrot.slane %v11138_v29, 2 }
 0x35d   :  { %14758 = vst [vmem:[#allocation104_spill] sm:$0xff] %v11469_v20  ;;  %v11471_v9 = vpop.permute.xlu0 %4192  ;;  %v11493_v20 = vmax.f32 %v3162_v31, 0.0  ;;  %v14769_v31 = vld [vmem:[#allocation18_spill] sm:$0xff] }
 0x35e   :  { %14759 = vst [vmem:[#allocation88_spill] sm:$0xff] %v11471_v9  ;;  %3986 = vrot.lane.b32.xlu1 %v3955_v61, %s7033_s23  ;;  %v3502_v9 = vsel %vm1468_vm7, %v14766_v35, %v3481_v6 }
 0x35f   :  { %4202 = vrot.lane.b32.xlu0 %v4127_v51, %s7033_s23  ;;  %v3346_v51 = vrot.slane %v11493_v20, 6 }
 0x360   :  { %v11481_v4 = vpop.permute.xlu1 %3414 }
 0x361   :  { %14763 = vst [vmem:[#allocation19_spill] sm:$0xff] %v11481_v4  ;;  %v11483_v47 = vpop.permute.xlu0 %4144 }
 0x362   :  { %14764 = vst [vmem:[#allocation93_spill] sm:$0xff] %v11483_v47  ;;  %3820 = vrot.lane.b32.xlu1 %v3766_v30, %s7032_s22  ;;  %v13938_v47 = vrot.slane %v10665_v5, 2  ;;  %v3139_v30 = vmul.f32 %v10392_v11, %v14769_v31 }
 0x363   :  { %3558 = vrot.lane.b32.xlu0 %v3502_v9, %s7029_s2 }
 0x364   :  { %v11497_v61 = vpop.permute.xlu1 %3860  ;;  %v3167_v60 = vadd.f32 %v10395_v3, %v3139_v30 }
 0x365   :  { %14767 = vst [vmem:[#allocation72_spill] sm:$0xff] %v11497_v61  ;;  %v11499_v54 = vpop.permute.xlu0 %3598  ;;  %v11521_v61 = vsel %vm2230_vm11, %v13938_v47, %v3917_v28 }
 0x366   :  { %14768 = vst [vmem:[#allocation53_spill] sm:$0xff] %v11499_v54  ;;  %3702 = vrot.lane.b32.xlu1 %v11138_v29, %s7029_s2  ;;  %v14772_v54 = vrot.slane %v11163_v17, 6  ;;  %14773 = vst [vmem:[#allocation106_spill] sm:$0xff] %v11521_v61  ;;  %v11538_v41 = vmax.f32 %v3167_v60, 0.0 }
 0x367   :  { %4154 = vrot.lane.b32.xlu0 %v4123_v42, %s7034_s24  ;;  %v3913_v42 = vrot.slane %v11163_v17, 2 }
 0x368   :  { %v11509_v35 = vpop.permute.xlu1 %3296  ;;  %v3365_v4 = vsel %vm1139_vm5, %v14772_v54, %v3346_v51  ;;  %v3750_v54 = vrot.slane %v11228_v2, 1 }
 0x369   :  { %14770 = vst [vmem:[#allocation22_spill] sm:$0xff] %v11509_v35  ;;  %v11511_v9 = vpop.permute.xlu0 %3550  ;;  %v14776_v35 = vrot.slane %v10502_v43, 2 }
 0x36a   :  { %14771 = vst [vmem:[#allocation65_spill] sm:$0xff] %v11511_v9  ;;  %3424 = vrot.lane.b32.xlu1 %v3365_v4, %s7027_s10 }
 0x36b   :  { %4036 = vrot.lane.b32.xlu0 %v11521_v61, %s7032_s22  ;;  %v3934_v47 = vsel %vm2230_vm11, %v14776_v35, %v3913_v42  ;;  %v14779_v61 = vrot.slane %v11138_v29, 1  ;;  %v14781_v35 = vrot.slane %v11138_v29, 7 }
 0x36c   :  { %v11528_v31 = vpop.permute.xlu1 %3812 }
 0x36d   :  { %14774 = vst [vmem:[#allocation62_spill] sm:$0xff] %v11528_v31  ;;  %v11530_v9 = vpop.permute.xlu0 %4028  ;;  %v11557_v60 = vsel %vm1468_vm7, %v14781_v35, %v3486_v53  ;;  %v13942_v31 = vrot.slane %v10665_v5, 3 }
 0x36e   :  { %14775 = vst [vmem:[#allocation54_spill] sm:$0xff] %v11530_v9  ;;  %3988 = vrot.lane.b32.xlu1 %v3934_v47, %s7033_s23  ;;  %v11551_v9 = vsel %vm1901_vm9, %v14779_v61, %v3750_v54  ;;  %14782 = vst [vmem:[#allocation107_spill] sm:$0xff] %v11557_v60  ;;  %v3215_v47 = vrot.slane %v11538_v41, 5 }
 0x36f   :  { %3654 = vrot.lane.b32.xlu0 %v11163_v17, %s7030_s7  ;;  %14780 = vst [vmem:[#allocation18_spill] sm:$0xff] %v11551_v9  ;;  %v3918_v17 = vrot.slane %v11228_v2, 2 }
 0x370   :  { %v11543_v4 = vpop.permute.xlu1 %3416  ;;  %v11574_v35 = vsel %vm810_vm1, %v14785_v37, %v3215_v47 }
 0x371   :  { %14777 = vst [vmem:[#allocation50_spill] sm:$0xff] %v11543_v4  ;;  %v11545_v30 = vpop.permute.xlu0 %3600  ;;  %v4085_v4 = vrot.slane %v11138_v29, 3  ;;  %14786 = vst [vmem:[#allocation110_spill] sm:$0xff] %v11574_v35 }
 0x372   :  { %14778 = vst [vmem:[#allocation24_spill] sm:$0xff] %v11545_v30  ;;  %3870 = vrot.lane.b32.xlu1 %v11551_v9, %s7030_s7  ;;  %v3746_v9 = vrot.slane %v11493_v20, 1 }
 0x373   :  { %3608 = vrot.lane.b32.xlu0 %v11557_v60, %s7027_s10  ;;  %v11580_v56 = vsel %vm2559_vm13, %v13942_v31, %v4085_v4  ;;  %v3482_v60 = vrot.slane %v11493_v20, 7 }
 0x374   :  { %v11566_v61 = vpop.permute.xlu1 %3980  ;;  %14787 = vst [vmem:[#allocation111_spill] sm:$0xff] %v11580_v56 }
 0x375   :  { %14783 = vst [vmem:[#allocation108_spill] sm:$0xff] %v11566_v61  ;;  %v11568_v30 = vpop.permute.xlu0 %4196  ;;  %v3765_v61 = vsel %vm1901_vm9, %v3745_v33, %v3746_v9  ;;  %v3501_v31 = vsel %vm1468_vm7, %v3481_v6, %v3482_v60  ;;  %v3347_v6 = vrot.slane %v11378_v15, 6 }
 0x376   :  { %14784 = vst [vmem:[#allocation109_spill] sm:$0xff] %v11568_v30  ;;  %3306 = vrot.lane.b32.xlu1 %v11574_v35, %s7031_s21 }
 0x377   :  { %4204 = vrot.lane.b32.xlu0 %v11580_v56, %s7033_s23  ;;  %v14792_v56 = vld [vmem:[#allocation86_spill] sm:$0xff] }
 0x378   :  { %v11588_v30 = vpop.permute.xlu1 %3862 }
 0x379   :  { %14788 = vst [vmem:[#allocation112_spill] sm:$0xff] %v11588_v30  ;;  %v11590_v37 = vpop.permute.xlu0 %3552  ;;  %v3140_v30 = vmul.f32 %v10392_v11, %v14792_v56  ;;  %v3364_v56 = vsel %vm1139_vm5, %v3346_v51, %v3347_v6 }
 0x37a   :  { %14789 = vst [vmem:[#allocation113_spill] sm:$0xff] %v11590_v37  ;;  %3822 = vrot.lane.b32.xlu1 %v3765_v61, %s7032_s22  ;;  %v14793_v37 = vrot.slane %v10502_v43, 3  ;;  %v3914_v43 = vrot.slane %v11493_v20, 2 }
 0x37b   :  { %3560 = vrot.lane.b32.xlu0 %v3501_v31, %s7029_s2  ;;  %v3168_v31 = vadd.f32 %v10395_v3, %v3140_v30 }
 0x37c   :  { %v11599_v35 = vpop.permute.xlu1 %3298  ;;  %v4102_v33 = vsel %vm2559_vm13, %v14793_v37, %v4081_v0  ;;  %v11623_v37 = vsel %vm2230_vm11, %v3917_v28, %v3918_v17  ;;  %v3933_v51 = vsel %vm2230_vm11, %v3913_v42, %v3914_v43  ;;  %v3487_v28 = vrot.slane %v11538_v41, 7 }
 0x37d   :  { %14790 = vst [vmem:[#allocation114_spill] sm:$0xff] %v11599_v35  ;;  %v11601_v21 = vpop.permute.xlu0 %4148  ;;  %14795 = vst [vmem:[#allocation116_spill] sm:$0xff] %v11623_v37 }
 0x37e   :  { %14791 = vst [vmem:[#allocation115_spill] sm:$0xff] %v11601_v21  ;;  %3704 = vrot.lane.b32.xlu1 %v11228_v2, %s7029_s2  ;;  %v11653_v42 = vsel %vm1468_vm7, %v3486_v53, %v3487_v28 }
 0x37f   :  { %4156 = vrot.lane.b32.xlu0 %v4102_v33, %s7034_s24  ;;  %v11629_v33 = vmax.f32 %v3168_v31, 0.0  ;;  %14801 = vst [vmem:[#allocation122_spill] sm:$0xff] %v11653_v42 }
 0x380   :  { %v11615_v61 = vpop.permute.xlu1 %3814 }
 0x381   :  { %14794 = vst [vmem:[#allocation86_spill] sm:$0xff] %v11615_v61  ;;  %v11617_v35 = vpop.permute.xlu0 %4030  ;;  %v3751_v61 = vrot.slane %v11538_v41, 1 }
 0x382   :  { %3426 = vrot.lane.b32.xlu1 %v3364_v56, %s7027_s10  ;;  %v13952_v56 = vrot.slane %v11629_v33, 5 }
 0x383   :  { %4038 = vrot.lane.b32.xlu0 %v11623_v37, %s7032_s22 }
 0x384   :  { %v11631_v30 = vpop.permute.xlu1 %3418 }
 0x385   :  { %14796 = vst [vmem:[#allocation117_spill] sm:$0xff] %v11631_v30  ;;  %v11633_v21 = vpop.permute.xlu0 %3602  ;;  %v11649_v30 = vsel %vm1901_vm9, %v3750_v54, %v3751_v61 }
 0x386   :  { %14797 = vst [vmem:[#allocation118_spill] sm:$0xff] %v11633_v21  ;;  %3990 = vrot.lane.b32.xlu1 %v3933_v51, %s7033_s23  ;;  %14800 = vst [vmem:[#allocation121_spill] sm:$0xff] %v11649_v30  ;;  %v4086_v21 = vrot.slane %v11228_v2, 3  ;;  %v3223_v51 = vsel %vm810_vm1, %v3215_v47, %v13952_v56 }
 0x387   :  { %3656 = vrot.lane.b32.xlu0 %v11493_v20, %s7030_s7 }
 0x388   :  { %v11643_v31 = vpop.permute.xlu1 %3982  ;;  %v11672_v2 = vsel %vm2559_vm13, %v4085_v4, %v4086_v21 }
 0x389   :  { %14798 = vst [vmem:[#allocation119_spill] sm:$0xff] %v11643_v31  ;;  %v11645_v37 = vpop.permute.xlu0 %4198 }
 0x38a   :  { %14799 = vst [vmem:[#allocation120_spill] sm:$0xff] %v11645_v37  ;;  %3872 = vrot.lane.b32.xlu1 %v11649_v30, %s7030_s7  ;;  %v14803_v37 = vld [vmem:[#allocation75_spill] sm:$0xff]  ;;  %v3747_v30 = vrot.slane %v11378_v15, 1 }
 0x38b   :  { %3610 = vrot.lane.b32.xlu0 %v11653_v42, %s7027_s10  ;;  %vm14804_vm14 = vcmp.ge.s32.totalorder %v14803_v37, 0  ;;  %14805 = vst [vmem:[#allocation75_spill] sm:$0xff] %v11672_v2  ;;  %v14808_v37 = vrot.slane %v11378_v15, 7 }
 0x38c   :  { %v11664_v31 = vpop.permute.xlu1 %3864  ;;  %v3264_v53 = vsel %vm14804_vm14, %v3223_v51, 0.0  ;;  %v3764_v56 = vsel %vm1901_vm9, %v3746_v9, %v3747_v30  ;;  %v13954_v51 = vrot.slane %v11493_v20, 3 }
 0x38d   :  { %v11666_v54 = vpop.permute.xlu0 %3554  ;;  %v3500_v4 = vsel %vm1468_vm7, %v3482_v60, %v14808_v37 }
 0x38e   :  { %14802 = vst [vmem:[#allocation123_spill] sm:$0xff] %v11666_v54  ;;  %3308 = vrot.lane.b32.xlu1 %v3264_v53, %s7031_s21  ;;  %v3348_v53 = vrot.slane %v10665_v5, 6  ;;  %v4101_v9 = vsel %vm2559_vm13, %v4081_v0, %v13954_v51 }
 0x38f   :  { %4206 = vrot.lane.b32.xlu0 %v11672_v2, %s7033_s23 }
 0x390   :  { %v11678_v42 = vpop.permute.xlu1 %3816  ;;  %v3363_v60 = vsel %vm1139_vm5, %v3347_v6, %v3348_v53  ;;  %v13957_v6 = vrot.slane %v11629_v33, 1 }
 0x391   :  { %14806 = vst [vmem:[#allocation124_spill] sm:$0xff] %v11678_v42  ;;  %v11680_v47 = vpop.permute.xlu0 %4150  ;;  %v14814_v42 = vld [vmem:[#allocation78_spill] sm:$0xff] }
 0x392   :  { %14807 = vst [vmem:[#allocation125_spill] sm:$0xff] %v11680_v47  ;;  %3824 = vrot.lane.b32.xlu1 %v3764_v56, %s7032_s22  ;;  %v3919_v47 = vrot.slane %v11538_v41, 2  ;;  %v14811_v56 = vld [vmem:[#allocation31_spill] sm:$0xff]  ;;  %vm14815_vm6 = vcmp.ge.s32.totalorder %v14814_v42, 0  ;;  %v13958_v42 = vrot.slane %v11629_v33, 7 }
 0x393   :  { %3562 = vrot.lane.b32.xlu0 %v3500_v4, %s7029_s2  ;;  %v3141_v37 = vmul.f32 %v10392_v11, %v14811_v56  ;;  %v11714_v0 = vsel %vm14815_vm6, %v3363_v60, 0.0 }
 0x394   :  { %v11692_v2 = vpop.permute.xlu1 %3984  ;;  %14816 = vst [vmem:[#allocation78_spill] sm:$0xff] %v11714_v0  ;;  %v11718_v51 = vsel %vm2230_vm11, %v3918_v17, %v3919_v47 }
 0x395   :  { %14809 = vst [vmem:[#allocation126_spill] sm:$0xff] %v11692_v2  ;;  %v11694_v54 = vpop.permute.xlu0 %4032  ;;  %14817 = vst [vmem:[#allocation129_spill] sm:$0xff] %v11718_v51 }
 0x396   :  { %14810 = vst [vmem:[#allocation127_spill] sm:$0xff] %v11694_v54  ;;  %3706 = vrot.lane.b32.xlu1 %v11538_v41, %s7029_s2  ;;  %v3169_v54 = vadd.f32 %v10395_v3, %v3141_v37  ;;  %v3759_v37 = vsel %vm1901_vm9, %v3751_v61, %v13957_v6  ;;  %v13963_v6 = vrot.slane %v11538_v41, 3 }
 0x397   :  { %4158 = vrot.lane.b32.xlu0 %v4101_v9, %s7034_s24  ;;  %v3915_v9 = vrot.slane %v11378_v15, 2 }
 0x398   :  { %v11708_v4 = vpop.permute.xlu1 %3302 }
 0x399   :  { %14812 = vst [vmem:[#allocation31_spill] sm:$0xff] %v11708_v4  ;;  %v11710_v2 = vpop.permute.xlu0 %4200  ;;  %v3932_v17 = vsel %vm2230_vm11, %v3914_v43, %v3915_v9  ;;  %v11734_v4 = vmax.f32 %v3169_v54, 0.0  ;;  %v14828_v54 = vrot.slane %v10423_v1, 5 }
 0x39a   :  { %14813 = vst [vmem:[#allocation128_spill] sm:$0xff] %v11710_v2  ;;  %3428 = vrot.lane.b32.xlu1 %v11714_v0, %s7027_s10 }
 0x39b   :  { %4040 = vrot.lane.b32.xlu0 %v11718_v51, %s7032_s22  ;;  %v13960_v61 = vrot.slane %v11734_v4, 5 }
 0x39c   :  { %v11728_v60 = vpop.permute.xlu1 %3422 }
 0x39d   :  { %14818 = vst [vmem:[#allocation130_spill] sm:$0xff] %v11728_v60  ;;  %v11730_v56 = vpop.permute.xlu0 %4152  ;;  %v3495_v60 = vsel %vm1468_vm7, %v3487_v28, %v13958_v42 }
 0x39e   :  { %14819 = vst [vmem:[#allocation131_spill] sm:$0xff] %v11730_v56  ;;  %3992 = vrot.lane.b32.xlu1 %v3932_v17, %s7033_s23  ;;  %v14822_v17 = vld [vmem:[#allocation70_spill] sm:$0xff]  ;;  %v14825_v56 = vld [vmem:[#allocation79_spill] sm:$0xff] }
 0x39f   :  { %3658 = vrot.lane.b32.xlu0 %v11378_v15, %s7030_s7  ;;  %vm14823_vm8 = vcmp.lt.s32.totalorder %v14822_v17, 32  ;;  %vm14826_vm4 = vcmp.ge.s32.totalorder %v14825_v56, 0 }
 0x3a0   :  { %v11747_v51 = vpop.permute.xlu1 %3868  ;;  %v11754_v0 = vsel %vm14823_vm8, %v3759_v37, 0.0  ;;  %v3536_v2 = vsel %vm14826_vm4, %v3495_v60, 0.0  ;;  %v14829_v37 = vrot.slane %v11233_v62, 5  ;;  %v14830_v60 = vrot.slane %v11629_v33, 5  ;;  %v14836_v62 = vld [vmem:[#allocation74_spill] sm:$0xff] }
 0x3a1   :  { %14820 = vst [vmem:[#allocation132_spill] sm:$0xff] %v11747_v51  ;;  %v11749_v43 = vpop.permute.xlu0 %3606  ;;  %14824 = vst [vmem:[#allocation70_spill] sm:$0xff] %v11754_v0  ;;  %vm14837_vm0 = vcmp.lt.s32.totalorder %v14836_v62, 32 }
 0x3a2   :  { %14821 = vst [vmem:[#allocation133_spill] sm:$0xff] %v11749_v43  ;;  %3874 = vrot.lane.b32.xlu1 %v11754_v0, %s7030_s7  ;;  %v3243_v56 = vsel %vm810_vm1, %v14829_v37, %v14828_v54  ;;  %v3222_v17 = vsel %vm810_vm1, %v14830_v60, %v13960_v61  ;;  %v14832_v54 = vrot.slane %v10665_v5, 1  ;;  %v3349_v60 = vrot.slane %v11138_v29, 6  ;;  %v14834_v61 = vld [vmem:[#allocation15_spill] sm:$0xff] }
 0x3a3   :  { %3612 = vrot.lane.b32.xlu0 %v3536_v2, %s7027_s10  ;;  %v11781_v2 = vsel %vm2559_vm13, %v4086_v21, %v13963_v6  ;;  %vm14835_vm12 = vcmp.ge.s32.totalorder %v14834_v61, 0  ;;  %v3920_v43 = vrot.slane %v11629_v33, 2 }
 0x3a4   :  { %v11763_v28 = vpop.permute.xlu1 %3304  ;;  %14831 = vst [vmem:[#allocation134_spill] sm:$0xff] %v11781_v2  ;;  %v3763_v37 = vsel %vm1901_vm9, %v3747_v30, %v14832_v54  ;;  %v3244_v1 = vsel %vm14835_vm12, %v3243_v56, 0.0  ;;  %v14838_v54 = vrot.slane %v10665_v5, 2 }
 0x3a5   :  { %14827 = vst [vmem:[#allocation79_spill] sm:$0xff] %v11763_v28  ;;  %v3285_v42 = vpop.permute.xlu0 %3284  ;;  %v14833_v28 = vld [vmem:[#allocation60_spill] sm:$0xff]  ;;  %v3795_v30 = vsel %vm14837_vm0, %v3763_v37, 0.0 }
 0x3a6   :  { %3310 = vrot.lane.b32.xlu1 %v3222_v17, %s7031_s21  ;;  %v3317_v0 = vadd.f32 %v11214_v59, %v14833_v28  ;;  %v4083_v17 = vrot.slane %v11378_v15, 3 }
 0x3a7   :  { %4208 = vrot.lane.b32.xlu0 %v11781_v2, %s7033_s23  ;;  %v3316_v2 = vadd.f32 %v3285_v42, %v3244_v1  ;;  %v3931_v1 = vsel %vm2230_vm11, %v3915_v9, %v14838_v54 }
 0x3a8   :  { %v3405_v21 = vpop.permute.xlu1 %3404  ;;  %v3437_v59 = vadd.f32 %v11159_v48, %v3317_v0 }
 0x3a9   :  { %v3589_v6 = vpop.permute.xlu0 %3588  ;;  %v3436_v28 = vadd.f32 %v3405_v21, %v3316_v2  ;;  %v14842_v2 = vld [vmem:[#allocation91_spill] sm:$0xff]  ;;  %v14843_v21 = vld [vmem:[#allocation80_spill] sm:$0xff] }
 0x3aa   :  { %v3620_v51 = vadd.f32 %v3589_v6, %v11360_v25  ;;  %3826 = vrot.lane.b32.xlu1 %v3795_v30, %s7032_s22  ;;  %v3621_v25 = vadd.f32 %v11185_v22, %v10521_v19  ;;  %v11815_v6 = vsel %vm1139_vm5, %v3348_v53, %v3349_v60  ;;  %v3927_v19 = vsel %vm2230_vm11, %v3919_v47, %v3920_v43  ;;  %v14840_v53 = vld [vmem:[#allocation38_spill] sm:$0xff]  ;;  %v14845_v30 = vld [vmem:[#allocation71_spill] sm:$0xff] }
 0x3ab   :  { %3564 = vrot.lane.b32.xlu0 %v11441_v10, %s7029_s2  ;;  %v3573_v22 = vadd.f32 %v11273_v55, %v3437_v59  ;;  %vm14841_vm15 = vcmp.ge.s32.totalorder %v14840_v53, 0  ;;  %v3318_v37 = vadd.f32 %v11216_v40, %v14842_v2  ;;  %vm14844_vm3 = vcmp.lt.s32.totalorder %v14843_v21, 32 }
 0x3ac   :  { %v3716_v56 = vadd.f32 %v11050_v26, %v3620_v51  ;;  %v3293_v10 = vpop.permute.xlu1 %3292  ;;  %v14839_v26 = vrot.slane %v11493_v20, 3  ;;  %v3388_v0 = vsel %vm14841_vm15, %v10966_v46, 0.0  ;;  %v3963_v47 = vsel %vm14844_vm3, %v3931_v1, 0.0 }
 0x3ad   :  { %v3541_v42 = vpop.permute.xlu0 %3540  ;;  %v3142_v55 = vmul.f32 %v10392_v11, %v14845_v30  ;;  %v4088_v59 = vrot.slane %v11629_v33, 3  ;;  %v3438_v54 = vadd.f32 %v11311_v14, %v3318_v37  ;;  %v3622_v1 = vadd.f32 %v11313_v16, %v10569_v23  ;;  %v14848_v23 = vld [vmem:[#allocation52_spill] sm:$0xff] }
 0x3ae   :  { %v4100_v48 = vsel %vm2559_vm13, %v14839_v26, %v4083_v17  ;;  %v3572_v51 = vadd.f32 %v3541_v42, %v3436_v28  ;;  %v3884_v9 = vadd.f32 %v11244_v38, %v3716_v56  ;;  %3708 = vrot.lane.b32.xlu1 %v11629_v33, %s7029_s2  ;;  %v14846_v28 = vld [vmem:[#allocation51_spill] sm:$0xff]  ;;  %v3753_v56 = vrot.slane %v11734_v4, 1  ;;  %v14852_v30 = vld [vmem:[#allocation28_spill] sm:$0xff] }
 0x3af   :  { %4160 = vrot.lane.b32.xlu0 %v4100_v48, %s7034_s24  ;;  %vm14847_vm14 = vcmp.lt.s32.totalorder %v14846_v28, 32  ;;  %v3717_v42 = vadd.f32 %v11068_v63, %v3621_v25  ;;  %v3170_v48 = vadd.f32 %v10395_v3, %v3142_v55  ;;  %v3574_v14 = vadd.f32 %v11353_v13, %v3438_v54  ;;  %v14855_v54 = vld [vmem:[#allocation103_spill] sm:$0xff] }
 0x3b0   :  { %v3668_v46 = vadd.f32 %v11060_v49, %v3572_v51  ;;  %v11845_v38 = vsel %vm14847_vm14, %v3927_v19, 0.0  ;;  %v4052_v40 = vadd.f32 %v11275_v32, %v3884_v9  ;;  %v3413_v11 = vpop.permute.xlu1 %3412  ;;  %v3669_v49 = vadd.f32 %v11052_v18, %v3573_v22  ;;  %v14850_v22 = vld [vmem:[#allocation61_spill] sm:$0xff] }
 0x3b1   :  { %v3597_v26 = vpop.permute.xlu0 %3596  ;;  %v3320_v19 = vadd.f32 %v3293_v10, %v11286_v12  ;;  %v3885_v9 = vadd.f32 %v11351_v7, %v3717_v42  ;;  %v3489_v3 = vrot.slane %v11734_v4, 7  ;;  %v3319_v18 = vadd.f32 %v11369_v50, %v14848_v23 }
 0x3b2   :  { %v3836_v51 = vadd.f32 %v11246_v45, %v3668_v46  ;;  %v4220_v32 = vadd.f32 %v11342_v58, %v4052_v40  ;;  %v3624_v2 = vadd.f32 %v3597_v26, %v3388_v0  ;;  %3430 = vrot.lane.b32.xlu1 %v11815_v6, %s7027_s10  ;;  %v3623_v63 = vadd.f32 %v11395_v52, %v10610_v27  ;;  %v14851_v0 = vld [vmem:[#allocation92_spill] sm:$0xff]  ;;  %v14853_v46 = vld [vmem:[#allocation83_spill] sm:$0xff]  ;;  %v14854_v40 = vld [vmem:[#allocation57_spill] sm:$0xff] }
 0x3b3   :  { %4042 = vrot.lane.b32.xlu0 %v11845_v38, %s7032_s22  ;;  %v3440_v16 = vadd.f32 %v3413_v11, %v3320_v19  ;;  %v4053_v58 = vadd.f32 %v11382_v24, %v3885_v9  ;;  %v3718_v12 = vadd.f32 %v11076_v57, %v3622_v1  ;;  %v11872_v25 = vmax.f32 %v3170_v48, 0.0  ;;  %v14856_v1 = vld [vmem:[#allocation69_spill] sm:$0xff] }
 0x3b4   :  { %4337 = vmatprep.mubr.f32.mxu1 %v4220_v32  ;;  %v4004_v45 = vadd.f32 %v11340_v44, %v3836_v51  ;;  %v3859_v7 = vpop.permute.xlu1 %3858  ;;  %v14849_v10 = vrot.slane %v11538_v41, 3  ;;  %v3837_v27 = vadd.f32 %v11380_v39, %v3669_v49  ;;  %v3439_v52 = vadd.f32 %v11393_v8, %v3319_v18  ;;  %v14860_v9 = vld [vmem:[#allocation97_spill] sm:$0xff] }
 0x3b5   :  { %v3549_v13 = vpop.permute.xlu0 %3548  ;;  %v4221_v57 = vadd.f32 %v14850_v22, %v4053_v58  ;;  %v3886_v37 = vadd.f32 %v14851_v0, %v3718_v12  ;;  %v3720_v55 = vadd.f32 %v14852_v30, %v3624_v2  ;;  %v3670_v8 = vadd.f32 %v14855_v54, %v3574_v14  ;;  %v14861_v2 = vld [vmem:[#allocation27_spill] sm:$0xff]  ;;  %v14864_v58 = vld [vmem:[#allocation104_spill] sm:$0xff] }
 0x3b6   :  { %v4095_v50 = vsel %vm2559_vm13, %v14849_v10, %v4088_v59  ;;  %v3576_v44 = vadd.f32 %v3549_v13, %v3440_v16  ;;  %v4172_v24 = vadd.f32 %v11371_v36, %v4004_v45  ;;  %3994 = vrot.lane.b32.xlu1 %v3963_v47, %s7033_s23  ;;  %v4005_v28 = vadd.f32 %v14853_v46, %v3837_v27  ;;  %v14857_v36 = vld [vmem:[#allocation68_spill] sm:$0xff]  ;;  %v14871_v46 = vld [vmem:[#allocation53_spill] sm:$0xff] }
 0x3b7   :  { %3660 = vrot.lane.b32.xlu0 %v10665_v5, %s7030_s7  ;;  %v3575_v39 = vadd.f32 %v14854_v40, %v3439_v52  ;;  %v3719_v42 = vadd.f32 %v14856_v1, %v3623_v63  ;;  %v4054_v11 = vadd.f32 %v14857_v36, %v3886_v37  ;;  %v14858_v47 = vrot.slane %v11629_v33, 1  ;;  %v14862_v63 = vld [vmem:[#allocation56_spill] sm:$0xff]  ;;  %v14873_v1 = vld [vmem:[#allocation59_spill] sm:$0xff] }
 0x3b8   :  { %4338 = vmatmul.mubr.f32.vlgmr.msra.gmra.mrb[0].mxu1 %v4172_v24  ;;  %v3811_v26 = vpop.permute.xlu1 %3810  ;;  %v14859_v19 = vrot.slane %v11629_v33, 7  ;;  %v3218_v32 = vrot.slane %v11872_v25, 5  ;;  %v3838_v14 = vadd.f32 %v14860_v9, %v3670_v8  ;;  %v4173_v23 = vadd.f32 %v14861_v2, %v4005_v28  ;;  %v14863_v45 = vld [vmem:[#allocation76_spill] sm:$0xff]  ;;  %v14867_v24 = vld [vmem:[#allocation85_spill] sm:$0xff] }
 0x3b9   :  { %v4027_v48 = vpop.permute.xlu0 %4026  ;;  %4342 = vmatprep.mubr.f32.mxu1 %v4221_v57  ;;  %v3758_v49 = vsel %vm1901_vm9, %v14858_v47, %v3753_v56  ;;  %v3887_v18 = vadd.f32 %v3859_v7, %v3719_v42  ;;  %v3672_v16 = vadd.f32 %v14862_v63, %v3576_v44  ;;  %v3321_v12 = vadd.f32 %v14864_v58, %v14863_v45  ;;  %v14865_v13 = vld [vmem:[#allocation88_spill] sm:$0xff]  ;;  %v14868_v57 = vld [vmem:[#allocation105_spill] sm:$0xff]  ;;  %v14869_v7 = vld [vmem:[#allocation19_spill] sm:$0xff] }
 0x3ba   :  { %v3494_v51 = vsel %vm1468_vm7, %v14859_v19, %v3489_v3  ;;  %v4222_v10 = vadd.f32 %v14865_v13, %v4054_v11  ;;  %v14866_v27 = vld [vmem:[#allocation72_spill] sm:$0xff]  ;;  %3876 = vrot.lane.b32.xlu1 %v3758_v49, %s7030_s7  ;;  %v4006_v22 = vadd.f32 %v14867_v24, %v3838_v14  ;;  %v3671_v0 = vadd.f32 %v14868_v57, %v3575_v39  ;;  %v14870_v44 = vld [vmem:[#allocation102_spill] sm:$0xff]  ;;  %v14875_v42 = vld [vmem:[#allocation93_spill] sm:$0xff] }
 0x3bb   :  { %v3888_v52 = vadd.f32 %v14866_v27, %v3720_v55  ;;  %3614 = vrot.lane.b32.xlu0 %v3494_v51, %s7027_s10  ;;  %v4055_v37 = vadd.f32 %v4027_v48, %v3887_v18  ;;  %v3441_v30 = vadd.f32 %v14869_v7, %v3321_v12  ;;  %v3625_v28 = vadd.f32 %v14871_v46, %v14870_v44  ;;  %v14876_v11 = vld [vmem:[#allocation62_spill] sm:$0xff]  ;;  %v14878_v9 = vld [vmem:[#allocation84_spill] sm:$0xff]  ;;  %v14881_v63 = vld [vmem:[#allocation63_spill] sm:$0xff] }
 0x3bc   :  { %4343 = vmatmul.mubr.f32.gmra.mrb[2].mxu1 %v4173_v23  ;;  %v3979_v40 = vpop.permute.xlu1 %3978  ;;  %v14872_v55 = vrot.slane %v11734_v4, 5  ;;  %vm14874_vm6 = vcmp.lt.s32.totalorder %v14873_v1, 32  ;;  %v4174_v36 = vadd.f32 %v14875_v42, %v4006_v22  ;;  %v3840_v48 = vadd.f32 %v14876_v11, %v3672_v16  ;;  %v14877_v19 = vld [vmem:[#allocation54_spill] sm:$0xff]  ;;  %v14880_v23 = vld [vmem:[#allocation65_spill] sm:$0xff]  ;;  %v14882_v45 = vld [vmem:[#allocation24_spill] sm:$0xff] }
 0x3bd   :  { %v4195_v54 = vpop.permute.xlu0 %4194  ;;  %4347 = vmatprep.mubr.f32.mxu1 %v4222_v10  ;;  %v11929_v39 = vsel %vm14874_vm6, %v4095_v50, 0.0  ;;  %v3839_v47 = vadd.f32 %v3811_v26, %v3671_v0  ;;  %v4056_v51 = vadd.f32 %v14877_v19, %v3888_v52  ;;  %v14879_v14 = vld [vmem:[#allocation22_spill] sm:$0xff]  ;;  %v3577_v18 = vadd.f32 %v14880_v23, %v3441_v30  ;;  %v14883_v16 = vld [vmem:[#allocation20_spill] sm:$0xff]  ;;  %v14888_v30 = vld [vmem:[#allocation23_spill] sm:$0xff] }
 0x3be   :  { %v3221_v8 = vsel %vm810_vm1, %v14872_v55, %v3218_v32  ;;  %v4223_v49 = vadd.f32 %v4195_v54, %v4055_v37  ;;  %v3322_v2 = vadd.f32 %v14879_v14, %v14878_v9  ;;  %v3626_v58 = vadd.f32 %v14882_v45, %v14881_v63  ;;  %v14884_v10 = vld [vmem:[#allocation50_spill] sm:$0xff]  ;;  %v14886_v57 = vld [vmem:[#allocation108_spill] sm:$0xff]  ;;  %v14890_v46 = vld [vmem:[#allocation109_spill] sm:$0xff] }
 0x3bf   :  { %3312 = vrot.lane.b32.xlu1 %v3221_v8, %s7031_s21  ;;  %4210 = vrot.lane.b32.xlu0 %v11929_v39, %s7033_s23  ;;  %v4007_v50 = vadd.f32 %v3979_v40, %v3839_v47  ;;  %v3721_v26 = vadd.f32 %v14883_v16, %v3625_v28  ;;  %v14885_v52 = vrot.slane %v10665_v5, 3  ;;  %v4008_v0 = vadd.f32 %v14886_v57, %v3840_v48  ;;  %v14887_v37 = vld [vmem:[#allocation112_spill] sm:$0xff]  ;;  %v14889_v44 = vld [vmem:[#allocation82_spill] sm:$0xff]  ;;  %v14891_v40 = vld [vmem:[#allocation113_spill] sm:$0xff] }
 0x3c0   :  { %4348 = vmatmul.mubr.f32.gmra.mrb[4].mxu1 %v4174_v36  ;;  %v11943_v12 = vpop.permute.xlu1 %3300  ;;  %v3442_v27 = vadd.f32 %v14884_v10, %v3322_v2  ;;  %v4224_v28 = vadd.f32 %v14890_v46, %v4056_v51  ;;  %v14892_v5 = vld [vmem:[#allocation99_spill] sm:$0xff]  ;;  %v14894_v11 = vld [vmem:[#allocation66_spill] sm:$0xff]  ;;  %v14898_v9 = vld [vmem:[#allocation81_spill] sm:$0xff]  ;;  %v3921_v2 = vrot.slane %v11734_v4, 2 }
 0x3c1   :  { %v4147_v13 = vpop.permute.xlu0 %4146  ;;  %4352 = vmatprep.mubr.f32.mxu1 %v4223_v49  ;;  %v4099_v22 = vsel %vm2559_vm13, %v4083_v17, %v14885_v52  ;;  %v3889_v7 = vadd.f32 %v14887_v37, %v3721_v26  ;;  %v3673_v55 = vadd.f32 %v14892_v5, %v3577_v18  ;;  %v14893_v17 = vld [vmem:[#allocation87_spill] sm:$0xff]  ;;  %vm14895_vm8 = vcmp.lt.s32.totalorder %v14894_v11, 32  ;;  %v14896_v47 = vld [vmem:[#allocation86_spill] sm:$0xff]  ;;  %v14899_v23 = vld [vmem:[#allocation120_spill] sm:$0xff] }
 0x3c2   :  { %v4175_v24 = vadd.f32 %v4147_v13, %v4007_v50  ;;  %v3578_v54 = vadd.f32 %v14891_v40, %v3442_v27  ;;  %v3722_v1 = vadd.f32 %v14893_v17, %v3626_v58  ;;  %v4131_v48 = vsel %vm14895_vm8, %v4099_v22, 0.0  ;;  %v14897_v19 = vld [vmem:[#allocation115_spill] sm:$0xff]  ;;  %v14900_v50 = vld [vmem:[#allocation26_spill] sm:$0xff]  ;;  %v14903_v26 = vld [vmem:[#allocation100_spill] sm:$0xff] }
 0x3c3   :  { %3828 = vrot.lane.b32.xlu1 %v14888_v30, %s7032_s22  ;;  %3566 = vrot.lane.b32.xlu0 %v14889_v44, %s7029_s2  ;;  %v4057_v8 = vadd.f32 %v11617_v35, %v3889_v7  ;;  %v3841_v49 = vadd.f32 %v14896_v47, %v3673_v55  ;;  %v4176_v51 = vadd.f32 %v14897_v19, %v4008_v0  ;;  %v3350_v14 = vrot.slane %v14898_v9, 6  ;;  %v14901_v63 = vld [vmem:[#allocation118_spill] sm:$0xff]  ;;  %v14902_v58 = vld [vmem:[#allocation119_spill] sm:$0xff]  ;;  %v14906_v57 = vld [vmem:[#allocation125_spill] sm:$0xff] }
 0x3c4   :  { %4353 = vmatmul.mubr.f32.gmra.mrb[6].mxu1 %v4175_v24  ;;  %v11963_v42 = vpop.permute.xlu1 %3420  ;;  %v3890_v18 = vadd.f32 %v11664_v31, %v3722_v1  ;;  %v3627_v45 = vadd.f32 %v14901_v63, %v14900_v50  ;;  %v3674_v13 = vadd.f32 %v14903_v26, %v3578_v54  ;;  %v14904_v10 = vld [vmem:[#allocation127_spill] sm:$0xff]  ;;  %v14905_v31 = vld [vmem:[#allocation124_spill] sm:$0xff]  ;;  %v3926_v7 = vsel %vm2230_vm11, %v3920_v43, %v3921_v2  ;;  %v14910_v54 = vld [vmem:[#allocation126_spill] sm:$0xff] }
 0x3c5   :  { %v11965_v36 = vpop.permute.xlu0 %3604  ;;  %4357 = vmatprep.mubr.f32.mxu1 %v4224_v28  ;;  %v4225_v35 = vadd.f32 %v14899_v23, %v4057_v8  ;;  %v4009_v16 = vadd.f32 %v14902_v58, %v3841_v49  ;;  %v11993_v37 = vsel %vm1139_vm5, %v3349_v60, %v3350_v14  ;;  %v14907_v30 = vld [vmem:[#allocation128_spill] sm:$0xff]  ;;  %v14908_v46 = vld [vmem:[#allocation55_spill] sm:$0xff]  ;;  %v14909_v28 = vld [vmem:[#allocation114_spill] sm:$0xff]  ;;  %v3754_v43 = vrot.slane %v11872_v25, 1 }
 0x3c6   :  { %v4058_v27 = vadd.f32 %v14904_v10, %v3890_v18  ;;  %v3842_v22 = vadd.f32 %v14905_v31, %v3674_v13  ;;  %v3323_v40 = vadd.f32 %v14909_v28, %v14908_v46  ;;  %v14911_v5 = vld [vmem:[#allocation35_spill] sm:$0xff]  ;;  %v14912_v1 = vld [vmem:[#allocation117_spill] sm:$0xff]  ;;  %v14914_v23 = vld [vmem:[#allocation106_spill] sm:$0xff] }
 0x3c7   :  { %3710 = vrot.lane.b32.xlu1 %v11734_v4, %s7029_s2  ;;  %4162 = vrot.lane.b32.xlu0 %v4131_v48, %s7034_s24  ;;  %v4177_v0 = vadd.f32 %v14906_v57, %v4009_v16  ;;  %v3723_v55 = vadd.f32 %v14911_v5, %v3627_v45  ;;  %v14913_v47 = vld [vmem:[#allocation131_spill] sm:$0xff]  ;;  %v3757_v16 = vsel %vm1901_vm9, %v3753_v56, %v3754_v43  ;;  %v14916_v13 = vld [vmem:[#allocation89_spill] sm:$0xff]  ;;  %v14919_v46 = vld [vmem:[#allocation18_spill] sm:$0xff]  ;;  %v3922_v5 = vrot.slane %v11872_v25, 2 }
 0x3c8   :  { %4358 = vmatmul.mubr.f32.gmra.mrb[8].mxu1 %v4176_v51  ;;  %v3867_v24 = vpop.permute.xlu1 %3866  ;;  %v4226_v44 = vadd.f32 %v14907_v30, %v4058_v27  ;;  %v4010_v60 = vadd.f32 %v14910_v54, %v3842_v22  ;;  %v3443_v48 = vadd.f32 %v14912_v1, %v3323_v40  ;;  %v3490_v51 = vrot.slane %v11872_v25, 7  ;;  %v14917_v22 = vld [vmem:[#allocation44_spill] sm:$0xff]  ;;  %v14920_v28 = vld [vmem:[#allocation107_spill] sm:$0xff]  ;;  %v14923_v1 = vld [vmem:[#allocation58_spill] sm:$0xff] }
 0x3c9   :  { %v11983_v52 = vpop.permute.xlu0 %3556  ;;  %4362 = vmatprep.mubr.f32.mxu1 %v4225_v35  ;;  %v3891_v19 = vadd.f32 %v3867_v24, %v3723_v55  ;;  %v14915_v35 = vld [vmem:[#allocation123_spill] sm:$0xff]  ;;  %v14918_v56 = vrot.slane %v14917_v22, 5 }
 0x3ca   :  { %v4178_v49 = vadd.f32 %v14913_v47, %v4010_v60  ;;  %v3579_v18 = vadd.f32 %v14915_v35, %v3443_v48  ;;  %v3493_v26 = vsel %vm1468_vm7, %v3489_v3, %v3490_v51  ;;  %v3351_v60 = vrot.slane %v11538_v41, 6  ;;  %v14922_v55 = vld [vmem:[#allocation111_spill] sm:$0xff] }
 0x3cb   :  { %3432 = vrot.lane.b32.xlu1 %v11993_v37, %s7027_s10  ;;  %4044 = vrot.lane.b32.xlu0 %v3926_v7, %s7032_s22  ;;  %v3220_v3 = vsel %vm810_vm1, %v3218_v32, %v14918_v56  ;;  %v3925_v47 = vsel %vm2230_vm11, %v3921_v2, %v3922_v5  ;;  %v3755_v2 = vrot.slane %v14917_v22, 1 }
 0x3cc   :  { %4363 = vmatmul.mubr.f32.gmra.mrb[10].mxu1 %v4177_v0  ;;  %v3819_v8 = vpop.permute.xlu1 %3818  ;;  %v3675_v10 = vadd.f32 %v14916_v13, %v3579_v18 }
 0x3cd   :  { %v4035_v17 = vpop.permute.xlu0 %4034  ;;  %4367 = vmatprep.mubr.f32.mxu1 %v4226_v44 }
 0x3ce   :  { %v4059_v50 = vadd.f32 %v4035_v17, %v3891_v19  ;;  %v3843_v31 = vadd.f32 %v3819_v8, %v3675_v10  ;;  %v14925_v19 = vld [vmem:[#allocation45_spill] sm:$0xff] }
 0x3cf   :  { %3996 = vrot.lane.b32.xlu1 %v14914_v23, %s7033_s23  ;;  %3662 = vrot.lane.b32.xlu0 %v11138_v29, %s7030_s7  ;;  %v4089_v29 = vrot.slane %v11734_v4, 3  ;;  %vm14926_vm4 = vcmp.ge.s32.totalorder %v14925_v19, 0 }
 0x3d0   :  { %4368 = vmatmul.mubr.f32.gmra.mrb[12].mxu1 %v4178_v49  ;;  %v3987_v63 = vpop.permute.xlu1 %3986  ;;  %v14924_v49 = vld [vmem:[#allocation101_spill] sm:$0xff] }
 0x3d1   :  { %v4203_v45 = vpop.permute.xlu0 %4202  ;;  %v4094_v57 = vsel %vm2559_vm13, %v4088_v59, %v4089_v29  ;;  %v4011_v0 = vadd.f32 %v3987_v63, %v3843_v31  ;;  %v14921_v59 = vld [vmem:[#allocation78_spill] sm:$0xff]  ;;  %v3256_v23 = vsel %vm14926_vm4, %v14924_v49, 0.0  ;;  %v14927_v63 = vld [vmem:[#allocation132_spill] sm:$0xff]  ;;  %v14929_v31 = vrot.slane %v14917_v22, 7 }
 0x3d2   :  { %v4227_v58 = vadd.f32 %v4203_v45, %v4059_v50  ;;  %v3628_v54 = vadd.f32 %v11965_v36, %v14921_v59  ;;  %v12071_v36 = vsel %vm1139_vm5, %v3350_v14, %v3351_v60  ;;  %v3324_v35 = vadd.f32 %v11943_v12, %v3256_v23  ;;  %v14935_v23 = vld [vmem:[#allocation133_spill] sm:$0xff] }
 0x3d3   :  { %3878 = vrot.lane.b32.xlu1 %v3757_v16, %s7030_s7  ;;  %3616 = vrot.lane.b32.xlu0 %v3493_v26, %s7027_s10  ;;  %v3492_v56 = vsel %vm1468_vm7, %v3490_v51, %v14929_v31  ;;  %v3923_v59 = vrot.slane %v14917_v22, 2  ;;  %v14941_v31 = vld [vmem:[#allocation31_spill] sm:$0xff] }
 0x3d4   :  { %4372 = vmatprep.mubr.f32.mxu1 %v4227_v58  ;;  %v3821_v27 = vpop.permute.xlu1 %3820  ;;  %v3724_v48 = vadd.f32 %v14923_v1, %v3628_v54  ;;  %v3444_v14 = vadd.f32 %v11963_v42, %v3324_v35  ;;  %v14928_v58 = vld [vmem:[#allocation116_spill] sm:$0xff]  ;;  %v3756_v42 = vsel %vm1901_vm9, %v3754_v43, %v3755_v2  ;;  %v14932_v54 = vld [vmem:[#allocation75_spill] sm:$0xff]  ;;  %v3629_v35 = vadd.f32 %v14935_v23, %v11815_v6 }
 0x3d5   :  { %v12032_v24 = vpop.permute.xlu0 %3558  ;;  %v3924_v1 = vsel %vm2230_vm11, %v3922_v5, %v3923_v59  ;;  %v14937_v5 = vld [vmem:[#allocation94_spill] sm:$0xff] }
 0x3d6   :  { %v3892_v45 = vadd.f32 %v14927_v63, %v3724_v48  ;;  %v3580_v16 = vadd.f32 %v11983_v52, %v3444_v14  ;;  %v4091_v14 = vrot.slane %v14917_v22, 3  ;;  %v14936_v63 = vld [vmem:[#allocation129_spill] sm:$0xff] }
 0x3d7   :  { %3314 = vrot.lane.b32.xlu1 %v3220_v3, %s7031_s21  ;;  %4212 = vrot.lane.b32.xlu0 %v4094_v57, %s7033_s23  ;;  %v4090_v3 = vrot.slane %v11872_v25, 3  ;;  %s7036_s21 = smov [#allocation7]  }
 0x3d8   :  { %v12046_v7 = vpop.permute.xlu1 %3702 }
 0x3d9   :  { %v4155_v30 = vpop.permute.xlu0 %4154  ;;  %v4093_v43 = vsel %vm2559_vm13, %v4089_v29, %v4090_v3 }
 0x3da   :  { %v4179_v44 = vadd.f32 %v4155_v30, %v4011_v0 }
 0x3db   :  { %3830 = vrot.lane.b32.xlu1 %v14919_v46, %s7032_s22  ;;  %3568 = vrot.lane.b32.xlu0 %v14920_v28, %s7029_s2 }
 0x3dc   :  { %4373 = vmatmul.mubr.f32.gmra.mrb[14].mxu1 %v4179_v44  ;;  %v12052_v32 = vpop.permute.xlu1 %3424  ;;  %v14931_v44 = vld [vmem:[#allocation122_spill] sm:$0xff] }
 0x3dd   :  { %v4037_v40 = vpop.permute.xlu0 %4036 }
 0x3de   :  { %v4060_v26 = vadd.f32 %v4037_v40, %v3892_v45  ;;  %v14938_v45 = vrot.slane %v14937_v5, 1 }
 0x3df   :  { %3712 = vrot.lane.b32.xlu1 %v11872_v25, %s7029_s2  ;;  %4164 = vrot.lane.b32.xlu0 %v14922_v55, %s7034_s24  ;;  %v14933_v55 = vld [vmem:[#allocation121_spill] sm:$0xff] }
 0x3e0   :  { %v3989_v8 = vpop.permute.xlu1 %3988 }
 0x3e1   :  { %v12062_v17 = vpop.permute.xlu0 %3654 }
 0x3e3   :  { %3434 = vrot.lane.b32.xlu1 %v12071_v36, %s7027_s10  ;;  %4046 = vrot.lane.b32.xlu0 %v3925_v47, %s7032_s22 }
 0x3e4   :  { %v3871_v18 = vpop.permute.xlu1 %3870 }
 0x3e5   :  { %v12084_v50 = vpop.permute.xlu0 %3608 }
 0x3e7   :  { %3998 = vrot.lane.b32.xlu1 %v14928_v58, %s7033_s23  ;;  %3664 = vrot.lane.b32.xlu0 %v14898_v9, %s7030_s7  ;;  %v14930_v9 = vld [vmem:[#allocation25_spill] sm:$0xff]  ;;  %v3779_v58 = vsel %vm1901_vm9, %v3755_v2, %v14938_v45  ;;  %v14950_v45 = vrot.slane %v14937_v5, 3 }
 0x3e8   :  { %v12094_v13 = vpop.permute.xlu1 %3306  ;;  %v3676_v52 = vadd.f32 %v14930_v9, %v3580_v16  ;;  %v3725_v16 = vadd.f32 %v12046_v7, %v3629_v35  ;;  %v14944_v7 = vld [vmem:[#allocation130_spill] sm:$0xff] }
 0x3e9   :  { %v4205_v12 = vpop.permute.xlu0 %4204 }
 0x3ea   :  { %v4228_v10 = vadd.f32 %v4205_v12, %v4060_v26  ;;  %v3844_v30 = vadd.f32 %v3821_v27, %v3676_v52  ;;  %v14939_v26 = vld [vmem:[#allocation90_spill] sm:$0xff]  ;;  %v3893_v9 = vadd.f32 %v3871_v18, %v3725_v16  ;;  %v4092_v52 = vsel %vm2559_vm13, %v4090_v3, %v4091_v14 }
 0x3eb   :  { %3880 = vrot.lane.b32.xlu1 %v3756_v42, %s7030_s7  ;;  %3618 = vrot.lane.b32.xlu0 %v3492_v56, %s7027_s10  ;;  %v14940_v12 = vrot.slane %v14939_v26, 5  ;;  %v14945_v18 = vld [vmem:[#allocation134_spill] sm:$0xff] }
 0x3ec   :  { %4377 = vmatprep.mubr.f32.mxu1 %v4228_v10  ;;  %v3823_v57 = vpop.permute.xlu1 %3822  ;;  %v4012_v51 = vadd.f32 %v3989_v8, %v3844_v30  ;;  %v14934_v8 = vld [vmem:[#allocation73_spill] sm:$0xff]  ;;  %v14942_v30 = vld [vmem:[#allocation95_spill] sm:$0xff]  ;;  %v14946_v3 = vld [vmem:[#allocation70_spill] sm:$0xff] }
 0x3ed   :  { %v12108_v0 = vpop.permute.xlu0 %3560  ;;  %v3209_v48 = vrot.slane %v14934_v8, 5  ;;  %vm14943_vm12 = vcmp.lt.s32.totalorder %v14942_v30, 32 }
 0x3ef   :  { %3570 = vrot.lane.b32.xlu1 %v14931_v44, %s7029_s2  ;;  %4214 = vrot.lane.b32.xlu0 %v4093_v43, %s7033_s23  ;;  %v3230_v6 = vsel %vm810_vm1, %v14940_v12, %v3209_v48  ;;  %v3803_v43 = vsel %vm14943_vm12, %v3779_v58, 0.0  ;;  %v4115_v58 = vsel %vm2559_vm13, %v4091_v14, %v14950_v45  ;;  %v14951_v12 = vld [vmem:[#allocation98_spill] sm:$0xff] }
 0x3f0   :  { %v3705_v46 = vpop.permute.xlu1 %3704  ;;  %v3325_v56 = vadd.f32 %v14941_v31, %v3230_v6  ;;  %vm14952_vm15 = vcmp.lt.s32.totalorder %v14951_v12, 32 }
 0x3f1   :  { %v4157_v28 = vpop.permute.xlu0 %4156 }
 0x3f2   :  { %v4180_v40 = vadd.f32 %v4157_v28, %v4012_v51  ;;  %v3445_v2 = vadd.f32 %v14944_v7, %v3325_v56 }
 0x3f3   :  { %4166 = vrot.lane.b32.xlu1 %v14932_v54, %s7034_s24  ;;  %3832 = vrot.lane.b32.xlu0 %v14933_v55, %s7032_s22  ;;  %v14947_v55 = vrot.slane %v14937_v5, 2  ;;  %v3210_v5 = vrot.slane %v11493_v20, 5 }
 0x3f4   :  { %4378 = vmatmul.mubr.f32.gmra.mrb[16].mxu1 %v4180_v40  ;;  %v12120_v27 = vpop.permute.xlu1 %3426  ;;  %v3581_v40 = vadd.f32 %v12032_v24, %v3445_v2 }
 0x3f5   :  { %v4039_v29 = vpop.permute.xlu0 %4038 }
 0x3f6   :  { %v4061_v44 = vadd.f32 %v4039_v29, %v3893_v9  ;;  %v3677_v8 = vadd.f32 %v12062_v17, %v3581_v40  ;;  %v3229_v9 = vsel %vm810_vm1, %v3209_v48, %v3210_v5 }
 0x3f7   :  { %4048 = vrot.lane.b32.xlu1 %v3924_v1, %s7032_s22  ;;  %3714 = vrot.lane.b32.xlu0 %v14917_v22, %s7029_s2  ;;  %v3947_v1 = vsel %vm2230_vm11, %v3923_v59, %v14947_v55 }
 0x3f8   :  { %v3991_v47 = vpop.permute.xlu1 %3990  ;;  %v3845_v35 = vadd.f32 %v3823_v57, %v3677_v8  ;;  %v4139_v57 = vsel %vm14952_vm15, %v4115_v58, 0.0  ;;  %vm15019_vm15 = vcmp.ge.s32.totalorder %v14840_v53, 0 }
 0x3f9   :  { %v3657_v49 = vpop.permute.xlu0 %3656 }
 0x3fa   :  { %v4013_v59 = vadd.f32 %v3991_v47, %v3845_v35  ;;  %v3630_v47 = vadd.f32 %v12084_v50, %v11993_v37 }
 0x3fb   :  { %4000 = vrot.lane.b32.xlu1 %v14936_v63, %s7033_s23  ;;  %3666 = vrot.lane.b32.xlu0 %v11538_v41, %s7030_s7  ;;  %v14948_v63 = vld [vmem:[#allocation96_spill] sm:$0xff] }
 0x3fc   :  { %v3873_v10 = vpop.permute.xlu1 %3872  ;;  %vm14949_vm0 = vcmp.lt.s32.totalorder %v14948_v63, 32  ;;  %v3726_v56 = vadd.f32 %v3705_v46, %v3630_v47 }
 0x3fd   :  { %v12144_v42 = vpop.permute.xlu0 %3610  ;;  %v3971_v24 = vsel %vm14949_vm0, %v3947_v1, 0.0  ;;  %vm15014_vm0 = vcmp.ge.s32.totalorder %v14925_v19, 0 }
 0x3fe   :  { %v3894_v7 = vadd.f32 %v3873_v10, %v3726_v56  ;;  %v3631_v63 = vadd.f32 %v12144_v42, %v12071_v36 }
 0x3ff   :  { %4216 = vrot.lane.b32.xlu1 %v4092_v52, %s7033_s23  ;;  %3882 = vrot.lane.b32.xlu0 %v3803_v43, %s7030_s7 }
 0x400   :  { %v12154_v51 = vpop.permute.xlu1 %3308 }
 0x401   :  { %v4207_v28 = vpop.permute.xlu0 %4206 }
 0x402   :  { %v4229_v54 = vadd.f32 %v4207_v28, %v4061_v44 }
 0x403   :  { %4168 = vrot.lane.b32.xlu1 %v14945_v18, %s7034_s24  ;;  %3834 = vrot.lane.b32.xlu0 %v14946_v3, %s7032_s22 }
 0x404   :  { %4382 = vmatprep.mubr.f32.mxu1 %v4229_v54  ;;  %v3825_v29 = vpop.permute.xlu1 %3824 }
 0x405   :  { %v3563_v23 = vpop.permute.xlu0 %3562 }
 0x407   :  { %4002 = vrot.lane.b32.xlu1 %v11845_v38, %s7033_s23  ;;  %4050 = vrot.lane.b32.xlu0 %v3971_v24, %s7032_s22 }
 0x408   :  { %v3707_v16 = vpop.permute.xlu1 %3706 }
 0x409   :  { %v4159_v17 = vpop.permute.xlu0 %4158 }
 0x40a   :  { %v4181_v26 = vadd.f32 %v4159_v17, %v4013_v59 }
 0x40b   :  { %4170 = vrot.lane.b32.xlu1 %v11929_v39, %s7034_s24  ;;  %4218 = vrot.lane.b32.xlu0 %v4139_v57, %s7033_s23  ;;  %v14953_v39 = vld [vmem:[#allocation79_spill] sm:$0xff] }
 0x40c   :  { %4383 = vmatmul.mubr.f32.gmra.mrb[18].mxu1 %v4181_v26  ;;  %v12180_v38 = vpop.permute.xlu1 %3428  ;;  %v3326_v43 = vadd.f32 %v14953_v39, %v3229_v9  ;;  %v3352_v9 = vrot.slane %v11629_v33, 6  ;;  %v14955_v39 = vld [vmem:[#allocation67_spill] sm:$0xff] }
 0x40d   :  { %v4041_v6 = vpop.permute.xlu0 %4040  ;;  %vm14956_vm3 = vcmp.ge.s32.totalorder %v14955_v39, 0 }
 0x40e   :  { %v3446_v2 = vadd.f32 %v12052_v32, %v3326_v43  ;;  %v4062_v44 = vadd.f32 %v4041_v6, %v3894_v7 }
 0x410   :  { %v3993_v31 = vpop.permute.xlu1 %3992  ;;  %v3582_v40 = vadd.f32 %v12108_v0, %v3446_v2  ;;  %v3727_v0 = vadd.f32 %v3707_v16, %v3631_v63 }
 0x411   :  { %v3659_v14 = vpop.permute.xlu0 %3658 }
 0x412   :  { %v3678_v18 = vadd.f32 %v3657_v49, %v3582_v40  ;;  %v14954_v49 = vrot.slane %v11378_v15, 5 }
 0x414   :  { %v3875_v52 = vpop.permute.xlu1 %3874  ;;  %v3846_v46 = vadd.f32 %v3825_v29, %v3678_v18  ;;  %v3228_v24 = vsel %vm810_vm1, %v3210_v5, %v14954_v49 }
 0x415   :  { %v3613_v30 = vpop.permute.xlu0 %3612  ;;  %v3327_v58 = vadd.f32 %v12094_v13, %v3228_v24  ;;  %v3895_v59 = vadd.f32 %v3875_v52, %v3727_v0 }
 0x416   :  { %v4014_v48 = vadd.f32 %v3993_v31, %v3846_v46 }
 0x417   :  { %v3447_v17 = vadd.f32 %v12120_v27, %v3327_v58 }
 0x418   :  { %v12189_v28 = vpop.permute.xlu1 %3310 }
 0x419   :  { %v4209_v20 = vpop.permute.xlu0 %4208  ;;  %v3583_v6 = vadd.f32 %v3563_v23, %v3447_v17  ;;  %v3359_v23 = vsel %vm1139_vm5, %v3351_v60, %v3352_v9 }
 0x41a   :  { %v4230_v54 = vadd.f32 %v4209_v20, %v4062_v44 }
 0x41b   :  { %v3679_v36 = vadd.f32 %v3659_v14, %v3583_v6  ;;  %v3400_v14 = vsel %vm14956_vm3, %v3359_v23, 0.0  ;;  %v3354_v23 = vrot.slane %v11872_v25, 6 }
 0x41c   :  { %4387 = vmatprep.mubr.f32.mxu1 %v4230_v54  ;;  %v3827_v37 = vpop.permute.xlu1 %3826  ;;  %v3632_v2 = vadd.f32 %v3613_v30, %v3400_v14  ;;  %v14957_v54 = vld [vmem:[#allocation39_spill] sm:$0xff]  ;;  %v14959_v14 = vld [vmem:[#allocation21_spill] sm:$0xff] }
 0x41d   :  { %v3565_v50 = vpop.permute.xlu0 %3564  ;;  %v3847_v16 = vadd.f32 %v3827_v37, %v3679_v36  ;;  %v3328_v33 = vadd.f32 %v12154_v51, %v14957_v54  ;;  %v3353_v51 = vrot.slane %v11734_v4, 6 }
 0x41f   :  { %v3448_v37 = vadd.f32 %v12180_v38, %v3328_v33  ;;  %v3358_v38 = vsel %vm1139_vm5, %v3352_v9, %v3353_v51 }
 0x420   :  { %v3709_v3 = vpop.permute.xlu1 %3708 }
 0x421   :  { %v4161_v55 = vpop.permute.xlu0 %4160  ;;  %v3728_v44 = vadd.f32 %v3709_v3, %v3632_v2 }
 0x422   :  { %v4182_v1 = vadd.f32 %v4161_v55, %v4014_v48  ;;  %v3584_v55 = vadd.f32 %v3565_v50, %v3448_v37 }
 0x424   :  { %4388 = vmatmul.mubr.f32.gmra.mrb[20].mxu1 %v4182_v1  ;;  %v12192_v10 = vpop.permute.xlu1 %3430 }
 0x425   :  { %v4043_v32 = vpop.permute.xlu0 %4042 }
 0x426   :  { %v4063_v26 = vadd.f32 %v4043_v32, %v3895_v59  ;;  %v14958_v59 = vld [vmem:[#allocation64_spill] sm:$0xff] }
 0x428   :  { %v3995_v8 = vpop.permute.xlu1 %3994 }
 0x429   :  { %v3661_v35 = vpop.permute.xlu0 %3660  ;;  %v4015_v47 = vadd.f32 %v3995_v8, %v3847_v16 }
 0x42a   :  { %v3680_v1 = vadd.f32 %v3661_v35, %v3584_v55  ;;  %v3329_v35 = vadd.f32 %v12189_v28, %v14958_v59  ;;  %v14960_v55 = vld [vmem:[#allocation110_spill] sm:$0xff] }
 0x42c   :  { %v3877_v29 = vpop.permute.xlu1 %3876 }
 0x42d   :  { %v3615_v45 = vpop.permute.xlu0 %3614  ;;  %v3896_v18 = vadd.f32 %v3877_v29, %v3728_v44 }
 0x42e   :  { %v3633_v17 = vadd.f32 %v3615_v45, %v3358_v38 }
 0x431   :  { %v12202_v12 = vpop.permute.xlu1 %3312  ;;  %v4211_v57 = vpop.permute.xlu0 %4210 }
 0x432   :  { %v4231_v31 = vadd.f32 %v4211_v57, %v4063_v26  ;;  %v3449_v26 = vadd.f32 %v12192_v10, %v3329_v35  ;;  %v3357_v10 = vsel %vm1139_vm5, %v3353_v51, %v3354_v23 }
 0x434   :  { %4392 = vmatprep.mubr.f32.mxu1 %v4231_v31 }
 0x435   :  { %v3829_v42 = vpop.permute.xlu1 %3828  ;;  %v3567_v15 = vpop.permute.xlu0 %3566 }
 0x436   :  { %v3848_v63 = vadd.f32 %v3829_v42, %v3680_v1  ;;  %v3585_v36 = vadd.f32 %v3567_v15, %v3449_v26 }
 0x439   :  { %v3711_v5 = vpop.permute.xlu1 %3710  ;;  %v4163_v56 = vpop.permute.xlu0 %4162 }
 0x43a   :  { %v4183_v13 = vadd.f32 %v4163_v56, %v4015_v47  ;;  %v3729_v57 = vadd.f32 %v3711_v5, %v3633_v17 }
 0x43c   :  { %4393 = vmatmul.mubr.f32.gmra.mrb[22].mxu1 %v4183_v13 }
 0x43d   :  { %v3433_v52 = vpop.permute.xlu1 %3432  ;;  %v4045_v27 = vpop.permute.xlu0 %4044 }
 0x43e   :  { %v4064_v46 = vadd.f32 %v4045_v27, %v3896_v18 }
 0x441   :  { %v3997_v43 = vpop.permute.xlu1 %3996  ;;  %v3663_v7 = vpop.permute.xlu0 %3662 }
 0x442   :  { %v4016_v30 = vadd.f32 %v3997_v43, %v3848_v63  ;;  %v3681_v16 = vadd.f32 %v3663_v7, %v3585_v36  ;;  %v3330_v43 = vadd.f32 %v12202_v12, %v14959_v14  ;;  %v14961_v12 = vrot.slane %v14917_v22, 6 }
 0x444   :  { %v3450_v2 = vadd.f32 %v3433_v52, %v3330_v43  ;;  %v3356_v52 = vsel %vm1139_vm5, %v3354_v23, %v14961_v12 }
 0x445   :  { %v3879_v20 = vpop.permute.xlu1 %3878  ;;  %v3617_v40 = vpop.permute.xlu0 %3616 }
 0x446   :  { %v3897_v42 = vadd.f32 %v3879_v20, %v3729_v57  ;;  %v3634_v7 = vadd.f32 %v3617_v40, %v3357_v10 }
 0x449   :  { %v3315_v41 = vpop.permute.xlu1 %3314  ;;  %v4213_v48 = vpop.permute.xlu0 %4212 }
 0x44a   :  { %v4232_v60 = vadd.f32 %v4213_v48, %v4064_v46 }
 0x44c   :  { %4397 = vmatprep.mubr.f32.mxu1 %v4232_v60  ;;  %v3331_v60 = vadd.f32 %v3315_v41, %v14960_v55 }
 0x44d   :  { %v3831_v32 = vpop.permute.xlu1 %3830  ;;  %v3569_v8 = vpop.permute.xlu0 %3568 }
 0x44e   :  { %v3849_v13 = vadd.f32 %v3831_v32, %v3681_v16  ;;  %v3586_v33 = vadd.f32 %v3569_v8, %v3450_v2 }
 0x451   :  { %v3713_v3 = vpop.permute.xlu1 %3712  ;;  %v4165_v0 = vpop.permute.xlu0 %4164 }
 0x452   :  { %v4184_v49 = vadd.f32 %v4165_v0, %v4016_v30  ;;  %v3730_v44 = vadd.f32 %v3713_v3, %v3634_v7 }
 0x454   :  { %4398 = vmatmul.mubr.f32.gmra.mrb[24].mxu1 %v4184_v49 }
 0x455   :  { %v3435_v24 = vpop.permute.xlu1 %3434  ;;  %v4047_v29 = vpop.permute.xlu0 %4046 }
 0x456   :  { %v4065_v4 = vadd.f32 %v4047_v29, %v3897_v42  ;;  %v3451_v63 = vadd.f32 %v3435_v24, %v3331_v60 }
 0x459   :  { %v3999_v58 = vpop.permute.xlu1 %3998  ;;  %v3665_v50 = vpop.permute.xlu0 %3664 }
 0x45a   :  { %v4017_v9 = vadd.f32 %v3999_v58, %v3849_v13  ;;  %v3682_v25 = vadd.f32 %v3665_v50, %v3586_v33 }
 0x45d   :  { %v3881_v6 = vpop.permute.xlu1 %3880  ;;  %v3619_v31 = vpop.permute.xlu0 %3618 }
 0x45e   :  { %v3898_v18 = vadd.f32 %v3881_v6, %v3730_v44  ;;  %v3635_v8 = vadd.f32 %v3619_v31, %v3356_v52  ;;  %v12233_v52 = vld [vmem:[%s13659_s4] sm:$0x7] }
 0x461   :  { %v3571_v47 = vpop.permute.xlu1 %3570  ;;  %v4215_v56 = vpop.permute.xlu0 %4214 }
 0x462   :  { %v4233_v27 = vadd.f32 %v4215_v56, %v4065_v4  ;;  %v3587_v0 = vadd.f32 %v3571_v47, %v3451_v63 }
 0x464   :  { %4402 = vmatprep.mubr.f32.mxu1 %v4233_v27 }
 0x465   :  { %v4167_v39 = vpop.permute.xlu1 %4166  ;;  %v3833_v28 = vpop.permute.xlu0 %3832 }
 0x466   :  { %v4185_v45 = vadd.f32 %v4167_v39, %v4017_v9  ;;  %v3850_v1 = vadd.f32 %v3833_v28, %v3682_v25 }
 0x468   :  { %4403 = vmatmul.mubr.f32.gmra.mrb[26].mxu1 %v4185_v45 }
 0x469   :  { %v4049_v5 = vpop.permute.xlu1 %4048  ;;  %v3715_v15 = vpop.permute.xlu0 %3714 }
 0x46a   :  { %v4066_v37 = vadd.f32 %v4049_v5, %v3898_v18  ;;  %v3731_v51 = vadd.f32 %v3715_v15, %v3635_v8 }
 0x46d   :  { %v4001_v20 = vpop.permute.xlu1 %4000  ;;  %v3667_v54 = vpop.permute.xlu0 %3666 }
 0x46e   :  { %v4018_v30 = vadd.f32 %v4001_v20, %v3850_v1  ;;  %v3683_v29 = vadd.f32 %v3667_v54, %v3587_v0 }
 0x471   :  { %v4217_v46 = vpop.permute.xlu1 %4216  ;;  %v3883_v48 = vpop.permute.xlu0 %3882 }
 0x472   :  { %v4234_v32 = vadd.f32 %v4217_v46, %v4066_v37  ;;  %v3899_v58 = vadd.f32 %v3883_v48, %v3731_v51 }
 0x474   :  { %4407 = vmatprep.mubr.f32.mxu1 %v4234_v32 }
 0x475   :  { %v4169_v40 = vpop.permute.xlu1 %4168  ;;  %v3835_v3 = vpop.permute.xlu0 %3834 }
 0x476   :  { %v4186_v49 = vadd.f32 %v4169_v40, %v4018_v30  ;;  %v3851_v50 = vadd.f32 %v3835_v3, %v3683_v29  ;;  %v14962_v40 = vld [vmem:[#allocation12_spill] sm:$0xff] }
 0x477   :  { %v12237_v3 = vrot.slane %v12233_v52, %v14962_v40 }
 0x478   :  { %4408 = vmatmul.mubr.f32.gmra.mrb[28].mxu1 %v4186_v49 }
 0x479   :  { %v4003_v38 = vpop.permute.xlu1 %4002  ;;  %v4051_v41 = vpop.permute.xlu0 %4050 }
 0x47a   :  { %v4019_v24 = vadd.f32 %v4003_v38, %v3851_v50  ;;  %v4067_v59 = vadd.f32 %v4051_v41, %v3899_v58 }
 0x47d   :  { %v4171_v35 = vpop.permute.xlu1 %4170  ;;  %v4219_v17 = vpop.permute.xlu0 %4218 }
 0x47e   :  { %v4187_v22 = vadd.f32 %v4171_v35, %v4019_v24  ;;  %v4235_v26 = vadd.f32 %v4219_v17, %v4067_v59 }
 0x480   :  { %4412 = vmatprep.mubr.f32.mxu1 %v4235_v26 }
 0x481   :  { %4413 = vmatmul.mubr.f32.gmra.mrb[30].mxu1 %v4187_v22 }
 0x48b   :  { %v6406_v57 = vpop.f32.mrb[0].mxu1 }
 0x48c   :  { %v6407_v6 = vpop.f32.mrb[1].mxu1 }
 0x48d   :  { %v6408_v31 = vadd.f32 %v6407_v6, %v6406_v57 }
 0x48f   :  { %v6409_v36 = vpop.f32.mrb[2].mxu1  ;;  %v12243_v0 = vadd.f32 %v6408_v31, %v12237_v3 }
 0x490   :  { %v6410_v42 = vpop.f32.mrb[3].mxu1 }
 0x491   :  { %v6411_v16 = vadd.f32 %v6410_v42, %v6409_v36  ;;  %v4418_v38 = vmul.f32 %v12243_v0, %v12243_v0 }
 0x493   :  { %v6412_v4 = vpop.f32.mrb[4].mxu1  ;;  %v12240_v8 = vadd.f32 %v6411_v16, %v12237_v3 }
 0x494   :  { %v6413_v47 = vpop.f32.mrb[5].mxu1 }
 0x495   :  { %v6414_v56 = vadd.f32 %v6413_v47, %v6412_v4  ;;  %v4419_v51 = vmul.f32 %v12240_v8, %v12240_v8  ;;  %v4434_v58 = vadd.f32 %v12240_v8, %v12243_v0 }
 0x497   :  { %v6415_v13 = vpop.f32.mrb[6].mxu1  ;;  %v12246_v49 = vadd.f32 %v6414_v56, %v12237_v3  ;;  %v4455_v24 = vadd.f32 %v4419_v51, %v4418_v38 }
 0x498   :  { %v6416_v27 = vpop.f32.mrb[7].mxu1 }
 0x499   :  { %v6417_v9 = vadd.f32 %v6416_v27, %v6415_v13  ;;  %v4420_v41 = vmul.f32 %v12246_v49, %v12246_v49  ;;  %v4435_v35 = vadd.f32 %v4434_v58, %v12246_v49 }
 0x49b   :  { %v6418_v23 = vpop.f32.mrb[8].mxu1  ;;  %v12251_v29 = vadd.f32 %v6417_v9, %v12237_v3  ;;  %v4456_v22 = vadd.f32 %v4455_v24, %v4420_v41 }
 0x49c   :  { %v6419_v39 = vpop.f32.mrb[9].mxu1 }
 0x49d   :  { %v6420_v28 = vadd.f32 %v6419_v39, %v6418_v23  ;;  %v4421_v59 = vmul.f32 %v12251_v29, %v12251_v29  ;;  %v4436_v26 = vadd.f32 %v4435_v35, %v12251_v29 }
 0x49f   :  { %v6421_v45 = vpop.f32.mrb[10].mxu1  ;;  %v12260_v50 = vadd.f32 %v6420_v28, %v12237_v3  ;;  %v4457_v36 = vadd.f32 %v4456_v22, %v4421_v59 }
 0x4a0   :  { %v6422_v10 = vpop.f32.mrb[11].mxu1 }
 0x4a1   :  { %v6423_v5 = vadd.f32 %v6422_v10, %v6421_v45  ;;  %v4422_v57 = vmul.f32 %v12260_v50, %v12260_v50  ;;  %v4437_v16 = vadd.f32 %v4436_v26, %v12260_v50 }
 0x4a3   :  { %v6424_v15 = vpop.f32.mrb[12].mxu1  ;;  %v12266_v17 = vadd.f32 %v6423_v5, %v12237_v3  ;;  %v4458_v13 = vadd.f32 %v4457_v36, %v4422_v57 }
 0x4a4   :  { %v6425_v14 = vpop.f32.mrb[13].mxu1 }
 0x4a5   :  { %v6426_v43 = vadd.f32 %v6425_v14, %v6424_v15  ;;  %v4423_v4 = vmul.f32 %v12266_v17, %v12266_v17  ;;  %v4438_v27 = vadd.f32 %v4437_v16, %v12266_v17 }
 0x4a7   :  { %v12272_v6 = vadd.f32 %v6426_v43, %v12237_v3  ;;  %v4459_v39 = vadd.f32 %v4458_v13, %v4423_v4 }
 0x4a9   :  { %v4424_v9 = vmul.f32 %v12272_v6, %v12272_v6  ;;  %v4439_v28 = vadd.f32 %v4438_v27, %v12272_v6 }
 0x4ab   :  { %v4460_v5 = vadd.f32 %v4459_v39, %v4424_v9 }
 0x4af   :  { %v6427_v7 = vpop.f32.mrb[14].mxu1 }
 0x4b0   :  { %v6428_v2 = vpop.f32.mrb[15].mxu1 }
 0x4b1   :  { %v6429_v44 = vadd.f32 %v6428_v2, %v6427_v7 }
 0x4b3   :  { %v12278_v47 = vadd.f32 %v6429_v44, %v12237_v3 }
 0x4b5   :  { %v4425_v45 = vmul.f32 %v12278_v47, %v12278_v47  ;;  %v4440_v15 = vadd.f32 %v4439_v28, %v12278_v47 }
 0x4b7   :  { %v4461_v7 = vadd.f32 %v4460_v5, %v4425_v45 }
 0x4c7   :  { %v6430_v20 = vpop.f32.mrb[16].mxu1 }
 0x4c8   :  { %v6431_v54 = vpop.f32.mrb[17].mxu1 }
 0x4c9   :  { %v6432_v33 = vadd.f32 %v6431_v54, %v6430_v20 }
 0x4cb   :  { %v12284_v23 = vadd.f32 %v6432_v33, %v12237_v3 }
 0x4cd   :  { %v4426_v14 = vmul.f32 %v12284_v23, %v12284_v23  ;;  %v4441_v2 = vadd.f32 %v4440_v15, %v12284_v23 }
 0x4cf   :  { %v4462_v54 = vadd.f32 %v4461_v7, %v4426_v14 }
 0x4df   :  { %v6433_v18 = vpop.f32.mrb[18].mxu1 }
 0x4e0   :  { %v6434_v25 = vpop.f32.mrb[19].mxu1 }
 0x4e1   :  { %v6435_v37 = vadd.f32 %v6434_v25, %v6433_v18 }
 0x4e3   :  { %v12290_v10 = vadd.f32 %v6435_v37, %v12237_v3 }
 0x4e5   :  { %v4427_v44 = vmul.f32 %v12290_v10, %v12290_v10  ;;  %v4442_v33 = vadd.f32 %v4441_v2, %v12290_v10 }
 0x4e7   :  { %v4463_v37 = vadd.f32 %v4462_v54, %v4427_v44 }
 0x4f7   :  { %v6436_v46 = vpop.f32.mrb[20].mxu1 }
 0x4f8   :  { %v6437_v48 = vpop.f32.mrb[21].mxu1 }
 0x4f9   :  { %v6438_v55 = vadd.f32 %v6437_v48, %v6436_v46 }
 0x4fb   :  { %v12296_v43 = vadd.f32 %v6438_v55, %v12237_v3 }
 0x4fd   :  { %v4428_v18 = vmul.f32 %v12296_v43, %v12296_v43  ;;  %v4443_v46 = vadd.f32 %v4442_v33, %v12296_v43 }
 0x50f   :  { %v6439_v60 = vpop.f32.mrb[22].mxu1 }
 0x510   :  { %v6440_v1 = vpop.f32.mrb[23].mxu1 }
 0x511   :  { %v6441_v32 = vadd.f32 %v6440_v1, %v6439_v60  ;;  %v4464_v60 = vadd.f32 %v4463_v37, %v4428_v18 }
 0x513   :  { %v4395_v20 = vadd.f32 %v6441_v32, %v12237_v3 }
 0x515   :  { %v4429_v48 = vmul.f32 %v4395_v20, %v4395_v20  ;;  %v4444_v1 = vadd.f32 %v4443_v46, %v4395_v20 }
 0x517   :  { %v4465_v51 = vadd.f32 %v4464_v60, %v4429_v48 }
 0x527   :  { %v6442_v63 = vpop.f32.mrb[24].mxu1 }
 0x528   :  { %v6443_v30 = vpop.f32.mrb[25].mxu1 }
 0x529   :  { %v6444_v12 = vadd.f32 %v6443_v30, %v6442_v63 }
 0x52b   :  { %v12306_v25 = vadd.f32 %v6444_v12, %v12237_v3 }
 0x52d   :  { %v4430_v32 = vmul.f32 %v12306_v25, %v12306_v25  ;;  %v4445_v38 = vadd.f32 %v4444_v1, %v12306_v25 }
 0x52f   :  { %v4466_v58 = vadd.f32 %v4465_v51, %v4430_v32 }
 0x53b   :  { %v6445_v31 = vpop.f32.mrb[26].mxu1 }
 0x53c   :  { %v6446_v42 = vpop.f32.mrb[27].mxu1 }
 0x53d   :  { %v6447_v56 = vadd.f32 %v6446_v42, %v6445_v31 }
 0x53f   :  { %v12310_v55 = vadd.f32 %v6447_v56, %v12237_v3 }
 0x541   :  { %v4431_v12 = vmul.f32 %v12310_v55, %v12310_v55  ;;  %v4446_v24 = vadd.f32 %v4445_v38, %v12310_v55 }
 0x543   :  { %v4467_v35 = vadd.f32 %v4466_v58, %v4431_v12 }
 0x54b   :  { %v6448_v63 = vpop.f32.mrb[28].mxu1 }
 0x54c   :  { %v6449_v30 = vpop.f32.mrb[29].mxu1 }
 0x54d   :  { %v6450_v41 = vadd.f32 %v6449_v30, %v6448_v63  ;;  %v14963_v63 = vld [vmem:[#allocation13_spill] sm:$0xff] }
 0x54f   :  { %v4410_v59 = vadd.f32 %v6450_v41, %v12237_v3 }
 0x551   :  { %v4432_v22 = vmul.f32 %v4410_v59, %v4410_v59  ;;  %v4447_v26 = vadd.f32 %v4446_v24, %v4410_v59 }
 0x553   :  { %v4468_v57 = vadd.f32 %v4467_v35, %v4432_v22  ;;  %v14964_v22 = vld [vmem:[#allocation14_spill] sm:$0xff] }
 0x554   :  { %v6451_v31 = vpop.f32.mrb[30].mxu1 }
 0x555   :  { %v6452_v36 = vpop.f32.mrb[31].mxu1 }
 0x556   :  { %v6453_v42 = vadd.f32 %v6452_v36, %v6451_v31 }
 0x558   :  { %v4415_v16 = vadd.f32 %v6453_v42, %v12237_v3 }
 0x55a   :  { %v4433_v4 = vmul.f32 %v4415_v16, %v4415_v16  ;;  %v4448_v56 = vadd.f32 %v4447_v26, %v4415_v16 }
 0x55c   :  { %v4449_v13 = vrot.slane %v4448_v56, 4  ;;  %v4469_v27 = vadd.f32 %v4468_v57, %v4433_v4 }
 0x55e   :  { %v4450_v9 = vadd.f32 %v4449_v13, %v4448_v56  ;;  %v4470_v39 = vrot.slane %v4469_v27, 4 }
 0x560   :  { %v4451_v28 = vrot.slane %v4450_v9, 2  ;;  %v4471_v45 = vadd.f32 %v4470_v39, %v4469_v27 }
 0x562   :  { %v4452_v5 = vadd.f32 %v4451_v28, %v4450_v9  ;;  %v4472_v15 = vrot.slane %v4471_v45, 2 }
 0x564   :  { %v4453_v14 = vrot.slane %v4452_v5, 1  ;;  %v4473_v7 = vadd.f32 %v4472_v15, %v4471_v45 }
 0x566   :  { %v4454_v2 = vadd.f32 %v4453_v14, %v4452_v5  ;;  %v4474_v44 = vrot.slane %v4473_v7, 1 }
 0x568   :  { %v4475_v54 = vadd.f32 %v4474_v44, %v4473_v7  ;;  %v4476_v33 = vmul.f32 0.0078125, %v4454_v2 }
 0x56a   :  { %v4477_v18 = vmul.f32 0.0078125, %v4475_v54  ;;  %v4478_v37 = vmul.f32 %v4476_v33, %v4476_v33 }
 0x56c   :  { %v4479_v46 = vsub.f32 %v4477_v18, %v4478_v37 }
 0x56e   :  { %v4480_v3 = vmax.f32 %v4479_v46, 0.0 }
 0x570   :  { %v4481_v48 = vadd.f32 1e-05, %v4480_v3 }
 0x572   :  { %6945 = vrsqrt.f32 %v4481_v48 }
 0x57c   :  { %v6946_v60 = vpop.eup %6945 }
 0x57d   :  { %v4483_v1 = vmul.f32 %v6946_v60, %v12233_v52 }
 0x57f   :  { %v4484_v32 = vmul.f32 %v4483_v1, %v4476_v33  ;;  %v12322_v30 = vrot.slane %v4483_v1, %v14963_v63  ;;  %v5124_v63 = vld [vmem:[#allocation2 + $0x98] sm:$0xff] }
 0x581   :  { %v4486_v51 = vrot.slane %v4484_v32, 7  ;;  %v4508_v38 = vmul.f32 %v12322_v30, %v4415_v16  ;;  %v4504_v12 = vmul.f32 %v12322_v30, %v4395_v20  ;;  %v4493_v58 = vmul.f32 %v12322_v30, %v12243_v0 }
 0x582   :  { %v4494_v24 = vmul.f32 %v12322_v30, %v12240_v8  ;;  %v4495_v35 = vmul.f32 %v12322_v30, %v12246_v49  ;;  %v4497_v57 = vmul.f32 %v12322_v30, %v12260_v50  ;;  %v4498_v20 = vmul.f32 %v12322_v30, %v12266_v17 }
 0x583   :  { %v4488_v41 = vsub.f32 %v12233_v52, %v4486_v51  ;;  %v12341_v52 = vmul.f32 %v12322_v30, %v4410_v59  ;;  %v4496_v0 = vmul.f32 %v12322_v30, %v12251_v29  ;;  %v4501_v8 = vmul.f32 %v12322_v30, %v12284_v23 }
 0x584   :  { %v4502_v49 = vmul.f32 %v12322_v30, %v12290_v10  ;;  %v4499_v31 = vmul.f32 %v12322_v30, %v12272_v6  ;;  %v4503_v56 = vmul.f32 %v12322_v30, %v12296_v43  ;;  %v4500_v48 = vmul.f32 %v12322_v30, %v12278_v47 }
 0x585   :  { %v12334_v26 = vrot.slane %v4488_v41, %v14964_v22  ;;  %v5123_v22 = vld [vmem:[#allocation2 + $0x90] sm:$0xff] }
 0x587   :  { %v12352_v50 = vadd.f32 %v12334_v26, %v4508_v38  ;;  %v4524_v17 = vadd.f32 %v12334_v26, %v4504_v12  ;;  %v4513_v59 = vadd.f32 %v12334_v26, %v4493_v58  ;;  %v4514_v36 = vadd.f32 %v12334_v26, %v4494_v24 }
 0x588   :  { %v4515_v29 = vadd.f32 %v12334_v26, %v4495_v35  ;;  %v4517_v42 = vadd.f32 %v12334_v26, %v4497_v57  ;;  %v4518_v23 = vadd.f32 %v12334_v26, %v4498_v20  ;;  %v4516_v10 = vadd.f32 %v12334_v26, %v4496_v0 }
 0x589   :  { %v12361_v16 = vmax.f32 %v4524_v17, 0.0  ;;  %v12363_v6 = vmax.f32 %v4513_v59, 0.0  ;;  %v12365_v4 = vmax.f32 %v4514_v36, 0.0  ;;  %v4521_v7 = vadd.f32 %v12334_v26, %v4501_v8 }
 0x58a   :  { %v12369_v13 = vmax.f32 %v4515_v29, 0.0  ;;  %v12371_v27 = vmax.f32 %v4517_v42, 0.0  ;;  %v12373_v9 = vmax.f32 %v4518_v23, 0.0  ;;  %v12375_v39 = vmax.f32 %v4516_v10, 0.0 }
 0x58b   :  { %14965 = vst [vmem:[#allocation60_spill] sm:$0xff] %v12361_v16  ;;  %14966 = vst [vmem:[#allocation15_spill] sm:$0xff] %v12363_v6  ;;  %4815 = vrot.lane.b32.xlu0 %v12361_v16, %s7034_s24  ;;  %4801 = vrot.lane.b32.xlu1 %v12363_v6, %s7034_s24  ;;  %v13967_v28 = vrot.slane %v12363_v6, 2  ;;  %v4930_v45 = vrot.slane %v12365_v4, 2  ;;  %v13976_v43 = vrot.slane %v12363_v6, 6  ;;  %v4626_v5 = vrot.slane %v12365_v4, 6 }
 0x58c   :  { %14967 = vst [vmem:[#allocation74_spill] sm:$0xff] %v12373_v9  ;;  %v4549_v15 = vrot.slane %v12371_v27, 5  ;;  %v4550_v14 = vrot.slane %v12373_v9, 5  ;;  %v4931_v2 = vrot.slane %v12369_v13, 2  ;;  %v4522_v33 = vadd.f32 %v12334_v26, %v4502_v49 }
 0x58d   :  { %v4959_v44 = vsel %vm2230_vm11, %v13967_v28, %v4930_v45  ;;  %v4655_v54 = vsel %vm1139_vm5, %v13976_v43, %v4626_v5  ;;  %v4519_v18 = vadd.f32 %v12334_v26, %v4499_v31  ;;  %v4523_v3 = vadd.f32 %v12334_v26, %v4503_v56 }
 0x58e   :  { %v4571_v37 = vsel %vm810_vm1, %v4549_v15, %v4550_v14  ;;  %v4958_v46 = vsel %vm2230_vm11, %v4930_v45, %v4931_v2  ;;  %v12413_v60 = vmax.f32 %v4521_v7, 0.0  ;;  %v12415_v1 = vmax.f32 %v4522_v33, 0.0 }
 0x58f   :  { %4803 = vrot.lane.b32.xlu1 %v12365_v4, %s7034_s24  ;;  %4977 = vrot.lane.b32.xlu0 %v4959_v44, %s7029_s2  ;;  %v4627_v32 = vrot.slane %v12369_v13, 6  ;;  %v4932_v51 = vrot.slane %v12375_v39, 2  ;;  %v12420_v38 = vadd.f32 %v12334_v26, %v4500_v48  ;;  %v13969_v12 = vrot.slane %v12363_v6, 3 }
 0x590   :  { %14968 = vst [vmem:[#allocation38_spill] sm:$0xff] %v12413_v60  ;;  %v5010_v47 = vrot.slane %v12365_v4, 3  ;;  %v13982_v24 = vrot.slane %v12375_v39, 6  ;;  %v4505_v35 = vmul.f32 %v12322_v30, %v12306_v25  ;;  %v13974_v20 = vrot.slane %v12363_v6, 7 }
 0x591   :  { %v12426_v41 = vsel %vm1139_vm5, %v4626_v5, %v4627_v32  ;;  %v12432_v58 = vsel %vm2230_vm11, %v4931_v2, %v4932_v51  ;;  %v4706_v0 = vrot.slane %v12365_v4, 7  ;;  %v4506_v8 = vmul.f32 %v12322_v30, %v12310_v55 }
 0x592   :  { %v12441_v57 = vsel %vm2559_vm13, %v13969_v12, %v5010_v47  ;;  %v12450_v49 = vmax.f32 %v4523_v3, 0.0  ;;  %v12456_v25 = vsel %vm1139_vm5, %v4627_v32, %v13982_v24  ;;  %v13968_v31 = vrot.slane %v12413_v60, 2 }
 0x593   :  { %4805 = vrot.lane.b32.xlu1 %v12369_v13, %s7034_s24  ;;  %4603 = vrot.lane.b32.xlu0 %v4571_v37, %s7034_s24  ;;  %v4938_v17 = vrot.slane %v12415_v1, 2  ;;  %v12464_v55 = vsel %vm1468_vm7, %v13974_v20, %v4706_v0  ;;  %v5011_v30 = vrot.slane %v12369_v13, 3  ;;  %v12468_v59 = vadd.f32 %v12334_v26, %v4505_v35 }
 0x594   :  { %v12477_v29 = vadd.f32 %v12334_v26, %v4506_v8  ;;  %v4707_v42 = vrot.slane %v12369_v13, 7  ;;  %v13972_v23 = vrot.slane %v12413_v60, 6  ;;  %v12481_v10 = vmax.f32 %v4519_v18, 0.0 }
 0x595   :  { %v12474_v36 = vsel %vm2230_vm11, %v13968_v31, %v4938_v17  ;;  %v12485_v56 = vsel %vm2559_vm13, %v5010_v47, %v5011_v30  ;;  %v4634_v45 = vrot.slane %v12415_v1, 6  ;;  %v5012_v7 = vrot.slane %v12375_v39, 3 }
 0x596   :  { %14969 = vst [vmem:[#allocation91_spill] sm:$0xff] %v12481_v10  ;;  %v12493_v5 = vsel %vm1468_vm7, %v4706_v0, %v4707_v42  ;;  %v4939_v2 = vrot.slane %v12450_v49, 2  ;;  %v4708_v33 = vrot.slane %v12375_v39, 7  ;;  %v12506_v18 = vadd.f32 %v12334_v26, %v12341_v52 }
 0x597   :  { %4807 = vrot.lane.b32.xlu1 %v12375_v39, %s7034_s24  ;;  %4675 = vrot.lane.b32.xlu0 %v4655_v54, %s7029_s2  ;;  %v12501_v44 = vsel %vm1139_vm5, %v13972_v23, %v4634_v45  ;;  %v12510_v54 = vsel %vm2559_vm13, %v5011_v30, %v5012_v7  ;;  %v13970_v3 = vrot.slane %v12413_v60, 3  ;;  %v4551_v48 = vrot.slane %v12481_v10, 5 }
 0x598   :  { %v12514_v37 = vsel %vm2230_vm11, %v4938_v17, %v4939_v2  ;;  %v12520_v32 = vsel %vm1468_vm7, %v4707_v42, %v4708_v33  ;;  %v5018_v47 = vrot.slane %v12415_v1, 3  ;;  %v4635_v26 = vrot.slane %v12450_v49, 6 }
 0x599   :  { %v13973_v52 = vrot.slane %v12413_v60, 7  ;;  %v4714_v35 = vrot.slane %v12415_v1, 7  ;;  %v13971_v0 = vrot.slane %v12361_v16, 2  ;;  %v5019_v30 = vrot.slane %v12450_v49, 3 }
 0x59a   :  { %v12534_v8 = vsel %vm2559_vm13, %v13970_v3, %v5018_v47  ;;  %v12538_v17 = vsel %vm1139_vm5, %v4634_v45, %v4635_v26  ;;  %v4715_v28 = vrot.slane %v12450_v49, 7  ;;  %v4570_v45 = vsel %vm810_vm1, %v4550_v14, %v4551_v48 }
 0x59b   :  { %4809 = vrot.lane.b32.xlu1 %v12413_v60, %s7034_s24  ;;  %4979 = vrot.lane.b32.xlu0 %v4958_v46, %s7029_s2  ;;  %v12545_v46 = vsel %vm1468_vm7, %v13973_v52, %v4714_v35  ;;  %v12551_v42 = vsel %vm2230_vm11, %v4939_v2, %v13971_v0  ;;  %v12560_v31 = vsel %vm2559_vm13, %v5018_v47, %v5019_v30  ;;  %v13975_v12 = vrot.slane %v12361_v16, 6 }
 0x59c   :  { %v13977_v3 = vrot.slane %v12361_v16, 3  ;;  %v12569_v2 = vsel %vm1468_vm7, %v4714_v35, %v4715_v28  ;;  %v5013_v0 = vrot.slane %v12371_v27, 3  ;;  %v13979_v14 = vrot.slane %v12373_v9, 3 }
 0x59d   :  { %v12577_v47 = vsel %vm1139_vm5, %v4635_v26, %v13975_v12  ;;  %v4853_v35 = vrot.slane %v12371_v27, 1  ;;  %v13981_v20 = vrot.slane %v12373_v9, 1  ;;  %v4709_v26 = vrot.slane %v12371_v27, 7 }
 0x59e   :  { %v12583_v23 = vsel %vm2559_vm13, %v5019_v30, %v13977_v3  ;;  %v12591_v52 = vsel %vm2559_vm13, %v5013_v0, %v13979_v14  ;;  %v13980_v12 = vrot.slane %v12373_v9, 7  ;;  %v12597_v43 = vmax.f32 %v12420_v38, 0.0 }
 0x59f   :  { %4811 = vrot.lane.b32.xlu1 %v12415_v1, %s7034_s24  ;;  %4605 = vrot.lane.b32.xlu0 %v4570_v45, %s7034_s24  ;;  %v13978_v45 = vrot.slane %v12361_v16, 7  ;;  %v4548_v3 = vrot.slane %v12375_v39, 5  ;;  %v12614_v38 = vsel %vm1901_vm9, %v4853_v35, %v13981_v20  ;;  %v13985_v14 = vrot.slane %v12371_v27, 2 }
 0x5a0   :  { %14970 = vst [vmem:[#allocation71_spill] sm:$0xff] %v12597_v43  ;;  %v12661_v24 = vmax.f32 %v12468_v59, 0.0  ;;  %v12713_v21 = vmax.f32 %v12506_v18, 0.0  ;;  %v4858_v18 = vrot.slane %v12415_v1, 1 }
 0x5a1   :  { %v12603_v30 = vsel %vm1468_vm7, %v4715_v28, %v13978_v45  ;;  %v12620_v28 = vsel %vm1468_vm7, %v4709_v26, %v13980_v12  ;;  %v12626_v45 = vsel %vm810_vm1, %v4548_v3, %v4549_v15  ;;  %v12636_v12 = vsel %vm2559_vm13, %v5012_v7, %v5013_v0 }
 0x5a2   :  { %v12644_v15 = vsel %vm2230_vm11, %v4932_v51, %v13985_v14  ;;  %v4851_v7 = vrot.slane %v12369_v13, 1  ;;  %v12657_v0 = vsel %vm1468_vm7, %v4708_v33, %v4709_v26  ;;  %v4546_v51 = vrot.slane %v12365_v4, 5  ;;  %14971 = vst [vmem:[#allocation51_spill] sm:$0xff] %v12661_v24  ;;  %v5121_v14 = vld [vmem:[#allocation2 + $0x80] sm:$0xff]  ;;  %v5106_v26 = vld [vmem:[#allocation2 + $0x8] sm:$0xff]  ;;  %14979 = vst [vmem:[#allocation57_spill] sm:$0xff] %v12713_v21 }
 0x5a3   :  { %4813 = vrot.lane.b32.xlu1 %v12450_v49, %s7034_s24  ;;  %4677 = vrot.lane.b32.xlu0 %v12426_v41, %s7029_s2  ;;  %v13983_v41 = vrot.slane %v12597_v43, 5  ;;  %v4547_v33 = vrot.slane %v12369_v13, 5  ;;  %v5105_v13 = vld [vmem:[#allocation2] sm:$0xff]  ;;  %v13989_v53 = vrot.slane %v12661_v24, 2 }
 0x5a5   :  { %v4569_v20 = vsel %vm810_vm1, %v4551_v48, %v13983_v41  ;;  %v12664_v48 = vmax.f32 %v12477_v29, 0.0  ;;  %v13986_v41 = vrot.slane %v12363_v6, 5  ;;  %v4852_v29 = vrot.slane %v12375_v39, 1 }
 0x5a7   :  { %4825 = vrot.lane.b32.xlu1 %v12371_v27, %s7032_s22  ;;  %4981 = vrot.lane.b32.xlu0 %v12432_v58, %s7029_s2  ;;  %v13984_v58 = vrot.slane %v12365_v4, 1  ;;  %14972 = vst [vmem:[#allocation52_spill] sm:$0xff] %v12664_v48  ;;  %v12681_v59 = vsel %vm810_vm1, %v13986_v41, %v4546_v51  ;;  %v12697_v41 = vsel %vm810_vm1, %v4546_v51, %v4547_v33 }
 0x5a8   :  { %14974 = vst [vmem:[#allocation92_spill] sm:$0xff] %v12681_v59  ;;  %14975 = vst [vmem:[#allocation28_spill] sm:$0xff] %v12697_v41  ;;  %v6600_v41 = vpack.c.bf16 %v5106_v26, %v5105_v13  ;;  %v5126_v59 = vld [vmem:[#allocation2 + $0xa8] sm:$0xff]  ;;  %v4859_v26 = vrot.slane %v12450_v49, 1  ;;  %v4553_v13 = vrot.slane %v12413_v60, 5 }
 0x5ab   :  { %4827 = vrot.lane.b32.xlu1 %v12373_v9, %s7032_s22  ;;  %4607 = vrot.lane.b32.xlu0 %v4569_v20, %s7034_s24  ;;  %v12670_v20 = vsel %vm1901_vm9, %v13984_v58, %v4851_v7  ;;  %v12700_v58 = vmax.f32 %v12352_v50, 0.0  ;;  %v12717_v50 = vsel %vm810_vm1, %v4547_v33, %v4548_v3  ;;  %v13987_v3 = vrot.slane %v12661_v24, 1 }
 0x5ac   :  { %14973 = vst [vmem:[#allocation61_spill] sm:$0xff] %v12670_v20 }
 0x5ad   :  { %14976 = vst [vmem:[#allocation83_spill] sm:$0xff] %v12700_v58 }
 0x5af   :  { %5057 = vrot.lane.b32.xlu1 %v12441_v57, %s7032_s22  ;;  %4679 = vrot.lane.b32.xlu0 %v12456_v25, %s7029_s2  ;;  %v12689_v57 = vsel %vm1901_vm9, %v4851_v7, %v4852_v29  ;;  %v5122_v25 = vld [vmem:[#allocation2 + $0x88] sm:$0xff]  ;;  %v12704_v7 = vsel %vm1901_vm9, %v4852_v29, %v4853_v35  ;;  %v5107_v35 = vld [vmem:[#allocation2 + $0x10] sm:$0xff]  ;;  %v5108_v29 = vld [vmem:[#allocation2 + $0x18] sm:$0xff] }
 0x5b0   :  { %v6598_v40 = vpack.c.bf16 %v5122_v25, %v5121_v14  ;;  %v6602_v14 = vpack.c.bf16 %v5124_v63, %v5123_v22  ;;  %v5125_v25 = vld [vmem:[#allocation2 + $0xa0] sm:$0xff]  ;;  %v6604_v33 = vpack.c.bf16 %v5108_v29, %v5107_v35  ;;  %v4860_v29 = vrot.slane %v12361_v16, 1 }
 0x5b1   :  { %v6606_v22 = vpack.c.bf16 %v5126_v59, %v5125_v25  ;;  %v5128_v59 = vld [vmem:[#allocation2 + $0xb8] sm:$0xff]  ;;  %v4555_v25 = vrot.slane %v12450_v49, 5  ;;  %v14981_v49 = vrot.slane %v12363_v6, 5 }
 0x5b2   :  { %6599 = vmatprep.subr.bf16.mxu1 %v6598_v40  ;;  %v12732_v40 = vsel %vm1901_vm9, %v4858_v18, %v4859_v26  ;;  %v12757_v63 = vsel %vm1901_vm9, %v4860_v29, %v13987_v3  ;;  %v14984_v3 = vrot.slane %v12373_v9, 2 }
 0x5b3   :  { %4755 = vrot.lane.b32.xlu1 %v12464_v55, %s7032_s22  ;;  %4985 = vrot.lane.b32.xlu0 %v12474_v36, %s7029_s2  ;;  %v14977_v55 = vrot.slane %v12664_v48, 5  ;;  %v14978_v36 = vrot.slane %v12661_v24, 5  ;;  %14980 = vst [vmem:[#allocation103_spill] sm:$0xff] %v12757_v63  ;;  %v14985_v63 = vrot.slane %v12371_v27, 2 }
 0x5b4   :  { %6601 = vmatpush3.bf16.msra.mxu1 %v6600_v41  ;;  %v12751_v41 = vsel %vm1901_vm9, %v4859_v26, %v4860_v29 }
 0x5b5   :  { %v4563_v51 = vsel %vm810_vm1, %v14978_v36, %v14977_v55  ;;  %6603 = vmatprep.subr.bf16.mxu1 %v6602_v14  ;;  %v5110_v55 = vld [vmem:[#allocation2 + $0x28] sm:$0xff]  ;;  %v5127_v14 = vld [vmem:[#allocation2 + $0xb0] sm:$0xff]  ;;  %v14982_v36 = vrot.slane %v12700_v58, 5 }
 0x5b7   :  { %5059 = vrot.lane.b32.xlu1 %v12485_v56, %s7032_s22  ;;  %4611 = vrot.lane.b32.xlu0 %v4563_v51, %s7034_s24  ;;  %v4554_v56 = vrot.slane %v12415_v1, 5  ;;  %v5109_v51 = vld [vmem:[#allocation2 + $0x20] sm:$0xff]  ;;  %v12765_v20 = vsel %vm810_vm1, %v14982_v36, %v14981_v49  ;;  %v12783_v36 = vsel %vm2230_vm11, %v14985_v63, %v14984_v3  ;;  %v14992_v49 = vrot.slane %v12375_v39, 6 }
 0x5b8   :  { %6605 = vmatpush3.bf16.msra.mxu1 %v6604_v33  ;;  %v6608_v1 = vpack.c.bf16 %v5110_v55, %v5109_v51  ;;  %v6610_v55 = vpack.c.bf16 %v5128_v59, %v5127_v14  ;;  %v5111_v33 = vld [vmem:[#allocation2 + $0x30] sm:$0xff]  ;;  %v5112_v51 = vld [vmem:[#allocation2 + $0x38] sm:$0xff]  ;;  %14986 = vst [vmem:[#allocation69_spill] sm:$0xff] %v12783_v36  ;;  %v14988_v14 = vrot.slane %v12365_v4, 1  ;;  %v5129_v63 = vld [vmem:[#allocation2 + $0xc0] sm:$0xff] }
 0x5b9   :  { %v12742_v35 = vsel %vm810_vm1, %v4553_v13, %v4554_v56  ;;  %6607 = vmatprep.subr.bf16.mxu1 %v6606_v22  ;;  %v12769_v26 = vsel %vm810_vm1, %v4554_v56, %v4555_v25  ;;  %v14987_v56 = vrot.slane %v12373_v9, 6  ;;  %v5130_v59 = vld [vmem:[#allocation2 + $0xc8] sm:$0xff]  ;;  %v6612_v4 = vpack.c.bf16 %v5112_v51, %v5111_v33  ;;  %v5113_v36 = vld [vmem:[#allocation2 + $0x40] sm:$0xff]  ;;  %v5116_v51 = vld [vmem:[#allocation2 + $0x58] sm:$0xff] }
 0x5bb   :  { %4757 = vrot.lane.b32.xlu1 %v12493_v5, %s7032_s22  ;;  %4683 = vrot.lane.b32.xlu0 %v12501_v44, %s7029_s2  ;;  %v4629_v5 = vrot.slane %v12371_v27, 6  ;;  %v14983_v44 = vrot.slane %v12361_v16, 5  ;;  %v14989_v27 = vrot.slane %v12363_v6, 1 }
 0x5bc   :  { %6609 = vmatpush3.bf16.msra.mxu1 %v6608_v1  ;;  %v5131_v1 = vld [vmem:[#allocation2 + $0xd0] sm:$0xff] }
 0x5bd   :  { %v12775_v29 = vsel %vm810_vm1, %v4555_v25, %v14983_v44  ;;  %v12793_v22 = vsel %vm1139_vm5, %v4629_v5, %v14987_v56  ;;  %v12801_v3 = vsel %vm1901_vm9, %v14989_v27, %v14988_v14  ;;  %v14991_v25 = vrot.slane %v12597_v43, 5  ;;  %6611 = vmatprep.subr.bf16.mxu1 %v6610_v55  ;;  %v5115_v55 = vld [vmem:[#allocation2 + $0x50] sm:$0xff] }
 0x5be   :  { %v12819_v56 = vsel %vm1139_vm5, %v14992_v49, %v4629_v5  ;;  %v14993_v14 = vrot.slane %v12713_v21, 5  ;;  %v14994_v27 = vrot.slane %v12664_v48, 5  ;;  %v5132_v5 = vld [vmem:[#allocation2 + $0xd8] sm:$0xff] }
 0x5bf   :  { %5061 = vrot.lane.b32.xlu1 %v12510_v54, %s7032_s22  ;;  %4987 = vrot.lane.b32.xlu0 %v12514_v37, %s7029_s2  ;;  %v14990_v54 = vrot.slane %v12413_v60, 1  ;;  %v12813_v44 = vsel %vm810_vm1, %v14991_v25, %v4553_v13  ;;  %v5114_v13 = vld [vmem:[#allocation2 + $0x48] sm:$0xff]  ;;  %v6618_v33 = vpack.c.bf16 %v5132_v5, %v5131_v1  ;;  %v5136_v49 = vld [vmem:[#allocation2 + $0xf8] sm:$0xff] }
 0x5c0   :  { %6613 = vmatpush3.bf16.msra.mxu1 %v6612_v4  ;;  %v6616_v39 = vpack.c.bf16 %v5114_v13, %v5113_v36  ;;  %v5133_v36 = vld [vmem:[#allocation2 + $0xe0] sm:$0xff]  ;;  %v5118_v4 = vld [vmem:[#allocation2 + $0x68] sm:$0xff] }
 0x5c1   :  { %v12807_v37 = vsel %vm1901_vm9, %v14990_v54, %v4858_v18  ;;  %v4562_v18 = vsel %vm810_vm1, %v14994_v27, %v14993_v14  ;;  %v6614_v54 = vpack.c.bf16 %v5130_v59, %v5129_v63  ;;  %v6620_v63 = vpack.c.bf16 %v5116_v51, %v5115_v55  ;;  %v5134_v59 = vld [vmem:[#allocation2 + $0xe8] sm:$0xff]  ;;  %v15001_v51 = vld [vmem:[#allocation29_spill] sm:$0xff] }
 0x5c2   :  { %v6622_v25 = vpack.c.bf16 %v5134_v59, %v5133_v36  ;;  %v5154_v1 = vld [vmem:[#allocation2 + $0x188] sm:$0xff]  ;;  %vm15002_vm6 = vcmp.ge.s32.totalorder %v15001_v51, 0  ;;  %v15006_v59 = vrot.slane %v12373_v9, 1 }
 0x5c3   :  { %4759 = vrot.lane.b32.xlu1 %v12520_v32, %s7032_s22  ;;  %4613 = vrot.lane.b32.xlu0 %v4562_v18, %s7034_s24  ;;  %v14995_v32 = vrot.slane %v12700_v58, 5  ;;  %v5120_v18 = vld [vmem:[#allocation2 + $0x78] sm:$0xff]  ;;  %v14999_v55 = vld [vmem:[#allocation16_spill] sm:$0xff] }
 0x5c4   :  { %6615 = vmatprep.subr.bf16.mxu1 %v6614_v54  ;;  %v5015_v54 = vrot.slane %v12481_v10, 3  ;;  %vm15000_vm14 = vcmp.ge.s32.totalorder %v14999_v55, 0 }
 0x5c5   :  { %6617 = vmatpush3.bf16.msra.mxu1 %v6616_v39  ;;  %v5153_v39 = vld [vmem:[#allocation2 + $0x180] sm:$0xff] }
 0x5c6   :  { %6619 = vmatprep.subr.bf16.mxu1 %v6618_v33  ;;  %v6630_v5 = vpack.c.bf16 %v5154_v1, %v5153_v39  ;;  %v15016_v1 = vrot.slane %v12413_v60, 6 }
 0x5c7   :  { %5065 = vrot.lane.b32.xlu1 %v12534_v8, %s7032_s22  ;;  %4685 = vrot.lane.b32.xlu0 %v12538_v17, %s7029_s2  ;;  %v14996_v8 = vmov %v14993_v14  ;;  %v5119_v14 = vld [vmem:[#allocation2 + $0x70] sm:$0xff] }
 0x5c8   :  { %v4561_v17 = vsel %vm810_vm1, %v14996_v8, %v14995_v32  ;;  %v6628_v13 = vpack.c.bf16 %v5120_v18, %v5119_v14  ;;  %v15003_v32 = vrot.slane %v12363_v6, 7  ;;  %v15011_v18 = vrot.slane %v12361_v16, 5 }
 0x5c9   :  { %6621 = vmatpush3.bf16.msra.mxu1 %v6620_v63  ;;  %v4855_v63 = vrot.slane %v12481_v10, 1 }
 0x5ca   :  { %6623 = vmatprep.subr.bf16.mxu1 %v6622_v25  ;;  %v5016_v25 = vrot.slane %v12597_v43, 3 }
 0x5cb   :  { %4763 = vrot.lane.b32.xlu1 %v12545_v46, %s7032_s22  ;;  %4989 = vrot.lane.b32.xlu0 %v12551_v42, %s7029_s2  ;;  %v5117_v46 = vld [vmem:[#allocation2 + $0x60] sm:$0xff] }
 0x5cc   :  { %v6624_v42 = vpack.c.bf16 %v5118_v4, %v5117_v46  ;;  %v4711_v46 = vrot.slane %v12481_v10, 7  ;;  %v15007_v4 = vrot.slane %v12373_v9, 7 }
 0x5ce   :  { %6625 = vmatpush3.bf16.msra.mxu1 %v6624_v42  ;;  %v4730_v42 = vsel %vm1468_vm7, %v15007_v4, %v4711_v46 }
 0x5cf   :  { %5067 = vrot.lane.b32.xlu1 %v12560_v31, %s7032_s22  ;;  %4615 = vrot.lane.b32.xlu0 %v4561_v17, %s7034_s24  ;;  %v5135_v31 = vld [vmem:[#allocation2 + $0xf0] sm:$0xff] }
 0x5d0   :  { %v6626_v27 = vpack.c.bf16 %v5136_v49, %v5135_v31  ;;  %v15004_v17 = vld [vmem:[#allocation17_spill] sm:$0xff]  ;;  %v5033_v31 = vsel %vm2559_vm13, %v5015_v54, %v5016_v25  ;;  %v15008_v49 = vld [vmem:[#allocation34_spill] sm:$0xff] }
 0x5d1   :  { %vm15005_vm8 = vcmp.ge.s32.totalorder %v15004_v17, 0  ;;  %vm15009_vm4 = vcmp.lt.s32.totalorder %v15008_v49, 32  ;;  %v15024_v49 = vrot.slane %v12361_v16, 3 }
 0x5d2   :  { %6627 = vmatprep.subr.bf16.mxu1 %v6626_v27  ;;  %v4964_v14 = vsel %vm15009_vm4, %v12644_v15, 0.0  ;;  %v15010_v27 = vrot.slane %v12661_v24, 5 }
 0x5d3   :  { %4765 = vrot.lane.b32.xlu1 %v12569_v2, %s7032_s22  ;;  %4687 = vrot.lane.b32.xlu0 %v12577_v47, %s7029_s2  ;;  %v13988_v2 = vrot.slane %v12700_v58, 6  ;;  %v14998_v47 = vrot.slane %v12363_v6, 6 }
 0x5d4   :  { %6629 = vmatpush3.bf16.msra.mxu1 %v6628_v13  ;;  %v4712_v13 = vrot.slane %v12597_v43, 7 }
 0x5d5   :  { %6631 = vmatprep.subr.bf16.mxu1 %v6630_v5 }
 0x5d6   :  { %v4729_v51 = vsel %vm1468_vm7, %v4711_v46, %v4712_v13 }
 0x5d7   :  { %5069 = vrot.lane.b32.xlu1 %v12583_v23, %s7032_s22  ;;  %5081 = vrot.lane.b32.xlu0 %v12591_v52, %s7029_s2  ;;  %v14997_v23 = vrot.slane %v12373_v9, 3  ;;  %v5138_v9 = vld [vmem:[#allocation2 + $0x108] sm:$0xff] }
 0x5d9   :  { %v5034_v52 = vsel %vm2559_vm13, %v14997_v23, %v5015_v54  ;;  %v4564_v54 = vsel %vm810_vm1, %v15011_v18, %v15010_v27  ;;  %v13990_v23 = vrot.slane %v12597_v43, 6 }
 0x5db   :  { %4767 = vrot.lane.b32.xlu1 %v12603_v30, %s7032_s22  ;;  %4905 = vrot.lane.b32.xlu0 %v12614_v38, %s7034_s24  ;;  %v4656_v30 = vsel %vm1139_vm5, %v13988_v2, %v14998_v47  ;;  %v4720_v38 = vrot.slane %v12700_v58, 7  ;;  %v4589_v47 = vsel %vm15014_vm0, %v4564_v54, 0.0  ;;  %v4648_v5 = vsel %vm1139_vm5, %v13990_v23, %v15016_v1 }
 0x5dc   :  { %v4657_v33 = vsel %vm15000_vm14, %v4656_v30, 0.0  ;;  %v15015_v30 = vrot.slane %v12413_v60, 7  ;;  %v4665_v55 = vsel %vm15019_vm15, %v4648_v5, 0.0  ;;  %v15032_v54 = vrot.slane %v12361_v16, 7 }
 0x5dd   :  { %v4736_v8 = vsel %vm1468_vm7, %v4720_v38, %v15003_v32  ;;  %v5021_v32 = vrot.slane %v12661_v24, 3 }
 0x5de   :  { %v4737_v36 = vsel %vm15005_vm8, %v4736_v8, 0.0  ;;  %v4728_v39 = vsel %vm1468_vm7, %v4712_v13, %v15015_v30  ;;  %v5022_v8 = vrot.slane %v12664_v48, 3  ;;  %v4741_v13 = vsel %vm1344_vm2, %v12657_v0, 0.0 }
 0x5df   :  { %4779 = vrot.lane.b32.xlu1 %v12620_v28, %s7029_s2  ;;  %5083 = vrot.lane.b32.xlu0 %v5034_v52, %s7029_s2  ;;  %v4581_v28 = vsel %vm15002_vm6, %v12626_v45, 0.0  ;;  %v4874_v45 = vsel %vm1901_vm9, %v15006_v59, %v4855_v63  ;;  %v15012_v52 = vld [vmem:[#allocation36_spill] sm:$0xff]  ;;  %v4718_v30 = vrot.slane %v12664_v48, 7 }
 0x5e0   :  { %vm15013_vm12 = vcmp.lt.s32.totalorder %v15012_v52, 32  ;;  %v5027_v59 = vsel %vm2559_vm13, %v5021_v32, %v5022_v8  ;;  %v15026_v52 = vld [vmem:[#allocation49_spill] sm:$0xff] }
 0x5e1   :  { %v5044_v15 = vsel %vm15013_vm12, %v12636_v12, 0.0  ;;  %v15017_v12 = vld [vmem:[#allocation40_spill] sm:$0xff]  ;;  %vm15027_vm14 = vcmp.lt.s32.totalorder %v15026_v52, 32  ;;  %vm15044_vm12 = vcmp.lt.s32.totalorder %v14894_v11, 32 }
 0x5e2   :  { %vm15018_vm1 = vcmp.ge.s32.totalorder %v15017_v12, 0  ;;  %v15028_v12 = vrot.slane %v12661_v24, 1 }
 0x5e3   :  { %4673 = vrot.lane.b32.xlu1 %v4657_v33, %s7029_s2  ;;  %4601 = vrot.lane.b32.xlu0 %v4581_v28, %s7034_s24  ;;  %v4745_v19 = vsel %vm15018_vm1, %v4728_v39, 0.0  ;;  %v4856_v33 = vrot.slane %v12597_v43, 1  ;;  %v4862_v39 = vrot.slane %v12664_v48, 1 }
 0x5e5   :  { %v4873_v28 = vsel %vm1901_vm9, %v4855_v63, %v4856_v33  ;;  %v15021_v63 = vrot.slane %v12361_v16, 2 }
 0x5e7   :  { %4753 = vrot.lane.b32.xlu1 %v4737_v36, %s7032_s22  ;;  %4907 = vrot.lane.b32.xlu0 %v4874_v45, %s7034_s24  ;;  %v4948_v45 = vsel %vm2230_vm11, %v15021_v63, %v13989_v53  ;;  %v15029_v63 = vrot.slane %v12413_v60, 3 }
 0x5eb   :  { %4781 = vrot.lane.b32.xlu1 %v4730_v42, %s7029_s2  ;;  %5085 = vrot.lane.b32.xlu0 %v5033_v31, %s7029_s2  ;;  %v15022_v42 = vld [vmem:[#allocation48_spill] sm:$0xff] }
 0x5ec   :  { %vm15023_vm3 = vcmp.lt.s32.totalorder %v15022_v42, 32 }
 0x5ed   :  { %v4972_v31 = vsel %vm15023_vm3, %v4948_v45, 0.0  ;;  %v5032_v45 = vsel %vm2559_vm13, %v5016_v25, %v15029_v63  ;;  %v15033_v25 = vrot.slane %v12413_v60, 1  ;;  %v4863_v63 = vrot.slane %v12713_v21, 1 }
 0x5ee   :  { %vm6035_vm3 = vcmask 1041409  }
 0x5ef   :  { %4829 = vrot.lane.b32.xlu1 %v12481_v10, %s7032_s22  ;;  %4983 = vrot.lane.b32.xlu0 %v4964_v14, %s7029_s2  ;;  %v5028_v14 = vsel %vm2559_vm13, %v15024_v49, %v5021_v32  ;;  %v15030_v49 = vld [vmem:[#allocation43_spill] sm:$0xff]  ;;  %v4872_v52 = vsel %vm1901_vm9, %v4856_v33, %v15033_v25 }
 0x5f0   :  { %vm15031_vm2 = vcmp.lt.s32.totalorder %v15030_v49, 32  ;;  %v4866_v49 = vsel %vm1901_vm9, %v4862_v39, %v4863_v63  ;;  %v5157_v10 = vld [vmem:[#allocation2 + $0x1a0] sm:$0xff] }
 0x5f3   :  { %5063 = vrot.lane.b32.xlu1 %v5044_v15, %s7032_s22  ;;  %4609 = vrot.lane.b32.xlu0 %v4589_v47, %s7034_s24  ;;  %v5052_v15 = vsel %vm15027_vm14, %v5028_v14, 0.0  ;;  %v4717_v47 = vrot.slane %v12661_v24, 7  ;;  %v5048_v14 = vsel %vm15031_vm2, %v5032_v45, 0.0 }
 0x5f5   :  { %v4723_v0 = vsel %vm1468_vm7, %v4717_v47, %v4718_v30 }
 0x5f7   :  { %4761 = vrot.lane.b32.xlu1 %v4745_v19, %s7032_s22  ;;  %4681 = vrot.lane.b32.xlu0 %v4665_v55, %s7029_s2  ;;  %v4867_v19 = vsel %vm1901_vm9, %v15028_v12, %v4862_v39  ;;  %v5023_v55 = vrot.slane %v12713_v21, 3 }
 0x5f9   :  { %v5026_v32 = vsel %vm2559_vm13, %v5022_v8, %v5023_v55 }
 0x5fb   :  { %4783 = vrot.lane.b32.xlu1 %v4729_v51, %s7029_s2  ;;  %4909 = vrot.lane.b32.xlu0 %v4873_v28, %s7034_s24 }
 0x5fd   :  { %v12956_v17 = vpop.permute.xlu0 %4815  ;;  %v12958_v36 = vpop.permute.xlu1 %4801 }
 0x5fe   :  { %15020 = vst [vmem:[#allocation68_spill] sm:$0xff] %v12956_v17  ;;  %v5158_v17 = vld [vmem:[#allocation2 + $0x1a8] sm:$0xff] }
 0x5ff   :  { %4831 = vrot.lane.b32.xlu1 %v12597_v43, %s7032_s22  ;;  %5089 = vrot.lane.b32.xlu0 %v5027_v59, %s7029_s2  ;;  %v4719_v59 = vrot.slane %v12713_v21, 7 }
 0x601   :  { %v12971_v46 = vpop.permute.xlu1 %4803  ;;  %v12973_v4 = vpop.permute.xlu0 %4977  ;;  %v4722_v8 = vsel %vm1468_vm7, %v4718_v30, %v4719_v59  ;;  %v4721_v39 = vsel %vm1468_vm7, %v4719_v59, %v4720_v38  ;;  %v15041_v38 = vrot.slane %v12363_v6, 1  ;;  %v15042_v59 = vrot.slane %v12363_v6, 3 }
 0x603   :  { %4833 = vrot.lane.b32.xlu1 %v12661_v24, %s7032_s22  ;;  %4991 = vrot.lane.b32.xlu0 %v4972_v31, %s7029_s2 }
 0x605   :  { %v12984_v27 = vpop.permute.xlu1 %4805  ;;  %v12986_v18 = vpop.permute.xlu0 %4603 }
 0x607   :  { %4777 = vrot.lane.b32.xlu1 %v4741_v13, %s7029_s2  ;;  %5071 = vrot.lane.b32.xlu0 %v5052_v15, %s7032_s22  ;;  %v4724_v13 = vsel %vm1468_vm7, %v15032_v54, %v4717_v47  ;;  %vm15043_vm7 = vcmp.lt.s32.totalorder %v14836_v62, 32 }
 0x609   :  { %v12998_v1 = vpop.permute.xlu1 %4807  ;;  %v13000_v5 = vpop.permute.xlu0 %4675 }
 0x60b   :  { %4787 = vrot.lane.b32.xlu1 %v4723_v0, %s7029_s2  ;;  %4913 = vrot.lane.b32.xlu0 %v4867_v19, %s7034_s24  ;;  %v15034_v0 = vld [vmem:[#allocation47_spill] sm:$0xff]  ;;  %v15036_v19 = vld [vmem:[#allocation41_spill] sm:$0xff] }
 0x60c   :  { %vm15035_vm6 = vcmp.ge.s32.totalorder %v15034_v0, 0  ;;  %vm15037_vm8 = vcmp.lt.s32.totalorder %v15036_v19, 32  ;;  %v4864_v0 = vrot.slane %v12700_v58, 1 }
 0x60d   :  { %v13011_v51 = vpop.permute.xlu1 %4809  ;;  %v13013_v28 = vpop.permute.xlu0 %4979  ;;  %v4749_v12 = vsel %vm15035_vm6, %v4724_v13, 0.0  ;;  %v15039_v13 = vld [vmem:[#allocation33_spill] sm:$0xff] }
 0x60e   :  { %vm15040_vm4 = vcmp.lt.s32.totalorder %v15039_v13, 32 }
 0x60f   :  { %4835 = vrot.lane.b32.xlu1 %v12664_v48, %s7032_s22  ;;  %5091 = vrot.lane.b32.xlu0 %v5026_v32, %s7029_s2  ;;  %v4888_v32 = vsel %vm15037_vm8, %v4872_v52, 0.0 }
 0x611   :  { %v13027_v42 = vpop.permute.xlu1 %4811  ;;  %v4606_v31 = vpop.permute.xlu0 %4605 }
 0x612   :  { %v4899_v47 = vadd.f32 %v12689_v57, %v4606_v31  ;;  %v4884_v57 = vsel %vm15040_vm4, %v12704_v7, 0.0 }
 0x613   :  { %4789 = vrot.lane.b32.xlu1 %v4722_v8, %s7029_s2  ;;  %5087 = vrot.lane.b32.xlu0 %v5048_v14, %s7029_s2  ;;  %v5024_v14 = vrot.slane %v12700_v58, 3 }
 0x615   :  { %v13043_v15 = vpop.permute.xlu1 %4813  ;;  %v13045_v30 = vpop.permute.xlu0 %4677  ;;  %v5025_v52 = vsel %vm2559_vm13, %v5023_v55, %v5024_v14  ;;  %v4880_v55 = vsel %vm1901_vm9, %v4864_v0, %v15041_v38 }
 0x617   :  { %4785 = vrot.lane.b32.xlu1 %v4749_v12, %s7029_s2  ;;  %4911 = vrot.lane.b32.xlu0 %v4888_v32, %s7034_s24  ;;  %v4865_v32 = vsel %vm1901_vm9, %v4863_v63, %v4864_v0  ;;  %v4896_v63 = vsel %vm15043_vm7, %v4880_v55, 0.0  ;;  %vm15049_vm9 = vcmp.ge.s32.totalorder %v14834_v61, 0 }
 0x618   :  { %v4577_v60 = vsel %vm15049_vm9, %v12765_v20, 0.0 }
 0x619   :  { %v13055_v45 = vpop.permute.xlu1 %4825  ;;  %v4982_v33 = vpop.permute.xlu0 %4981 }
 0x61a   :  { %15038 = vst [vmem:[#allocation97_spill] sm:$0xff] %v13055_v45  ;;  %v13057_v8 = vadd.f32 %v4982_v33, %v4899_v47  ;;  %v5040_v47 = vsel %vm2559_vm13, %v5024_v14, %v15042_v59 }
 0x61b   :  { %4837 = vrot.lane.b32.xlu1 %v12713_v21, %s7032_s22  ;;  %4915 = vrot.lane.b32.xlu0 %v4866_v49, %s7034_s24  ;;  %v5056_v49 = vsel %vm15044_vm12, %v5040_v47, 0.0 }
 0x61d   :  { %v4828_v54 = vpop.permute.xlu1 %4827  ;;  %v4608_v31 = vpop.permute.xlu0 %4607 }
 0x61e   :  { %v13068_v25 = vadd.f32 %v4884_v57, %v4608_v31 }
 0x61f   :  { %4791 = vrot.lane.b32.xlu1 %v4721_v39, %s7029_s2  ;;  %5093 = vrot.lane.b32.xlu0 %v5025_v52, %s7029_s2 }
 0x621   :  { %v5058_v12 = vpop.permute.xlu1 %5057  ;;  %v4680_v19 = vpop.permute.xlu0 %4679 }
 0x622   :  { %v13080_v7 = vadd.f32 %v4680_v19, %v12717_v50 }
 0x623   :  { %4839 = vrot.lane.b32.xlu1 %v12700_v58, %s7032_s22  ;;  %4917 = vrot.lane.b32.xlu0 %v4865_v32, %s7034_s24 }
 0x625   :  { %v4756_v50 = vpop.permute.xlu1 %4755  ;;  %v13095_v33 = vpop.permute.xlu0 %4985 }
 0x627   :  { %4919 = vrot.lane.b32.xlu1 %v4896_v63, %s7034_s24  ;;  %5095 = vrot.lane.b32.xlu0 %v5056_v49, %s7029_s2 }
 0x629   :  { %v5060_v13 = vpop.permute.xlu1 %5059  ;;  %v4612_v57 = vpop.permute.xlu0 %4611 }
 0x62a   :  { %v13104_v31 = vadd.f32 %v12732_v40, %v4612_v57 }
 0x62d   :  { %v4758_v39 = vpop.permute.xlu1 %4757  ;;  %v4684_v14 = vpop.permute.xlu0 %4683 }
 0x62e   :  { %v13107_v52 = vadd.f32 %v4684_v14, %v12742_v35 }
 0x631   :  { %v5062_v0 = vpop.permute.xlu1 %5061  ;;  %v13109_v62 = vpop.permute.xlu0 %4987 }
 0x635   :  { %v13111_v19 = vpop.permute.xlu1 %4759  ;;  %v13113_v11 = vpop.permute.xlu0 %4613 }
 0x639   :  { %v13115_v32 = vpop.permute.xlu1 %5065  ;;  %v13117_v38 = vpop.permute.xlu0 %4685 }
 0x63d   :  { %v13119_v55 = vpop.permute.xlu1 %4763  ;;  %v13121_v40 = vpop.permute.xlu0 %4989 }
 0x641   :  { %v13123_v59 = vpop.permute.xlu1 %5067  ;;  %v13125_v47 = vpop.permute.xlu0 %4615 }
 0x645   :  { %v13127_v35 = vpop.permute.xlu1 %4765  ;;  %v13129_v63 = vpop.permute.xlu0 %4687 }
 0x649   :  { %v13131_v49 = vpop.permute.xlu1 %5069  ;;  %v13133_v57 = vpop.permute.xlu0 %5081 }
 0x64a   :  { %15045 = vst [vmem:[#allocation27_spill] sm:$0xff] %v13133_v57 }
 0x64d   :  { %v13135_v14 = vpop.permute.xlu1 %4767  ;;  %v13137_v2 = vpop.permute.xlu0 %4905 }
 0x64e   :  { %15046 = vst [vmem:[#allocation56_spill] sm:$0xff] %v13137_v2  ;;  %v15050_v2 = vld [vmem:[#allocation61_spill] sm:$0xff] }
 0x651   :  { %v4780_v53 = vpop.permute.xlu1 %4779  ;;  %v13139_v23 = vpop.permute.xlu0 %5083 }
 0x652   :  { %15047 = vst [vmem:[#allocation76_spill] sm:$0xff] %v13139_v23  ;;  %v4794_v6 = vadd.f32 %v4780_v53, %v12793_v22  ;;  %v4898_v23 = vadd.f32 %v15050_v2, %v12986_v18  ;;  %v5156_v53 = vld [vmem:[#allocation2 + $0x198] sm:$0xff] }
 0x653   :  { %v5140_v2 = vld [vmem:[#allocation2 + $0x118] sm:$0xff] }
 0x654   :  { %v13142_v58 = vadd.f32 %v4828_v54, %v4794_v6  ;;  %v5155_v6 = vld [vmem:[#allocation2 + $0x190] sm:$0xff]  ;;  %v4994_v61 = vadd.f32 %v13013_v28, %v4898_v23  ;;  %v5141_v23 = vld [vmem:[#allocation2 + $0x120] sm:$0xff]  ;;  %v5075_v28 = vadd.f32 %v5062_v0, %v13057_v8  ;;  %v5144_v8 = vld [vmem:[#allocation2 + $0x138] sm:$0xff] }
 0x655   :  { %v4674_v21 = vpop.permute.xlu1 %4673  ;;  %v4602_v48 = vpop.permute.xlu0 %4601  ;;  %v15052_v54 = vld [vmem:[#allocation92_spill] sm:$0xff]  ;;  %v6634_v20 = vpack.c.bf16 %v5156_v53, %v5155_v6 }
 0x656   :  { %15048 = vst [vmem:[#allocation104_spill] sm:$0xff] %v13142_v58  ;;  %v4897_v16 = vadd.f32 %v12801_v3, %v4602_v48  ;;  %v4689_v24 = vadd.f32 %v4674_v21, %v4577_v60  ;;  %v4690_v48 = vadd.f32 %v13000_v5, %v15052_v54  ;;  %v6632_v21 = vpack.c.bf16 %v5138_v9, %v5137_v34  ;;  %v15053_v5 = vld [vmem:[#allocation28_spill] sm:$0xff]  ;;  %v5161_v54 = vld [vmem:[#allocation2 + $0x1c0] sm:$0xff] }
 0x657   :  { %v5074_v18 = vadd.f32 %v5060_v13, %v4994_v61  ;;  %v5160_v13 = vld [vmem:[#allocation2 + $0x1b8] sm:$0xff] }
 0x658   :  { %v4993_v43 = vadd.f32 %v12973_v4, %v4897_v16  ;;  %v4770_v60 = vadd.f32 %v4756_v50, %v4690_v48  ;;  %v5139_v4 = vld [vmem:[#allocation2 + $0x110] sm:$0xff]  ;;  %v5162_v48 = vld [vmem:[#allocation2 + $0x1c8] sm:$0xff] }
 0x659   :  { %v4754_v45 = vpop.permute.xlu1 %4753  ;;  %v13151_v22 = vpop.permute.xlu0 %4907  ;;  %v6636_v34 = vpack.c.bf16 %v5140_v2, %v5139_v4  ;;  %v5159_v50 = vld [vmem:[#allocation2 + $0x1b0] sm:$0xff]  ;;  %v4585_v4 = vsel %vm690_vm10, %v12813_v44, 0.0 }
 0x65a   :  { %15051 = vst [vmem:[#allocation88_spill] sm:$0xff] %v13151_v22  ;;  %v4769_v3 = vadd.f32 %v4754_v45, %v4689_v24  ;;  %v5073_v58 = vadd.f32 %v5058_v12, %v4993_v43  ;;  %v4691_v43 = vadd.f32 %v13045_v30, %v15053_v5  ;;  %v4818_v9 = vadd.f32 %v12971_v46, %v4770_v60  ;;  %v5146_v60 = vld [vmem:[#allocation2 + $0x148] sm:$0xff] }
 0x65b   :  { %v4772_v46 = vadd.f32 %v13111_v19, %v13080_v7  ;;  %v5145_v19 = vld [vmem:[#allocation2 + $0x140] sm:$0xff] }
 0x65c   :  { %v4817_v16 = vadd.f32 %v12958_v36, %v4769_v3  ;;  %5238 = vmatprep.mubr.f32.mxu1 %v5073_v58  ;;  %v4771_v24 = vadd.f32 %v4758_v39, %v4691_v43  ;;  %v6638_v58 = vpack.c.bf16 %v5158_v17, %v5157_v10  ;;  %v5142_v36 = vld [vmem:[#allocation2 + $0x128] sm:$0xff]  ;;  %v6642_v17 = vpack.c.bf16 %v5160_v13, %v5159_v50  ;;  %v5143_v39 = vld [vmem:[#allocation2 + $0x130] sm:$0xff] }
 0x65d   :  { %v13157_v57 = vpop.permute.xlu1 %4781  ;;  %v13159_v22 = vpop.permute.xlu0 %5085  ;;  %v6640_v30 = vpack.c.bf16 %v5142_v36, %v5141_v23  ;;  %v5165_v36 = vld [vmem:[#allocation2 + $0x1e0] sm:$0xff]  ;;  %v4903_v50 = vadd.f32 %v12751_v41, %v13113_v11  ;;  %v5167_v41 = vld [vmem:[#allocation2 + $0x1f0] sm:$0xff]  ;;  %v5168_v11 = vld [vmem:[#allocation2 + $0x1f8] sm:$0xff] }
 0x65e   :  { %5239 = vmatmul.mubr.f32.vlgmr.msra.gmra.mrb[32].mxu1 %v4817_v16  ;;  %v4819_v6 = vadd.f32 %v12984_v27, %v4771_v24  ;;  %v4820_v27 = vadd.f32 %v12998_v1, %v4772_v46  ;;  %v6648_v1 = vpack.c.bf16 %v5146_v60, %v5145_v19  ;;  %v5148_v24 = vld [vmem:[#allocation2 + $0x158] sm:$0xff]  ;;  %v5150_v46 = vld [vmem:[#allocation2 + $0x168] sm:$0xff] }
 0x65f   :  { %5243 = vmatprep.mubr.f32.mxu1 %v5074_v18  ;;  %6633 = vmatpush3.bf16.msra.mxu1 %v6632_v21  ;;  %v6644_v21 = vpack.c.bf16 %v5144_v8, %v5143_v39  ;;  %v5163_v18 = vld [vmem:[#allocation2 + $0x1d0] sm:$0xff]  ;;  %v15055_v8 = vld [vmem:[#allocation103_spill] sm:$0xff] }
 0x660   :  { %6635 = vmatprep.subr.bf16.mxu1 %v6634_v20  ;;  %v5151_v39 = vld [vmem:[#allocation2 + $0x170] sm:$0xff] }
 0x661   :  { %v13165_v45 = vpop.permute.xlu1 %4829  ;;  %v4984_v12 = vpop.permute.xlu0 %4983  ;;  %v15060_v60 = vld [vmem:[#allocation68_spill] sm:$0xff] }
 0x662   :  { %5244 = vmatmul.mubr.f32.gmra.mrb[34].mxu1 %v4818_v9  ;;  %v4996_v10 = vadd.f32 %v4984_v12, %v13068_v25  ;;  %v6646_v25 = vpack.c.bf16 %v5162_v48, %v5161_v54  ;;  %v5147_v9 = vld [vmem:[#allocation2 + $0x150] sm:$0xff]  ;;  %v4696_v54 = vadd.f32 %v13129_v63, %v12775_v29 }
 0x663   :  { %5248 = vmatprep.mubr.f32.mxu1 %v5075_v28  ;;  %6637 = vmatpush3.bf16.msra.mxu1 %v6636_v34  ;;  %v5166_v28 = vld [vmem:[#allocation2 + $0x1e8] sm:$0xff] }
 0x664   :  { %6639 = vmatprep.subr.bf16.mxu1 %v6638_v58  ;;  %v4998_v58 = vadd.f32 %v13109_v62, %v13104_v31  ;;  %v4695_v31 = vadd.f32 %v13117_v38, %v12769_v26  ;;  %v6654_v62 = vpack.c.bf16 %v5166_v28, %v5165_v36  ;;  %v15070_v28 = vld [vmem:[#allocation76_spill] sm:$0xff] }
 0x665   :  { %v5064_v0 = vpop.permute.xlu1 %5063  ;;  %v4610_v53 = vpop.permute.xlu0 %4609 }
 0x666   :  { %v5076_v3 = vadd.f32 %v5064_v0, %v4996_v10  ;;  %v4901_v61 = vadd.f32 %v12807_v37, %v4610_v53  ;;  %5249 = vmatmul.mubr.f32.gmra.mrb[36].mxu1 %v4819_v6  ;;  %v5164_v37 = vld [vmem:[#allocation2 + $0x1d8] sm:$0xff]  ;;  %v5078_v13 = vadd.f32 %v13123_v59, %v4998_v58  ;;  %v5149_v6 = vld [vmem:[#allocation2 + $0x160] sm:$0xff]  ;;  %v4999_v10 = vadd.f32 %v13121_v40, %v4903_v50 }
 0x667   :  { %6641 = vmatpush3.bf16.msra.mxu1 %v6640_v30  ;;  %v6650_v34 = vpack.c.bf16 %v5164_v37, %v5163_v18  ;;  %v6652_v30 = vpack.c.bf16 %v5148_v24, %v5147_v9  ;;  %v4775_v59 = vadd.f32 %v13127_v35, %v4695_v31  ;;  %v6656_v38 = vpack.c.bf16 %v5150_v46, %v5149_v6  ;;  %v5152_v40 = vld [vmem:[#allocation2 + $0x178] sm:$0xff]  ;;  %v15069_v58 = vld [vmem:[#allocation71_spill] sm:$0xff]  ;;  %v15073_v6 = vld [vmem:[#allocation104_spill] sm:$0xff] }
 0x668   :  { %v4997_v7 = vadd.f32 %v13095_v33, %v4901_v61  ;;  %5253 = vmatprep.mubr.f32.mxu1 %v5076_v3  ;;  %6643 = vmatprep.subr.bf16.mxu1 %v6642_v17  ;;  %v5079_v26 = vadd.f32 %v13131_v49, %v4999_v10  ;;  %v6658_v17 = vpack.c.bf16 %v5168_v11, %v5167_v41  ;;  %v15056_v0 = vld [vmem:[#allocation77_spill] sm:$0xff]  ;;  %v4936_v36 = vrot.slane %v15069_v58, 2  ;;  %v15072_v31 = vld [vmem:[#allocation51_spill] sm:$0xff]  ;;  %v15074_v46 = vld [vmem:[#allocation88_spill] sm:$0xff] }
 0x669   :  { %v4762_v16 = vpop.permute.xlu1 %4761  ;;  %v4682_v2 = vpop.permute.xlu0 %4681  ;;  %vm15057_vm13 = vcmp.lt.s32.totalorder %v15056_v0, 32  ;;  %v4823_v49 = vadd.f32 %v13043_v15, %v4775_v59  ;;  %v4776_v3 = vadd.f32 %v13135_v14, %v4696_v54  ;;  %v6660_v61 = vpack.c.bf16 %v5152_v40, %v5151_v39  ;;  %v15062_v15 = vld [vmem:[#allocation69_spill] sm:$0xff]  ;;  %v15063_v14 = vld [vmem:[#allocation27_spill] sm:$0xff]  ;;  %v15075_v59 = vld [vmem:[#allocation38_spill] sm:$0xff] }
 0x66a   :  { %v4693_v5 = vadd.f32 %v4682_v2, %v4585_v4  ;;  %5254 = vmatmul.mubr.f32.gmra.mrb[38].mxu1 %v4820_v27  ;;  %v5077_v43 = vadd.f32 %v13115_v32, %v4997_v7  ;;  %v4774_v32 = vadd.f32 %v13119_v55, %v13107_v52  ;;  %v4892_v53 = vsel %vm15057_vm13, %v15055_v8, 0.0  ;;  %v15058_v27 = vld [vmem:[#allocation30_spill] sm:$0xff]  ;;  %v15064_v2 = vld [vmem:[#allocation97_spill] sm:$0xff] }
 0x66b   :  { %6645 = vmatpush3.bf16.msra.mxu1 %v6644_v21  ;;  %v4904_v35 = vadd.f32 %v4892_v53, %v13125_v47  ;;  %vm15059_vm10 = vcmp.ge.s32.totalorder %v15058_v27, 0  ;;  %v15061_v47 = vld [vmem:[#allocation91_spill] sm:$0xff]  ;;  %v5097_v4 = vadd.f32 %v15063_v14, %v15062_v15  ;;  %v4922_v10 = vadd.f32 %v15074_v46, %v15073_v6  ;;  %v15078_v53 = vld [vmem:[#allocation60_spill] sm:$0xff]  ;;  %v15083_v27 = vld [vmem:[#allocation46_spill] sm:$0xff] }
 0x66c   :  { %v4773_v33 = vadd.f32 %v4762_v16, %v4693_v5  ;;  %5258 = vmatprep.mubr.f32.mxu1 %v5077_v43  ;;  %6647 = vmatprep.subr.bf16.mxu1 %v6646_v25  ;;  %v4822_v55 = vadd.f32 %v13027_v42, %v4774_v32  ;;  %v4661_v7 = vsel %vm15059_vm10, %v12819_v56, 0.0  ;;  %v4824_v16 = vadd.f32 %v15060_v60, %v4776_v3  ;;  %v15065_v43 = vld [vmem:[#allocation56_spill] sm:$0xff]  ;;  %v15089_v6 = vld [vmem:[#allocation15_spill] sm:$0xff] }
 0x66d   :  { %v13180_v23 = vpop.permute.xlu1 %4783  ;;  %v13182_v44 = vpop.permute.xlu0 %4909  ;;  %v4935_v20 = vrot.slane %v15061_v47, 2  ;;  %v4631_v56 = vrot.slane %v15061_v47, 6  ;;  %v15077_v39 = vrot.slane %v15069_v58, 6  ;;  %vm15084_vm1 = vcmp.ge.s32.totalorder %v15083_v27, 0 }
 0x66e   :  { %v4821_v12 = vadd.f32 %v13011_v51, %v4773_v33  ;;  %v15066_v33 = vld [vmem:[#allocation74_spill] sm:$0xff]  ;;  %v15090_v46 = vrot.slane %v15089_v6, 2 }
 0x66f   :  { %6649 = vmatpush3.bf16.msra.mxu1 %v6648_v1  ;;  %v4953_v11 = vsel %vm2230_vm11, %v4935_v20, %v4936_v36  ;;  %v4649_v40 = vsel %vm1139_vm5, %v4631_v56, %v15077_v39 }
 0x670   :  { %5259 = vmatmul.mubr.f32.gmra.mrb[40].mxu1 %v4821_v12  ;;  %6651 = vmatprep.subr.bf16.mxu1 %v6650_v34  ;;  %v15067_v34 = vrot.slane %v15066_v33, 2 }
 0x671   :  { %v13193_v52 = vpop.permute.xlu1 %4831  ;;  %v13195_v51 = vpop.permute.xlu0 %5089  ;;  %5263 = vmatprep.mubr.f32.mxu1 %v5078_v13  ;;  %v15071_v13 = vrot.slane %v15066_v33, 6 }
 0x672   :  { %v4954_v24 = vsel %vm2230_vm11, %v15067_v34, %v4935_v20 }
 0x673   :  { %6653 = vmatpush3.bf16.msra.mxu1 %v6652_v30  ;;  %v5098_v32 = vadd.f32 %v15070_v28, %v4954_v24  ;;  %v4650_v30 = vsel %vm1139_vm5, %v15071_v13, %v4631_v56 }
 0x674   :  { %5264 = vmatmul.mubr.f32.gmra.mrb[42].mxu1 %v4822_v55  ;;  %6655 = vmatprep.subr.bf16.mxu1 %v6654_v62  ;;  %v4637_v62 = vrot.slane %v15072_v31, 6  ;;  %v4795_v41 = vadd.f32 %v13157_v57, %v4650_v30  ;;  %v5099_v55 = vadd.f32 %v13159_v22, %v4953_v11  ;;  %v4796_v57 = vadd.f32 %v13180_v23, %v4649_v40 }
 0x675   :  { %v13205_v48 = vpop.permute.xlu1 %4833  ;;  %v4992_v42 = vpop.permute.xlu0 %4991  ;;  %5268 = vmatprep.mubr.f32.mxu1 %v5079_v26  ;;  %v15076_v26 = vrot.slane %v15075_v59, 2  ;;  %v15079_v22 = vrot.slane %v15078_v53, 6 }
 0x676   :  { %v5000_v21 = vadd.f32 %v4992_v42, %v4904_v35  ;;  %v15080_v35 = vld [vmem:[#allocation52_spill] sm:$0xff] }
 0x677   :  { %6657 = vmatpush3.bf16.msra.mxu1 %v6656_v38  ;;  %v4952_v38 = vsel %vm2230_vm11, %v4936_v36, %v15076_v26  ;;  %v4644_v54 = vsel %vm1139_vm5, %v15079_v22, %v4637_v62 }
 0x678   :  { %5269 = vmatmul.mubr.f32.gmra.mrb[44].mxu1 %v4823_v49  ;;  %6659 = vmatprep.subr.bf16.mxu1 %v6658_v17  ;;  %v4843_v17 = vadd.f32 %v13165_v45, %v4795_v41  ;;  %v4942_v45 = vrot.slane %v15080_v35, 2  ;;  %v15081_v49 = vld [vmem:[#allocation42_spill] sm:$0xff] }
 0x679   :  { %v4778_v29 = vpop.permute.xlu1 %4777  ;;  %v5072_v63 = vpop.permute.xlu0 %5071  ;;  %vm15082_vm0 = vcmp.lt.s32.totalorder %v15081_v49, 32 }
 0x67a   :  { %v4793_v25 = vadd.f32 %v4778_v29, %v4661_v7  ;;  %v5080_v19 = vadd.f32 %v5072_v63, %v5000_v21  ;;  %v4923_v42 = vadd.f32 %v13182_v44, %v4843_v17  ;;  %v4968_v3 = vsel %vm15082_vm0, %v4952_v38, 0.0 }
 0x67b   :  { %6661 = vmatpush3.bf16.msra.mxu1 %v6660_v61  ;;  %v4844_v61 = vadd.f32 %v13193_v52, %v4796_v57  ;;  %v4669_v7 = vsel %vm15084_vm1, %v4644_v54, 0.0  ;;  %v4638_v63 = vrot.slane %v15080_v35, 6  ;;  %v15085_v44 = vrot.slane %v15072_v31, 2 }
 0x67c   :  { %v4841_v18 = vadd.f32 %v15064_v2, %v4793_v25  ;;  %5273 = vmatprep.mubr.f32.mxu1 %v5080_v19 }
 0x67d   :  { %v4788_v37 = vpop.permute.xlu1 %4787  ;;  %v4914_v5 = vpop.permute.xlu0 %4913  ;;  %5274 = vmatmul.mubr.f32.gmra.mrb[46].mxu1 %v4824_v16  ;;  %v4947_v60 = vsel %vm2230_vm11, %v15085_v44, %v4942_v45  ;;  %v15086_v16 = vld [vmem:[#allocation57_spill] sm:$0xff]  ;;  %v4643_v2 = vsel %vm1139_vm5, %v4637_v62, %v4638_v63 }
 0x67e   :  { %v4921_v1 = vadd.f32 %v15065_v43, %v4841_v18  ;;  %5343 = vmatprep.mubr.f32.mxu1 %v5097_v4  ;;  %v4943_v47 = vrot.slane %v15086_v16, 2  ;;  %v5101_v52 = vadd.f32 %v13195_v51, %v4947_v60  ;;  %v4639_v15 = vrot.slane %v15086_v16, 6  ;;  %v15093_v60 = vld [vmem:[#allocation12_spill] sm:$0xff] }
 0x67f   :  { %v4798_v56 = vadd.f32 %v4788_v37, %v4643_v2 }
 0x680   :  { %v4946_v43 = vsel %vm2230_vm11, %v4942_v45, %v4943_v47 }
 0x681   :  { %v4836_v12 = vpop.permute.xlu1 %4835  ;;  %v5092_v50 = vpop.permute.xlu0 %5091  ;;  %5344 = vmatmul.mubr.f32.vlgmr.msra.gmra.mrb[48].mxu1 %v4921_v1  ;;  %v15087_v1 = vld [vmem:[#allocation83_spill] sm:$0xff] }
 0x682   :  { %5348 = vmatprep.mubr.f32.mxu1 %v5098_v32  ;;  %v4944_v33 = vrot.slane %v15087_v1, 2  ;;  %v5102_v34 = vadd.f32 %v5092_v50, %v4946_v43  ;;  %v4846_v51 = vadd.f32 %v4836_v12, %v4798_v56  ;;  %v15088_v13 = vrot.slane %v15087_v1, 6 }
 0x684   :  { %v4641_v50 = vsel %vm1139_vm5, %v4639_v15, %v15088_v13 }
 0x685   :  { %v4790_v8 = vpop.permute.xlu1 %4789  ;;  %v5088_v0 = vpop.permute.xlu0 %5087  ;;  %5349 = vmatmul.mubr.f32.gmra.mrb[50].mxu1 %v4922_v10  ;;  %v4960_v10 = vsel %vm2230_vm11, %v4944_v33, %v15090_v46 }
 0x686   :  { %5353 = vmatprep.mubr.f32.mxu1 %v5099_v55  ;;  %v5100_v21 = vadd.f32 %v5088_v0, %v4968_v3  ;;  %v15091_v55 = vld [vmem:[#allocation80_spill] sm:$0xff] }
 0x687   :  { %vm15092_vm15 = vcmp.lt.s32.totalorder %v15091_v55, 32 }
 0x688   :  { %v4976_v59 = vsel %vm15092_vm15, %v4960_v10, 0.0 }
 0x689   :  { %v4786_v23 = vpop.permute.xlu1 %4785  ;;  %v4912_v29 = vpop.permute.xlu0 %4911  ;;  %5354 = vmatmul.mubr.f32.gmra.mrb[52].mxu1 %v4923_v42 }
 0x68a   :  { %v4797_v25 = vadd.f32 %v4786_v23, %v4669_v7  ;;  %v4924_v19 = vadd.f32 %v4912_v29, %v4844_v61  ;;  %5358 = vmatprep.mubr.f32.mxu1 %v5100_v21 }
 0x68c   :  { %v4845_v20 = vadd.f32 %v13205_v48, %v4797_v25  ;;  %v4642_v48 = vsel %vm1139_vm5, %v4638_v63, %v4639_v15  ;;  %v13289_v25 = vld [vmem:[%s13661_s6] sm:$0x7] }
 0x68d   :  { %v4838_v14 = vpop.permute.xlu1 %4837  ;;  %v4916_v4 = vpop.permute.xlu0 %4915  ;;  %5359 = vmatmul.mubr.f32.gmra.mrb[54].mxu1 %v4924_v19  ;;  %v4799_v36 = vadd.f32 %v4790_v8, %v4642_v48  ;;  %v5173_v16 = vrot.slane %v13289_v25, %v15093_v60 }
 0x68e   :  { %5363 = vmatprep.mubr.f32.mxu1 %v5101_v52  ;;  %v4925_v18 = vadd.f32 %v4914_v5, %v4845_v20  ;;  %v4926_v28 = vadd.f32 %v4916_v4, %v4846_v51  ;;  %v4945_v5 = vsel %vm2230_vm11, %v4943_v47, %v4944_v33 }
 0x68f   :  { %v4847_v37 = vadd.f32 %v4838_v14, %v4799_v36 }
 0x691   :  { %v4792_v24 = vpop.permute.xlu1 %4791  ;;  %v5094_v58 = vpop.permute.xlu0 %5093  ;;  %5364 = vmatmul.mubr.f32.gmra.mrb[56].mxu1 %v4925_v18 }
 0x692   :  { %5368 = vmatprep.mubr.f32.mxu1 %v5102_v34  ;;  %v5103_v32 = vadd.f32 %v5094_v58, %v4945_v5  ;;  %v4800_v31 = vadd.f32 %v4792_v24, %v4641_v50 }
 0x695   :  { %v4840_v12 = vpop.permute.xlu1 %4839  ;;  %v4918_v30 = vpop.permute.xlu0 %4917  ;;  %5369 = vmatmul.mubr.f32.gmra.mrb[58].mxu1 %v4926_v28 }
 0x696   :  { %v4927_v62 = vadd.f32 %v4918_v30, %v4847_v37  ;;  %5373 = vmatprep.mubr.f32.mxu1 %v5103_v32  ;;  %v4848_v41 = vadd.f32 %v4840_v12, %v4800_v31 }
 0x699   :  { %v4920_v11 = vpop.permute.xlu1 %4919  ;;  %v5096_v26 = vpop.permute.xlu0 %5095  ;;  %5374 = vmatmul.mubr.f32.gmra.mrb[60].mxu1 %v4927_v62 }
 0x69a   :  { %v4928_v38 = vadd.f32 %v4920_v11, %v4848_v41  ;;  %v5104_v17 = vadd.f32 %v5096_v26, %v4976_v59 }
 0x69c   :  { %5378 = vmatprep.mubr.f32.mxu1 %v5104_v17 }
 0x69d   :  { %5379 = vmatmul.mubr.f32.gmra.mrb[62].mxu1 %v4928_v38 }
 0x731   :  { %v6486_v39 = vpop.f32.mrb[32].mxu1 }
 0x732   :  { %v6487_v40 = vpop.f32.mrb[33].mxu1 }
 0x733   :  { %v6488_v8 = vadd.f32 %v6487_v40, %v6486_v39 }
 0x735   :  { %v6489_v0 = vpop.f32.mrb[34].mxu1  ;;  %v5241_v15 = vadd.f32 %v6488_v8, %v5173_v16 }
 0x736   :  { %v6490_v57 = vpop.f32.mrb[35].mxu1 }
 0x737   :  { %v6491_v53 = vadd.f32 %v6490_v57, %v6489_v0 }
 0x739   :  { %v6492_v22 = vpop.f32.mrb[36].mxu1  ;;  %v5246_v56 = vadd.f32 %v6491_v53, %v5173_v16 }
 0x73a   :  { %v6493_v9 = vpop.f32.mrb[37].mxu1 }
 0x73b   :  { %v6494_v54 = vadd.f32 %v6493_v9, %v6492_v22 }
 0x73d   :  { %v6495_v42 = vpop.f32.mrb[38].mxu1  ;;  %v5251_v34 = vadd.f32 %v6494_v54, %v5173_v16 }
 0x73e   :  { %v6496_v35 = vpop.f32.mrb[39].mxu1 }
 0x73f   :  { %v6497_v45 = vadd.f32 %v6496_v35, %v6495_v42 }
 0x741   :  { %v5256_v13 = vadd.f32 %v6497_v45, %v5173_v16 }
 0x743   :  { %v6498_v49 = vpop.f32.mrb[40].mxu1 }
 0x744   :  { %v6499_v3 = vpop.f32.mrb[41].mxu1 }
 0x745   :  { %v6500_v61 = vadd.f32 %v6499_v3, %v6498_v49 }
 0x747   :  { %v6501_v21 = vpop.f32.mrb[42].mxu1  ;;  %v5261_v10 = vadd.f32 %v6500_v61, %v5173_v16 }
 0x748   :  { %v6502_v27 = vpop.f32.mrb[43].mxu1 }
 0x749   :  { %v6503_v7 = vadd.f32 %v6502_v27, %v6501_v21 }
 0x74b   :  { %v6504_v23 = vpop.f32.mrb[44].mxu1  ;;  %v5266_v39 = vadd.f32 %v6503_v7, %v5173_v16 }
 0x74c   :  { %v6505_v29 = vpop.f32.mrb[45].mxu1 }
 0x74d   :  { %v6506_v63 = vadd.f32 %v6505_v29, %v6504_v23 }
 0x74f   :  { %v5271_v54 = vadd.f32 %v6506_v63, %v5173_v16 }
 0x750   :  { %v6507_v19 = vpop.f32.mrb[46].mxu1 }
 0x751   :  { %v6508_v44 = vpop.f32.mrb[47].mxu1 }
 0x752   :  { %v6509_v47 = vadd.f32 %v6508_v44, %v6507_v19 }
 0x754   :  { %v6542_v52 = vpop.f32.mrb[48].mxu1  ;;  %v5276_v27 = vadd.f32 %v6509_v47, %v5173_v16 }
 0x755   :  { %v6543_v20 = vpop.f32.mrb[49].mxu1 }
 0x756   :  { %v6544_v14 = vadd.f32 %v6543_v20, %v6542_v52 }
 0x758   :  { %v13293_v4 = vadd.f32 %v6544_v14, %v5241_v15  ;;  %v6545_v2 = vpop.f32.mrb[50].mxu1 }
 0x759   :  { %v6546_v18 = vpop.f32.mrb[51].mxu1 }
 0x75a   :  { %v6547_v43 = vadd.f32 %v6546_v18, %v6545_v2  ;;  %v5384_v48 = vmul.f32 %v13293_v4, %v13293_v4 }
 0x75c   :  { %v13295_v1 = vadd.f32 %v6547_v43, %v5246_v56  ;;  %v6548_v33 = vpop.f32.mrb[52].mxu1 }
 0x75d   :  { %v6549_v51 = vpop.f32.mrb[53].mxu1 }
 0x75e   :  { %v5385_v24 = vmul.f32 %v13295_v1, %v13295_v1  ;;  %v5392_v58 = vadd.f32 %v13295_v1, %v13293_v4  ;;  %v6550_v36 = vadd.f32 %v6549_v51, %v6548_v33 }
 0x760   :  { %v5405_v28 = vadd.f32 %v5385_v24, %v5384_v48  ;;  %v13303_v5 = vadd.f32 %v6550_v36, %v5251_v34  ;;  %v6551_v37 = vpop.f32.mrb[54].mxu1 }
 0x761   :  { %v6552_v32 = vpop.f32.mrb[55].mxu1 }
 0x762   :  { %v5386_v50 = vmul.f32 %v13303_v5, %v13303_v5  ;;  %v5393_v12 = vadd.f32 %v5392_v58, %v13303_v5  ;;  %v6553_v30 = vadd.f32 %v6552_v32, %v6551_v37 }
 0x764   :  { %v5406_v31 = vadd.f32 %v5405_v28, %v5386_v50  ;;  %v13308_v62 = vadd.f32 %v6553_v30, %v5256_v13  ;;  %v6554_v6 = vpop.f32.mrb[56].mxu1  ;;  %v15094_v30 = vld [vmem:[#allocation13_spill] sm:$0xff] }
 0x765   :  { %v6555_v46 = vpop.f32.mrb[57].mxu1 }
 0x766   :  { %v5387_v41 = vmul.f32 %v13308_v62, %v13308_v62  ;;  %v5394_v11 = vadd.f32 %v5393_v12, %v13308_v62  ;;  %v6556_v55 = vadd.f32 %v6555_v46, %v6554_v6 }
 0x768   :  { %v5407_v59 = vadd.f32 %v5406_v31, %v5387_v41  ;;  %v5366_v26 = vadd.f32 %v6556_v55, %v5261_v10  ;;  %v6557_v38 = vpop.f32.mrb[58].mxu1 }
 0x769   :  { %v6558_v17 = vpop.f32.mrb[59].mxu1 }
 0x76a   :  { %v5388_v40 = vmul.f32 %v5366_v26, %v5366_v26  ;;  %v5395_v8 = vadd.f32 %v5394_v11, %v5366_v26  ;;  %v6559_v0 = vadd.f32 %v6558_v17, %v6557_v38 }
 0x76c   :  { %v5408_v57 = vadd.f32 %v5407_v59, %v5388_v40  ;;  %v5371_v53 = vadd.f32 %v6559_v0, %v5266_v39  ;;  %v6560_v22 = vpop.f32.mrb[60].mxu1  ;;  %v15095_v40 = vld [vmem:[#allocation14_spill] sm:$0xff]  ;;  %v7035_v0 = vmov 0.0  }
 0x76d   :  { %v6561_v9 = vpop.f32.mrb[61].mxu1 }
 0x76e   :  { %v5389_v42 = vmul.f32 %v5371_v53, %v5371_v53  ;;  %v5396_v35 = vadd.f32 %v5395_v8, %v5371_v53  ;;  %v6562_v45 = vadd.f32 %v6561_v9, %v6560_v22 }
 0x770   :  { %v5409_v49 = vadd.f32 %v5408_v57, %v5389_v42  ;;  %v5376_v3 = vadd.f32 %v6562_v45, %v5271_v54  ;;  %v6563_v61 = vpop.f32.mrb[62].mxu1  ;;  %v5489_v57 = vrot.slane %v7035_v0, 4 }
 0x771   :  { %v6564_v21 = vpop.f32.mrb[63].mxu1 }
 0x772   :  { %v5390_v23 = vmul.f32 %v5376_v3, %v5376_v3  ;;  %v5397_v29 = vadd.f32 %v5396_v35, %v5376_v3  ;;  %v6565_v19 = vadd.f32 %v6564_v21, %v6563_v61 }
 0x774   :  { %v5410_v7 = vadd.f32 %v5409_v49, %v5390_v23  ;;  %v5381_v44 = vadd.f32 %v6565_v19, %v5276_v27 }
 0x776   :  { %v5391_v52 = vmul.f32 %v5381_v44, %v5381_v44  ;;  %v5398_v20 = vadd.f32 %v5397_v29, %v5381_v44 }
 0x778   :  { %v5399_v15 = vrot.slane %v5398_v20, 4  ;;  %v5411_v14 = vadd.f32 %v5410_v7, %v5391_v52 }
 0x77a   :  { %v5400_v2 = vadd.f32 %v5399_v15, %v5398_v20  ;;  %v5412_v18 = vrot.slane %v5411_v14, 4 }
 0x77c   :  { %v5401_v63 = vrot.slane %v5400_v2, 2  ;;  %v5413_v56 = vadd.f32 %v5412_v18, %v5411_v14 }
 0x77e   :  { %v5402_v43 = vadd.f32 %v5401_v63, %v5400_v2  ;;  %v5414_v33 = vrot.slane %v5413_v56, 2 }
 0x780   :  { %v5403_v34 = vrot.slane %v5402_v43, 1  ;;  %v5415_v51 = vadd.f32 %v5414_v33, %v5413_v56 }
 0x782   :  { %v5404_v48 = vadd.f32 %v5403_v34, %v5402_v43  ;;  %v5416_v24 = vrot.slane %v5415_v51, 1 }
 0x784   :  { %v5417_v16 = vadd.f32 %v5416_v24, %v5415_v51  ;;  %v5418_v47 = vmul.f32 0.015625, %v5404_v48 }
 0x786   :  { %v5419_v58 = vmul.f32 0.015625, %v5417_v16  ;;  %v5420_v36 = vmul.f32 %v5418_v47, %v5418_v47 }
 0x788   :  { %v5421_v28 = vsub.f32 %v5419_v58, %v5420_v36  ;;  %v5815_v36 = vld [vmem:[#allocation5 + $0x208] sm:$0xff] }
 0x78a   :  { %v5422_v37 = vmax.f32 %v5421_v28, 0.0  ;;  %v5817_v28 = vld [vmem:[#allocation5 + $0x218] sm:$0xff] }
 0x78c   :  { %v5423_v32 = vadd.f32 1e-05, %v5422_v37  ;;  %v5814_v37 = vld [vmem:[#allocation5 + $0x200] sm:$0xff] }
 0x78e   :  { %6947 = vrsqrt.f32 %v5423_v32  ;;  %v6726_v32 = vpack.c.bf16 %v5817_v28, %v5815_v36 }
 0x790   :  { %6727 = vmatprep.subr.bf16.mxu0 %v6726_v32  ;;  %v5844_v32 = vld [vmem:[#allocation5 + $0x2f0] sm:$0xff] }
 0x798   :  { %v6948_v13 = vpop.eup %6947 }
 0x799   :  { %v5425_v50 = vmul.f32 %v6948_v13, %v13289_v25  ;;  %v5816_v13 = vld [vmem:[#allocation5 + $0x210] sm:$0xff] }
 0x79b   :  { %v5426_v12 = vmul.f32 %v5425_v50, %v5418_v47  ;;  %v5434_v31 = vrot.slane %v5425_v50, %v15094_v30  ;;  %v5819_v50 = vld [vmem:[#allocation5 + $0x228] sm:$0xff] }
 0x79d   :  { %v5428_v6 = vrot.slane %v5426_v12, 7  ;;  %v5442_v46 = vmul.f32 %v5434_v31, %v5381_v44  ;;  %v5440_v10 = vmul.f32 %v5434_v31, %v5371_v53  ;;  %v5439_v41 = vmul.f32 %v5434_v31, %v5366_v26  ;;  %v5821_v12 = vld [vmem:[#allocation5 + $0x238] sm:$0xff] }
 0x79e   :  { %v5436_v11 = vmul.f32 %v5434_v31, %v13295_v1  ;;  %v5435_v55 = vmul.f32 %v5434_v31, %v13293_v4  ;;  %v5441_v59 = vmul.f32 %v5434_v31, %v5376_v3  ;;  %v5437_v38 = vmul.f32 %v5434_v31, %v13303_v5 }
 0x79f   :  { %v5430_v17 = vsub.f32 %v13289_v25, %v5428_v6  ;;  %v5438_v39 = vmul.f32 %v5434_v31, %v13308_v62  ;;  %v6728_v31 = vpack.c.bf16 %v5816_v13, %v5814_v37  ;;  %v6730_v6 = vpack.c.bf16 %v5821_v12, %v5819_v50  ;;  %v5842_v37 = vld [vmem:[#allocation5 + $0x2e0] sm:$0xff]  ;;  %v5847_v13 = vld [vmem:[#allocation5 + $0x308] sm:$0xff]  ;;  %v5849_v50 = vld [vmem:[#allocation5 + $0x318] sm:$0xff] }
 0x7a0   :  { %v6756_v12 = vpack.c.bf16 %v5844_v32, %v5842_v37  ;;  %v5871_v37 = vld [vmem:[#allocation5 + $0x3c8] sm:$0xff]  ;;  %v5873_v32 = vld [vmem:[#allocation5 + $0x3d8] sm:$0xff] }
 0x7a1   :  { %v5446_v8 = vrot.slane %v5430_v17, %v15095_v40  ;;  %6729 = vmatpush1.bf16.msra.mxu0 %v6728_v31  ;;  %v5824_v17 = vld [vmem:[#allocation5 + $0x250] sm:$0xff]  ;;  %v5829_v40 = vld [vmem:[#allocation5 + $0x278] sm:$0xff]  ;;  %v6758_v31 = vpack.c.bf16 %v5849_v50, %v5847_v13 }
 0x7a2   :  { %6731 = vmatprep.subr.bf16.mxu0 %v6730_v6  ;;  %v5846_v6 = vld [vmem:[#allocation5 + $0x300] sm:$0xff] }
 0x7a3   :  { %v13321_v22 = vadd.f32 %v5446_v8, %v5442_v46  ;;  %v5452_v9 = vadd.f32 %v5446_v8, %v5440_v10  ;;  %v5451_v53 = vadd.f32 %v5446_v8, %v5439_v41  ;;  %v5448_v26 = vadd.f32 %v5446_v8, %v5436_v11  ;;  %v5818_v46 = vld [vmem:[#allocation5 + $0x220] sm:$0xff]  ;;  %v5820_v10 = vld [vmem:[#allocation5 + $0x230] sm:$0xff]  ;;  %v5823_v41 = vld [vmem:[#allocation5 + $0x248] sm:$0xff] }
 0x7a4   :  { %v5447_v54 = vadd.f32 %v5446_v8, %v5435_v55  ;;  %v5453_v1 = vadd.f32 %v5446_v8, %v5441_v59  ;;  %v13323_v42 = vadd.f32 %v5446_v8, %v5437_v38  ;;  %v13325_v4 = vadd.f32 %v5446_v8, %v5438_v39  ;;  %v5825_v11 = vld [vmem:[#allocation5 + $0x258] sm:$0xff]  ;;  %v5822_v38 = vld [vmem:[#allocation5 + $0x240] sm:$0xff]  ;;  %v5827_v39 = vld [vmem:[#allocation5 + $0x268] sm:$0xff] }
 0x7a5   :  { %v5460_v5 = vmax.f32 %v5452_v9, 0.0  ;;  %v5459_v35 = vmax.f32 %v5451_v53, 0.0  ;;  %v5462_v25 = vmax.f32 %v13321_v22, 0.0  ;;  %v5456_v49 = vmax.f32 %v5448_v26, 0.0  ;;  %v5828_v9 = vld [vmem:[#allocation5 + $0x270] sm:$0xff]  ;;  %v5831_v53 = vld [vmem:[#allocation5 + $0x288] sm:$0xff] }
 0x7a6   :  { %v5455_v3 = vmax.f32 %v5447_v54, 0.0  ;;  %v5458_v61 = vmax.f32 %v13325_v4, 0.0  ;;  %v5461_v14 = vmax.f32 %v5453_v1, 0.0  ;;  %v5457_v43 = vmax.f32 %v13323_v42, 0.0  ;;  %v5833_v26 = vld [vmem:[#allocation5 + $0x298] sm:$0xff] }
 0x7a7   :  { %v13328_v62 = vadd.f32 %v5489_v57, %v5460_v5  ;;  %v13330_v45 = vrot.slane %v5459_v35, 4  ;;  %v13335_v23 = vadd.f32 %v5489_v57, %v5459_v35  ;;  %v13337_v29 = vrot.slane %v5460_v5, 4  ;;  %v5830_v5 = vld [vmem:[#allocation5 + $0x280] sm:$0xff]  ;;  %v5832_v35 = vld [vmem:[#allocation5 + $0x290] sm:$0xff] }
 0x7a8   :  { %v13343_v19 = vadd.f32 %v5489_v57, %v5462_v25  ;;  %v13347_v7 = vadd.f32 %v5489_v57, %v5458_v61  ;;  %v13351_v20 = vadd.f32 %v5489_v57, %v5456_v49  ;;  %v13353_v15 = vrot.slane %v5455_v3, 4 }
 0x7a9   :  { %v5548_v21 = vrot.slane %v13328_v62, 2  ;;  %v5547_v27 = vrot.slane %v13330_v45, 2  ;;  %v5546_v44 = vrot.slane %v13335_v23, 2  ;;  %v5549_v52 = vrot.slane %v13337_v29, 2 }
 0x7aa   :  { %v5540_v2 = vrot.slane %v13351_v20, 2  ;;  %v5539_v18 = vrot.slane %v13353_v15, 2  ;;  %v13359_v63 = vadd.f32 %v5489_v57, %v5455_v3  ;;  %v13361_v56 = vrot.slane %v5456_v49, 4  ;;  %v5835_v49 = vld [vmem:[#allocation5 + $0x2a8] sm:$0xff]  ;;  %v5837_v3 = vld [vmem:[#allocation5 + $0x2b8] sm:$0xff] }
 0x7ab   :  { %5580 = vrot.lane.b32.xlu1 %v5548_v21, %s7032_s22  ;;  %5576 = vrot.lane.b32.xlu0 %v5547_v27, %s7032_s22  ;;  %v13368_v51 = vrot.slane %v5461_v14, 4  ;;  %v13370_v48 = vadd.f32 %v5489_v57, %v5461_v14  ;;  %v13378_v47 = vadd.f32 %v5489_v57, %v5457_v43  ;;  %v6732_v55 = vpack.c.bf16 %v5820_v10, %v5818_v46  ;;  %v5826_v57 = vld [vmem:[#allocation5 + $0x260] sm:$0xff]  ;;  %v5839_v14 = vld [vmem:[#allocation5 + $0x2c8] sm:$0xff]  ;;  %v5848_v46 = vld [vmem:[#allocation5 + $0x310] sm:$0xff] }
 0x7ac   :  { %v5538_v33 = vrot.slane %v13359_v63, 2  ;;  %v5541_v34 = vrot.slane %v13361_v56, 2  ;;  %v6734_v59 = vpack.c.bf16 %v5825_v11, %v5823_v41  ;;  %v6736_v8 = vpack.c.bf16 %v5824_v17, %v5822_v38  ;;  %v5851_v10 = vld [vmem:[#allocation5 + $0x328] sm:$0xff]  ;;  %v5853_v41 = vld [vmem:[#allocation5 + $0x338] sm:$0xff]  ;;  %v5852_v38 = vld [vmem:[#allocation5 + $0x330] sm:$0xff] }
 0x7ad   :  { %v5551_v24 = vrot.slane %v13368_v51, 2  ;;  %v5550_v16 = vrot.slane %v13370_v48, 2  ;;  %v5542_v58 = vrot.slane %v13378_v47, 2  ;;  %6733 = vmatpush1.bf16.msra.mxu0 %v6732_v55  ;;  %v6738_v0 = vpack.c.bf16 %v5829_v40, %v5827_v39  ;;  %v5855_v17 = vld [vmem:[#allocation5 + $0x348] sm:$0xff]  ;;  %v5857_v39 = vld [vmem:[#allocation5 + $0x358] sm:$0xff] }
 0x7ae   :  { %6735 = vmatprep.subr.bf16.mxu0 %v6734_v59  ;;  %v6740_v54 = vpack.c.bf16 %v5828_v9, %v5826_v57  ;;  %v6742_v1 = vpack.c.bf16 %v5833_v26, %v5831_v53  ;;  %v6744_v21 = vpack.c.bf16 %v5832_v35, %v5830_v5  ;;  %v6746_v27 = vpack.c.bf16 %v5837_v3, %v5835_v49  ;;  %v5850_v59 = vld [vmem:[#allocation5 + $0x320] sm:$0xff]  ;;  %v5856_v57 = vld [vmem:[#allocation5 + $0x350] sm:$0xff]  ;;  %v5859_v9 = vld [vmem:[#allocation5 + $0x368] sm:$0xff] }
 0x7af   :  { %5572 = vrot.lane.b32.xlu1 %v5546_v44, %s7032_s22  ;;  %5584 = vrot.lane.b32.xlu0 %v5549_v52, %s7032_s22  ;;  %v5834_v44 = vld [vmem:[#allocation5 + $0x2a0] sm:$0xff]  ;;  %v5836_v52 = vld [vmem:[#allocation5 + $0x2b0] sm:$0xff]  ;;  %v6760_v11 = vpack.c.bf16 %v5848_v46, %v5846_v6  ;;  %v6762_v55 = vpack.c.bf16 %v5853_v41, %v5851_v10  ;;  %v6764_v40 = vpack.c.bf16 %v5852_v38, %v5850_v59  ;;  %v5861_v53 = vld [vmem:[#allocation5 + $0x378] sm:$0xff] }
 0x7b0   :  { %v5860_v5 = vld [vmem:[#allocation5 + $0x370] sm:$0xff]  ;;  %v5863_v49 = vld [vmem:[#allocation5 + $0x388] sm:$0xff]  ;;  %v5865_v3 = vld [vmem:[#allocation5 + $0x398] sm:$0xff] }
 0x7b1   :  { %6737 = vmatpush1.bf16.msra.mxu0 %v6736_v8  ;;  %v6766_v8 = vpack.c.bf16 %v5857_v39, %v5855_v17  ;;  %v5872_v6 = vld [vmem:[#allocation5 + $0x3d0] sm:$0xff]  ;;  %v5875_v17 = vld [vmem:[#allocation5 + $0x3e8] sm:$0xff]  ;;  %v5877_v39 = vld [vmem:[#allocation5 + $0x3f8] sm:$0xff] }
 0x7b2   :  { %6739 = vmatprep.subr.bf16.mxu0 %v6738_v0  ;;  %v5854_v0 = vld [vmem:[#allocation5 + $0x340] sm:$0xff] }
 0x7b3   :  { %5578 = vrot.lane.b32.xlu1 %v5540_v2, %s7032_s22  ;;  %5574 = vrot.lane.b32.xlu0 %v5539_v18, %s7032_s22  ;;  %v5841_v2 = vld [vmem:[#allocation5 + $0x2d8] sm:$0xff]  ;;  %v6748_v18 = vpack.c.bf16 %v5836_v52, %v5834_v44  ;;  %v6768_v26 = vpack.c.bf16 %v5856_v57, %v5854_v0  ;;  %v5864_v44 = vld [vmem:[#allocation5 + $0x390] sm:$0xff]  ;;  %v15096_v52 = vlaneseq }
 0x7b4   :  { %v5876_v0 = vld [vmem:[#allocation5 + $0x3f0] sm:$0xff] }
 0x7b5   :  { %6741 = vmatpush1.bf16.msra.mxu0 %v6740_v54  ;;  %v6770_v54 = vpack.c.bf16 %v5861_v53, %v5859_v9 }
 0x7b6   :  { %6743 = vmatprep.subr.bf16.mxu0 %v6742_v1  ;;  %v5858_v1 = vld [vmem:[#allocation5 + $0x360] sm:$0xff] }
 0x7b7   :  { %5570 = vrot.lane.b32.xlu1 %v5538_v33, %s7032_s22  ;;  %5582 = vrot.lane.b32.xlu0 %v5541_v34, %s7032_s22  ;;  %v6750_v33 = vpack.c.bf16 %v5841_v2, %v5839_v14  ;;  %v5838_v34 = vld [vmem:[#allocation5 + $0x2c0] sm:$0xff]  ;;  %v6772_v35 = vpack.c.bf16 %v5860_v5, %v5858_v1  ;;  %v13385_v14 = vand.u32 127, %v15096_v52  ;;  %v13436_v52 = vrot.slane %v5457_v43, 4 }
 0x7b9   :  { %6745 = vmatpush1.bf16.msra.mxu0 %v6744_v21  ;;  %v5862_v21 = vld [vmem:[#allocation5 + $0x380] sm:$0xff]  ;;  %vm5604_vm5 = vcmp.lt.s32.totalorder %v13385_v14, 64  ;;  %vm5717_vm11 = vcmp.lt.s32.totalorder %v13385_v14, 32 }
 0x7ba   :  { %6747 = vmatprep.subr.bf16.mxu0 %v6746_v27  ;;  %v6774_v27 = vpack.c.bf16 %v5865_v3, %v5863_v49  ;;  %v6776_v2 = vpack.c.bf16 %v5864_v44, %v5862_v21 }
 0x7bb   :  { %5592 = vrot.lane.b32.xlu1 %v5551_v24, %s7032_s22  ;;  %5588 = vrot.lane.b32.xlu0 %v5550_v16, %s7032_s22  ;;  %v5840_v24 = vld [vmem:[#allocation5 + $0x2d0] sm:$0xff]  ;;  %v5843_v16 = vld [vmem:[#allocation5 + $0x2e8] sm:$0xff] }
 0x7bc   :  { %v6752_v36 = vpack.c.bf16 %v5840_v24, %v5838_v34  ;;  %v5867_v34 = vld [vmem:[#allocation5 + $0x3a8] sm:$0xff]  ;;  %v5869_v24 = vld [vmem:[#allocation5 + $0x3b8] sm:$0xff] }
 0x7bd   :  { %6749 = vmatpush1.bf16.msra.mxu0 %v6748_v18 }
 0x7be   :  { %6751 = vmatprep.subr.bf16.mxu0 %v6750_v33 }
 0x7bf   :  { %5586 = vrot.lane.b32.xlu1 %v5542_v58, %s7032_s22  ;;  %v5845_v58 = vld [vmem:[#allocation5 + $0x2f8] sm:$0xff] }
 0x7c0   :  { %v6754_v28 = vpack.c.bf16 %v5845_v58, %v5843_v16  ;;  %v5866_v16 = vld [vmem:[#allocation5 + $0x3a0] sm:$0xff] }
 0x7c1   :  { %6753 = vmatpush1.bf16.msra.mxu0 %v6752_v36  ;;  %v6778_v36 = vpack.c.bf16 %v5869_v24, %v5867_v34  ;;  %v5544_v34 = vrot.slane %v13347_v7, 2 }
 0x7c2   :  { %6755 = vmatprep.subr.bf16.mxu0 %v6754_v28  ;;  %v5868_v28 = vld [vmem:[#allocation5 + $0x3b0] sm:$0xff] }
 0x7c3   :  { %v6780_v50 = vpack.c.bf16 %v5868_v28, %v5866_v16  ;;  %v13459_v16 = vrot.slane %v5458_v61, 4 }
 0x7c5   :  { %6757 = vmatpush1.bf16.msra.mxu0 %v6756_v12  ;;  %v6782_v12 = vpack.c.bf16 %v5873_v32, %v5871_v37  ;;  %v5545_v61 = vrot.slane %v13459_v16, 2  ;;  %v5751_v32 = vld [vmem:[#allocation5 + $0x8] sm:$0xff] }
 0x7c6   :  { %6759 = vmatprep.subr.bf16.mxu0 %v6758_v31  ;;  %v5870_v31 = vld [vmem:[#allocation5 + $0x3c0] sm:$0xff] }
 0x7c9   :  { %6761 = vmatpush1.bf16.msra.mxu0 %v6760_v11  ;;  %v6784_v11 = vpack.c.bf16 %v5872_v6, %v5870_v31  ;;  %v5750_v31 = vld [vmem:[#allocation5] sm:$0xff]  ;;  %v5752_v6 = vld [vmem:[#allocation5 + $0x10] sm:$0xff] }
 0x7ca   :  { %6763 = vmatprep.subr.bf16.mxu0 %v6762_v55 }
 0x7cd   :  { %6765 = vmatpush1.bf16.msra.mxu0 %v6764_v40  ;;  %v5874_v40 = vld [vmem:[#allocation5 + $0x3e0] sm:$0xff] }
 0x7ce   :  { %6767 = vmatprep.subr.bf16.mxu0 %v6766_v8  ;;  %v6786_v8 = vpack.c.bf16 %v5877_v39, %v5875_v17  ;;  %v5754_v17 = vld [vmem:[#allocation5 + $0x20] sm:$0xff]  ;;  %v5756_v39 = vld [vmem:[#allocation5 + $0x30] sm:$0xff] }
 0x7d1   :  { %6769 = vmatpush1.bf16.msra.mxu0 %v6768_v26 }
 0x7d2   :  { %6771 = vmatprep.subr.bf16.mxu0 %v6770_v54  ;;  %v6788_v54 = vpack.c.bf16 %v5876_v0, %v5874_v40  ;;  %v6668_v40 = vpack.c.bf16 %v5756_v39, %v5754_v17  ;;  %v5761_v0 = vld [vmem:[#allocation5 + $0x58] sm:$0xff] }
 0x7d5   :  { %6773 = vmatpush1.bf16.msra.mxu0 %v6772_v35 }
 0x7d6   :  { %6775 = vmatprep.subr.bf16.mxu0 %v6774_v27 }
 0x7d9   :  { %6777 = vmatpush1.bf16.msra.mxu0 %v6776_v2 }
 0x7da   :  { %6779 = vmatprep.subr.bf16.mxu0 %v6778_v36 }
 0x7dd   :  { %6781 = vmatpush1.bf16.msra.mxu0 %v6780_v50  ;;  %v5753_v50 = vld [vmem:[#allocation5 + $0x18] sm:$0xff] }
 0x7de   :  { %6783 = vmatprep.subr.bf16.mxu0 %v6782_v12  ;;  %v6662_v12 = vpack.c.bf16 %v5753_v50, %v5751_v32  ;;  %v5774_v32 = vld [vmem:[#allocation5 + $0xc0] sm:$0xff]  ;;  %v5776_v50 = vld [vmem:[#allocation5 + $0xd0] sm:$0xff] }
 0x7e0   :  { %6663 = vmatprep.subr.bf16.mxu1 %v6662_v12  ;;  %v5779_v12 = vld [vmem:[#allocation5 + $0xe8] sm:$0xff] }
 0x7e1   :  { %6785 = vmatpush1.bf16.msra.mxu0 %v6784_v11  ;;  %v5755_v11 = vld [vmem:[#allocation5 + $0x28] sm:$0xff] }
 0x7e2   :  { %6787 = vmatprep.subr.bf16.mxu0 %v6786_v8  ;;  %v5759_v8 = vld [vmem:[#allocation5 + $0x48] sm:$0xff] }
 0x7e5   :  { %6789 = vmatpush1.bf16.msra.mxu0 %v6788_v54  ;;  %v5763_v54 = vld [vmem:[#allocation5 + $0x68] sm:$0xff] }
 0x81d   :  { %v5581_v18 = vpop.permute.xlu1 %5580  ;;  %v5577_v33 = vpop.permute.xlu0 %5576 }
 0x81e   :  { %v5616_v58 = vsel %vm5604_vm5, %v5577_v33, %v5581_v18 }
 0x81f   :  { %v13391_v13 = vadd.f32 %v5616_v58, %v13328_v62  ;;  %v5881_v58 = vld [vmem:[#allocation5 + $0x418] sm:$0xff] }
 0x821   :  { %v5663_v46 = vrot.slane %v13391_v13, 1  ;;  %v13394_v10 = vpop.permute.xlu1 %5572  ;;  %v5585_v41 = vpop.permute.xlu0 %5584 }
 0x822   :  { %v5618_v55 = vsel %vm5604_vm5, %v13394_v10, %v5577_v33  ;;  %v5614_v62 = vsel %vm5604_vm5, %v5581_v18, %v5585_v41  ;;  %v5543_v18 = vrot.slane %v13436_v52, 2  ;;  %v13446_v33 = vrot.slane %v5462_v25, 4 }
 0x823   :  { %v13402_v59 = vadd.f32 %v5618_v55, %v13330_v45  ;;  %v13405_v38 = vadd.f32 %v5614_v62, %v13337_v29  ;;  %5695 = vrot.lane.b32.xlu0 %v5663_v46, %s7029_s2  ;;  %v5757_v55 = vld [vmem:[#allocation5 + $0x38] sm:$0xff] }
 0x824   :  { %v5553_v24 = vrot.slane %v13446_v33, 2  ;;  %v6666_v62 = vpack.c.bf16 %v5757_v55, %v5755_v11  ;;  %v5780_v11 = vld [vmem:[#allocation5 + $0xf0] sm:$0xff]  ;;  %v5783_v55 = vld [vmem:[#allocation5 + $0x108] sm:$0xff] }
 0x825   :  { %v5662_v57 = vrot.slane %v13402_v59, 1  ;;  %v5664_v9 = vrot.slane %v13405_v38, 1  ;;  %v5579_v53 = vpop.permute.xlu1 %5578  ;;  %v5575_v26 = vpop.permute.xlu0 %5574 }
 0x826   :  { %v5615_v45 = vsel %vm5604_vm5, %v5575_v26, %v5579_v53 }
 0x827   :  { %v13413_v29 = vadd.f32 %v5615_v45, %v13351_v20  ;;  %5699 = vrot.lane.b32.xlu1 %v5664_v9, %s7029_s2  ;;  %5691 = vrot.lane.b32.xlu0 %v5662_v57, %s7029_s2  ;;  %v6670_v9 = vpack.c.bf16 %v5761_v0, %v5759_v8  ;;  %v5765_v45 = vld [vmem:[#allocation5 + $0x78] sm:$0xff]  ;;  %v5784_v8 = vld [vmem:[#allocation5 + $0x110] sm:$0xff]  ;;  %v5787_v0 = vld [vmem:[#allocation5 + $0x128] sm:$0xff] }
 0x829   :  { %v5655_v1 = vrot.slane %v13413_v29, 1  ;;  %v13418_v5 = vpop.permute.xlu1 %5570  ;;  %v5583_v35 = vpop.permute.xlu0 %5582 }
 0x82a   :  { %v5617_v49 = vsel %vm5604_vm5, %v13418_v5, %v5575_v26  ;;  %v5613_v3 = vsel %vm5604_vm5, %v5579_v53, %v5583_v35  ;;  %v5758_v53 = vld [vmem:[#allocation5 + $0x40] sm:$0xff] }
 0x82b   :  { %v13426_v20 = vadd.f32 %v5617_v49, %v13353_v15  ;;  %v13429_v21 = vadd.f32 %v5613_v3, %v13361_v56  ;;  %5693 = vrot.lane.b32.xlu1 %v5655_v1, %s7029_s2  ;;  %v5552_v56 = vrot.slane %v13343_v19, 2  ;;  %v6674_v1 = vpack.c.bf16 %v5765_v45, %v5763_v54  ;;  %v5764_v49 = vld [vmem:[#allocation5 + $0x70] sm:$0xff]  ;;  %v5767_v3 = vld [vmem:[#allocation5 + $0x88] sm:$0xff]  ;;  %v5793_v45 = vld [vmem:[#allocation5 + $0x158] sm:$0xff] }
 0x82c   :  { %v5791_v54 = vld [vmem:[#allocation5 + $0x148] sm:$0xff] }
 0x82d   :  { %v5654_v27 = vrot.slane %v13426_v20, 1  ;;  %v5656_v44 = vrot.slane %v13429_v21, 1  ;;  %v5589_v2 = vpop.permute.xlu0 %5588  ;;  %v13440_v15 = vpop.permute.xlu1 %5592 }
 0x82e   :  { %v5612_v42 = vsel %vm5604_vm5, %v5585_v41, %v5589_v2  ;;  %v5610_v22 = vsel %vm5604_vm5, %v5589_v2, %v13440_v15  ;;  %v6664_v41 = vpack.c.bf16 %v5752_v6, %v5750_v31  ;;  %v5781_v31 = vld [vmem:[#allocation5 + $0xf8] sm:$0xff]  ;;  %v6688_v6 = vpack.c.bf16 %v5776_v50, %v5774_v32  ;;  %v5799_v32 = vld [vmem:[#allocation5 + $0x188] sm:$0xff] }
 0x82f   :  { %5689 = vrot.lane.b32.xlu1 %v5654_v27, %s7029_s2  ;;  %5697 = vrot.lane.b32.xlu0 %v5656_v44, %s7029_s2  ;;  %v13453_v43 = vadd.f32 %v5612_v42, %v13370_v48  ;;  %v5879_v48 = vld [vmem:[#allocation5 + $0x408] sm:$0xff]  ;;  %v13469_v28 = vadd.f32 %v5610_v22, %v13368_v51  ;;  %v5769_v27 = vld [vmem:[#allocation5 + $0x98] sm:$0xff] }
 0x830   :  { %v6790_v36 = vpack.c.bf16 %v5881_v58, %v5879_v48  ;;  %6665 = vmatpush1.bf16.msra.mxu1 %v6664_v41  ;;  %v6678_v2 = vpack.c.bf16 %v5769_v27, %v5767_v3  ;;  %v5771_v42 = vld [vmem:[#allocation5 + $0xa8] sm:$0xff]  ;;  %v5770_v48 = vld [vmem:[#allocation5 + $0xa0] sm:$0xff]  ;;  %v5772_v58 = vld [vmem:[#allocation5 + $0xb0] sm:$0xff] }
 0x831   :  { %v13464_v25 = vpop.permute.xlu1 %5586  ;;  %v5665_v4 = vrot.slane %v13453_v43, 1  ;;  %v5666_v51 = vrot.slane %v13469_v28, 1  ;;  %6667 = vmatprep.subr.bf16.mxu1 %v6666_v62  ;;  %v5778_v41 = vld [vmem:[#allocation5 + $0xe0] sm:$0xff]  ;;  %v5785_v62 = vld [vmem:[#allocation5 + $0x118] sm:$0xff]  ;;  %v5792_v3 = vld [vmem:[#allocation5 + $0x150] sm:$0xff] }
 0x832   :  { %v5611_v37 = vsel %vm5604_vm5, %v5583_v35, %v13464_v25  ;;  %6791 = vmatprep.subr.bf16.mxu0 %v6790_v36  ;;  %v5762_v35 = vld [vmem:[#allocation5 + $0x60] sm:$0xff]  ;;  %v5775_v36 = vld [vmem:[#allocation5 + $0xc8] sm:$0xff]  ;;  %v6692_v17 = vpack.c.bf16 %v5780_v11, %v5778_v41  ;;  %v6694_v39 = vpack.c.bf16 %v5785_v62, %v5783_v55  ;;  %v5801_v50 = vld [vmem:[#allocation5 + $0x198] sm:$0xff] }
 0x833   :  { %5596 = vrot.lane.b32.xlu1 %v5552_v56, %s7032_s22  ;;  %5590 = vrot.lane.b32.xlu0 %v5543_v18, %s7032_s22  ;;  %v13480_v46 = vadd.f32 %v5611_v37, %v13378_v47  ;;  %v5760_v47 = vld [vmem:[#allocation5 + $0x50] sm:$0xff]  ;;  %v6676_v44 = vpack.c.bf16 %v5764_v49, %v5762_v35  ;;  %v5766_v56 = vld [vmem:[#allocation5 + $0x80] sm:$0xff]  ;;  %v6702_v35 = vpack.c.bf16 %v5793_v45, %v5791_v54  ;;  %v5795_v27 = vld [vmem:[#allocation5 + $0x168] sm:$0xff] }
 0x834   :  { %6669 = vmatpush1.bf16.msra.mxu1 %v6668_v40  ;;  %v6672_v26 = vpack.c.bf16 %v5760_v47, %v5758_v53  ;;  %v5768_v18 = vld [vmem:[#allocation5 + $0x90] sm:$0xff]  ;;  %v5782_v40 = vld [vmem:[#allocation5 + $0x100] sm:$0xff] }
 0x835   :  { %v5657_v57 = vrot.slane %v13480_v46, 1  ;;  %6671 = vmatprep.subr.bf16.mxu1 %v6670_v9  ;;  %v6696_v9 = vpack.c.bf16 %v5784_v8, %v5782_v40  ;;  %v5786_v47 = vld [vmem:[#allocation5 + $0x120] sm:$0xff]  ;;  %v5880_v55 = vld [vmem:[#allocation5 + $0x410] sm:$0xff] }
 0x836   :  { %v5790_v49 = vld [vmem:[#allocation5 + $0x140] sm:$0xff] }
 0x837   :  { %5594 = vrot.lane.b32.xlu1 %v5544_v34, %s7032_s22  ;;  %5600 = vrot.lane.b32.xlu0 %v5553_v24, %s7032_s22  ;;  %v5773_v34 = vld [vmem:[#allocation5 + $0xb8] sm:$0xff]  ;;  %v6680_v24 = vpack.c.bf16 %v5768_v18, %v5766_v56  ;;  %v5794_v18 = vld [vmem:[#allocation5 + $0x160] sm:$0xff] }
 0x838   :  { %6673 = vmatpush1.bf16.msra.mxu1 %v6672_v26  ;;  %v6682_v22 = vpack.c.bf16 %v5773_v34, %v5771_v42  ;;  %v5788_v26 = vld [vmem:[#allocation5 + $0x130] sm:$0xff]  ;;  %v5878_v11 = vld [vmem:[#allocation5 + $0x400] sm:$0xff] }
 0x839   :  { %6675 = vmatprep.subr.bf16.mxu1 %v6674_v1  ;;  %v6700_v1 = vpack.c.bf16 %v5788_v26, %v5786_v47  ;;  %v5796_v42 = vld [vmem:[#allocation5 + $0x170] sm:$0xff] }
 0x83a   :  { %v6708_v34 = vpack.c.bf16 %v5796_v42, %v5794_v18  ;;  %v5884_v47 = vld [vmem:[#allocation5 + $0x430] sm:$0xff] }
 0x83b   :  { %5598 = vrot.lane.b32.xlu0 %v5545_v61, %s7032_s22  ;;  %5703 = vrot.lane.b32.xlu1 %v5665_v4, %s7029_s2  ;;  %v5777_v4 = vld [vmem:[#allocation5 + $0xd8] sm:$0xff]  ;;  %v6684_v61 = vpack.c.bf16 %v5772_v58, %v5770_v48  ;;  %s6363_s22 = sshll.u32 %s7036_s21, 4  ;;  %s6364_s22 = int_to_ptr.vmem [resolvable:$true] %s6363_s22 }
 0x83c   :  { %6677 = vmatpush1.bf16.msra.mxu1 %v6676_v44  ;;  %v6686_v37 = vpack.c.bf16 %v5777_v4, %v5775_v36  ;;  %v5797_v44 = vld [vmem:[#allocation5 + $0x178] sm:$0xff]  ;;  %s6994_s23 = scalar_lea.vmem %s6364_s22, 64  ;;  %p6999_p3 = scmp.lt.s32.totalorder %s6364_s22, %s6364_s22 }
 0x83d   :  { %6679 = vmatprep.subr.bf16.mxu1 %v6678_v2  ;;  %v6704_v2 = vpack.c.bf16 %v5792_v3, %v5790_v49  ;;  %v6706_v56 = vpack.c.bf16 %v5797_v44, %v5795_v27  ;;  %v5887_v49 = vld [vmem:[#allocation5 + $0x448] sm:$0xff]  ;;  %v5805_v27 = vld [vmem:[#allocation5 + $0x1b8] sm:$0xff]  ;;  %p6995_p2 = scmp.ne.s32.totalorder %s6364_s22, %s6994_s23  ;;  %p7000_p4 = scmp.lt.s32.totalorder %s6994_s23, %s6994_s23 }
 0x83e   :  { %v5803_v3 = vld [vmem:[#allocation5 + $0x1a8] sm:$0xff] }
 0x83f   :  { %5707 = vrot.lane.b32.xlu0 %v5666_v51, %s7029_s2  ;;  %v6690_v51 = vpack.c.bf16 %v5781_v31, %v5779_v12  ;;  %v6710_v12 = vpack.c.bf16 %v5801_v50, %v5799_v32  ;;  %v5798_v31 = vld [vmem:[#allocation5 + $0x180] sm:$0xff]  ;;  %v6714_v44 = vpack.c.bf16 %v5805_v27, %v5803_v3  ;;  %v5893_v32 = vld [vmem:[#allocation5 + $0x478] sm:$0xff]  ;;  %v5807_v50 = vld [vmem:[#allocation5 + $0x1c8] sm:$0xff]  ;;  %p7001_p5 = por %p7000_p4, %p6999_p3 }
 0x840   :  { %6681 = vmatpush1.bf16.msra.mxu1 %v6680_v24 }
 0x841   :  { %6683 = vmatprep.subr.bf16.mxu1 %v6682_v22  ;;  %p7002_p6 = pnand %p7001_p5, %p6995_p2 }
 0x843   :  { %5701 = vrot.lane.b32.xlu0 %v5657_v57, %s7029_s2  ;;  %v5789_v57 = vld [vmem:[#allocation5 + $0x138] sm:$0xff] }
 0x844   :  { %6685 = vmatpush1.bf16.msra.mxu1 %v6684_v61  ;;  %v6698_v53 = vpack.c.bf16 %v5789_v57, %v5787_v0 }
 0x845   :  { %6687 = vmatprep.subr.bf16.mxu1 %v6686_v37 }
 0x848   :  { %6689 = vmatpush1.bf16.msra.mxu1 %v6688_v6  ;;  %v5800_v6 = vld [vmem:[#allocation5 + $0x190] sm:$0xff] }
 0x849   :  { %6691 = vmatprep.subr.bf16.mxu1 %v6690_v51  ;;  %v6712_v62 = vpack.c.bf16 %v5800_v6, %v5798_v31 }
 0x84c   :  { %6693 = vmatpush1.bf16.msra.mxu1 %v6692_v17 }
 0x84d   :  { %6695 = vmatprep.subr.bf16.mxu1 %v6694_v39  ;;  %v5885_v39 = vld [vmem:[#allocation5 + $0x438] sm:$0xff] }
 0x850   :  { %6697 = vmatpush1.bf16.msra.mxu1 %v6696_v9  ;;  %v6792_v9 = vpack.c.bf16 %v5880_v55, %v5878_v11  ;;  %v5806_v55 = vld [vmem:[#allocation5 + $0x1c0] sm:$0xff] }
 0x851   :  { %6699 = vmatprep.subr.bf16.mxu1 %v6698_v53  ;;  %v5882_v53 = vld [vmem:[#allocation5 + $0x420] sm:$0xff] }
 0x854   :  { %6701 = vmatpush1.bf16.msra.mxu1 %v6700_v1 }
 0x855   :  { %6703 = vmatprep.subr.bf16.mxu1 %v6702_v35 }
 0x858   :  { %6705 = vmatpush1.bf16.msra.mxu1 %v6704_v2  ;;  %v5802_v2 = vld [vmem:[#allocation5 + $0x1a0] sm:$0xff] }
 0x859   :  { %6707 = vmatprep.subr.bf16.mxu1 %v6706_v56  ;;  %v5804_v56 = vld [vmem:[#allocation5 + $0x1b0] sm:$0xff] }
 0x85a   :  { %v6716_v42 = vpack.c.bf16 %v5804_v56, %v5802_v2 }
 0x85c   :  { %6709 = vmatpush1.bf16.msra.mxu1 %v6708_v34  ;;  %v6796_v34 = vpack.c.bf16 %v5884_v47, %v5882_v53 }
 0x85d   :  { %6711 = vmatprep.subr.bf16.mxu1 %v6710_v12  ;;  %v5809_v12 = vld [vmem:[#allocation5 + $0x1d8] sm:$0xff] }
 0x85e   :  { %v6718_v11 = vpack.c.bf16 %v5809_v12, %v5807_v50  ;;  %v5903_v50 = vld [vmem:[#allocation5 + $0x4c8] sm:$0xff]  ;;  %v5905_v12 = vld [vmem:[#allocation5 + $0x4d8] sm:$0xff] }
 0x860   :  { %6713 = vmatpush1.bf16.msra.mxu1 %v6712_v62  ;;  %v5808_v62 = vld [vmem:[#allocation5 + $0x1d0] sm:$0xff] }
 0x861   :  { %6715 = vmatprep.subr.bf16.mxu1 %v6714_v44 }
 0x864   :  { %6717 = vmatpush1.bf16.msra.mxu1 %v6716_v42 }
 0x865   :  { %6719 = vmatprep.subr.bf16.mxu1 %v6718_v11  ;;  %v6814_v11 = vpack.c.bf16 %v5905_v12, %v5903_v50  ;;  %v5933_v50 = vld [vmem:[#allocation5 + $0x5b8] sm:$0xff] }
 0x895   :  { %v5696_v24 = vpop.permute.xlu0 %5695 }
 0x899   :  { %v13486_v22 = vpop.permute.xlu1 %5699  ;;  %v13488_v48 = vpop.permute.xlu0 %5691 }
 0x89a   :  { %v5727_v58 = vsel %vm5717_vm11, %v5696_v24, %v13486_v22  ;;  %v5729_v36 = vsel %vm5717_vm11, %v13488_v48, %v5696_v24  ;;  %v5886_v24 = vld [vmem:[#allocation5 + $0x440] sm:$0xff] }
 0x89b   :  { %v5745_v61 = vadd.f32 %v5727_v58, %v13405_v38  ;;  %v5744_v37 = vadd.f32 %v5729_v36, %v13391_v13  ;;  %v5883_v38 = vld [vmem:[#allocation5 + $0x428] sm:$0xff]  ;;  %v5888_v58 = vld [vmem:[#allocation5 + $0x450] sm:$0xff] }
 0x89c   :  { %v6794_v35 = vpack.c.bf16 %v5885_v39, %v5883_v38  ;;  %v5891_v36 = vld [vmem:[#allocation5 + $0x468] sm:$0xff]  ;;  %v5890_v38 = vld [vmem:[#allocation5 + $0x460] sm:$0xff]  ;;  %v6800_v39 = vpack.c.bf16 %v5888_v58, %v5886_v24  ;;  %v5896_v24 = vld [vmem:[#allocation5 + $0x490] sm:$0xff] }
 0x89d   :  { %v5694_v4 = vpop.permute.xlu1 %5693  ;;  %v6041_v40 = vrot.slane %v5745_v61, 7  ;;  %v6039_v8 = vrot.slane %v5744_v37, 7  ;;  %v5901_v58 = vld [vmem:[#allocation5 + $0x4b8] sm:$0xff] }
 0x8a1   :  { %v13498_v51 = vpop.permute.xlu1 %5689  ;;  %v13500_v41 = vpop.permute.xlu0 %5697 }
 0x8a2   :  { %v5728_v17 = vsel %vm5717_vm11, %v13498_v51, %v5694_v4  ;;  %v5726_v13 = vsel %vm5717_vm11, %v5694_v4, %v13500_v41 }
 0x8a3   :  { %v5736_v0 = vadd.f32 %v5728_v17, %v13413_v29  ;;  %v5737_v57 = vadd.f32 %v5726_v13, %v13429_v21  ;;  %v5889_v21 = vld [vmem:[#allocation5 + $0x458] sm:$0xff] }
 0x8a4   :  { %v6798_v37 = vpack.c.bf16 %v5889_v21, %v5887_v49 }
 0x8a5   :  { %v5597_v26 = vpop.permute.xlu1 %5596  ;;  %v5591_v54 = vpop.permute.xlu0 %5590  ;;  %v6042_v45 = vsel %vm6035_vm3, %v6041_v40, %v5737_v57  ;;  %v6040_v1 = vsel %vm6035_vm3, %v6039_v8, %v5736_v0  ;;  %v6802_v40 = vpack.c.bf16 %v5893_v32, %v5891_v36  ;;  %v5892_v8 = vld [vmem:[#allocation5 + $0x470] sm:$0xff]  ;;  %v5895_v0 = vld [vmem:[#allocation5 + $0x488] sm:$0xff]  ;;  %v5813_v57 = vld [vmem:[#allocation5 + $0x1f8] sm:$0xff] }
 0x8a6   :  { %v5609_v29 = vsel %vm5604_vm5, %v13464_v25, %v5591_v54  ;;  %6194 = vmatprep.mubr.f32.mxu0 %v6042_v45  ;;  %v5900_v32 = vld [vmem:[#allocation5 + $0x4b0] sm:$0xff] }
 0x8a7   :  { %v13516_v18 = vadd.f32 %v5609_v29, %v13436_v52  ;;  %6195 = vmatmul.mubr.f32.vlgmr.msra.gmra.mrb[0].mxu0 %v6040_v1  ;;  %v5608_v52 = vsel %vm5604_vm5, %v13440_v15, %v5597_v26  ;;  %v5811_v15 = vld [vmem:[#allocation5 + $0x1e8] sm:$0xff]  ;;  %v5810_v1 = vld [vmem:[#allocation5 + $0x1e0] sm:$0xff]  ;;  %v6804_v29 = vpack.c.bf16 %v5892_v8, %v5890_v38  ;;  %v5908_v8 = vld [vmem:[#allocation5 + $0x4f0] sm:$0xff] }
 0x8a8   :  { %6793 = vmatpush1.bf16.msra.mxu0 %v6792_v9  ;;  %v13535_v9 = vadd.f32 %v5608_v52, %v13343_v19  ;;  %v6722_v45 = vpack.c.bf16 %v5813_v57, %v5811_v15  ;;  %v5907_v15 = vld [vmem:[#allocation5 + $0x4e8] sm:$0xff] }
 0x8a9   :  { %v5658_v4 = vrot.slane %v13516_v18, 1  ;;  %v5595_v61 = vpop.permute.xlu1 %5594  ;;  %v5601_v25 = vpop.permute.xlu0 %5600  ;;  %6795 = vmatprep.subr.bf16.mxu0 %v6794_v35  ;;  %v5812_v35 = vld [vmem:[#allocation5 + $0x1f0] sm:$0xff] }
 0x8aa   :  { %v5606_v31 = vsel %vm5604_vm5, %v5597_v26, %v5601_v25  ;;  %v5620_v6 = vsel %vm5604_vm5, %v5601_v25, %v13394_v10  ;;  %v6720_v10 = vpack.c.bf16 %v5808_v62, %v5806_v55  ;;  %v5897_v26 = vld [vmem:[#allocation5 + $0x498] sm:$0xff]  ;;  %v5607_v49 = vsel %vm5604_vm5, %v5591_v54, %v5595_v61  ;;  %v5902_v55 = vld [vmem:[#allocation5 + $0x4c0] sm:$0xff]  ;;  %v5904_v62 = vld [vmem:[#allocation5 + $0x4d0] sm:$0xff] }
 0x8ab   :  { %v13528_v17 = vadd.f32 %v5620_v6, %v13335_v23  ;;  %v13531_v13 = vadd.f32 %v5606_v31, %v13446_v33  ;;  %5705 = vrot.lane.b32.xlu1 %v5658_v4, %s7029_s2  ;;  %v6806_v21 = vpack.c.bf16 %v5897_v26, %v5895_v0  ;;  %v6724_v44 = vpack.c.bf16 %v5812_v35, %v5810_v1  ;;  %v5911_v0 = vld [vmem:[#allocation5 + $0x508] sm:$0xff] }
 0x8ac   :  { %6797 = vmatpush1.bf16.msra.mxu0 %v6796_v34  ;;  %6721 = vmatpush1.bf16.msra.mxu1 %v6720_v10  ;;  %v13559_v2 = vadd.f32 %v5607_v49, %v13347_v7  ;;  %v5894_v34 = vld [vmem:[#allocation5 + $0x480] sm:$0xff]  ;;  %v5913_v10 = vld [vmem:[#allocation5 + $0x518] sm:$0xff]  ;;  %v5915_v26 = vld [vmem:[#allocation5 + $0x528] sm:$0xff] }
 0x8ad   :  { %v5661_v23 = vrot.slane %v13528_v17, 1  ;;  %v5668_v33 = vrot.slane %v13531_v13, 1  ;;  %v13539_v53 = vpop.permute.xlu1 %5703  ;;  %v5599_v47 = vpop.permute.xlu0 %5598  ;;  %6799 = vmatprep.subr.bf16.mxu0 %v6798_v37  ;;  %6723 = vmatprep.subr.bf16.mxu1 %v6722_v45  ;;  %v6808_v7 = vpack.c.bf16 %v5896_v24, %v5894_v34  ;;  %v5898_v37 = vld [vmem:[#allocation5 + $0x4a0] sm:$0xff]  ;;  %v5917_v45 = vld [vmem:[#allocation5 + $0x538] sm:$0xff] }
 0x8ae   :  { %v5605_v3 = vsel %vm5604_vm5, %v5595_v61, %v5599_v47  ;;  %v5619_v19 = vsel %vm5604_vm5, %v5599_v47, %v13418_v5  ;;  %v5725_v54 = vsel %vm5717_vm11, %v13486_v22, %v13539_v53  ;;  %v5667_v5 = vrot.slane %v13535_v9, 1  ;;  %v5899_v22 = vld [vmem:[#allocation5 + $0x4a8] sm:$0xff]  ;;  %v5912_v47 = vld [vmem:[#allocation5 + $0x510] sm:$0xff]  ;;  %v5914_v49 = vld [vmem:[#allocation5 + $0x520] sm:$0xff] }
 0x8af   :  { %v13549_v27 = vadd.f32 %v5619_v19, %v13359_v63  ;;  %5687 = vrot.lane.b32.xlu0 %v5661_v23, %s7029_s2  ;;  %5715 = vrot.lane.b32.xlu1 %v5668_v33, %s7029_s2  ;;  %v13562_v63 = vadd.f32 %v5605_v3, %v13459_v16  ;;  %v5746_v36 = vadd.f32 %v5725_v54, %v13453_v43  ;;  %v5659_v16 = vrot.slane %v13559_v2, 1  ;;  %v5910_v33 = vld [vmem:[#allocation5 + $0x500] sm:$0xff]  ;;  %v5916_v3 = vld [vmem:[#allocation5 + $0x530] sm:$0xff]  ;;  %v5919_v19 = vld [vmem:[#allocation5 + $0x548] sm:$0xff] }
 0x8b0   :  { %6801 = vmatpush1.bf16.msra.mxu0 %v6800_v39  ;;  %6725 = vmatpush1.bf16.msra.mxu1 %v6724_v44  ;;  %v6810_v25 = vpack.c.bf16 %v5901_v58, %v5899_v22  ;;  %v6812_v6 = vpack.c.bf16 %v5900_v32, %v5898_v37  ;;  %v6816_v39 = vpack.c.bf16 %v5904_v62, %v5902_v55  ;;  %v5918_v44 = vld [vmem:[#allocation5 + $0x540] sm:$0xff]  ;;  %v5925_v34 = vld [vmem:[#allocation5 + $0x578] sm:$0xff]  ;;  %v5928_v32 = vld [vmem:[#allocation5 + $0x590] sm:$0xff] }
 0x8b1   :  { %v5653_v56 = vrot.slane %v13549_v27, 1  ;;  %v13565_v42 = vpop.permute.xlu0 %5707  ;;  %6803 = vmatprep.subr.bf16.mxu0 %v6802_v40  ;;  %v5660_v4 = vrot.slane %v13562_v63, 1  ;;  %v6043_v52 = vrot.slane %v5746_v36, 7  ;;  %v6822_v23 = vpack.c.bf16 %v5913_v10, %v5911_v0  ;;  %v5922_v58 = vld [vmem:[#allocation5 + $0x560] sm:$0xff]  ;;  %v5924_v36 = vld [vmem:[#allocation5 + $0x570] sm:$0xff]  ;;  %v5937_v55 = vld [vmem:[#allocation5 + $0x5d8] sm:$0xff] }
 0x8b2   :  { %v6824_v1 = vpack.c.bf16 %v5912_v47, %v5910_v33  ;;  %v6826_v35 = vpack.c.bf16 %v5917_v45, %v5915_v26  ;;  %v6828_v54 = vpack.c.bf16 %v5916_v3, %v5914_v49  ;;  %v5926_v37 = vld [vmem:[#allocation5 + $0x580] sm:$0xff]  ;;  %v5945_v33 = vld [vmem:[#allocation5 + $0x618] sm:$0xff]  ;;  %v5723_v45 = vsel %vm5717_vm11, %v13539_v53, %v13565_v42  ;;  %v5944_v3 = vld [vmem:[#allocation5 + $0x610] sm:$0xff] }
 0x8b3   :  { %5711 = vrot.lane.b32.xlu1 %v5667_v5, %s7029_s2  ;;  %5685 = vrot.lane.b32.xlu0 %v5653_v56, %s7029_s2  ;;  %v5920_v5 = vld [vmem:[#allocation5 + $0x550] sm:$0xff]  ;;  %v5923_v56 = vld [vmem:[#allocation5 + $0x568] sm:$0xff]  ;;  %v6840_v12 = vpack.c.bf16 %v5928_v32, %v5926_v37  ;;  %v5938_v10 = vld [vmem:[#allocation5 + $0x5e0] sm:$0xff] }
 0x8b4   :  { %6805 = vmatpush1.bf16.msra.mxu0 %v6804_v29  ;;  %v5921_v29 = vld [vmem:[#allocation5 + $0x558] sm:$0xff]  ;;  %v6832_v24 = vpack.c.bf16 %v5920_v5, %v5918_v44  ;;  %v6834_v22 = vpack.c.bf16 %v5925_v34, %v5923_v56  ;;  %v5942_v49 = vld [vmem:[#allocation5 + $0x600] sm:$0xff] }
 0x8b5   :  { %v13572_v61 = vpop.permute.xlu0 %5701  ;;  %6807 = vmatprep.subr.bf16.mxu0 %v6806_v21  ;;  %v6830_v21 = vpack.c.bf16 %v5921_v29, %v5919_v19  ;;  %v5947_v29 = vld [vmem:[#allocation5 + $0x628] sm:$0xff]  ;;  %v6856_v5 = vpack.c.bf16 %v5944_v3, %v5942_v49  ;;  %v5950_v32 = vld [vmem:[#allocation5 + $0x640] sm:$0xff]  ;;  %v5965_v49 = vld [vmem:[#allocation5 + $0x6b8] sm:$0xff] }
 0x8b6   :  { %v5724_v43 = vsel %vm5717_vm11, %v13500_v41, %v13572_v61  ;;  %v5909_v41 = vld [vmem:[#allocation5 + $0x4f8] sm:$0xff] }
 0x8b7   :  { %v5738_v31 = vadd.f32 %v5724_v43, %v13480_v46  ;;  %5709 = vrot.lane.b32.xlu1 %v5659_v16, %s7029_s2  ;;  %5713 = vrot.lane.b32.xlu0 %v5660_v4, %s7029_s2  ;;  %v6818_v40 = vpack.c.bf16 %v5909_v41, %v5907_v15  ;;  %v5906_v46 = vld [vmem:[#allocation5 + $0x4e0] sm:$0xff]  ;;  %v5929_v16 = vld [vmem:[#allocation5 + $0x598] sm:$0xff]  ;;  %v6836_v4 = vpack.c.bf16 %v5924_v36, %v5922_v58  ;;  %v5931_v43 = vld [vmem:[#allocation5 + $0x5a8] sm:$0xff] }
 0x8b8   :  { %6809 = vmatpush1.bf16.msra.mxu0 %v6808_v7  ;;  %v6820_v57 = vpack.c.bf16 %v5908_v8, %v5906_v46  ;;  %v5927_v7 = vld [vmem:[#allocation5 + $0x588] sm:$0xff]  ;;  %v5934_v41 = vld [vmem:[#allocation5 + $0x5c0] sm:$0xff]  ;;  %v5941_v46 = vld [vmem:[#allocation5 + $0x5f8] sm:$0xff] }
 0x8b9   :  { %6811 = vmatprep.subr.bf16.mxu0 %v6810_v25  ;;  %v13582_v38 = vsel %vm6035_vm3, %v6043_v52, %v5738_v31  ;;  %v6838_v25 = vpack.c.bf16 %v5929_v16, %v5927_v7  ;;  %v6842_v52 = vpack.c.bf16 %v5933_v50, %v5931_v43  ;;  %v5930_v31 = vld [vmem:[#allocation5 + $0x5a0] sm:$0xff]  ;;  %v5951_v36 = vld [vmem:[#allocation5 + $0x648] sm:$0xff]  ;;  %v5952_v43 = vld [vmem:[#allocation5 + $0x650] sm:$0xff] }
 0x8ba   :  { %v5957_v50 = vld [vmem:[#allocation5 + $0x678] sm:$0xff] }
 0x8bc   :  { %6813 = vmatpush1.bf16.msra.mxu0 %v6812_v6  ;;  %v5932_v6 = vld [vmem:[#allocation5 + $0x5b0] sm:$0xff] }
 0x8bd   :  { %6815 = vmatprep.subr.bf16.mxu0 %v6814_v11  ;;  %v5935_v11 = vld [vmem:[#allocation5 + $0x5c8] sm:$0xff]  ;;  %v6844_v62 = vpack.c.bf16 %v5932_v6, %v5930_v31 }
 0x8be   :  { %v6846_v15 = vpack.c.bf16 %v5937_v55, %v5935_v11  ;;  %v6864_v11 = vpack.c.bf16 %v5952_v43, %v5950_v32  ;;  %v5981_v32 = vld [vmem:[#allocation5 + $0x738] sm:$0xff] }
 0x8c0   :  { %6817 = vmatpush1.bf16.msra.mxu0 %v6816_v39  ;;  %v5936_v39 = vld [vmem:[#allocation5 + $0x5d0] sm:$0xff] }
 0x8c1   :  { %6819 = vmatprep.subr.bf16.mxu0 %v6818_v40  ;;  %v5939_v40 = vld [vmem:[#allocation5 + $0x5e8] sm:$0xff]  ;;  %v6848_v8 = vpack.c.bf16 %v5936_v39, %v5934_v41  ;;  %v5954_v39 = vld [vmem:[#allocation5 + $0x660] sm:$0xff] }
 0x8c2   :  { %v6850_v0 = vpack.c.bf16 %v5941_v46, %v5939_v40  ;;  %v5961_v40 = vld [vmem:[#allocation5 + $0x698] sm:$0xff] }
 0x8c4   :  { %6821 = vmatpush1.bf16.msra.mxu0 %v6820_v57  ;;  %v5940_v57 = vld [vmem:[#allocation5 + $0x5f0] sm:$0xff] }
 0x8c5   :  { %6823 = vmatprep.subr.bf16.mxu0 %v6822_v23  ;;  %v5943_v23 = vld [vmem:[#allocation5 + $0x608] sm:$0xff]  ;;  %v6852_v47 = vpack.c.bf16 %v5940_v57, %v5938_v10 }
 0x8c6   :  { %v6854_v26 = vpack.c.bf16 %v5945_v33, %v5943_v23 }
 0x8c8   :  { %6825 = vmatpush1.bf16.msra.mxu0 %v6824_v1  ;;  %v5747_v1 = vadd.f32 %v5723_v45, %v13469_v28  ;;  %v5960_v45 = vld [vmem:[#allocation5 + $0x690] sm:$0xff] }
 0x8c9   :  { %6827 = vmatprep.subr.bf16.mxu0 %v6826_v35 }
 0x8cc   :  { %6829 = vmatpush1.bf16.msra.mxu0 %v6828_v54  ;;  %v5949_v54 = vld [vmem:[#allocation5 + $0x638] sm:$0xff] }
 0x8cd   :  { %6831 = vmatprep.subr.bf16.mxu0 %v6830_v21  ;;  %v6045_v21 = vrot.slane %v5747_v1, 7  ;;  %v6858_v28 = vpack.c.bf16 %v5949_v54, %v5947_v29  ;;  %v5963_v1 = vld [vmem:[#allocation5 + $0x6a8] sm:$0xff]  ;;  %v5969_v54 = vld [vmem:[#allocation5 + $0x6d8] sm:$0xff] }
 0x8ce   :  { %v5967_v29 = vld [vmem:[#allocation5 + $0x6c8] sm:$0xff] }
 0x8d0   :  { %6833 = vmatpush1.bf16.msra.mxu0 %v6832_v24  ;;  %v5946_v24 = vld [vmem:[#allocation5 + $0x620] sm:$0xff] }
 0x8d1   :  { %6835 = vmatprep.subr.bf16.mxu0 %v6834_v22  ;;  %v5948_v22 = vld [vmem:[#allocation5 + $0x630] sm:$0xff] }
 0x8d2   :  { %v6860_v16 = vpack.c.bf16 %v5948_v22, %v5946_v24  ;;  %v5970_v22 = vld [vmem:[#allocation5 + $0x6e0] sm:$0xff] }
 0x8d4   :  { %6837 = vmatpush1.bf16.msra.mxu0 %v6836_v4 }
 0x8d5   :  { %6839 = vmatprep.subr.bf16.mxu0 %v6838_v25 }
 0x8d8   :  { %6841 = vmatpush1.bf16.msra.mxu0 %v6840_v12 }
 0x8d9   :  { %6843 = vmatprep.subr.bf16.mxu0 %v6842_v52 }
 0x8dc   :  { %6845 = vmatpush1.bf16.msra.mxu0 %v6844_v62 }
 0x8dd   :  { %6847 = vmatprep.subr.bf16.mxu0 %v6846_v15 }
 0x8e0   :  { %6849 = vmatpush1.bf16.msra.mxu0 %v6848_v8 }
 0x8e1   :  { %6851 = vmatprep.subr.bf16.mxu0 %v6850_v0 }
 0x8e4   :  { %6853 = vmatpush1.bf16.msra.mxu0 %v6852_v47 }
 0x8e5   :  { %6855 = vmatprep.subr.bf16.mxu0 %v6854_v26  ;;  %v5958_v26 = vld [vmem:[#allocation5 + $0x680] sm:$0xff] }
 0x8e6   :  { %v6872_v3 = vpack.c.bf16 %v5960_v45, %v5958_v26  ;;  %v5996_v26 = vld [vmem:[#allocation5 + $0x7b0] sm:$0xff]  ;;  %v5999_v45 = vld [vmem:[#allocation5 + $0x7c8] sm:$0xff] }
 0x91d   :  { %v13589_v35 = vpop.permute.xlu1 %5705 }
 0x91e   :  { %v5722_v19 = vsel %vm5717_vm11, %v13572_v61, %v13589_v35  ;;  %v5953_v61 = vld [vmem:[#allocation5 + $0x658] sm:$0xff] }
 0x91f   :  { %v5739_v44 = vadd.f32 %v5722_v19, %v13516_v18  ;;  %v6862_v37 = vpack.c.bf16 %v5953_v61, %v5951_v36  ;;  %v5962_v19 = vld [vmem:[#allocation5 + $0x6a0] sm:$0xff]  ;;  %v5975_v36 = vld [vmem:[#allocation5 + $0x708] sm:$0xff]  ;;  %v5977_v61 = vld [vmem:[#allocation5 + $0x718] sm:$0xff] }
 0x921   :  { %v5716_v56 = vpop.permute.xlu1 %5715  ;;  %v5688_v34 = vpop.permute.xlu0 %5687  ;;  %v6046_v53 = vsel %vm6035_vm3, %v6045_v21, %v5739_v44  ;;  %v6878_v44 = vpack.c.bf16 %v5969_v54, %v5967_v29  ;;  %v6005_v29 = vld [vmem:[#allocation5 + $0x7f8] sm:$0xff] }
 0x922   :  { %v5731_v58 = vsel %vm5717_vm11, %v5688_v34, %v13488_v48  ;;  %6265 = vmatprep.mubr.f32.mxu0 %v6046_v53  ;;  %v5733_v18 = vsel %vm5717_vm11, %v5716_v56, %v5688_v34  ;;  %v5971_v34 = vld [vmem:[#allocation5 + $0x6e8] sm:$0xff]  ;;  %v5973_v53 = vld [vmem:[#allocation5 + $0x6f8] sm:$0xff] }
 0x923   :  { %v5743_v7 = vadd.f32 %v5731_v58, %v13402_v59  ;;  %6266 = vmatmul.mubr.f32.vlgmr.msra.gmra.mrb[0].mxu0 %v13582_v38  ;;  %v5955_v38 = vld [vmem:[#allocation5 + $0x668] sm:$0xff]  ;;  %v5742_v12 = vadd.f32 %v5733_v18, %v13528_v17  ;;  %v6882_v24 = vpack.c.bf16 %v5973_v53, %v5971_v34  ;;  %v5972_v58 = vld [vmem:[#allocation5 + $0x6f0] sm:$0xff]  ;;  %v6886_v18 = vpack.c.bf16 %v5977_v61, %v5975_v36  ;;  %v6006_v36 = vld [vmem:[%s13663_s8] sm:$0x3] }
 0x924   :  { %6857 = vmatpush1.bf16.msra.mxu0 %v6856_v5  ;;  %v6866_v41 = vpack.c.bf16 %v5957_v50, %v5955_v38  ;;  %v5966_v5 = vld [vmem:[#allocation5 + $0x6c0] sm:$0xff]  ;;  %v5980_v38 = vld [vmem:[#allocation5 + $0x730] sm:$0xff]  ;;  %v5983_v50 = vld [vmem:[#allocation5 + $0x748] sm:$0xff]  ;;  %v6011_v14 = vrot.slane %v6006_v36, %v15093_v60 }
 0x925   :  { %v13604_v4 = vpop.permute.xlu1 %5711  ;;  %v5686_v25 = vpop.permute.xlu0 %5685  ;;  %6859 = vmatprep.subr.bf16.mxu0 %v6858_v28  ;;  %v6037_v52 = vrot.slane %v5743_v7, 7  ;;  %v6034_v46 = vrot.slane %v5742_v12, 7  ;;  %v6884_v7 = vpack.c.bf16 %v5972_v58, %v5970_v22  ;;  %v5985_v12 = vld [vmem:[#allocation5 + $0x758] sm:$0xff] }
 0x926   :  { %v5719_v48 = vsel %vm5717_vm11, %v13604_v4, %v5716_v56  ;;  %v5730_v59 = vsel %vm5717_vm11, %v5686_v25, %v13498_v51  ;;  %v5956_v51 = vld [vmem:[#allocation5 + $0x670] sm:$0xff] }
 0x927   :  { %v5749_v31 = vadd.f32 %v5719_v48, %v13531_v13  ;;  %v5735_v6 = vadd.f32 %v5730_v59, %v13426_v20  ;;  %v5959_v20 = vld [vmem:[#allocation5 + $0x688] sm:$0xff]  ;;  %v6868_v57 = vpack.c.bf16 %v5956_v51, %v5954_v39  ;;  %v5968_v56 = vld [vmem:[#allocation5 + $0x6d0] sm:$0xff]  ;;  %v5978_v59 = vld [vmem:[#allocation5 + $0x720] sm:$0xff] }
 0x928   :  { %6861 = vmatpush1.bf16.msra.mxu0 %v6860_v16  ;;  %v6870_v47 = vpack.c.bf16 %v5961_v40, %v5959_v20  ;;  %v6880_v28 = vpack.c.bf16 %v5968_v56, %v5966_v5  ;;  %v5974_v16 = vld [vmem:[#allocation5 + $0x700] sm:$0xff]  ;;  %v5993_v20 = vld [vmem:[#allocation5 + $0x798] sm:$0xff]  ;;  %v6004_v56 = vld [vmem:[#allocation5 + $0x7f0] sm:$0xff] }
 0x929   :  { %v13615_v55 = vpop.permute.xlu1 %5709  ;;  %v5714_v62 = vpop.permute.xlu0 %5713  ;;  %v6038_v15 = vsel %vm6035_vm3, %v6037_v52, %v5735_v6  ;;  %6863 = vmatprep.subr.bf16.mxu0 %v6862_v37  ;;  %v6049_v8 = vrot.slane %v5749_v31, 7  ;;  %v5979_v37 = vld [vmem:[#allocation5 + $0x728] sm:$0xff]  ;;  %v6892_v52 = vpack.c.bf16 %v5980_v38, %v5978_v59  ;;  %v6894_v31 = vpack.c.bf16 %v5985_v12, %v5983_v50  ;;  %v5982_v6 = vld [vmem:[#allocation5 + $0x740] sm:$0xff] }
 0x92a   :  { %v5718_v17 = vsel %vm5717_vm11, %v13615_v55, %v5714_v62  ;;  %v5732_v13 = vsel %vm5717_vm11, %v5714_v62, %v5686_v25  ;;  %6123 = vmatprep.mubr.f32.mxu1 %v6038_v15  ;;  %v5976_v25 = vld [vmem:[#allocation5 + $0x710] sm:$0xff]  ;;  %v6890_v48 = vpack.c.bf16 %v5981_v32, %v5979_v37  ;;  %v5987_v62 = vld [vmem:[#allocation5 + $0x768] sm:$0xff]  ;;  %v5989_v15 = vld [vmem:[#allocation5 + $0x778] sm:$0xff]  ;;  %v5720_v34 = vsel %vm5717_vm11, %v13589_v35, %v13615_v55 }
 0x92b   :  { %v5734_v0 = vadd.f32 %v5732_v13, %v13549_v27  ;;  %v5741_v10 = vadd.f32 %v5718_v17, %v13562_v63  ;;  %v6874_v27 = vpack.c.bf16 %v5965_v49, %v5963_v1  ;;  %v5964_v63 = vld [vmem:[#allocation5 + $0x6b0] sm:$0xff]  ;;  %v6888_v43 = vpack.c.bf16 %v5976_v25, %v5974_v16  ;;  %v5986_v51 = vld [vmem:[#allocation5 + $0x760] sm:$0xff]  ;;  %v5991_v13 = vld [vmem:[#allocation5 + $0x788] sm:$0xff] }
 0x92c   :  { %6865 = vmatpush1.bf16.msra.mxu0 %v6864_v11  ;;  %v6876_v21 = vpack.c.bf16 %v5964_v63, %v5962_v19  ;;  %v5984_v11 = vld [vmem:[#allocation5 + $0x750] sm:$0xff]  ;;  %v6898_v39 = vpack.c.bf16 %v5989_v15, %v5987_v62  ;;  %v6001_v1 = vld [vmem:[#allocation5 + $0x7d8] sm:$0xff]  ;;  %v6003_v63 = vld [vmem:[#allocation5 + $0x7e8] sm:$0xff] }
 0x92d   :  { %v6036_v23 = vsel %vm6035_vm3, %v6034_v46, %v5734_v0  ;;  %6867 = vmatprep.subr.bf16.mxu0 %v6866_v41  ;;  %v6050_v33 = vsel %vm6035_vm3, %v6049_v8, %v5741_v10  ;;  %v6896_v41 = vpack.c.bf16 %v5984_v11, %v5982_v6  ;;  %v5988_v17 = vld [vmem:[#allocation5 + $0x770] sm:$0xff]  ;;  %v6902_v46 = vpack.c.bf16 %v5993_v20, %v5991_v13  ;;  %v5990_v8 = vld [vmem:[#allocation5 + $0x780] sm:$0xff]  ;;  %v5995_v10 = vld [vmem:[#allocation5 + $0x7a8] sm:$0xff] }
 0x92e   :  { %6124 = vmatmul.mubr.f32.vlgmr.msra.gmra.mrb[64].mxu1 %v6036_v23  ;;  %6336 = vmatprep.mubr.f32.mxu0 %v6050_v33  ;;  %v6900_v40 = vpack.c.bf16 %v5988_v17, %v5986_v51  ;;  %v5992_v0 = vld [vmem:[#allocation5 + $0x790] sm:$0xff]  ;;  %v6002_v5 = vld [vmem:[#allocation5 + $0x7e0] sm:$0xff] }
 0x92f   :  { %v6904_v23 = vpack.c.bf16 %v5992_v0, %v5990_v8  ;;  %v6000_v19 = vld [vmem:[#allocation5 + $0x7d0] sm:$0xff] }
 0x930   :  { %6869 = vmatpush1.bf16.msra.mxu0 %v6868_v57  ;;  %v5997_v57 = vld [vmem:[#allocation5 + $0x7b8] sm:$0xff] }
 0x931   :  { %6871 = vmatprep.subr.bf16.mxu0 %v6870_v47  ;;  %v6906_v33 = vpack.c.bf16 %v5997_v57, %v5995_v10  ;;  %v5994_v47 = vld [vmem:[#allocation5 + $0x7a0] sm:$0xff] }
 0x932   :  { %v6908_v49 = vpack.c.bf16 %v5996_v26, %v5994_v47 }
 0x934   :  { %6873 = vmatpush1.bf16.msra.mxu0 %v6872_v3  ;;  %v6910_v3 = vpack.c.bf16 %v6001_v1, %v5999_v45 }
 0x935   :  { %6875 = vmatprep.subr.bf16.mxu0 %v6874_v27  ;;  %v5998_v27 = vld [vmem:[#allocation5 + $0x7c0] sm:$0xff] }
 0x936   :  { %v6912_v54 = vpack.c.bf16 %v6000_v19, %v5998_v27 }
 0x938   :  { %6877 = vmatpush1.bf16.msra.mxu0 %v6876_v21  ;;  %v5721_v21 = vsel %vm5717_vm11, %v13565_v42, %v13604_v4 }
 0x939   :  { %6879 = vmatprep.subr.bf16.mxu0 %v6878_v44  ;;  %v6914_v44 = vpack.c.bf16 %v6005_v29, %v6003_v63  ;;  %v5748_v53 = vadd.f32 %v5721_v21, %v13535_v9  ;;  %v6015_v9 = vrot.slane %v6006_v36, %v15094_v30 }
 0x93b   :  { %v6047_v22 = vrot.slane %v5748_v53, 7 }
 0x93c   :  { %6881 = vmatpush1.bf16.msra.mxu0 %v6880_v28  ;;  %v6916_v28 = vpack.c.bf16 %v6004_v56, %v6002_v5 }
 0x93d   :  { %6883 = vmatprep.subr.bf16.mxu0 %v6882_v24  ;;  %v5740_v24 = vadd.f32 %v5720_v34, %v13559_v2 }
 0x93f   :  { %v6048_v42 = vsel %vm6035_vm3, %v6047_v22, %v5740_v24 }
 0x940   :  { %6885 = vmatpush1.bf16.msra.mxu0 %v6884_v7 }
 0x941   :  { %6887 = vmatprep.subr.bf16.mxu0 %v6886_v18 }
 0x944   :  { %6889 = vmatpush1.bf16.msra.mxu0 %v6888_v43 }
 0x945   :  { %6891 = vmatprep.subr.bf16.mxu0 %v6890_v48 }
 0x948   :  { %6893 = vmatpush1.bf16.msra.mxu0 %v6892_v52 }
 0x949   :  { %6895 = vmatprep.subr.bf16.mxu0 %v6894_v31 }
 0x94c   :  { %6897 = vmatpush1.bf16.msra.mxu0 %v6896_v41 }
 0x94d   :  { %6899 = vmatprep.subr.bf16.mxu0 %v6898_v39 }
 0x950   :  { %6901 = vmatpush1.bf16.msra.mxu0 %v6900_v40 }
 0x951   :  { %6903 = vmatprep.subr.bf16.mxu0 %v6902_v46 }
 0x954   :  { %6905 = vmatpush1.bf16.msra.mxu0 %v6904_v23 }
 0x955   :  { %6907 = vmatprep.subr.bf16.mxu0 %v6906_v33 }
 0x958   :  { %6909 = vmatpush1.bf16.msra.mxu0 %v6908_v49 }
 0x959   :  { %6911 = vmatprep.subr.bf16.mxu0 %v6910_v3 }
 0x95c   :  { %6913 = vmatpush1.bf16.msra.mxu0 %v6912_v54 }
 0x95d   :  { %6915 = vmatprep.subr.bf16.mxu0 %v6914_v44 }
 0x960   :  { %6917 = vmatpush1.bf16.msra.mxu0 %v6916_v28 }
 0x963   :  { %6337 = vmatmul.mubr.f32.vlgmr.msra.gmra.mrb[0].mxu0 %v6048_v42 }
 0xa01   :  { %v6125_v4 = vpop.f32.mrb[64].mxu1 }
 0xa02   :  { %v6127_v58 = vpop.f32.mrb[65].mxu1  ;;  %v6126_v35 = vadd.f32 %v6125_v4, %v6011_v14 }
 0xa03   :  { %v6128_v55 = vadd.f32 %v6127_v58, %v6015_v9 }
 0xa36   :  { %v6338_v61 = vpop.f32.mrb[0].mxu0 }
 0xa37   :  { %v6919_v7 = vadd.f32 %v6338_v61, %v6126_v35  ;;  %v6340_v2 = vpop.f32.mrb[1].mxu0 }
 0xa38   :  { %v6921_v18 = vadd.f32 %v6340_v2, %v6128_v55 }
 0xa39   :  { %v6343_v16 = vmax.f32 %v6919_v7, 0.0 }
 0xa3a   :  { %v6344_v25 = vmax.f32 %v6921_v18, 0.0 }
 0xa3c   :  { %v6347_v37 = vcombine.low %v6343_v16, %v6344_v25 }
 0xa3e   :  { %6373 = vst.sshfl [vmem:[#allocation7] sm:$0x33 pattern:$0x76325410] %v6347_v37 }
 0xa3f   :  { %7005 = shalt.err (!%p7002_p6)
}
 0xa40   :  { %s7006_s12 = scalar_lea.hbm %s13664_s9, 64 }
 0xa41   :  { %p7007_p7 = scmp.ne.s32.totalorder %s13664_s9, %s7006_s12  ;;  %p7010_p8 = scmp.lt.u32.totalorder %s7006_s12, %s13664_s9 }
 0xa43   :  { %p7012_p9 = pnand %p7010_p8, %p7007_p7 }
 0xa45   :  { %7015 = shalt.err (!%p7012_p9)
}
 0xa46   :  { %6366 = dma.vmem_to_hbm [thread:$0]  %s6364_s22, 64, %s13664_s9, [#allocation4]  }
 0xa47   :  { %7020 = dma.done.wait [#allocation4], 64  }
 0xa48   :  { %7021 = vsyncadd [#allocation4], 4294967232 }
 0xa49   :  { %6370 = vsyncpa [#allocation3], 1 }
 0xa4a   :  { %6371 = vsyncpa [#allocation6], 1 }
 0xa4b   :  { %6372 = vsyncpa [#allocation4], 1 }

</bundles_post_ra>
